<compile_context>
chip_gen: v6e
topology: v6e:2x2x1
jax: 0.10.0
libtpu: 0.0.40
codegen_flags: <defaults>
</compile_context>

<pallas_src>
import math

import jax
import jax.numpy as jnp
from jax.experimental import pallas as pl
from jax.experimental.pallas import tpu as pltpu

NEG_SLOPE = 0.01       # nn.LeakyReLU default negative_slope
BN_EPS = 1e-5
COMPUTE_DTYPE = jnp.bfloat16


# ----------------------------------------------------------------------------
# Fused kernel: (conv3d k=3 p=1 no-bias -> folded BN -> LeakyReLU) x 2
# One grid step processes one full batch element.
# ----------------------------------------------------------------------------
def _double_conv3d_kernel(x_ref, wb1_ref, wb2_ref, sh1_ref, sh2_ref, o_ref,
                          mid_ref, acc1_ref, acc2_ref):
    # x_ref:   ((D+3)*(H+2), W*Cin) bf16  flattened rows, D-padded (1 front, 2 back),
    #                                     H-padded (1,1); W handled by band weights.
    # wb1_ref: (9, W*Cin,  W*Cmid)  bf16  banded-W conv1 weights (BN1 scale folded in)
    # wb2_ref: (9, W*Cmid, W*Cout)  bf16  banded-W conv2 weights (BN2 scale folded in)
    # sh1/sh2: (1, W*Cmid)/(1, W*Cout) f32 folded BN shifts, tiled over W
    # o_ref:   (D, H, W*Cout) f32
    # mid_ref: VMEM ((D+3)*(H+2), W*Cmid) bf16  conv1 activation, same padded layout
    # acc1_ref/acc2_ref: VMEM (D*(H+2), W*Cmid / W*Cout) f32 accumulators
    D, H, _ = o_ref.shape
    Hp = H + 2
    M = D * Hp  # matmul M; rows r = e*Hp + y, valid output rows are y < H

    # ---- conv1: 9 banded MXU matmuls; tap (kz, ky) == row offset kz*Hp + ky ----
    for t in range(9):
        kz, ky = divmod(t, 3)
        contrib = jnp.dot(x_ref[pl.ds(kz * Hp + ky, M), :], wb1_ref[t],
                          preferred_element_type=jnp.float32)
        if t == 0:
            acc1_ref[...] = contrib
        else:
            acc1_ref[...] += contrib

    # ---- conv1 epilogue (BN shift + LeakyReLU) into the zero-padded intermediate ----
    mid_ref[...] = jnp.zeros_like(mid_ref)          # D/H zero borders for conv2
    for e in range(D):
        y = acc1_ref[pl.ds(e * Hp, H), :] + sh1_ref[...]
        y = jnp.maximum(y, NEG_SLOPE * y)
        mid_ref[pl.ds((e + 1) * Hp + 1, H), :] = y.astype(mid_ref.dtype)
    # TODO(synk): nn.Dropout3d is stochastic in train mode; identity (eval mode) here.

    # ---- conv2: 9 banded MXU matmuls over the VMEM-resident conv1 activation ----
    for t in range(9):
        kz, ky = divmod(t, 3)
        contrib = jnp.dot(mid_ref[pl.ds(kz * Hp + ky, M), :], wb2_ref[t],
                          preferred_element_type=jnp.float32)
        if t == 0:
            acc2_ref[...] = contrib
        else:
            acc2_ref[...] += contrib

    # ---- conv2 epilogue + store the valid H rows of every depth slice ----
    for e in range(D):
        y = acc2_ref[pl.ds(e * Hp, H), :] + sh2_ref[...]
        y = jnp.maximum(y, NEG_SLOPE * y)
        o_ref[e] = y.astype(o_ref.dtype)


# ----------------------------------------------------------------------------
# Banded weight construction (trace time, plain JAX):
# band[3*kz+ky][(xi*Cin+ci), (xo*Cout+co)] = w[kz,ky, xi-xo+1, ci, co] if |xi-xo|<=1
# so that `row-slab @ band` performs the kx-convolution (with zero padding) along W.
# ----------------------------------------------------------------------------
def _band_weights(w, bn_scale, W):
    w = w.astype(jnp.float32) * bn_scale.astype(jnp.float32)   # fold BN scale
    Cin, Cout = w.shape[3], w.shape[4]
    xi = jnp.arange(W)[:, None]
    xo = jnp.arange(W)[None, :]
    delta = xi - xo                                             # (W, W)
    valid = (jnp.abs(delta) <= 1).astype(jnp.float32)
    kx = jnp.clip(delta + 1, 0, 2)
    sel = w[:, :, kx, :, :] * valid[None, None, :, :, None, None]   # (3,3,W,W,Cin,Cout)
    band = jnp.transpose(sel, (0, 1, 2, 4, 3, 5)).reshape(9, W * Cin, W * Cout)
    return band.astype(COMPUTE_DTYPE)


# ----------------------------------------------------------------------------
# DoubleConv_3D forward (x is NCDHW like the PyTorch module)
# ----------------------------------------------------------------------------
def double_conv_3d_forward(params, x):
    N, Cin, D, H, W = x.shape
    Cmid = params["conv1_w"].shape[-1]
    Cout = params["conv2_w"].shape[-1]

    # NCDHW -> NDHWC, cast to bf16 BEFORE padding; pad only D (1 front, 2 back: the
    # extra trailing zero slice keeps every tap's M = D*(H+2) row window in-bounds)
    # and H (1,1).  W padding is absorbed by the banded weight matrices.
    xt = jnp.transpose(x, (0, 2, 3, 4, 1)).astype(COMPUTE_DTYPE)
    xp = jnp.pad(xt, ((0, 0), (1, 2), (1, 1), (0, 0), (0, 0)))
    xp = xp.reshape(N, (D + 3) * (H + 2), W * Cin)               # lane-dense rows

    wb1 = _band_weights(params["conv1_w"], params["bn1_scale"], W)   # (9, W*Cin, W*Cmid)
    wb2 = _band_weights(params["conv2_w"], params["bn2_scale"], W)   # (9, W*Cmid, W*Cout)
    sh1 = jnp.tile(params["bn1_shift"].astype(jnp.float32), W)[None, :]
    sh2 = jnp.tile(params["bn2_shift"].astype(jnp.float32), W)[None, :]

    out = pl.pallas_call(
        _double_conv3d_kernel,
        out_shape=jax.ShapeDtypeStruct((N, D, H, W * Cout), jnp.float32),
        grid=(N,),
        in_specs=[
            pl.BlockSpec((None, (D + 3) * (H + 2), W * Cin), lambda n: (n, 0, 0)),
            pl.BlockSpec((9, W * Cin, W * Cmid), lambda n: (0, 0, 0)),
            pl.BlockSpec((9, W * Cmid, W * Cout), lambda n: (0, 0, 0)),
            pl.BlockSpec((1, W * Cmid), lambda n: (0, 0)),
            pl.BlockSpec((1, W * Cout), lambda n: (0, 0)),
        ],
        out_specs=pl.BlockSpec((None, D, H, W * Cout), lambda n: (n, 0, 0, 0)),
        scratch_shapes=[
            pltpu.VMEM(((D + 3) * (H + 2), W * Cmid), COMPUTE_DTYPE),  # conv1 activation
            pltpu.VMEM((D * (H + 2), W * Cmid), jnp.float32),          # conv1 accumulator
            pltpu.VMEM((D * (H + 2), W * Cout), jnp.float32),          # conv2 accumulator
        ],
        compiler_params=pltpu.CompilerParams(
            # One batch element per grid step; "parallel" lets v7x shard the steps
            # across its 2 TensorCores.  For much larger volumes one would add a
            # halo'd D/H tile axis (manual DMA) to bound the VMEM footprint.
            dimension_semantics=("parallel",),
            # Actual footprint ~4 MiB (double-buffered band weights + scratch);
            # 16 MiB leaves headroom and fits v5e/v6e/v7x scoped-VMEM defaults.
            vmem_limit_bytes=16 * 1024 * 1024,
        ),
    )(xp, wb1, wb2, sh1, sh2)

    out = out.reshape(N, D, H, W, Cout)
    return jnp.transpose(out, (0, 4, 1, 2, 3))                   # back to NCDHW


# ----------------------------------------------------------------------------
# Pure-JAX f32 reference for a correctness sanity check.
# ----------------------------------------------------------------------------
def _conv_bn_lrelu_ref(x, w, scale, shift):
    y = jax.lax.conv_general_dilated(
        x, w, window_strides=(1, 1, 1), padding="SAME",
        dimension_numbers=("NDHWC", "DHWIO", "NDHWC"))
    y = y * scale + shift
    return jnp.maximum(y, NEG_SLOPE * y)


def _double_conv_ref(params, x):
    x = jnp.transpose(x, (0, 2, 3, 4, 1))
    h = _conv_bn_lrelu_ref(x, params["conv1_w"], params["bn1_scale"], params["bn1_shift"])
    y = _conv_bn_lrelu_ref(h, params["conv2_w"], params["bn2_scale"], params["bn2_shift"])
    return jnp.transpose(y, (0, 4, 1, 2, 3))


# ----------------------------------------------------------------------------
# Deterministic parameter construction (kernel_size=3, stride=1, dilation=1,
# leaky=True, mid_channels=out_channels — the module defaults).
# ----------------------------------------------------------------------------
def init_params(key, in_channels, out_channels, mid_channels=None):
    if mid_channels is None:
        mid_channels = out_channels
    ks = jax.random.split(key, 10)

    def bn_fold(kg, kb, km, kv, c):
        gamma = jax.random.uniform(kg, (c,), jnp.float32, 0.5, 1.5)
        beta = jax.random.normal(kb, (c,), jnp.float32) * 0.1
        mean = jax.random.normal(km, (c,), jnp.float32) * 0.1
        var = jax.random.uniform(kv, (c,), jnp.float32, 0.5, 1.5)
        scale = gamma / jnp.sqrt(var + BN_EPS)
        shift = beta - mean * scale
        return scale, shift

    bn1_scale, bn1_shift = bn_fold(ks[2], ks[3], ks[4], ks[5], mid_channels)
    bn2_scale, bn2_shift = bn_fold(ks[6], ks[7], ks[8], ks[9], out_channels)

    return {
        # Conv3d weights stored as (kz, ky, kx, Cin, Cout).
        # (PyTorch layout (Cout, Cin, kz, ky, kx) -> transpose(2, 3, 4, 1, 0).)
        "conv1_w": jax.random.normal(ks[0], (3, 3, 3, in_channels, mid_channels),
                                     jnp.float32) * (1.0 / math.sqrt(in_channels * 27)),
        "conv2_w": jax.random.normal(ks[1], (3, 3, 3, mid_channels, out_channels),
                                     jnp.float32) * (1.0 / math.sqrt(mid_channels * 27)),
        "bn1_scale": bn1_scale, "bn1_shift": bn1_shift,
        "bn2_scale": bn2_scale, "bn2_shift": bn2_shift,
    }


if __name__ == "__main__":
    in_channels, out_channels = 8, 16
    B, D, H, W = 2, 8, 16, 16

    key = jax.random.PRNGKey(0)
    kp, kx = jax.random.split(key)
    params = init_params(kp, in_channels, out_channels)

    # PyTorch-convention NCDHW input.
    x = jax.random.normal(kx, (B, in_channels, D, H, W), jnp.float32)

    out = jax.jit(double_conv_3d_forward)(params, x)
    out = jax.block_until_ready(out)

    assert out.shape == (B, out_channels, D, H, W), out.shape
    assert bool(jnp.all(jnp.isfinite(out)))

    # Sanity-check against a pure-JAX f32 reference (bf16 MXU inputs -> loose tol).
    ref = jax.jit(_double_conv_ref)(params, x)
    ref = jax.block_until_ready(ref)
    rel_err = jnp.max(jnp.abs(out - ref)) / (jnp.max(jnp.abs(ref)) + 1e-6)
    assert float(rel_err) < 5e-2, float(rel_err)

    print("KERNEL_OK")
</pallas_src>

<mosaic_0001>
module attributes {stable_mosaic.version = 11 : i64} {
  func.func @_double_conv3d_kernel(%arg0: i32, %arg1: memref<1x198x128xbf16, #tpu.memory_space<vmem>>, %arg2: memref<9x128x256xbf16, #tpu.memory_space<vmem>>, %arg3: memref<9x256x256xbf16, #tpu.memory_space<vmem>>, %arg4: memref<1x256xf32, #tpu.memory_space<vmem>>, %arg5: memref<1x256xf32, #tpu.memory_space<vmem>>, %arg6: memref<1x8x16x256xf32, #tpu.memory_space<vmem>>, %arg7: memref<198x256xbf16, #tpu.memory_space<vmem>>, %arg8: memref<144x256xf32, #tpu.memory_space<vmem>>, %arg9: memref<144x256xf32, #tpu.memory_space<vmem>>) attributes {dimension_semantics = [#tpu.dimension_semantics<parallel>], iteration_bounds = array<i64: 2>, scalar_prefetch = 0 : i64, scratch_operands = 3 : i64, tpu.core_type = #tpu.core_type<tc>, window_params = [{transform_indices = @transform_0, window_bounds = array<i64: 1, 198, 128>}, {pipeline_mode = #tpu.pipeline_mode<synchronous>, transform_indices = @transform_1, window_bounds = array<i64: 9, 128, 256>}, {pipeline_mode = #tpu.pipeline_mode<synchronous>, transform_indices = @transform_2, window_bounds = array<i64: 9, 256, 256>}, {pipeline_mode = #tpu.pipeline_mode<synchronous>, transform_indices = @transform_3, window_bounds = array<i64: 1, 256>}, {pipeline_mode = #tpu.pipeline_mode<synchronous>, transform_indices = @transform_4, window_bounds = array<i64: 1, 256>}, {transform_indices = @transform_5, window_bounds = array<i64: 1, 8, 16, 256>}]} {
    %c0 = arith.constant 0 : index
    %c0_0 = arith.constant 0 : index
    %c0_1 = arith.constant 0 : index
    %0 = vector.load %arg1[%c0, %c0_0, %c0_1] : memref<1x198x128xbf16, #tpu.memory_space<vmem>>, vector<1x144x128xbf16>
    %1 = vector.shape_cast %0 : vector<1x144x128xbf16> to vector<144x128xbf16>
    %c0_2 = arith.constant 0 : index
    %c0_3 = arith.constant 0 : index
    %c0_4 = arith.constant 0 : index
    %2 = vector.load %arg2[%c0_2, %c0_3, %c0_4] : memref<9x128x256xbf16, #tpu.memory_space<vmem>>, vector<1x128x256xbf16>
    %3 = vector.shape_cast %2 : vector<1x128x256xbf16> to vector<128x256xbf16>
    %cst = arith.constant dense<0.000000e+00> : vector<144x256xf32>
    %4 = tpu.matmul %1, %3, %cst {dimension_numbers = #tpu.dot_dimension_numbers<[1], [0], [0], [1], [0, 0, 1, 1], [], []>} : vector<144x128xbf16>, vector<128x256xbf16>, vector<144x256xf32> -> vector<144x256xf32>
    %c0_5 = arith.constant 0 : index
    %c0_6 = arith.constant 0 : index
    %5 = vector.load %arg8[%c0_5, %c0_6] : memref<144x256xf32, #tpu.memory_space<vmem>>, vector<144x256xf32>
    tpu.vector_store %arg8[%c0_5, %c0_6], %4 {strides = array<i32>} : memref<144x256xf32, #tpu.memory_space<vmem>>, vector<144x256xf32>,
    %c0_7 = arith.constant 0 : index
    %c1 = arith.constant 1 : index
    %c0_8 = arith.constant 0 : index
    %6 = vector.load %arg1[%c0_7, %c1, %c0_8] : memref<1x198x128xbf16, #tpu.memory_space<vmem>>, vector<1x144x128xbf16>
    %7 = vector.shape_cast %6 : vector<1x144x128xbf16> to vector<144x128xbf16>
    %c1_9 = arith.constant 1 : index
    %c0_10 = arith.constant 0 : index
    %c0_11 = arith.constant 0 : index
    %8 = vector.load %arg2[%c1_9, %c0_10, %c0_11] : memref<9x128x256xbf16, #tpu.memory_space<vmem>>, vector<1x128x256xbf16>
    %9 = vector.shape_cast %8 : vector<1x128x256xbf16> to vector<128x256xbf16>
    %cst_12 = arith.constant dense<0.000000e+00> : vector<144x256xf32>
    %10 = tpu.matmul %7, %9, %cst_12 {dimension_numbers = #tpu.dot_dimension_numbers<[1], [0], [0], [1], [0, 0, 1, 1], [], []>} : vector<144x128xbf16>, vector<128x256xbf16>, vector<144x256xf32> -> vector<144x256xf32>
    %c0_13 = arith.constant 0 : index
    %c0_14 = arith.constant 0 : index
    %11 = vector.load %arg8[%c0_13, %c0_14] : memref<144x256xf32, #tpu.memory_space<vmem>>, vector<144x256xf32>
    %12 = arith.addf %11, %10 : vector<144x256xf32>
    %c0_15 = arith.constant 0 : index
    %c0_16 = arith.constant 0 : index
    %13 = vector.load %arg8[%c0_15, %c0_16] : memref<144x256xf32, #tpu.memory_space<vmem>>, vector<144x256xf32>
    tpu.vector_store %arg8[%c0_15, %c0_16], %12 {strides = array<i32>} : memref<144x256xf32, #tpu.memory_space<vmem>>, vector<144x256xf32>,
    %c0_17 = arith.constant 0 : index
    %c2 = arith.constant 2 : index
    %c0_18 = arith.constant 0 : index
    %14 = vector.load %arg1[%c0_17, %c2, %c0_18] : memref<1x198x128xbf16, #tpu.memory_space<vmem>>, vector<1x144x128xbf16>
    %15 = vector.shape_cast %14 : vector<1x144x128xbf16> to vector<144x128xbf16>
    %c2_19 = arith.constant 2 : index
    %c0_20 = arith.constant 0 : index
    %c0_21 = arith.constant 0 : index
    %16 = vector.load %arg2[%c2_19, %c0_20, %c0_21] : memref<9x128x256xbf16, #tpu.memory_space<vmem>>, vector<1x128x256xbf16>
    %17 = vector.shape_cast %16 : vector<1x128x256xbf16> to vector<128x256xbf16>
    %cst_22 = arith.constant dense<0.000000e+00> : vector<144x256xf32>
    %18 = tpu.matmul %15, %17, %cst_22 {dimension_numbers = #tpu.dot_dimension_numbers<[1], [0], [0], [1], [0, 0, 1, 1], [], []>} : vector<144x128xbf16>, vector<128x256xbf16>, vector<144x256xf32> -> vector<144x256xf32>
    %c0_23 = arith.constant 0 : index
    %c0_24 = arith.constant 0 : index
    %19 = vector.load %arg8[%c0_23, %c0_24] : memref<144x256xf32, #tpu.memory_space<vmem>>, vector<144x256xf32>
    %20 = arith.addf %19, %18 : vector<144x256xf32>
    %c0_25 = arith.constant 0 : index
    %c0_26 = arith.constant 0 : index
    %21 = vector.load %arg8[%c0_25, %c0_26] : memref<144x256xf32, #tpu.memory_space<vmem>>, vector<144x256xf32>
    tpu.vector_store %arg8[%c0_25, %c0_26], %20 {strides = array<i32>} : memref<144x256xf32, #tpu.memory_space<vmem>>, vector<144x256xf32>,
    %c0_27 = arith.constant 0 : index
    %c18 = arith.constant 18 : index
    %c0_28 = arith.constant 0 : index
    %22 = vector.load %arg1[%c0_27, %c18, %c0_28] : memref<1x198x128xbf16, #tpu.memory_space<vmem>>, vector<1x144x128xbf16>
    %23 = vector.shape_cast %22 : vector<1x144x128xbf16> to vector<144x128xbf16>
    %c3 = arith.constant 3 : index
    %c0_29 = arith.constant 0 : index
    %c0_30 = arith.constant 0 : index
    %24 = vector.load %arg2[%c3, %c0_29, %c0_30] : memref<9x128x256xbf16, #tpu.memory_space<vmem>>, vector<1x128x256xbf16>
    %25 = vector.shape_cast %24 : vector<1x128x256xbf16> to vector<128x256xbf16>
    %cst_31 = arith.constant dense<0.000000e+00> : vector<144x256xf32>
    %26 = tpu.matmul %23, %25, %cst_31 {dimension_numbers = #tpu.dot_dimension_numbers<[1], [0], [0], [1], [0, 0, 1, 1], [], []>} : vector<144x128xbf16>, vector<128x256xbf16>, vector<144x256xf32> -> vector<144x256xf32>
    %c0_32 = arith.constant 0 : index
    %c0_33 = arith.constant 0 : index
    %27 = vector.load %arg8[%c0_32, %c0_33] : memref<144x256xf32, #tpu.memory_space<vmem>>, vector<144x256xf32>
    %28 = arith.addf %27, %26 : vector<144x256xf32>
    %c0_34 = arith.constant 0 : index
    %c0_35 = arith.constant 0 : index
    %29 = vector.load %arg8[%c0_34, %c0_35] : memref<144x256xf32, #tpu.memory_space<vmem>>, vector<144x256xf32>
    tpu.vector_store %arg8[%c0_34, %c0_35], %28 {strides = array<i32>} : memref<144x256xf32, #tpu.memory_space<vmem>>, vector<144x256xf32>,
    %c0_36 = arith.constant 0 : index
    %c19 = arith.constant 19 : index
    %c0_37 = arith.constant 0 : index
    %30 = vector.load %arg1[%c0_36, %c19, %c0_37] : memref<1x198x128xbf16, #tpu.memory_space<vmem>>, vector<1x144x128xbf16>
    %31 = vector.shape_cast %30 : vector<1x144x128xbf16> to vector<144x128xbf16>
    %c4 = arith.constant 4 : index
    %c0_38 = arith.constant 0 : index
    %c0_39 = arith.constant 0 : index
    %32 = vector.load %arg2[%c4, %c0_38, %c0_39] : memref<9x128x256xbf16, #tpu.memory_space<vmem>>, vector<1x128x256xbf16>
    %33 = vector.shape_cast %32 : vector<1x128x256xbf16> to vector<128x256xbf16>
    %cst_40 = arith.constant dense<0.000000e+00> : vector<144x256xf32>
    %34 = tpu.matmul %31, %33, %cst_40 {dimension_numbers = #tpu.dot_dimension_numbers<[1], [0], [0], [1], [0, 0, 1, 1], [], []>} : vector<144x128xbf16>, vector<128x256xbf16>, vector<144x256xf32> -> vector<144x256xf32>
    %c0_41 = arith.constant 0 : index
    %c0_42 = arith.constant 0 : index
    %35 = vector.load %arg8[%c0_41, %c0_42] : memref<144x256xf32, #tpu.memory_space<vmem>>, vector<144x256xf32>
    %36 = arith.addf %35, %34 : vector<144x256xf32>
    %c0_43 = arith.constant 0 : index
    %c0_44 = arith.constant 0 : index
    %37 = vector.load %arg8[%c0_43, %c0_44] : memref<144x256xf32, #tpu.memory_space<vmem>>, vector<144x256xf32>
    tpu.vector_store %arg8[%c0_43, %c0_44], %36 {strides = array<i32>} : memref<144x256xf32, #tpu.memory_space<vmem>>, vector<144x256xf32>,
    %c0_45 = arith.constant 0 : index
    %c20 = arith.constant 20 : index
    %c0_46 = arith.constant 0 : index
    %38 = vector.load %arg1[%c0_45, %c20, %c0_46] : memref<1x198x128xbf16, #tpu.memory_space<vmem>>, vector<1x144x128xbf16>
    %39 = vector.shape_cast %38 : vector<1x144x128xbf16> to vector<144x128xbf16>
    %c5 = arith.constant 5 : index
    %c0_47 = arith.constant 0 : index
    %c0_48 = arith.constant 0 : index
    %40 = vector.load %arg2[%c5, %c0_47, %c0_48] : memref<9x128x256xbf16, #tpu.memory_space<vmem>>, vector<1x128x256xbf16>
    %41 = vector.shape_cast %40 : vector<1x128x256xbf16> to vector<128x256xbf16>
    %cst_49 = arith.constant dense<0.000000e+00> : vector<144x256xf32>
    %42 = tpu.matmul %39, %41, %cst_49 {dimension_numbers = #tpu.dot_dimension_numbers<[1], [0], [0], [1], [0, 0, 1, 1], [], []>} : vector<144x128xbf16>, vector<128x256xbf16>, vector<144x256xf32> -> vector<144x256xf32>
    %c0_50 = arith.constant 0 : index
    %c0_51 = arith.constant 0 : index
    %43 = vector.load %arg8[%c0_50, %c0_51] : memref<144x256xf32, #tpu.memory_space<vmem>>, vector<144x256xf32>
    %44 = arith.addf %43, %42 : vector<144x256xf32>
    %c0_52 = arith.constant 0 : index
    %c0_53 = arith.constant 0 : index
    %45 = vector.load %arg8[%c0_52, %c0_53] : memref<144x256xf32, #tpu.memory_space<vmem>>, vector<144x256xf32>
    tpu.vector_store %arg8[%c0_52, %c0_53], %44 {strides = array<i32>} : memref<144x256xf32, #tpu.memory_space<vmem>>, vector<144x256xf32>,
    %c0_54 = arith.constant 0 : index
    %c36 = arith.constant 36 : index
    %c0_55 = arith.constant 0 : index
    %46 = vector.load %arg1[%c0_54, %c36, %c0_55] : memref<1x198x128xbf16, #tpu.memory_space<vmem>>, vector<1x144x128xbf16>
    %47 = vector.shape_cast %46 : vector<1x144x128xbf16> to vector<144x128xbf16>
    %c6 = arith.constant 6 : index
    %c0_56 = arith.constant 0 : index
    %c0_57 = arith.constant 0 : index
    %48 = vector.load %arg2[%c6, %c0_56, %c0_57] : memref<9x128x256xbf16, #tpu.memory_space<vmem>>, vector<1x128x256xbf16>
    %49 = vector.shape_cast %48 : vector<1x128x256xbf16> to vector<128x256xbf16>
    %cst_58 = arith.constant dense<0.000000e+00> : vector<144x256xf32>
    %50 = tpu.matmul %47, %49, %cst_58 {dimension_numbers = #tpu.dot_dimension_numbers<[1], [0], [0], [1], [0, 0, 1, 1], [], []>} : vector<144x128xbf16>, vector<128x256xbf16>, vector<144x256xf32> -> vector<144x256xf32>
    %c0_59 = arith.constant 0 : index
    %c0_60 = arith.constant 0 : index
    %51 = vector.load %arg8[%c0_59, %c0_60] : memref<144x256xf32, #tpu.memory_space<vmem>>, vector<144x256xf32>
    %52 = arith.addf %51, %50 : vector<144x256xf32>
    %c0_61 = arith.constant 0 : index
    %c0_62 = arith.constant 0 : index
    %53 = vector.load %arg8[%c0_61, %c0_62] : memref<144x256xf32, #tpu.memory_space<vmem>>, vector<144x256xf32>
    tpu.vector_store %arg8[%c0_61, %c0_62], %52 {strides = array<i32>} : memref<144x256xf32, #tpu.memory_space<vmem>>, vector<144x256xf32>,
    %c0_63 = arith.constant 0 : index
    %c37 = arith.constant 37 : index
    %c0_64 = arith.constant 0 : index
    %54 = vector.load %arg1[%c0_63, %c37, %c0_64] : memref<1x198x128xbf16, #tpu.memory_space<vmem>>, vector<1x144x128xbf16>
    %55 = vector.shape_cast %54 : vector<1x144x128xbf16> to vector<144x128xbf16>
    %c7 = arith.constant 7 : index
    %c0_65 = arith.constant 0 : index
    %c0_66 = arith.constant 0 : index
    %56 = vector.load %arg2[%c7, %c0_65, %c0_66] : memref<9x128x256xbf16, #tpu.memory_space<vmem>>, vector<1x128x256xbf16>
    %57 = vector.shape_cast %56 : vector<1x128x256xbf16> to vector<128x256xbf16>
    %cst_67 = arith.constant dense<0.000000e+00> : vector<144x256xf32>
    %58 = tpu.matmul %55, %57, %cst_67 {dimension_numbers = #tpu.dot_dimension_numbers<[1], [0], [0], [1], [0, 0, 1, 1], [], []>} : vector<144x128xbf16>, vector<128x256xbf16>, vector<144x256xf32> -> vector<144x256xf32>
    %c0_68 = arith.constant 0 : index
    %c0_69 = arith.constant 0 : index
    %59 = vector.load %arg8[%c0_68, %c0_69] : memref<144x256xf32, #tpu.memory_space<vmem>>, vector<144x256xf32>
    %60 = arith.addf %59, %58 : vector<144x256xf32>
    %c0_70 = arith.constant 0 : index
    %c0_71 = arith.constant 0 : index
    %61 = vector.load %arg8[%c0_70, %c0_71] : memref<144x256xf32, #tpu.memory_space<vmem>>, vector<144x256xf32>
    tpu.vector_store %arg8[%c0_70, %c0_71], %60 {strides = array<i32>} : memref<144x256xf32, #tpu.memory_space<vmem>>, vector<144x256xf32>,
    %c0_72 = arith.constant 0 : index
    %c38 = arith.constant 38 : index
    %c0_73 = arith.constant 0 : index
    %62 = vector.load %arg1[%c0_72, %c38, %c0_73] : memref<1x198x128xbf16, #tpu.memory_space<vmem>>, vector<1x144x128xbf16>
    %63 = vector.shape_cast %62 : vector<1x144x128xbf16> to vector<144x128xbf16>
    %c8 = arith.constant 8 : index
    %c0_74 = arith.constant 0 : index
    %c0_75 = arith.constant 0 : index
    %64 = vector.load %arg2[%c8, %c0_74, %c0_75] : memref<9x128x256xbf16, #tpu.memory_space<vmem>>, vector<1x128x256xbf16>
    %65 = vector.shape_cast %64 : vector<1x128x256xbf16> to vector<128x256xbf16>
    %cst_76 = arith.constant dense<0.000000e+00> : vector<144x256xf32>
    %66 = tpu.matmul %63, %65, %cst_76 {dimension_numbers = #tpu.dot_dimension_numbers<[1], [0], [0], [1], [0, 0, 1, 1], [], []>} : vector<144x128xbf16>, vector<128x256xbf16>, vector<144x256xf32> -> vector<144x256xf32>
    %c0_77 = arith.constant 0 : index
    %c0_78 = arith.constant 0 : index
    %67 = vector.load %arg8[%c0_77, %c0_78] : memref<144x256xf32, #tpu.memory_space<vmem>>, vector<144x256xf32>
    %68 = arith.addf %67, %66 : vector<144x256xf32>
    %c0_79 = arith.constant 0 : index
    %c0_80 = arith.constant 0 : index
    %69 = vector.load %arg8[%c0_79, %c0_80] : memref<144x256xf32, #tpu.memory_space<vmem>>, vector<144x256xf32>
    tpu.vector_store %arg8[%c0_79, %c0_80], %68 {strides = array<i32>} : memref<144x256xf32, #tpu.memory_space<vmem>>, vector<144x256xf32>,
    %cst_81 = arith.constant 0.000000e+00 : bf16
    %70 = vector.broadcast %cst_81 : bf16 to vector<198x256xbf16>
    %c0_82 = arith.constant 0 : index
    %c0_83 = arith.constant 0 : index
    %71 = vector.load %arg7[%c0_82, %c0_83] : memref<198x256xbf16, #tpu.memory_space<vmem>>, vector<198x256xbf16>
    tpu.vector_store %arg7[%c0_82, %c0_83], %70 {strides = array<i32>} : memref<198x256xbf16, #tpu.memory_space<vmem>>, vector<198x256xbf16>,
    %c0_84 = arith.constant 0 : index
    %c0_85 = arith.constant 0 : index
    %72 = vector.load %arg8[%c0_84, %c0_85] : memref<144x256xf32, #tpu.memory_space<vmem>>, vector<16x256xf32>
    %c0_86 = arith.constant 0 : index
    %c0_87 = arith.constant 0 : index
    %73 = vector.load %arg4[%c0_86, %c0_87] : memref<1x256xf32, #tpu.memory_space<vmem>>, vector<1x256xf32>
    %74 = vector.broadcast %73 : vector<1x256xf32> to vector<16x256xf32>
    %75 = arith.addf %72, %74 : vector<16x256xf32>
    %cst_88 = arith.constant 0.00999999977 : f32
    %76 = vector.broadcast %cst_88 : f32 to vector<16x256xf32>
    %77 = arith.mulf %76, %75 : vector<16x256xf32>
    %78 = arith.maximumf %75, %77 : vector<16x256xf32>
    %79 = arith.truncf %78 : vector<16x256xf32> to vector<16x256xbf16>
    %c19_89 = arith.constant 19 : index
    %c0_90 = arith.constant 0 : index
    %80 = vector.load %arg7[%c19_89, %c0_90] : memref<198x256xbf16, #tpu.memory_space<vmem>>, vector<16x256xbf16>
    tpu.vector_store %arg7[%c19_89, %c0_90], %79 {strides = array<i32>} : memref<198x256xbf16, #tpu.memory_space<vmem>>, vector<16x256xbf16>,
    %c18_91 = arith.constant 18 : index
    %c0_92 = arith.constant 0 : index
    %81 = vector.load %arg8[%c18_91, %c0_92] : memref<144x256xf32, #tpu.memory_space<vmem>>, vector<16x256xf32>
    %c0_93 = arith.constant 0 : index
    %c0_94 = arith.constant 0 : index
    %82 = vector.load %arg4[%c0_93, %c0_94] : memref<1x256xf32, #tpu.memory_space<vmem>>, vector<1x256xf32>
    %83 = vector.broadcast %82 : vector<1x256xf32> to vector<16x256xf32>
    %84 = arith.addf %81, %83 : vector<16x256xf32>
    %cst_95 = arith.constant 0.00999999977 : f32
    %85 = vector.broadcast %cst_95 : f32 to vector<16x256xf32>
    %86 = arith.mulf %85, %84 : vector<16x256xf32>
    %87 = arith.maximumf %84, %86 : vector<16x256xf32>
    %88 = arith.truncf %87 : vector<16x256xf32> to vector<16x256xbf16>
    %c37_96 = arith.constant 37 : index
    %c0_97 = arith.constant 0 : index
    %89 = vector.load %arg7[%c37_96, %c0_97] : memref<198x256xbf16, #tpu.memory_space<vmem>>, vector<16x256xbf16>
    tpu.vector_store %arg7[%c37_96, %c0_97], %88 {strides = array<i32>} : memref<198x256xbf16, #tpu.memory_space<vmem>>, vector<16x256xbf16>,
    %c36_98 = arith.constant 36 : index
    %c0_99 = arith.constant 0 : index
    %90 = vector.load %arg8[%c36_98, %c0_99] : memref<144x256xf32, #tpu.memory_space<vmem>>, vector<16x256xf32>
    %c0_100 = arith.constant 0 : index
    %c0_101 = arith.constant 0 : index
    %91 = vector.load %arg4[%c0_100, %c0_101] : memref<1x256xf32, #tpu.memory_space<vmem>>, vector<1x256xf32>
    %92 = vector.broadcast %91 : vector<1x256xf32> to vector<16x256xf32>
    %93 = arith.addf %90, %92 : vector<16x256xf32>
    %cst_102 = arith.constant 0.00999999977 : f32
    %94 = vector.broadcast %cst_102 : f32 to vector<16x256xf32>
    %95 = arith.mulf %94, %93 : vector<16x256xf32>
    %96 = arith.maximumf %93, %95 : vector<16x256xf32>
    %97 = arith.truncf %96 : vector<16x256xf32> to vector<16x256xbf16>
    %c55 = arith.constant 55 : index
    %c0_103 = arith.constant 0 : index
    %98 = vector.load %arg7[%c55, %c0_103] : memref<198x256xbf16, #tpu.memory_space<vmem>>, vector<16x256xbf16>
    tpu.vector_store %arg7[%c55, %c0_103], %97 {strides = array<i32>} : memref<198x256xbf16, #tpu.memory_space<vmem>>, vector<16x256xbf16>,
    %c54 = arith.constant 54 : index
    %c0_104 = arith.constant 0 : index
    %99 = vector.load %arg8[%c54, %c0_104] : memref<144x256xf32, #tpu.memory_space<vmem>>, vector<16x256xf32>
    %c0_105 = arith.constant 0 : index
    %c0_106 = arith.constant 0 : index
    %100 = vector.load %arg4[%c0_105, %c0_106] : memref<1x256xf32, #tpu.memory_space<vmem>>, vector<1x256xf32>
    %101 = vector.broadcast %100 : vector<1x256xf32> to vector<16x256xf32>
    %102 = arith.addf %99, %101 : vector<16x256xf32>
    %cst_107 = arith.constant 0.00999999977 : f32
    %103 = vector.broadcast %cst_107 : f32 to vector<16x256xf32>
    %104 = arith.mulf %103, %102 : vector<16x256xf32>
    %105 = arith.maximumf %102, %104 : vector<16x256xf32>
    %106 = arith.truncf %105 : vector<16x256xf32> to vector<16x256xbf16>
    %c73 = arith.constant 73 : index
    %c0_108 = arith.constant 0 : index
    %107 = vector.load %arg7[%c73, %c0_108] : memref<198x256xbf16, #tpu.memory_space<vmem>>, vector<16x256xbf16>
    tpu.vector_store %arg7[%c73, %c0_108], %106 {strides = array<i32>} : memref<198x256xbf16, #tpu.memory_space<vmem>>, vector<16x256xbf16>,
    %c72 = arith.constant 72 : index
    %c0_109 = arith.constant 0 : index
    %108 = vector.load %arg8[%c72, %c0_109] : memref<144x256xf32, #tpu.memory_space<vmem>>, vector<16x256xf32>
    %c0_110 = arith.constant 0 : index
    %c0_111 = arith.constant 0 : index
    %109 = vector.load %arg4[%c0_110, %c0_111] : memref<1x256xf32, #tpu.memory_space<vmem>>, vector<1x256xf32>
    %110 = vector.broadcast %109 : vector<1x256xf32> to vector<16x256xf32>
    %111 = arith.addf %108, %110 : vector<16x256xf32>
    %cst_112 = arith.constant 0.00999999977 : f32
    %112 = vector.broadcast %cst_112 : f32 to vector<16x256xf32>
    %113 = arith.mulf %112, %111 : vector<16x256xf32>
    %114 = arith.maximumf %111, %113 : vector<16x256xf32>
    %115 = arith.truncf %114 : vector<16x256xf32> to vector<16x256xbf16>
    %c91 = arith.constant 91 : index
    %c0_113 = arith.constant 0 : index
    %116 = vector.load %arg7[%c91, %c0_113] : memref<198x256xbf16, #tpu.memory_space<vmem>>, vector<16x256xbf16>
    tpu.vector_store %arg7[%c91, %c0_113], %115 {strides = array<i32>} : memref<198x256xbf16, #tpu.memory_space<vmem>>, vector<16x256xbf16>,
    %c90 = arith.constant 90 : index
    %c0_114 = arith.constant 0 : index
    %117 = vector.load %arg8[%c90, %c0_114] : memref<144x256xf32, #tpu.memory_space<vmem>>, vector<16x256xf32>
    %c0_115 = arith.constant 0 : index
    %c0_116 = arith.constant 0 : index
    %118 = vector.load %arg4[%c0_115, %c0_116] : memref<1x256xf32, #tpu.memory_space<vmem>>, vector<1x256xf32>
    %119 = vector.broadcast %118 : vector<1x256xf32> to vector<16x256xf32>
    %120 = arith.addf %117, %119 : vector<16x256xf32>
    %cst_117 = arith.constant 0.00999999977 : f32
    %121 = vector.broadcast %cst_117 : f32 to vector<16x256xf32>
    %122 = arith.mulf %121, %120 : vector<16x256xf32>
    %123 = arith.maximumf %120, %122 : vector<16x256xf32>
    %124 = arith.truncf %123 : vector<16x256xf32> to vector<16x256xbf16>
    %c109 = arith.constant 109 : index
    %c0_118 = arith.constant 0 : index
    %125 = vector.load %arg7[%c109, %c0_118] : memref<198x256xbf16, #tpu.memory_space<vmem>>, vector<16x256xbf16>
    tpu.vector_store %arg7[%c109, %c0_118], %124 {strides = array<i32>} : memref<198x256xbf16, #tpu.memory_space<vmem>>, vector<16x256xbf16>,
    %c108 = arith.constant 108 : index
    %c0_119 = arith.constant 0 : index
    %126 = vector.load %arg8[%c108, %c0_119] : memref<144x256xf32, #tpu.memory_space<vmem>>, vector<16x256xf32>
    %c0_120 = arith.constant 0 : index
    %c0_121 = arith.constant 0 : index
    %127 = vector.load %arg4[%c0_120, %c0_121] : memref<1x256xf32, #tpu.memory_space<vmem>>, vector<1x256xf32>
    %128 = vector.broadcast %127 : vector<1x256xf32> to vector<16x256xf32>
    %129 = arith.addf %126, %128 : vector<16x256xf32>
    %cst_122 = arith.constant 0.00999999977 : f32
    %130 = vector.broadcast %cst_122 : f32 to vector<16x256xf32>
    %131 = arith.mulf %130, %129 : vector<16x256xf32>
    %132 = arith.maximumf %129, %131 : vector<16x256xf32>
    %133 = arith.truncf %132 : vector<16x256xf32> to vector<16x256xbf16>
    %c127 = arith.constant 127 : index
    %c0_123 = arith.constant 0 : index
    %134 = vector.load %arg7[%c127, %c0_123] : memref<198x256xbf16, #tpu.memory_space<vmem>>, vector<16x256xbf16>
    tpu.vector_store %arg7[%c127, %c0_123], %133 {strides = array<i32>} : memref<198x256xbf16, #tpu.memory_space<vmem>>, vector<16x256xbf16>,
    %c126 = arith.constant 126 : index
    %c0_124 = arith.constant 0 : index
    %135 = vector.load %arg8[%c126, %c0_124] : memref<144x256xf32, #tpu.memory_space<vmem>>, vector<16x256xf32>
    %c0_125 = arith.constant 0 : index
    %c0_126 = arith.constant 0 : index
    %136 = vector.load %arg4[%c0_125, %c0_126] : memref<1x256xf32, #tpu.memory_space<vmem>>, vector<1x256xf32>
    %137 = vector.broadcast %136 : vector<1x256xf32> to vector<16x256xf32>
    %138 = arith.addf %135, %137 : vector<16x256xf32>
    %cst_127 = arith.constant 0.00999999977 : f32
    %139 = vector.broadcast %cst_127 : f32 to vector<16x256xf32>
    %140 = arith.mulf %139, %138 : vector<16x256xf32>
    %141 = arith.maximumf %138, %140 : vector<16x256xf32>
    %142 = arith.truncf %141 : vector<16x256xf32> to vector<16x256xbf16>
    %c145 = arith.constant 145 : index
    %c0_128 = arith.constant 0 : index
    %143 = vector.load %arg7[%c145, %c0_128] : memref<198x256xbf16, #tpu.memory_space<vmem>>, vector<16x256xbf16>
    tpu.vector_store %arg7[%c145, %c0_128], %142 {strides = array<i32>} : memref<198x256xbf16, #tpu.memory_space<vmem>>, vector<16x256xbf16>,
    %c0_129 = arith.constant 0 : index
    %c0_130 = arith.constant 0 : index
    %144 = vector.load %arg7[%c0_129, %c0_130] : memref<198x256xbf16, #tpu.memory_space<vmem>>, vector<144x256xbf16>
    %c0_131 = arith.constant 0 : index
    %c0_132 = arith.constant 0 : index
    %c0_133 = arith.constant 0 : index
    %145 = vector.load %arg3[%c0_131, %c0_132, %c0_133] : memref<9x256x256xbf16, #tpu.memory_space<vmem>>, vector<1x256x256xbf16>
    %146 = vector.shape_cast %145 : vector<1x256x256xbf16> to vector<256x256xbf16>
    %cst_134 = arith.constant dense<0.000000e+00> : vector<144x256xf32>
    %147 = tpu.matmul %144, %146, %cst_134 {dimension_numbers = #tpu.dot_dimension_numbers<[1], [0], [0], [1], [0, 0, 1, 1], [], []>} : vector<144x256xbf16>, vector<256x256xbf16>, vector<144x256xf32> -> vector<144x256xf32>
    %c0_135 = arith.constant 0 : index
    %c0_136 = arith.constant 0 : index
    %148 = vector.load %arg9[%c0_135, %c0_136] : memref<144x256xf32, #tpu.memory_space<vmem>>, vector<144x256xf32>
    tpu.vector_store %arg9[%c0_135, %c0_136], %147 {strides = array<i32>} : memref<144x256xf32, #tpu.memory_space<vmem>>, vector<144x256xf32>,
    %c1_137 = arith.constant 1 : index
    %c0_138 = arith.constant 0 : index
    %149 = vector.load %arg7[%c1_137, %c0_138] : memref<198x256xbf16, #tpu.memory_space<vmem>>, vector<144x256xbf16>
    %c1_139 = arith.constant 1 : index
    %c0_140 = arith.constant 0 : index
    %c0_141 = arith.constant 0 : index
    %150 = vector.load %arg3[%c1_139, %c0_140, %c0_141] : memref<9x256x256xbf16, #tpu.memory_space<vmem>>, vector<1x256x256xbf16>
    %151 = vector.shape_cast %150 : vector<1x256x256xbf16> to vector<256x256xbf16>
    %cst_142 = arith.constant dense<0.000000e+00> : vector<144x256xf32>
    %152 = tpu.matmul %149, %151, %cst_142 {dimension_numbers = #tpu.dot_dimension_numbers<[1], [0], [0], [1], [0, 0, 1, 1], [], []>} : vector<144x256xbf16>, vector<256x256xbf16>, vector<144x256xf32> -> vector<144x256xf32>
    %c0_143 = arith.constant 0 : index
    %c0_144 = arith.constant 0 : index
    %153 = vector.load %arg9[%c0_143, %c0_144] : memref<144x256xf32, #tpu.memory_space<vmem>>, vector<144x256xf32>
    %154 = arith.addf %153, %152 : vector<144x256xf32>
    %c0_145 = arith.constant 0 : index
    %c0_146 = arith.constant 0 : index
    %155 = vector.load %arg9[%c0_145, %c0_146] : memref<144x256xf32, #tpu.memory_space<vmem>>, vector<144x256xf32>
    tpu.vector_store %arg9[%c0_145, %c0_146], %154 {strides = array<i32>} : memref<144x256xf32, #tpu.memory_space<vmem>>, vector<144x256xf32>,
    %c2_147 = arith.constant 2 : index
    %c0_148 = arith.constant 0 : index
    %156 = vector.load %arg7[%c2_147, %c0_148] : memref<198x256xbf16, #tpu.memory_space<vmem>>, vector<144x256xbf16>
    %c2_149 = arith.constant 2 : index
    %c0_150 = arith.constant 0 : index
    %c0_151 = arith.constant 0 : index
    %157 = vector.load %arg3[%c2_149, %c0_150, %c0_151] : memref<9x256x256xbf16, #tpu.memory_space<vmem>>, vector<1x256x256xbf16>
    %158 = vector.shape_cast %157 : vector<1x256x256xbf16> to vector<256x256xbf16>
    %cst_152 = arith.constant dense<0.000000e+00> : vector<144x256xf32>
    %159 = tpu.matmul %156, %158, %cst_152 {dimension_numbers = #tpu.dot_dimension_numbers<[1], [0], [0], [1], [0, 0, 1, 1], [], []>} : vector<144x256xbf16>, vector<256x256xbf16>, vector<144x256xf32> -> vector<144x256xf32>
    %c0_153 = arith.constant 0 : index
    %c0_154 = arith.constant 0 : index
    %160 = vector.load %arg9[%c0_153, %c0_154] : memref<144x256xf32, #tpu.memory_space<vmem>>, vector<144x256xf32>
    %161 = arith.addf %160, %159 : vector<144x256xf32>
    %c0_155 = arith.constant 0 : index
    %c0_156 = arith.constant 0 : index
    %162 = vector.load %arg9[%c0_155, %c0_156] : memref<144x256xf32, #tpu.memory_space<vmem>>, vector<144x256xf32>
    tpu.vector_store %arg9[%c0_155, %c0_156], %161 {strides = array<i32>} : memref<144x256xf32, #tpu.memory_space<vmem>>, vector<144x256xf32>,
    %c18_157 = arith.constant 18 : index
    %c0_158 = arith.constant 0 : index
    %163 = vector.load %arg7[%c18_157, %c0_158] : memref<198x256xbf16, #tpu.memory_space<vmem>>, vector<144x256xbf16>
    %c3_159 = arith.constant 3 : index
    %c0_160 = arith.constant 0 : index
    %c0_161 = arith.constant 0 : index
    %164 = vector.load %arg3[%c3_159, %c0_160, %c0_161] : memref<9x256x256xbf16, #tpu.memory_space<vmem>>, vector<1x256x256xbf16>
    %165 = vector.shape_cast %164 : vector<1x256x256xbf16> to vector<256x256xbf16>
    %cst_162 = arith.constant dense<0.000000e+00> : vector<144x256xf32>
    %166 = tpu.matmul %163, %165, %cst_162 {dimension_numbers = #tpu.dot_dimension_numbers<[1], [0], [0], [1], [0, 0, 1, 1], [], []>} : vector<144x256xbf16>, vector<256x256xbf16>, vector<144x256xf32> -> vector<144x256xf32>
    %c0_163 = arith.constant 0 : index
    %c0_164 = arith.constant 0 : index
    %167 = vector.load %arg9[%c0_163, %c0_164] : memref<144x256xf32, #tpu.memory_space<vmem>>, vector<144x256xf32>
    %168 = arith.addf %167, %166 : vector<144x256xf32>
    %c0_165 = arith.constant 0 : index
    %c0_166 = arith.constant 0 : index
    %169 = vector.load %arg9[%c0_165, %c0_166] : memref<144x256xf32, #tpu.memory_space<vmem>>, vector<144x256xf32>
    tpu.vector_store %arg9[%c0_165, %c0_166], %168 {strides = array<i32>} : memref<144x256xf32, #tpu.memory_space<vmem>>, vector<144x256xf32>,
    %c19_167 = arith.constant 19 : index
    %c0_168 = arith.constant 0 : index
    %170 = vector.load %arg7[%c19_167, %c0_168] : memref<198x256xbf16, #tpu.memory_space<vmem>>, vector<144x256xbf16>
    %c4_169 = arith.constant 4 : index
    %c0_170 = arith.constant 0 : index
    %c0_171 = arith.constant 0 : index
    %171 = vector.load %arg3[%c4_169, %c0_170, %c0_171] : memref<9x256x256xbf16, #tpu.memory_space<vmem>>, vector<1x256x256xbf16>
    %172 = vector.shape_cast %171 : vector<1x256x256xbf16> to vector<256x256xbf16>
    %cst_172 = arith.constant dense<0.000000e+00> : vector<144x256xf32>
    %173 = tpu.matmul %170, %172, %cst_172 {dimension_numbers = #tpu.dot_dimension_numbers<[1], [0], [0], [1], [0, 0, 1, 1], [], []>} : vector<144x256xbf16>, vector<256x256xbf16>, vector<144x256xf32> -> vector<144x256xf32>
    %c0_173 = arith.constant 0 : index
    %c0_174 = arith.constant 0 : index
    %174 = vector.load %arg9[%c0_173, %c0_174] : memref<144x256xf32, #tpu.memory_space<vmem>>, vector<144x256xf32>
    %175 = arith.addf %174, %173 : vector<144x256xf32>
    %c0_175 = arith.constant 0 : index
    %c0_176 = arith.constant 0 : index
    %176 = vector.load %arg9[%c0_175, %c0_176] : memref<144x256xf32, #tpu.memory_space<vmem>>, vector<144x256xf32>
    tpu.vector_store %arg9[%c0_175, %c0_176], %175 {strides = array<i32>} : memref<144x256xf32, #tpu.memory_space<vmem>>, vector<144x256xf32>,
    %c20_177 = arith.constant 20 : index
    %c0_178 = arith.constant 0 : index
    %177 = vector.load %arg7[%c20_177, %c0_178] : memref<198x256xbf16, #tpu.memory_space<vmem>>, vector<144x256xbf16>
    %c5_179 = arith.constant 5 : index
    %c0_180 = arith.constant 0 : index
    %c0_181 = arith.constant 0 : index
    %178 = vector.load %arg3[%c5_179, %c0_180, %c0_181] : memref<9x256x256xbf16, #tpu.memory_space<vmem>>, vector<1x256x256xbf16>
    %179 = vector.shape_cast %178 : vector<1x256x256xbf16> to vector<256x256xbf16>
    %cst_182 = arith.constant dense<0.000000e+00> : vector<144x256xf32>
    %180 = tpu.matmul %177, %179, %cst_182 {dimension_numbers = #tpu.dot_dimension_numbers<[1], [0], [0], [1], [0, 0, 1, 1], [], []>} : vector<144x256xbf16>, vector<256x256xbf16>, vector<144x256xf32> -> vector<144x256xf32>
    %c0_183 = arith.constant 0 : index
    %c0_184 = arith.constant 0 : index
    %181 = vector.load %arg9[%c0_183, %c0_184] : memref<144x256xf32, #tpu.memory_space<vmem>>, vector<144x256xf32>
    %182 = arith.addf %181, %180 : vector<144x256xf32>
    %c0_185 = arith.constant 0 : index
    %c0_186 = arith.constant 0 : index
    %183 = vector.load %arg9[%c0_185, %c0_186] : memref<144x256xf32, #tpu.memory_space<vmem>>, vector<144x256xf32>
    tpu.vector_store %arg9[%c0_185, %c0_186], %182 {strides = array<i32>} : memref<144x256xf32, #tpu.memory_space<vmem>>, vector<144x256xf32>,
    %c36_187 = arith.constant 36 : index
    %c0_188 = arith.constant 0 : index
    %184 = vector.load %arg7[%c36_187, %c0_188] : memref<198x256xbf16, #tpu.memory_space<vmem>>, vector<144x256xbf16>
    %c6_189 = arith.constant 6 : index
    %c0_190 = arith.constant 0 : index
    %c0_191 = arith.constant 0 : index
    %185 = vector.load %arg3[%c6_189, %c0_190, %c0_191] : memref<9x256x256xbf16, #tpu.memory_space<vmem>>, vector<1x256x256xbf16>
    %186 = vector.shape_cast %185 : vector<1x256x256xbf16> to vector<256x256xbf16>
    %cst_192 = arith.constant dense<0.000000e+00> : vector<144x256xf32>
    %187 = tpu.matmul %184, %186, %cst_192 {dimension_numbers = #tpu.dot_dimension_numbers<[1], [0], [0], [1], [0, 0, 1, 1], [], []>} : vector<144x256xbf16>, vector<256x256xbf16>, vector<144x256xf32> -> vector<144x256xf32>
    %c0_193 = arith.constant 0 : index
    %c0_194 = arith.constant 0 : index
    %188 = vector.load %arg9[%c0_193, %c0_194] : memref<144x256xf32, #tpu.memory_space<vmem>>, vector<144x256xf32>
    %189 = arith.addf %188, %187 : vector<144x256xf32>
    %c0_195 = arith.constant 0 : index
    %c0_196 = arith.constant 0 : index
    %190 = vector.load %arg9[%c0_195, %c0_196] : memref<144x256xf32, #tpu.memory_space<vmem>>, vector<144x256xf32>
    tpu.vector_store %arg9[%c0_195, %c0_196], %189 {strides = array<i32>} : memref<144x256xf32, #tpu.memory_space<vmem>>, vector<144x256xf32>,
    %c37_197 = arith.constant 37 : index
    %c0_198 = arith.constant 0 : index
    %191 = vector.load %arg7[%c37_197, %c0_198] : memref<198x256xbf16, #tpu.memory_space<vmem>>, vector<144x256xbf16>
    %c7_199 = arith.constant 7 : index
    %c0_200 = arith.constant 0 : index
    %c0_201 = arith.constant 0 : index
    %192 = vector.load %arg3[%c7_199, %c0_200, %c0_201] : memref<9x256x256xbf16, #tpu.memory_space<vmem>>, vector<1x256x256xbf16>
    %193 = vector.shape_cast %192 : vector<1x256x256xbf16> to vector<256x256xbf16>
    %cst_202 = arith.constant dense<0.000000e+00> : vector<144x256xf32>
    %194 = tpu.matmul %191, %193, %cst_202 {dimension_numbers = #tpu.dot_dimension_numbers<[1], [0], [0], [1], [0, 0, 1, 1], [], []>} : vector<144x256xbf16>, vector<256x256xbf16>, vector<144x256xf32> -> vector<144x256xf32>
    %c0_203 = arith.constant 0 : index
    %c0_204 = arith.constant 0 : index
    %195 = vector.load %arg9[%c0_203, %c0_204] : memref<144x256xf32, #tpu.memory_space<vmem>>, vector<144x256xf32>
    %196 = arith.addf %195, %194 : vector<144x256xf32>
    %c0_205 = arith.constant 0 : index
    %c0_206 = arith.constant 0 : index
    %197 = vector.load %arg9[%c0_205, %c0_206] : memref<144x256xf32, #tpu.memory_space<vmem>>, vector<144x256xf32>
    tpu.vector_store %arg9[%c0_205, %c0_206], %196 {strides = array<i32>} : memref<144x256xf32, #tpu.memory_space<vmem>>, vector<144x256xf32>,
    %c38_207 = arith.constant 38 : index
    %c0_208 = arith.constant 0 : index
    %198 = vector.load %arg7[%c38_207, %c0_208] : memref<198x256xbf16, #tpu.memory_space<vmem>>, vector<144x256xbf16>
    %c8_209 = arith.constant 8 : index
    %c0_210 = arith.constant 0 : index
    %c0_211 = arith.constant 0 : index
    %199 = vector.load %arg3[%c8_209, %c0_210, %c0_211] : memref<9x256x256xbf16, #tpu.memory_space<vmem>>, vector<1x256x256xbf16>
    %200 = vector.shape_cast %199 : vector<1x256x256xbf16> to vector<256x256xbf16>
    %cst_212 = arith.constant dense<0.000000e+00> : vector<144x256xf32>
    %201 = tpu.matmul %198, %200, %cst_212 {dimension_numbers = #tpu.dot_dimension_numbers<[1], [0], [0], [1], [0, 0, 1, 1], [], []>} : vector<144x256xbf16>, vector<256x256xbf16>, vector<144x256xf32> -> vector<144x256xf32>
    %c0_213 = arith.constant 0 : index
    %c0_214 = arith.constant 0 : index
    %202 = vector.load %arg9[%c0_213, %c0_214] : memref<144x256xf32, #tpu.memory_space<vmem>>, vector<144x256xf32>
    %203 = arith.addf %202, %201 : vector<144x256xf32>
    %c0_215 = arith.constant 0 : index
    %c0_216 = arith.constant 0 : index
    %204 = vector.load %arg9[%c0_215, %c0_216] : memref<144x256xf32, #tpu.memory_space<vmem>>, vector<144x256xf32>
    tpu.vector_store %arg9[%c0_215, %c0_216], %203 {strides = array<i32>} : memref<144x256xf32, #tpu.memory_space<vmem>>, vector<144x256xf32>,
    %c0_217 = arith.constant 0 : index
    %c0_218 = arith.constant 0 : index
    %205 = vector.load %arg9[%c0_217, %c0_218] : memref<144x256xf32, #tpu.memory_space<vmem>>, vector<16x256xf32>
    %c0_219 = arith.constant 0 : index
    %c0_220 = arith.constant 0 : index
    %206 = vector.load %arg5[%c0_219, %c0_220] : memref<1x256xf32, #tpu.memory_space<vmem>>, vector<1x256xf32>
    %207 = vector.broadcast %206 : vector<1x256xf32> to vector<16x256xf32>
    %208 = arith.addf %205, %207 : vector<16x256xf32>
    %cst_221 = arith.constant 0.00999999977 : f32
    %209 = vector.broadcast %cst_221 : f32 to vector<16x256xf32>
    %210 = arith.mulf %209, %208 : vector<16x256xf32>
    %211 = arith.maximumf %208, %210 : vector<16x256xf32>
    %c0_222 = arith.constant 0 : index
    %c0_223 = arith.constant 0 : index
    %c0_224 = arith.constant 0 : index
    %c0_225 = arith.constant 0 : index
    %212 = vector.load %arg6[%c0_222, %c0_223, %c0_224, %c0_225] : memref<1x8x16x256xf32, #tpu.memory_space<vmem>>, vector<1x1x16x256xf32>
    %213 = vector.shape_cast %212 : vector<1x1x16x256xf32> to vector<16x256xf32>
    %214 = vector.shape_cast %211 : vector<16x256xf32> to vector<1x1x16x256xf32>
    tpu.vector_store %arg6[%c0_222, %c0_223, %c0_224, %c0_225], %214 {strides = array<i32>} : memref<1x8x16x256xf32, #tpu.memory_space<vmem>>, vector<1x1x16x256xf32>,
    %c18_226 = arith.constant 18 : index
    %c0_227 = arith.constant 0 : index
    %215 = vector.load %arg9[%c18_226, %c0_227] : memref<144x256xf32, #tpu.memory_space<vmem>>, vector<16x256xf32>
    %c0_228 = arith.constant 0 : index
    %c0_229 = arith.constant 0 : index
    %216 = vector.load %arg5[%c0_228, %c0_229] : memref<1x256xf32, #tpu.memory_space<vmem>>, vector<1x256xf32>
    %217 = vector.broadcast %216 : vector<1x256xf32> to vector<16x256xf32>
    %218 = arith.addf %215, %217 : vector<16x256xf32>
    %cst_230 = arith.constant 0.00999999977 : f32
    %219 = vector.broadcast %cst_230 : f32 to vector<16x256xf32>
    %220 = arith.mulf %219, %218 : vector<16x256xf32>
    %221 = arith.maximumf %218, %220 : vector<16x256xf32>
    %c0_231 = arith.constant 0 : index
    %c1_232 = arith.constant 1 : index
    %c0_233 = arith.constant 0 : index
    %c0_234 = arith.constant 0 : index
    %222 = vector.load %arg6[%c0_231, %c1_232, %c0_233, %c0_234] : memref<1x8x16x256xf32, #tpu.memory_space<vmem>>, vector<1x1x16x256xf32>
    %223 = vector.shape_cast %222 : vector<1x1x16x256xf32> to vector<16x256xf32>
    %224 = vector.shape_cast %221 : vector<16x256xf32> to vector<1x1x16x256xf32>
    tpu.vector_store %arg6[%c0_231, %c1_232, %c0_233, %c0_234], %224 {strides = array<i32>} : memref<1x8x16x256xf32, #tpu.memory_space<vmem>>, vector<1x1x16x256xf32>,
    %c36_235 = arith.constant 36 : index
    %c0_236 = arith.constant 0 : index
    %225 = vector.load %arg9[%c36_235, %c0_236] : memref<144x256xf32, #tpu.memory_space<vmem>>, vector<16x256xf32>
    %c0_237 = arith.constant 0 : index
    %c0_238 = arith.constant 0 : index
    %226 = vector.load %arg5[%c0_237, %c0_238] : memref<1x256xf32, #tpu.memory_space<vmem>>, vector<1x256xf32>
    %227 = vector.broadcast %226 : vector<1x256xf32> to vector<16x256xf32>
    %228 = arith.addf %225, %227 : vector<16x256xf32>
    %cst_239 = arith.constant 0.00999999977 : f32
    %229 = vector.broadcast %cst_239 : f32 to vector<16x256xf32>
    %230 = arith.mulf %229, %228 : vector<16x256xf32>
    %231 = arith.maximumf %228, %230 : vector<16x256xf32>
    %c0_240 = arith.constant 0 : index
    %c2_241 = arith.constant 2 : index
    %c0_242 = arith.constant 0 : index
    %c0_243 = arith.constant 0 : index
    %232 = vector.load %arg6[%c0_240, %c2_241, %c0_242, %c0_243] : memref<1x8x16x256xf32, #tpu.memory_space<vmem>>, vector<1x1x16x256xf32>
    %233 = vector.shape_cast %232 : vector<1x1x16x256xf32> to vector<16x256xf32>
    %234 = vector.shape_cast %231 : vector<16x256xf32> to vector<1x1x16x256xf32>
    tpu.vector_store %arg6[%c0_240, %c2_241, %c0_242, %c0_243], %234 {strides = array<i32>} : memref<1x8x16x256xf32, #tpu.memory_space<vmem>>, vector<1x1x16x256xf32>,
    %c54_244 = arith.constant 54 : index
    %c0_245 = arith.constant 0 : index
    %235 = vector.load %arg9[%c54_244, %c0_245] : memref<144x256xf32, #tpu.memory_space<vmem>>, vector<16x256xf32>
    %c0_246 = arith.constant 0 : index
    %c0_247 = arith.constant 0 : index
    %236 = vector.load %arg5[%c0_246, %c0_247] : memref<1x256xf32, #tpu.memory_space<vmem>>, vector<1x256xf32>
    %237 = vector.broadcast %236 : vector<1x256xf32> to vector<16x256xf32>
    %238 = arith.addf %235, %237 : vector<16x256xf32>
    %cst_248 = arith.constant 0.00999999977 : f32
    %239 = vector.broadcast %cst_248 : f32 to vector<16x256xf32>
    %240 = arith.mulf %239, %238 : vector<16x256xf32>
    %241 = arith.maximumf %238, %240 : vector<16x256xf32>
    %c0_249 = arith.constant 0 : index
    %c3_250 = arith.constant 3 : index
    %c0_251 = arith.constant 0 : index
    %c0_252 = arith.constant 0 : index
    %242 = vector.load %arg6[%c0_249, %c3_250, %c0_251, %c0_252] : memref<1x8x16x256xf32, #tpu.memory_space<vmem>>, vector<1x1x16x256xf32>
    %243 = vector.shape_cast %242 : vector<1x1x16x256xf32> to vector<16x256xf32>
    %244 = vector.shape_cast %241 : vector<16x256xf32> to vector<1x1x16x256xf32>
    tpu.vector_store %arg6[%c0_249, %c3_250, %c0_251, %c0_252], %244 {strides = array<i32>} : memref<1x8x16x256xf32, #tpu.memory_space<vmem>>, vector<1x1x16x256xf32>,
    %c72_253 = arith.constant 72 : index
    %c0_254 = arith.constant 0 : index
    %245 = vector.load %arg9[%c72_253, %c0_254] : memref<144x256xf32, #tpu.memory_space<vmem>>, vector<16x256xf32>
    %c0_255 = arith.constant 0 : index
    %c0_256 = arith.constant 0 : index
    %246 = vector.load %arg5[%c0_255, %c0_256] : memref<1x256xf32, #tpu.memory_space<vmem>>, vector<1x256xf32>
    %247 = vector.broadcast %246 : vector<1x256xf32> to vector<16x256xf32>
    %248 = arith.addf %245, %247 : vector<16x256xf32>
    %cst_257 = arith.constant 0.00999999977 : f32
    %249 = vector.broadcast %cst_257 : f32 to vector<16x256xf32>
    %250 = arith.mulf %249, %248 : vector<16x256xf32>
    %251 = arith.maximumf %248, %250 : vector<16x256xf32>
    %c0_258 = arith.constant 0 : index
    %c4_259 = arith.constant 4 : index
    %c0_260 = arith.constant 0 : index
    %c0_261 = arith.constant 0 : index
    %252 = vector.load %arg6[%c0_258, %c4_259, %c0_260, %c0_261] : memref<1x8x16x256xf32, #tpu.memory_space<vmem>>, vector<1x1x16x256xf32>
    %253 = vector.shape_cast %252 : vector<1x1x16x256xf32> to vector<16x256xf32>
    %254 = vector.shape_cast %251 : vector<16x256xf32> to vector<1x1x16x256xf32>
    tpu.vector_store %arg6[%c0_258, %c4_259, %c0_260, %c0_261], %254 {strides = array<i32>} : memref<1x8x16x256xf32, #tpu.memory_space<vmem>>, vector<1x1x16x256xf32>,
    %c90_262 = arith.constant 90 : index
    %c0_263 = arith.constant 0 : index
    %255 = vector.load %arg9[%c90_262, %c0_263] : memref<144x256xf32, #tpu.memory_space<vmem>>, vector<16x256xf32>
    %c0_264 = arith.constant 0 : index
    %c0_265 = arith.constant 0 : index
    %256 = vector.load %arg5[%c0_264, %c0_265] : memref<1x256xf32, #tpu.memory_space<vmem>>, vector<1x256xf32>
    %257 = vector.broadcast %256 : vector<1x256xf32> to vector<16x256xf32>
    %258 = arith.addf %255, %257 : vector<16x256xf32>
    %cst_266 = arith.constant 0.00999999977 : f32
    %259 = vector.broadcast %cst_266 : f32 to vector<16x256xf32>
    %260 = arith.mulf %259, %258 : vector<16x256xf32>
    %261 = arith.maximumf %258, %260 : vector<16x256xf32>
    %c0_267 = arith.constant 0 : index
    %c5_268 = arith.constant 5 : index
    %c0_269 = arith.constant 0 : index
    %c0_270 = arith.constant 0 : index
    %262 = vector.load %arg6[%c0_267, %c5_268, %c0_269, %c0_270] : memref<1x8x16x256xf32, #tpu.memory_space<vmem>>, vector<1x1x16x256xf32>
    %263 = vector.shape_cast %262 : vector<1x1x16x256xf32> to vector<16x256xf32>
    %264 = vector.shape_cast %261 : vector<16x256xf32> to vector<1x1x16x256xf32>
    tpu.vector_store %arg6[%c0_267, %c5_268, %c0_269, %c0_270], %264 {strides = array<i32>} : memref<1x8x16x256xf32, #tpu.memory_space<vmem>>, vector<1x1x16x256xf32>,
    %c108_271 = arith.constant 108 : index
    %c0_272 = arith.constant 0 : index
    %265 = vector.load %arg9[%c108_271, %c0_272] : memref<144x256xf32, #tpu.memory_space<vmem>>, vector<16x256xf32>
    %c0_273 = arith.constant 0 : index
    %c0_274 = arith.constant 0 : index
    %266 = vector.load %arg5[%c0_273, %c0_274] : memref<1x256xf32, #tpu.memory_space<vmem>>, vector<1x256xf32>
    %267 = vector.broadcast %266 : vector<1x256xf32> to vector<16x256xf32>
    %268 = arith.addf %265, %267 : vector<16x256xf32>
    %cst_275 = arith.constant 0.00999999977 : f32
    %269 = vector.broadcast %cst_275 : f32 to vector<16x256xf32>
    %270 = arith.mulf %269, %268 : vector<16x256xf32>
    %271 = arith.maximumf %268, %270 : vector<16x256xf32>
    %c0_276 = arith.constant 0 : index
    %c6_277 = arith.constant 6 : index
    %c0_278 = arith.constant 0 : index
    %c0_279 = arith.constant 0 : index
    %272 = vector.load %arg6[%c0_276, %c6_277, %c0_278, %c0_279] : memref<1x8x16x256xf32, #tpu.memory_space<vmem>>, vector<1x1x16x256xf32>
    %273 = vector.shape_cast %272 : vector<1x1x16x256xf32> to vector<16x256xf32>
    %274 = vector.shape_cast %271 : vector<16x256xf32> to vector<1x1x16x256xf32>
    tpu.vector_store %arg6[%c0_276, %c6_277, %c0_278, %c0_279], %274 {strides = array<i32>} : memref<1x8x16x256xf32, #tpu.memory_space<vmem>>, vector<1x1x16x256xf32>,
    %c126_280 = arith.constant 126 : index
    %c0_281 = arith.constant 0 : index
    %275 = vector.load %arg9[%c126_280, %c0_281] : memref<144x256xf32, #tpu.memory_space<vmem>>, vector<16x256xf32>
    %c0_282 = arith.constant 0 : index
    %c0_283 = arith.constant 0 : index
    %276 = vector.load %arg5[%c0_282, %c0_283] : memref<1x256xf32, #tpu.memory_space<vmem>>, vector<1x256xf32>
    %277 = vector.broadcast %276 : vector<1x256xf32> to vector<16x256xf32>
    %278 = arith.addf %275, %277 : vector<16x256xf32>
    %cst_284 = arith.constant 0.00999999977 : f32
    %279 = vector.broadcast %cst_284 : f32 to vector<16x256xf32>
    %280 = arith.mulf %279, %278 : vector<16x256xf32>
    %281 = arith.maximumf %278, %280 : vector<16x256xf32>
    %c0_285 = arith.constant 0 : index
    %c7_286 = arith.constant 7 : index
    %c0_287 = arith.constant 0 : index
    %c0_288 = arith.constant 0 : index
    %282 = vector.load %arg6[%c0_285, %c7_286, %c0_287, %c0_288] : memref<1x8x16x256xf32, #tpu.memory_space<vmem>>, vector<1x1x16x256xf32>
    %283 = vector.shape_cast %282 : vector<1x1x16x256xf32> to vector<16x256xf32>
    %284 = vector.shape_cast %281 : vector<16x256xf32> to vector<1x1x16x256xf32>
    tpu.vector_store %arg6[%c0_285, %c7_286, %c0_287, %c0_288], %284 {strides = array<i32>} : memref<1x8x16x256xf32, #tpu.memory_space<vmem>>, vector<1x1x16x256xf32>,
    return
  }
  func.func @transform_0(%arg0: i32) -> (i32, i32, i32) {
    %c0_i32 = arith.constant 0 : i32
    %c0_i32_0 = arith.constant 0 : i32
    %c0_i32_1 = arith.constant 0 : i32
    return %arg0, %c0_i32, %c0_i32_0 : i32, i32, i32
  }
  func.func @transform_1(%arg0: i32) -> (i32, i32, i32) {
    %c0_i32 = arith.constant 0 : i32
    %c0_i32_0 = arith.constant 0 : i32
    %c0_i32_1 = arith.constant 0 : i32
    %c0_i32_2 = arith.constant 0 : i32
    return %c0_i32, %c0_i32_0, %c0_i32_1 : i32, i32, i32
  }
  func.func @transform_2(%arg0: i32) -> (i32, i32, i32) {
    %c0_i32 = arith.constant 0 : i32
    %c0_i32_0 = arith.constant 0 : i32
    %c0_i32_1 = arith.constant 0 : i32
    %c0_i32_2 = arith.constant 0 : i32
    return %c0_i32, %c0_i32_0, %c0_i32_1 : i32, i32, i32
  }
  func.func @transform_3(%arg0: i32) -> (i32, i32) {
    %c0_i32 = arith.constant 0 : i32
    %c0_i32_0 = arith.constant 0 : i32
    %c0_i32_1 = arith.constant 0 : i32
    return %c0_i32, %c0_i32_0 : i32, i32
  }
  func.func @transform_4(%arg0: i32) -> (i32, i32) {
    %c0_i32 = arith.constant 0 : i32
    %c0_i32_0 = arith.constant 0 : i32
    %c0_i32_1 = arith.constant 0 : i32
    return %c0_i32, %c0_i32_0 : i32, i32
  }
  func.func @transform_5(%arg0: i32) -> (i32, i32, i32, i32) {
    %c0_i32 = arith.constant 0 : i32
    %c0_i32_0 = arith.constant 0 : i32
    %c0_i32_1 = arith.constant 0 : i32
    %c0_i32_2 = arith.constant 0 : i32
    return %arg0, %c0_i32, %c0_i32_0, %c0_i32_1 : i32, i32, i32, i32
  }
}

</mosaic_0001>

<bundles_post_ra>
// kernel: tile.13
= control target key start
LH: loop header
LB: loop body
LE: loop exit
PB: predicated region body
PF: predicated region fallthrough
CT: control target
= control target key end

     0   :  { %s28_s0 = inlined_call_operand.vmem [shape: f32[16], index: 0, kind: input, shape index: {}]   ;;  %s29_s1 = inlined_call_operand.vmem [shape: f32[16,16], index: 1, kind: output, shape index: {}]  }
   0x1   :  { %v4_v0 = vld [vmem:[%s28_s0] ss:$0 sm:$0xff] }
   0x2   :  { %5 = vst [vmem:[%s29_s1] sm:$0xff] %v4_v0  ;;  %8 = vst [vmem:[%s29_s1 + $0x8] sm:$0xff] %v4_v0 }

// kernel: tile.14
= control target key start
LH: loop header
LB: loop body
LE: loop exit
PB: predicated region body
PF: predicated region fallthrough
CT: control target
= control target key end

     0   :  { %s7_s6 = smov 3  ;;  %s21_s9 = smov 3  ;;  %vm4_vm0 = vcmask 130048   ;;  %vm11_vm1 = vcmask 1048448   ;;  %vm18_vm2 = vcmask 917248   ;;  %vm25_vm3 = vcmask 786048   ;;  %s131_s0 = inlined_call_operand.vmem [shape: f32[16,16], index: 0, kind: input, shape index: {}]   ;;  %s132_s1 = inlined_call_operand.vmem [shape: f32[1,256], index: 1, kind: output, shape index: {}]  }
   0x1   :  { %v69_v0 = vld [vmem:[%s131_s0 + $0x7] ss:$8 sm:%s7_s6]   ;;  %s84_s10 = smov 112   ;;  %v71_v1 = vld [vmem:[%s131_s0 + $0x5] ss:$8 sm:%s21_s9]   ;;  %s14_s13 = smov 3 }
   0x2   :  { %9 = vrot.lane.b32.xlu0 %v69_v0, %s84_s10  ;;  %s85_s14 = smov 80   ;;  %v70_v2 = vld [vmem:[%s131_s0 + $0x6] ss:$8 sm:%s14_s13]   ;;  %s28_s17 = smov 3  ;;  %vm32_vm4 = vcmask 654848   ;;  %vm39_vm5 = vcmask 523648  }
   0x3   :  { %23 = vrot.lane.b32.xlu1 %v71_v1, %s85_s14  ;;  %v72_v3 = vld [vmem:[%s131_s0 + $0x4] ss:$8 sm:%s28_s17]   ;;  %s35_s20 = smov 3  ;;  %s42_s21 = smov 3  ;;  %vm46_vm6 = vcmask 392448   ;;  %vm53_vm7 = vcmask 261248  }
   0x4   :  { %s86_s22 = smov 96   ;;  %s87_s23 = smov 64   ;;  %v73_v4 = vld [vmem:[%s131_s0 + $0x3] ss:$8 sm:%s35_s20]   ;;  %v74_v5 = vld [vmem:[%s131_s0 + $0x2] ss:$8 sm:%s42_s21]  }
   0x5   :  { %s2_s26 = smov 3  ;;  %s49_s29 = smov 3 }
   0x6   :  { %16 = vrot.lane.b32.xlu0 %v70_v2, %s86_s22  ;;  %v3_v6 = vld [vmem:[%s131_s0] ss:$8 sm:%s2_s26]   ;;  %s88_s3 = smov 48   ;;  %s89_s4 = smov 32  }
   0x7   :  { %30 = vrot.lane.b32.xlu1 %v72_v3, %s87_s23  ;;  %5 = vst.msk [vmem:[#allocation0] ss:$8 sm:$0x3] %vm4_vm0, %v3_v6   ;;  %v75_v7 = vld [vmem:[%s131_s0 + $0x1] ss:$8 sm:%s49_s29]   ;;  %s90_s0 = smov 16  }
   0xa   :  { %37 = vrot.lane.b32.xlu0 %v73_v4, %s88_s3 }
   0xb   :  { %44 = vrot.lane.b32.xlu1 %v74_v5, %s89_s4 }
   0xe   :  { %51 = vrot.lane.b32.xlu0 %v75_v7, %s90_s0 }
  0x74   :  { %v10_v8 = vpop.permute.xlu0 %9  }
  0x75   :  { %12 = vst.msk [vmem:[#allocation0] ss:$8 sm:$0x3] %vm11_vm1, %v10_v8   ;;  %v24_v9 = vpop.permute.xlu1 %23  }
  0x78   :  { %v17_v10 = vpop.permute.xlu0 %16  }
  0x79   :  { %19 = vst.msk [vmem:[#allocation0] ss:$8 sm:$0x3] %vm18_vm2, %v17_v10   ;;  %v31_v11 = vpop.permute.xlu1 %30  }
  0x7a   :  { %26 = vst.msk [vmem:[#allocation0] ss:$8 sm:$0x3] %vm25_vm3, %v24_v9  }
  0x7b   :  { %33 = vst.msk [vmem:[#allocation0] ss:$8 sm:$0x3] %vm32_vm4, %v31_v11  }
  0x7c   :  { %v38_v12 = vpop.permute.xlu0 %37  }
  0x7d   :  { %40 = vst.msk [vmem:[#allocation0] ss:$8 sm:$0x3] %vm39_vm5, %v38_v12   ;;  %v45_v13 = vpop.permute.xlu1 %44  }
  0x7e   :  { %47 = vst.msk [vmem:[#allocation0] ss:$8 sm:$0x3] %vm46_vm6, %v45_v13  }
  0x80   :  { %v52_v14 = vpop.permute.xlu0 %51  }
  0x81   :  { %54 = vst.msk [vmem:[#allocation0] ss:$8 sm:$0x3] %vm53_vm7, %v52_v14  }
  0x88   :  { %v59_v15 = vld [vmem:[#allocation0] sm:$0x1]  ;;  %v64_v16 = vld [vmem:[#allocation0 + $0x8] sm:$0x1] }
  0x89   :  { %62 = vst [vmem:[%s132_s1] sm:$0x1] %v59_v15  ;;  %76 = vst [vmem:[%s132_s1 + $0x1] sm:$0x1] %v64_v16 }

// kernel: double_conv_3d_forward.1
= control target key start
LH: loop header
LB: loop body
LE: loop exit
PB: predicated region body
PF: predicated region fallthrough
CT: control target
= control target key end

     0   :  { %s12891_s18 = smov 0   ;;  %s17257_s0 = inlined_call_operand.vmem [shape: bf16[2,198,128], index: 0, kind: input, shape index: {}]   ;;  %s17258_s1 = inlined_call_operand.vmem [shape: bf16[9,128,256], index: 1, kind: input, shape index: {}]   ;;  %s17259_s2 = inlined_call_operand.vmem [shape: bf16[9,256,256], index: 2, kind: input, shape index: {}]   ;;  %s17260_s3 = inlined_call_operand.vmem [shape: f32[1,256], index: 3, kind: input, shape index: {}]   ;;  %s17261_s4 = inlined_call_operand.vmem [shape: f32[1,256], index: 4, kind: input, shape index: {}]   ;;  %s17262_s5 = inlined_call_operand.vmem [shape: f32[2,8,16,256], index: 5, kind: output, shape index: {}]  }
   0x1 LB: > { %s10850_s19 = sadd.s32 4294967295, %s12858_s18   ;;  %p10854_p0 = scmp.ge.s32.totalorder %s12858_s18, 1  ;;  %s12858_s18 = sphi %s12891_s18, %s15_s18  }
   0x2   : > { %p187_p1 = scmp.lt.s32.totalorder %s12858_s18, 3 }
   0x4   : > { %p188_p2 = pnand %p10854_p0, %p187_p1 }
   0x6   : > { %191 = sbr.rel (%p188_p2) target bundleno = 1177 (0x499), region = 40 }
   0xb   : > { %v12026_v0 = vld [vmem:[%s17258_s1 + $0x74] ss:$8 sps:$4 sm:$0xff]   ;;  %v12028_v1 = vld [vmem:[%s17258_s1 + $0x70] ss:$8 sps:$4 sm:$0xff]   ;;  %v12860_v2 = vmov 0   ;;  %p215_p3 = scmp.lt.s32.totalorder %s10850_s19, 1 }
   0xc   : > { %426 = vmatprep.mubr.bf16.mxu0 %v12860_v2  ;;  %4140 = vst [vmem:[#allocation2 + $0xb0] sm:$0xff] %v12860_v2  ;;  %4142 = vst [vmem:[#allocation2 + $0x10] sm:$0xff] %v12860_v2  ;;  %835 = vmatprep.mubr.bf16.mxu1 %v12860_v2  ;;  %v12029_v3 = vld [vmem:[%s17258_s1 + $0x64] ss:$8 sps:$4 sm:$0xff]   ;;  %v12031_v4 = vld [vmem:[%s17258_s1 + $0x60] ss:$8 sps:$4 sm:$0xff]  }
   0xd   : > { %4144 = vst [vmem:[#allocation2 + $0x60] sm:$0xff] %v12860_v2  ;;  %4146 = vst [vmem:[#allocation2 + $0x40] sm:$0xff] %v12860_v2  ;;  %394 = vmatprep.subr.bf16.mxu0 %v12026_v0  ;;  %v12032_v5 = vld [vmem:[%s17258_s1 + $0x54] ss:$8 sps:$4 sm:$0xff]   ;;  %v12037_v7 = vld [vmem:[%s17258_s1 + $0xf0] ss:$8 sps:$4 sm:$0xff]  }
   0xe   : > { %4151 = vst [vmem:[#allocation2 + $0x70] sm:$0xff] %v12860_v2  ;;  %4153 = vst [vmem:[#allocation2 + $0x68] sm:$0xff] %v12860_v2  ;;  %395 = vmatpush1.bf16.msra.mxu0 %v12028_v1  ;;  %v12034_v6 = vld [vmem:[%s17258_s1 + $0xf4] ss:$8 sps:$4 sm:$0xff]   ;;  %v12036_v8 = vld [vmem:[%s17258_s1 + $0x50] ss:$8 sps:$4 sm:$0xff]  }
   0xf   : > { %4155 = vst [vmem:[#allocation2 + $0xa0] sm:$0xff] %v12860_v2  ;;  %4160 = vst [vmem:[#allocation2 + $0x58] sm:$0xff] %v12860_v2  ;;  %396 = vmatprep.subr.bf16.mxu0 %v12029_v3  ;;  %803 = vmatprep.subr.bf16.mxu1 %v12034_v6  ;;  %v12040_v9 = vld [vmem:[%s17258_s1 + $0xe4] ss:$8 sps:$4 sm:$0xff]   ;;  %v12043_v10 = vld [vmem:[%s17258_s1 + $0xe0] ss:$8 sps:$4 sm:$0xff]  }
  0x10   : > { %4162 = vst [vmem:[#allocation2 + $0x8] sm:$0xff] %v12860_v2  ;;  %804 = vmatpush1.bf16.msra.mxu1 %v12037_v7  ;;  %v12038_v11 = vld [vmem:[%s17258_s1 + $0x44] ss:$8 sps:$4 sm:$0xff]   ;;  %v12046_v12 = vld [vmem:[%s17258_s1 + $0xd4] ss:$8 sps:$4 sm:$0xff]   ;;  %s17639_s19 = smov (!%p215_p3, %s10850_s19), 1 }
  0x11   : > { %805 = vmatprep.subr.bf16.mxu1 %v12040_v9  ;;  %v12042_v13 = vld [vmem:[%s17258_s1 + $0x40] ss:$8 sps:$4 sm:$0xff]   ;;  %v12049_v14 = vld [vmem:[%s17258_s1 + $0xd0] ss:$8 sps:$4 sm:$0xff]   ;;  %v12044_v15 = vld [vmem:[%s17258_s1 + $0x34] ss:$8 sps:$4 sm:$0xff]  }
  0x12   : > { %397 = vmatpush1.bf16.msra.mxu0 %v12031_v4  ;;  %v12052_v16 = vld [vmem:[%s17258_s1 + $0xc4] ss:$8 sps:$4 sm:$0xff]   ;;  %s12016_s29 = smul.u32 100, %s17639_s19  ;;  %v12048_v17 = vld [vmem:[%s17258_s1 + $0x30] ss:$8 sps:$4 sm:$0xff]   ;;  %vm17271_vm1 = vcmask 1046528  }
  0x13   : > { %398 = vmatprep.subr.bf16.mxu0 %v12032_v5  ;;  %v12050_v18 = vld [vmem:[%s17258_s1 + $0x24] ss:$8 sps:$4 sm:$0xff]   ;;  %v12055_v19 = vld [vmem:[%s17258_s1 + $0xc0] ss:$8 sps:$4 sm:$0xff]   ;;  %v12058_v20 = vld [vmem:[%s17258_s1 + $0xb4] ss:$8 sps:$4 sm:$0xff]  }
  0x14   : > { %806 = vmatpush1.bf16.msra.mxu1 %v12043_v10  ;;  %s12980_s15 = scalar_lea.vmem %s17257_s0, %s12016_s29  ;;  %v12054_v21 = vld [vmem:[%s17258_s1 + $0x20] ss:$8 sps:$4 sm:$0xff]   ;;  %v12056_v22 = vld [vmem:[%s17258_s1 + $0x14] ss:$8 sps:$4 sm:$0xff]   ;;  %v12061_v23 = vld [vmem:[%s17258_s1 + $0xb0] ss:$8 sps:$4 sm:$0xff]  }
  0x15   : > { %807 = vmatprep.subr.bf16.mxu1 %v12046_v12  ;;  %v12064_v24 = vld [vmem:[%s17258_s1 + $0xa4] ss:$8 sps:$4 sm:$0xff]   ;;  %v12060_v25 = vld [vmem:[%s17258_s1 + $0x10] ss:$8 sps:$4 sm:$0xff]   ;;  %v12067_v27 = vld [vmem:[%s17258_s1 + $0xa0] ss:$8 sps:$4 sm:$0xff]  }
  0x16   : > { %399 = vmatpush1.bf16.msra.mxu0 %v12036_v8  ;;  %v12062_v26 = vld [vmem:[%s17258_s1 + $0x4] ss:$8 sps:$4 sm:$0xff]   ;;  %v12069_v28 = vld [vmem:[%s17258_s1 + $0x94] ss:$8 sps:$4 sm:$0xff]   ;;  %v12066_v29 = vld [vmem:[%s17258_s1] ss:$8 sps:$4 sm:$0xff]  }
  0x17   : > { %400 = vmatprep.subr.bf16.mxu0 %v12038_v11  ;;  %v12073_v30 = vld [vmem:[%s17258_s1 + $0x174] ss:$8 sps:$4 sm:$0xff]   ;;  %v12079_v31 = vld [vmem:[%s12980_s15] sm:$0xff]   ;;  %v12080_v32 = vld [vmem:[%s12980_s15 + $0x8] sm:$0xff]   ;;  %vm17274_vm0 = vsmask.f32 7424 }
  0x18   : > { %808 = vmatpush1.bf16.msra.mxu1 %v12049_v14  ;;  %v12074_v33 = vld [vmem:[%s17258_s1 + $0x90] ss:$8 sps:$4 sm:$0xff]   ;;  %v12075_v34 = vld [vmem:[%s17258_s1 + $0x84] ss:$8 sps:$4 sm:$0xff]   ;;  %v639_v36 = vshrl.u32 %v12079_v31, 16  ;;  %v641_v37 = vshll.u32 %v12079_v31, 16 }
  0x19   : > { %809 = vmatprep.subr.bf16.mxu1 %v12052_v16  ;;  %v12068_v35 = vld [vmem:[%s12980_s15] sm:$0xff]   ;;  %v646_v38 = vshll.u32 %v12080_v32, 16  ;;  %v12071_v39 = vld [vmem:[%s17258_s1 + $0x170] ss:$8 sps:$4 sm:$0xff]   ;;  %v650_v49 = vshrl.u32 %v12080_v32, 16  ;;  %v12078_v51 = vld [vmem:[%s12980_s15 + $0x8] sm:$0xff]  }
  0x1a   : > { %401 = vmatpush1.bf16.msra.mxu0 %v12042_v13  ;;  %v643_v40 = vrot.slane %v641_v37, 1  ;;  %v12085_v41 = vld [vmem:[%s12980_s15 + $0x10] sm:$0xff]   ;;  %v12077_v42 = vld [vmem:[%s17258_s1 + $0x80] ss:$8 sps:$4 sm:$0xff]   ;;  %v12083_v45 = vld [vmem:[%s17258_s1 + $0x164] ss:$8 sps:$4 sm:$0xff]  }
  0x1b   : > { %402 = vmatprep.subr.bf16.mxu0 %v12044_v15  ;;  %v648_v43 = vrot.slane %v646_v38, 1  ;;  %v12081_v46 = vld [vmem:[%s17258_s1 + $0x160] ss:$8 sps:$4 sm:$0xff]   ;;  %v654_v47 = vshll.u32 %v12085_v41, 16  ;;  %v12088_v50 = vld [vmem:[%s17258_s1 + $0x154] ss:$8 sps:$4 sm:$0xff]  }
  0x1c   : > { %810 = vmatpush1.bf16.msra.mxu1 %v12055_v19  ;;  %v644_v44 = vor.u32 %v643_v40, %v639_v36  ;;  %v12086_v53 = vld [vmem:[%s17258_s1 + $0x150] ss:$8 sps:$4 sm:$0xff]   ;;  %v12093_v56 = vld [vmem:[%s17258_s1 + $0x144] ss:$8 sps:$4 sm:$0xff]   ;;  %v12091_v57 = vld [vmem:[%s17258_s1 + $0x140] ss:$8 sps:$4 sm:$0xff]  }
  0x1d   : > { %811 = vmatprep.subr.bf16.mxu1 %v12058_v20  ;;  %v656_v52 = vrot.slane %v654_v47, 1  ;;  %v12090_v54 = vld [vmem:[%s12980_s15 + $0x18] sm:$0xff]   ;;  %v652_v55 = vor.u32 %v650_v49, %v648_v43  ;;  %v658_v60 = vshrl.u32 %v12085_v41, 16  ;;  %v12084_v62 = vld [vmem:[%s12980_s15 + $0x10] sm:$0xff]   ;;  %v12095_v1 = vld [vmem:[%s12980_s15 + $0x20] sm:$0xff]   ;;  %vm17270_vm3 = vcmask 1045504  }
  0x1e   : > { %403 = vmatpush1.bf16.msra.mxu0 %v12048_v17  ;;  %v649_v48 = vsel %vm17274_vm0, %v644_v44, %v648_v43  ;;  %v662_v58 = vshll.u32 %v12090_v54, 16  ;;  %v12098_v61 = vld [vmem:[%s17258_s1 + $0x134] ss:$8 sps:$4 sm:$0xff]   ;;  %v12106_v63 = vld [vmem:[%s17258_s1 + $0x1f0] ss:$8 sps:$4 sm:$0xff]   ;;  %v666_v12 = vshrl.u32 %v12090_v54, 16 }
  0x1f   : > { %404 = vmatprep.subr.bf16.mxu0 %v12050_v18  ;;  %v657_v59 = vsel %vm17274_vm0, %v652_v55, %v656_v52  ;;  %v12108_v0 = vld [vmem:[%s17258_s1 + $0x1f4] ss:$8 sps:$4 sm:$0xff]   ;;  %v12096_v4 = vld [vmem:[%s17258_s1 + $0x130] ss:$8 sps:$4 sm:$0xff]   ;;  %v660_v5 = vor.u32 %v658_v60, %v656_v52  ;;  %v12103_v6 = vld [vmem:[%s17258_s1 + $0x124] ss:$8 sps:$4 sm:$0xff]  }
  0x20   : > { %812 = vmatpush1.bf16.msra.mxu1 %v12061_v23  ;;  %v664_v3 = vrot.slane %v662_v58, 1  ;;  %v12112_v7 = vld [vmem:[%s17258_s1 + $0x1e0] ss:$8 sps:$4 sm:$0xff]   ;;  %v12114_v8 = vld [vmem:[%s17258_s1 + $0x1e4] ss:$8 sps:$4 sm:$0xff]   ;;  %v670_v13 = vshll.u32 %v12095_v1, 16 }
  0x21   : > { %813 = vmatprep.subr.bf16.mxu1 %v12064_v24  ;;  %v12101_v9 = vld [vmem:[%s17258_s1 + $0x120] ss:$8 sps:$4 sm:$0xff]   ;;  %v12119_v10 = vld [vmem:[%s17258_s1 + $0x1d4] ss:$8 sps:$4 sm:$0xff]   ;;  %v12117_v15 = vld [vmem:[%s17258_s1 + $0x1d0] ss:$8 sps:$4 sm:$0xff]  }
  0x22   : > { %405 = vmatpush1.bf16.msra.mxu0 %v12054_v21  ;;  %v665_v11 = vsel %vm17274_vm0, %v660_v5, %v664_v3  ;;  %v12111_v14 = vld [vmem:[%s17258_s1 + $0x114] ss:$8 sps:$4 sm:$0xff]   ;;  %v12100_v17 = vld [vmem:[%s12980_s15 + $0x28] sm:$0xff]   ;;  %v668_v19 = vor.u32 %v666_v12, %v664_v3  ;;  %v672_v20 = vrot.slane %v670_v13, 1  ;;  %v12109_v21 = vld [vmem:[%s17258_s1 + $0x110] ss:$8 sps:$4 sm:$0xff]  }
  0x23   : > { %406 = vmatprep.subr.bf16.mxu0 %v12056_v22  ;;  %v12089_v16 = vld [vmem:[%s12980_s15 + $0x18] sm:$0xff]   ;;  %v12122_v18 = vld [vmem:[%s17258_s1 + $0x1c4] ss:$8 sps:$4 sm:$0xff]   ;;  %v12120_v22 = vld [vmem:[%s17258_s1 + $0x1c0] ss:$8 sps:$4 sm:$0xff]   ;;  %vm17269_vm5 = vcmask 1044480  }
  0x24   : > { %814 = vmatpush1.bf16.msra.mxu1 %v12067_v27  ;;  %v12125_v23 = vld [vmem:[%s17258_s1 + $0x104] ss:$8 sps:$4 sm:$0xff]   ;;  %v12130_v24 = vld [vmem:[%s17258_s1 + $0x1b4] ss:$8 sps:$4 sm:$0xff]   ;;  %v678_v27 = vshll.u32 %v12100_v17, 16  ;;  %vm4228_vm6 = vcmask 1043457  }
  0x25   : > { %815 = vmatprep.subr.bf16.mxu1 %v12069_v28  ;;  %v12123_v28 = vld [vmem:[%s17258_s1 + $0x100] ss:$8 sps:$4 sm:$0xff]   ;;  %v12139_v32 = vld [vmem:[%s17258_s1 + $0x274] ss:$8 sps:$4 sm:$0xff]   ;;  %v12140_v41 = vld [vmem:[%s17258_s1 + $0x190] ss:$8 sps:$4 sm:$0xff]  }
  0x26   : > { %407 = vmatpush1.bf16.msra.mxu0 %v12060_v25  ;;  %v673_v25 = vsel %vm17274_vm0, %v668_v19, %v672_v20  ;;  %v12094_v31 = vld [vmem:[%s12980_s15 + $0x20] sm:$0xff]   ;;  %v12142_v37 = vld [vmem:[%s17258_s1 + $0x194] ss:$8 sps:$4 sm:$0xff]   ;;  %v12099_v43 = vld [vmem:[%s12980_s15 + $0x28] sm:$0xff]   ;;  %vm17275_vm2 = vsmask.f32 6400 }
  0x27   : > { %408 = vmatprep.subr.bf16.mxu0 %v12062_v26  ;;  %v674_v26 = vshrl.u32 %v12095_v1, 16  ;;  %v12131_v36 = vld [vmem:[%s17258_s1 + $0x1a0] ss:$8 sps:$4 sm:$0xff]   ;;  %v12115_v58 = vld [vmem:[%s12980_s15 + $0x38] sm:$0xff]   ;;  %vm17268_vm4 = vsmask.f32 5376 }
  0x28   : > { %816 = vmatpush1.bf16.msra.mxu1 %v12074_v33  ;;  %v12143_v47 = vld [vmem:[%s17258_s1 + $0x180] ss:$8 sps:$4 sm:$0xff]   ;;  %v12137_v13 = vld [vmem:[%s17258_s1 + $0x270] ss:$8 sps:$4 sm:$0xff]   ;;  %vm4229_vm7 = vsmask.f32 7942 }
  0x29   : > { %817 = vmatprep.subr.bf16.mxu1 %v12075_v34  ;;  %v676_v33 = vor.u32 %v674_v26, %v672_v20  ;;  %v680_v34 = vrot.slane %v678_v27, 1  ;;  %v12127_v54 = vld [vmem:[%s12980_s15 + $0x40] sm:$0xff]   ;;  %v12136_v5 = vld [vmem:[%s12980_s15 + $0x8] sm:$0xff]   ;;  %v12154_v26 = vld [vmem:[%s17258_s1 + $0x250] ss:$8 sps:$4 sm:$0xff]   ;;  %vm4231_vm8 = vcmask 1047557  }
  0x2a   : > { %409 = vmatpush1.bf16.msra.mxu0 %v12066_v29  ;;  %v12128_v29 = vld [vmem:[%s17258_s1 + $0x1b0] ss:$8 sps:$4 sm:$0xff]   ;;  %v12126_v3 = vld [vmem:[%s12980_s15 + $0x40] sm:$0xff]   ;;  %v12150_v12 = vld [vmem:[%s12980_s15 + $0x8] sm:$0xfe]   ;;  %vm17267_vm14 = vcmask 1041408  }
  0x2b   : > { %1227 = vmatprep.subr.bf16.mxu0 %v12073_v30  ;;  %v12133_v30 = vld [vmem:[%s17258_s1 + $0x1a4] ss:$8 sps:$4 sm:$0xff]   ;;  %v681_v38 = vsel %vm17274_vm0, %v676_v33, %v680_v34  ;;  %v12147_v20 = vld [vmem:[%s17258_s1 + $0x260] ss:$8 sps:$4 sm:$0xff]   ;;  %vm4232_vm9 = vsmask.f32 7958  ;;  %vm14401_vm10 = vmand %vm4228_vm6, %vm4229_vm7 }
  0x2c   : > { %818 = vmatpush1.bf16.msra.mxu1 %v12077_v42  ;;  %v12145_v42 = vld [vmem:[%s17258_s1 + $0x184] ss:$8 sps:$4 sm:$0xff]   ;;  %vm4203_vm11 = vsmask.f32 1280  ;;  %vm4204_vm12 = vsmask.f32 5392  ;;  %vm14411_vm13 = vmand %vm4231_vm8, %vm4232_vm9 }
  0x2d   : > { %427 = vmatmul.mubr.bf16.vlgmr.msra.gmra.mxu0 %v12068_v35  ;;  %1650 = vmatprep.subr.bf16.mxu1 %v12108_v0  ;;  %v12105_v35 = vld [vmem:[%s12980_s15 + $0x30] sm:$0xff]   ;;  %v706_v0 = vshrl.u32 %v12127_v54, 16  ;;  %v12182_v27 = vld [vmem:[%s17258_s1 + $0x2e4] ss:$8 sps:$4 sm:$0xff]   ;;  %vm4241_vm15 = vcmask 1045508   ;;  %vm17273_vm6 = vmor %vm14411_vm13, %vm14401_vm10  ;;  %s11993_s22 = sshll.u32 %s17639_s19, 8 }
  0x2e   : > { %1228 = vmatpush1.bf16.msra.mxu0 %v12071_v39  ;;  %436 = vmatprep.mubr.bf16.mxu0 %v12860_v2  ;;  %v682_v39 = vshrl.u32 %v12100_v17, 16  ;;  %v686_v40 = vshll.u32 %v12105_v35, 16  ;;  %v690_v49 = vshrl.u32 %v12105_v35, 16  ;;  %vm14435_vm7 = vmand %vm17267_vm14, %vm4203_vm11  ;;  %vm4334_vm14 = vcmask 1047558   ;;  %s16960_s25 = scalar_lea.vmem %s17262_s5, %s11993_s22 }
  0x2f   : > { %1229 = vmatprep.subr.bf16.mxu0 %v12083_v45  ;;  %836 = vmatmul.mubr.bf16.vlgmr.msra.gmra.mxu1 %v649_v48  ;;  %vm14446_vm8 = vmand %vm4241_vm15, %vm17268_vm4  ;;  %vm4332_vm15 = vsmask.f32 7946 }
  0x30   : > { %845 = vmatprep.mubr.bf16.mxu1 %v12860_v2  ;;  %1651 = vmatpush1.bf16.msra.mxu1 %v12106_v63  ;;  %v684_v44 = vor.u32 %v682_v39, %v680_v34  ;;  %v688_v45 = vrot.slane %v686_v40, 1  ;;  %v12158_v34 = vld [vmem:[%s12980_s15 + $0x20] sm:$0xff]   ;;  %vm14458_vm9 = vmor %vm4203_vm11, %vm4204_vm12  ;;  %vm4331_vm12 = vcmask 1043458  }
  0x31   : > { %1652 = vmatprep.subr.bf16.mxu1 %v12114_v8  ;;  %v12190_v39 = vld [vmem:[%s17258_s1 + $0x2c4] ss:$8 sps:$4 sm:$0xff]   ;;  %vm17272_vm11 = vmor %vm14446_vm8, %vm14435_vm7 }
  0x32   : > { %1230 = vmatpush1.bf16.msra.mxu0 %v12081_v46  ;;  %v12116_v46 = vld [vmem:[%s12980_s15 + $0x38] sm:$0xff]   ;;  %v689_v48 = vsel %vm17274_vm0, %v684_v44, %v688_v45  ;;  %v692_v52 = vor.u32 %v690_v49, %v688_v45  ;;  %v12157_v40 = vld [vmem:[%s12980_s15 + $0x20] sm:$0xff]   ;;  %v13242_v49 = vld [vmem:[#allocation2 + $0xb0] sm:$0xff] }
  0x33   : > { %1231 = vmatprep.subr.bf16.mxu0 %v12088_v50  ;;  %v694_v50 = vshll.u32 %v12116_v46, 16  ;;  %v12171_v44 = vld [vmem:[%s17258_s1 + $0x224] ss:$8 sps:$4 sm:$0xff]   ;;  %v12188_v45 = vld [vmem:[%s17258_s1 + $0x2c0] ss:$8 sps:$4 sm:$0xff]  }
  0x34   : > { %1653 = vmatpush1.bf16.msra.mxu1 %v12112_v7 }
  0x35   : > { %437 = vmatmul.mubr.bf16.gmra.mxu0 %v12078_v51  ;;  %1654 = vmatprep.subr.bf16.mxu1 %v12119_v10  ;;  %v12104_v51 = vld [vmem:[%s12980_s15 + $0x30] sm:$0xff]  }
  0x36   : > { %446 = vmatprep.mubr.bf16.mxu0 %v12860_v2  ;;  %1232 = vmatpush1.bf16.msra.mxu0 %v12086_v53  ;;  %v696_v53 = vrot.slane %v694_v50, 1  ;;  %v12151_v10 = vld [vmem:[%s12980_s15 + $0x10] sm:$0xff]  }
  0x37   : > { %1233 = vmatprep.subr.bf16.mxu0 %v12093_v56  ;;  %846 = vmatmul.mubr.bf16.gmra.mxu1 %v657_v59  ;;  %v698_v56 = vshrl.u32 %v12116_v46, 16  ;;  %v12176_v59 = vld [vmem:[%s17258_s1 + $0x2f4] ss:$8 sps:$4 sm:$0xff]   ;;  %v1543_v17 = vrot.slane %v12151_v10, 1  ;;  %v1126_v46 = vrot.slane %v12157_v40, 1 }
  0x38   : > { %855 = vmatprep.mubr.bf16.mxu1 %v12860_v2  ;;  %1655 = vmatpush1.bf16.msra.mxu1 %v12117_v15  ;;  %v697_v55 = vsel %vm17274_vm0, %v692_v52, %v696_v53  ;;  %v12196_v52 = vld [vmem:[%s17258_s1 + $0x2b0] ss:$8 sps:$4 sm:$0xff]  }
  0x39   : > { %1656 = vmatprep.subr.bf16.mxu1 %v12122_v18  ;;  %v700_v60 = vor.u32 %v698_v56, %v696_v53  ;;  %v12149_v18 = vld [vmem:[%s17258_s1 + $0x264] ss:$8 sps:$4 sm:$0xff]   ;;  %v12177_v56 = vld [vmem:[%s17258_s1 + $0x210] ss:$8 sps:$4 sm:$0xff]  }
  0x3a   : > { %1234 = vmatpush1.bf16.msra.mxu0 %v12091_v57  ;;  %v702_v57 = vshll.u32 %v12127_v54, 16  ;;  %v12201_v53 = vld [vmem:[%s17258_s1 + $0x2a4] ss:$8 sps:$4 sm:$0xff]  }
  0x3b   : > { %1235 = vmatprep.subr.bf16.mxu0 %v12098_v61  ;;  %v12162_v54 = vld [vmem:[%s12980_s15 + $0x28] sm:$0xff]  }
  0x3c   : > { %1657 = vmatpush1.bf16.msra.mxu1 %v12120_v22  ;;  %v704_v61 = vrot.slane %v702_v57, 1 }
  0x3d   : > { %447 = vmatmul.mubr.bf16.gmra.mxu0 %v12084_v62  ;;  %1658 = vmatprep.subr.bf16.mxu1 %v12130_v24  ;;  %v12134_v62 = vld [vmem:[%s12980_s15 + $0x48] ss:$0 sps:$4 sm:$0x11]   ;;  %v12152_v24 = vld [vmem:[%s12980_s15 + $0x18] sm:$0xff]  }
  0x3e   : > { %456 = vmatprep.mubr.bf16.mxu0 %v12860_v2  ;;  %1236 = vmatpush1.bf16.msra.mxu0 %v12096_v4  ;;  %v705_v63 = vsel %vm17274_vm0, %v700_v60, %v704_v61  ;;  %v710_v1 = vshll.u32 %v12134_v62, 16  ;;  %v12135_v4 = vld [vmem:[%s12980_s15] sm:$0xfe]   ;;  %v1124_v33 = vrot.slane %v12152_v24, 1  ;;  %v12210_v60 = vld [vmem:[%s17258_s1 + $0x294] ss:$8 sps:$4 sm:$0xff]  }
  0x3f   : > { %1237 = vmatprep.subr.bf16.mxu0 %v12103_v6  ;;  %856 = vmatmul.mubr.bf16.gmra.mxu1 %v665_v11  ;;  %v708_v6 = vor.u32 %v706_v0, %v704_v61  ;;  %v1119_v8 = vrot.slane %v12135_v4, 1  ;;  %v1128_v61 = vrot.slane %v12162_v54, 1  ;;  %v12191_v0 = vld [vmem:[%s17258_s1 + $0x200] ss:$8 sps:$4 sm:$0xff]   ;;  %v12213_v4 = vld [vmem:[%s17258_s1 + $0x284] ss:$8 sps:$4 sm:$0xff]  }
  0x40   : > { %865 = vmatprep.mubr.bf16.mxu1 %v12860_v2  ;;  %1659 = vmatpush1.bf16.msra.mxu1 %v12128_v29  ;;  %v712_v7 = vrot.slane %v710_v1, 1  ;;  %v1127_v57 = vsel %vm17271_vm1, %v1124_v33, %v1126_v46  ;;  %v12206_v1 = vld [vmem:[%s17258_s1 + $0x374] ss:$8 sps:$4 sm:$0xff]   ;;  %v12195_v24 = vld [vmem:[%s12980_s15 + $0x48] sm:$0xff]  }
  0x41   : > { %1660 = vmatprep.subr.bf16.mxu1 %v12133_v30  ;;  %v12161_v30 = vld [vmem:[%s17258_s1 + $0x244] ss:$8 sps:$4 sm:$0xff]  }
  0x42   : > { %1238 = vmatpush1.bf16.msra.mxu0 %v12101_v9  ;;  %v1120_v9 = vrot.slane %v12136_v5, 1  ;;  %v713_v11 = vsel %vm17274_vm0, %v708_v6, %v712_v7  ;;  %v1129_v5 = vsel %vm17271_vm1, %v1126_v46, %v1128_v61  ;;  %v12167_v6 = vld [vmem:[%s12980_s15 + $0x30] sm:$0xff]   ;;  %v12220_v46 = vld [vmem:[%s12980_s15 + $0x20] sm:$0xff]  }
  0x43   : > { %1239 = vmatprep.subr.bf16.mxu0 %v12111_v14  ;;  %v12146_v14 = vld [vmem:[%s12980_s15 + $0x10] sm:$0xff]   ;;  %v1130_v10 = vrot.slane %v12167_v6, 1  ;;  %v12225_v6 = vld [vmem:[%s12980_s15 + $0x28] sm:$0xff]  }
  0x44   : > { %1661 = vmatpush1.bf16.msra.mxu1 %v12131_v36  ;;  %v1121_v15 = vsel %vm17271_vm1, %v1119_v8, %v1120_v9  ;;  %v1122_v19 = vrot.slane %v12146_v14, 1  ;;  %v12159_v36 = vld [vmem:[%s17258_s1 + $0x240] ss:$8 sps:$4 sm:$0xff]   ;;  %v12172_v14 = vld [vmem:[%s12980_s15 + $0x38] sm:$0xff]  }
  0x45   : > { %457 = vmatmul.mubr.bf16.gmra.mxu0 %v12089_v16  ;;  %1662 = vmatprep.subr.bf16.mxu1 %v12142_v37  ;;  %v1542_v16 = vrot.slane %v12150_v12, 1  ;;  %v12166_v37 = vld [vmem:[%s17258_s1 + $0x234] ss:$8 sps:$4 sm:$0xff]   ;;  %v12211_v8 = vld [vmem:[%s17258_s1 + $0x280] ss:$8 sps:$4 sm:$0xff]  }
  0x46   : > { %466 = vmatprep.mubr.bf16.mxu0 %v12860_v2  ;;  %1240 = vmatpush1.bf16.msra.mxu0 %v12109_v21  ;;  %v12153_v21 = vld [vmem:[%s12980_s15 + $0x18] sm:$0xff]  }
  0x47   : > { %1241 = vmatprep.subr.bf16.mxu0 %v12125_v23  ;;  %866 = vmatmul.mubr.bf16.gmra.mxu1 %v673_v25  ;;  %v1544_v22 = vsel %vm17271_vm1, %v1542_v16, %v1543_v17  ;;  %v12156_v23 = vld [vmem:[%s17258_s1 + $0x254] ss:$8 sps:$4 sm:$0xff]   ;;  %v12174_v25 = vld [vmem:[%s17258_s1 + $0x2f0] ss:$8 sps:$4 sm:$0xff]   ;;  %v1545_v29 = vrot.slane %v12153_v21, 1  ;;  %v12184_v16 = vld [vmem:[%s12980_s15 + $0x40] sm:$0xff]  }
  0x48   : > { %875 = vmatprep.mubr.bf16.mxu1 %v12860_v2  ;;  %1663 = vmatpush1.bf16.msra.mxu1 %v12140_v41  ;;  %v1547_v41 = vrot.slane %v12158_v34, 1  ;;  %v12173_v12 = vld [vmem:[%s12980_s15 + $0x38] sm:$0xff]   ;;  %v1555_v21 = vrot.slane %v12184_v16, 1 }
  0x49   : > { %1664 = vmatprep.subr.bf16.mxu1 %v12145_v42  ;;  %v1546_v35 = vsel %vm17271_vm1, %v1543_v17, %v1545_v29  ;;  %v1125_v42 = vsel %vm17271_vm1, %v1122_v19, %v1124_v33  ;;  %v1132_v17 = vrot.slane %v12172_v14, 1  ;;  %v12207_v33 = vld [vmem:[%s12980_s15 + $0x50] ss:$0 sps:$4 sm:$0x11]   ;;  %v13364_v14 = vld [vmem:[%s12980_s15 + $0x20] sm:$0xff]  }
  0x4a   : > { %1242 = vmatpush1.bf16.msra.mxu0 %v12123_v28  ;;  %v1123_v28 = vsel %vm17271_vm1, %v1120_v9, %v1122_v19  ;;  %v1548_v50 = vsel %vm17271_vm1, %v1545_v29, %v1547_v41  ;;  %v12244_v9 = vld [vmem:[%s17258_s1 + $0x3f4] ss:$8 sps:$4 sm:$0xff]   ;;  %v12183_v19 = vld [vmem:[%s12980_s15 + $0x40] sm:$0xff]  }
  0x4b   : > { %2144 = vmatprep.subr.bf16.mxu0 %v12139_v32  ;;  %v12187_v32 = vld [vmem:[%s17258_s1 + $0x2d4] ss:$8 sps:$4 sm:$0xff]  }
  0x4c   : > { %1665 = vmatpush1.bf16.msra.mxu1 %v12143_v47  ;;  %v12163_v47 = vld [vmem:[%s12980_s15 + $0x28] sm:$0xff]   ;;  %v12203_v29 = vld [vmem:[%s12980_s15 + $0x10] sm:$0xff]  }
  0x4d   : > { %467 = vmatmul.mubr.bf16.gmra.mxu0 %v12094_v31  ;;  %2568 = vmatprep.subr.bf16.mxu1 %v12176_v59  ;;  %v12180_v31 = vld [vmem:[%s17258_s1 + $0x2e0] ss:$8 sps:$4 sm:$0xff]   ;;  %v12255_v16 = vld [vmem:[%s17258_s1 + $0x3d4] ss:$8 sps:$4 sm:$0xff]  }
  0x4e   : > { %476 = vmatprep.mubr.bf16.mxu0 %v12860_v2  ;;  %v12199_v59 = vld [vmem:[%s17258_s1 + $0x2a0] ss:$8 sps:$4 sm:$0xff]  }
  0x4f   : > { %876 = vmatmul.mubr.bf16.gmra.mxu1 %v681_v38  ;;  %v12185_v38 = vld [vmem:[%s17258_s1 + $0x2d0] ss:$8 sps:$4 sm:$0xff]  }
  0x50   : > { %885 = vmatprep.mubr.bf16.mxu1 %v12860_v2 }
  0x55   : > { %477 = vmatmul.mubr.bf16.gmra.mxu0 %v12099_v43  ;;  %v12164_v43 = vld [vmem:[%s17258_s1 + $0x230] ss:$8 sps:$4 sm:$0xff]  }
  0x56   : > { %486 = vmatprep.mubr.bf16.mxu0 %v12860_v2 }
  0x57   : > { %886 = vmatmul.mubr.bf16.gmra.mxu1 %v689_v48  ;;  %v12169_v48 = vld [vmem:[%s17258_s1 + $0x220] ss:$8 sps:$4 sm:$0xff]  }
  0x58   : > { %895 = vmatprep.mubr.bf16.mxu1 %v12860_v2 }
  0x5d   : > { %487 = vmatmul.mubr.bf16.gmra.mxu0 %v12104_v51  ;;  %v12179_v51 = vld [vmem:[%s17258_s1 + $0x214] ss:$8 sps:$4 sm:$0xff]  }
  0x5e   : > { %496 = vmatprep.mubr.bf16.mxu0 %v12860_v2 }
  0x5f   : > { %896 = vmatmul.mubr.bf16.gmra.mxu1 %v697_v55  ;;  %v1549_v55 = vrot.slane %v12163_v47, 1 }
  0x60   : > { %905 = vmatprep.mubr.bf16.mxu1 %v12860_v2 }
  0x61   : > { %v1550_v62 = vsel %vm17271_vm1, %v1547_v41, %v1549_v55 }
  0x65   : > { %497 = vmatmul.mubr.bf16.gmra.mxu0 %v12115_v58  ;;  %v12193_v58 = vld [vmem:[%s17258_s1 + $0x204] ss:$8 sps:$4 sm:$0xff]  }
  0x66   : > { %506 = vmatprep.mubr.bf16.mxu0 %v12860_v2 }
  0x67   : > { %906 = vmatmul.mubr.bf16.gmra.mxu1 %v705_v63  ;;  %v12168_v63 = vld [vmem:[%s12980_s15 + $0x30] sm:$0xff]  }
  0x68   : > { %915 = vmatprep.mubr.bf16.mxu1 %v12860_v2  ;;  %v1551_v7 = vrot.slane %v12168_v63, 1 }
  0x6d   : > { %507 = vmatmul.mubr.bf16.gmra.mxu0 %v12126_v3  ;;  %v12208_v3 = vld [vmem:[%s17258_s1 + $0x290] ss:$8 sps:$4 sm:$0xff]  }
  0x6e   : > { %1259 = vmatprep.mubr.bf16.mxu0 %v12860_v2 }
  0x6f   : > { %916 = vmatmul.mubr.bf16.gmra.mxu1 %v713_v11  ;;  %v1552_v11 = vsel %vm17271_vm1, %v1549_v55, %v1551_v7  ;;  %v1993_v55 = vshrl.u32 %v12220_v46, 16 }
  0x70   : > { %1682 = vmatprep.mubr.bf16.mxu1 %v12860_v2 }
  0x71   : > { %v1995_v63 = vrot.slane %v1993_v55, 1 }
  0x75   : > { %1260 = vmatmul.mubr.bf16.vlgmr.msra.gmra.mxu0 %v1121_v15  ;;  %v1553_v15 = vrot.slane %v12173_v12, 1  ;;  %v12248_v12 = vld [vmem:[%s17258_s1 + $0x3e0] ss:$8 sps:$4 sm:$0xff]  }
  0x76   : > { %2145 = vmatpush1.bf16.msra.mxu0 %v12137_v13  ;;  %1269 = vmatprep.mubr.bf16.mxu0 %v12860_v2  ;;  %v1131_v13 = vsel %vm17271_vm1, %v1128_v61, %v1130_v10  ;;  %v12215_v61 = vld [vmem:[%s17258_s1 + $0x360] ss:$8 sps:$4 sm:$0xff]  }
  0x77   : > { %2146 = vmatprep.subr.bf16.mxu0 %v12149_v18  ;;  %1683 = vmatmul.mubr.bf16.vlgmr.msra.gmra.mxu1 %v1544_v22  ;;  %v1554_v18 = vsel %vm17271_vm1, %v1551_v7, %v1553_v15  ;;  %v1134_v22 = vrot.slane %v12183_v19, 1  ;;  %v12250_v7 = vld [vmem:[%s17258_s1 + $0x3e4] ss:$8 sps:$4 sm:$0xff]   ;;  %v12253_v19 = vld [vmem:[%s17258_s1 + $0x3d0] ss:$8 sps:$4 sm:$0xff]  }
  0x78   : > { %1692 = vmatprep.mubr.bf16.mxu1 %v12860_v2  ;;  %2569 = vmatpush1.bf16.msra.mxu1 %v12174_v25  ;;  %v12194_v25 = vld [vmem:[%s12980_s15 + $0x48] ss:$0 sps:$4 sm:$0x11]  }
  0x79   : > { %2570 = vmatprep.subr.bf16.mxu1 %v12182_v27  ;;  %v1135_v27 = vsel %vm17271_vm1, %v1132_v17, %v1134_v22 }
  0x7a   : > { %2147 = vmatpush1.bf16.msra.mxu0 %v12147_v20  ;;  %v1133_v20 = vsel %vm17271_vm1, %v1130_v10, %v1132_v17  ;;  %v2005_v17 = vshll.u32 %v12225_v6, 16 }
  0x7b   : > { %2148 = vmatprep.subr.bf16.mxu0 %v12156_v23  ;;  %v1556_v23 = vsel %vm17271_vm1, %v1553_v15, %v1555_v21  ;;  %v12227_v15 = vld [vmem:[%s17258_s1 + $0x340] ss:$8 sps:$4 sm:$0xff]  }
  0x7c   : > { %2571 = vmatpush1.bf16.msra.mxu1 %v12180_v31 }
  0x7d   : > { %1270 = vmatmul.mubr.bf16.gmra.mxu0 %v1123_v28  ;;  %2572 = vmatprep.subr.bf16.mxu1 %v12187_v32  ;;  %v1557_v28 = vrot.slane %v12195_v24, 1  ;;  %v12232_v24 = vld [vmem:[%s17258_s1 + $0x330] ss:$8 sps:$4 sm:$0xff]  }
  0x7e   : > { %1279 = vmatprep.mubr.bf16.mxu0 %v12860_v2  ;;  %2149 = vmatpush1.bf16.msra.mxu0 %v12154_v26  ;;  %v12202_v26 = vld [vmem:[%s12980_s15 + $0x8] sm:$0xfe]  }
  0x7f   : > { %2150 = vmatprep.subr.bf16.mxu0 %v12161_v30  ;;  %1693 = vmatmul.mubr.bf16.gmra.mxu1 %v1546_v35  ;;  %v1136_v30 = vrot.slane %v12194_v25, 1  ;;  %v1967_v31 = vshrl.u32 %v12202_v26, 16  ;;  %v1970_v32 = vshll.u32 %v12202_v26, 16  ;;  %v1558_v34 = vsel %vm17271_vm1, %v1555_v21, %v1557_v28  ;;  %v12239_v25 = vld [vmem:[%s17258_s1 + $0x324] ss:$8 sps:$4 sm:$0xff]  }
  0x80   : > { %1702 = vmatprep.mubr.bf16.mxu1 %v12860_v2  ;;  %2573 = vmatpush1.bf16.msra.mxu1 %v12185_v38  ;;  %v12198_v2 = vld [vmem:[%s17258_s1 + $0x2b4] ss:$8 sps:$4 sm:$0xff]   ;;  %v1975_v35 = vshrl.u32 %v12203_v29, 16  ;;  %v12256_v26 = vld [vmem:[%s17258_s1 + $0x3c0] ss:$8 sps:$4 sm:$0xff]  }
  0x81   : > { %2574 = vmatprep.subr.bf16.mxu1 %v12190_v39  ;;  %v1137_v38 = vsel %vm17271_vm1, %v1134_v22, %v1136_v30  ;;  %v1969_v39 = vrot.slane %v1967_v31, 1  ;;  %v1972_v40 = vrot.slane %v1970_v32, 2  ;;  %v12258_v22 = vld [vmem:[%s17258_s1 + $0x3c4] ss:$8 sps:$4 sm:$0xff]   ;;  %v2465_v30 = vrot.slane %v13364_v14, 2 }
  0x82   : > { %2151 = vmatpush1.bf16.msra.mxu0 %v12159_v36  ;;  %v1978_v36 = vshll.u32 %v12203_v29, 16  ;;  %v1977_v41 = vrot.slane %v1975_v35, 1  ;;  %v2007_v29 = vrot.slane %v2005_v17, 2  ;;  %v13397_v31 = vld [vmem:[%s12980_s15 + $0x28] sm:$0xff]   ;;  %v12264_v35 = vld [vmem:[%s17258_s1 + $0x3b0] ss:$8 sps:$4 sm:$0xff]  }
  0x83   : > { %2152 = vmatprep.subr.bf16.mxu0 %v12166_v37  ;;  %v12214_v37 = vld [vmem:[%s12980_s15 + $0x18] sm:$0xff]   ;;  %v1973_v47 = vor.u32 %v1972_v40, %v1969_v39  ;;  %v12237_v32 = vld [vmem:[%s17258_s1 + $0x320] ss:$8 sps:$4 sm:$0xff]   ;;  %v12269_v40 = vld [vmem:[%s17258_s1 + $0x3a4] ss:$8 sps:$4 sm:$0xff]  }
  0x84   : > { %2575 = vmatpush1.bf16.msra.mxu1 %v12188_v45  ;;  %v1987_v45 = vshll.u32 %v12214_v37, 16  ;;  %v12262_v17 = vld [vmem:[%s12980_s15 + $0x50] ss:$0 sps:$4 sm:$0x33]  }
  0x85   : > { %1280 = vmatmul.mubr.bf16.gmra.mxu0 %v1125_v42  ;;  %2576 = vmatprep.subr.bf16.mxu1 %v12198_v2  ;;  %v1980_v42 = vrot.slane %v1978_v36, 2  ;;  %v12218_v2 = vld [vmem:[%s12980_s15 + $0x8] sm:$0xfc]  }
  0x86   : > { %1289 = vmatprep.mubr.bf16.mxu0 %v13242_v49  ;;  %2153 = vmatpush1.bf16.msra.mxu0 %v12164_v43  ;;  %v1559_v43 = vrot.slane %v12207_v33, 1  ;;  %v1989_v54 = vrot.slane %v1987_v45, 2  ;;  %v12266_v33 = vld [vmem:[%s17258_s1 + $0x3b4] ss:$8 sps:$4 sm:$0xff]  }
  0x87   : > { %2154 = vmatprep.subr.bf16.mxu0 %v12171_v44  ;;  %1703 = vmatmul.mubr.bf16.gmra.mxu1 %v1548_v50  ;;  %v1984_v44 = vshrl.u32 %v12214_v37, 16 }
  0x88   : > { %1712 = vmatprep.mubr.bf16.mxu1 %v13242_v49  ;;  %2577 = vmatpush1.bf16.msra.mxu1 %v12196_v52  ;;  %v1560_v50 = vsel %vm17271_vm1, %v1557_v28, %v1559_v43  ;;  %v12204_v52 = vld [vmem:[%s17258_s1 + $0x370] ss:$8 sps:$4 sm:$0xff]   ;;  %v12261_v43 = vld [vmem:[%s17258_s1 + $0x304] ss:$8 sps:$4 sm:$0xff]   ;;  %vm4345_vm1 = vcmask 1046532  }
  0x89   : > { %2578 = vmatprep.subr.bf16.mxu1 %v12201_v53  ;;  %v1986_v53 = vrot.slane %v1984_v44, 1  ;;  %v12267_v44 = vld [vmem:[%s17258_s1 + $0x3a0] ss:$8 sps:$4 sm:$0xff]  }
  0x8a   : > { %2155 = vmatpush1.bf16.msra.mxu0 %v12169_v48  ;;  %v1981_v48 = vor.u32 %v1980_v42, %v1977_v41  ;;  %v12235_v41 = vld [vmem:[%s12980_s15 + $0x38] sm:$0xff]  }
  0x8b   : > { %2156 = vmatprep.subr.bf16.mxu0 %v12179_v51  ;;  %v12219_v51 = vld [vmem:[%s12980_s15 + $0x10] sm:$0xff]  }
  0x8c   : > { %2579 = vmatpush1.bf16.msra.mxu1 %v12199_v59  ;;  %v2461_v59 = vrot.slane %v12219_v51, 2  ;;  %v12245_v42 = vld [vmem:[%s17258_s1 + $0x310] ss:$8 sps:$4 sm:$0xff]   ;;  %v12278_v51 = vld [vmem:[%s17258_s1 + $0x394] ss:$8 sps:$4 sm:$0xff]  }
  0x8d   : > { %1290 = vmatmul.mubr.bf16.gmra.mxu0 %v1127_v57  ;;  %2580 = vmatprep.subr.bf16.mxu1 %v12210_v60  ;;  %v1982_v57 = vsel %vm17275_vm2, %v1973_v47, %v1981_v48  ;;  %v12217_v60 = vld [vmem:[%s17258_s1 + $0x364] ss:$8 sps:$4 sm:$0xff]   ;;  %v2467_v47 = vrot.slane %v13397_v31, 2 }
  0x8e   : > { %1299 = vmatprep.mubr.bf16.mxu0 %v13242_v49  ;;  %2157 = vmatpush1.bf16.msra.mxu0 %v12177_v56  ;;  %v13329_v56 = vld [vmem:[%s12980_s15 + $0x18] sm:$0xff]  }
  0x8f   : > { %2158 = vmatprep.subr.bf16.mxu0 %v12193_v58  ;;  %1713 = vmatmul.mubr.bf16.gmra.mxu1 %v1550_v62  ;;  %v2460_v58 = vrot.slane %v12218_v2, 2  ;;  %v1996_v62 = vshll.u32 %v12220_v46, 16  ;;  %v2468_v55 = vsel %vm17270_vm3, %v2465_v30, %v2467_v47 }
  0x90   : > { %1722 = vmatprep.mubr.bf16.mxu1 %v13242_v49  ;;  %2581 = vmatpush1.bf16.msra.mxu1 %v12208_v3  ;;  %v1990_v3 = vor.u32 %v1989_v54, %v1986_v53  ;;  %v12276_v53 = vld [vmem:[%s17258_s1 + $0x390] ss:$8 sps:$4 sm:$0xff]  }
  0x91   : > { %2582 = vmatprep.subr.bf16.mxu1 %v12213_v4  ;;  %v2462_v4 = vsel %vm17270_vm3, %v2460_v58, %v2461_v59  ;;  %v12281_v58 = vld [vmem:[%s17258_s1 + $0x384] ss:$8 sps:$4 sm:$0xff]  }
  0x92   : > { %2159 = vmatpush1.bf16.msra.mxu0 %v12191_v0  ;;  %v12224_v0 = vld [vmem:[%s17258_s1 + $0x354] ss:$8 sps:$4 sm:$0xff]   ;;  %v1991_v10 = vsel %vm17275_vm2, %v1981_v48, %v1990_v3 }
  0x93   : > { %2991 = vmatprep.subr.bf16.mxu0 %v12206_v1  ;;  %v12242_v1 = vld [vmem:[%s17258_s1 + $0x3f0] ss:$8 sps:$4 sm:$0xff]  }
  0x94   : > { %2583 = vmatpush1.bf16.msra.mxu1 %v12211_v8  ;;  %v12222_v8 = vld [vmem:[%s17258_s1 + $0x350] ss:$8 sps:$4 sm:$0xff]  }
  0x95   : > { %1300 = vmatmul.mubr.bf16.gmra.mxu0 %v1129_v5  ;;  %3485 = vmatprep.subr.bf16.mxu1 %v12244_v9  ;;  %v2463_v5 = vrot.slane %v13329_v56, 2  ;;  %v12229_v9 = vld [vmem:[%s17258_s1 + $0x344] ss:$8 sps:$4 sm:$0xff]   ;;  %v12236_v48 = vld [vmem:[%s12980_s15 + $0x30] sm:$0xff]   ;;  %v2020_v56 = vshrl.u32 %v12235_v41, 16 }
  0x96   : > { %1309 = vmatprep.mubr.bf16.mxu0 %v13242_v49 }
  0x97   : > { %1723 = vmatmul.mubr.bf16.gmra.mxu1 %v1552_v11  ;;  %v1998_v11 = vrot.slane %v1996_v62, 2  ;;  %v2464_v21 = vsel %vm17270_vm3, %v2461_v59, %v2463_v5  ;;  %v2466_v37 = vsel %vm17270_vm3, %v2463_v5, %v2465_v30  ;;  %v12240_v59 = vld [vmem:[%s12980_s15 + $0x40] sm:$0xff]   ;;  %v2022_v62 = vrot.slane %v2020_v56, 1 }
  0x98   : > { %1732 = vmatprep.mubr.bf16.mxu1 %v13242_v49  ;;  %v2029_v5 = vshrl.u32 %v12240_v59, 16 }
  0x9d   : > { %1310 = vmatmul.mubr.bf16.gmra.mxu0 %v1131_v13  ;;  %v2002_v13 = vshrl.u32 %v12225_v6, 16  ;;  %v2032_v6 = vshll.u32 %v12240_v59, 16 }
  0x9e   : > { %1319 = vmatprep.mubr.bf16.mxu0 %v13242_v49 }
  0x9f   : > { %1733 = vmatmul.mubr.bf16.gmra.mxu1 %v1554_v18  ;;  %v12234_v18 = vld [vmem:[%s17258_s1 + $0x334] ss:$8 sps:$4 sm:$0xff]   ;;  %v2004_v28 = vrot.slane %v2002_v13, 1 }
  0xa0   : > { %1742 = vmatprep.mubr.bf16.mxu1 %v13242_v49 }
  0xa1   : > { %v2008_v36 = vor.u32 %v2007_v29, %v2004_v28 }
  0xa5   : > { %1320 = vmatmul.mubr.bf16.gmra.mxu0 %v1133_v20  ;;  %v1999_v20 = vor.u32 %v1998_v11, %v1995_v63 }
  0xa6   : > { %1329 = vmatprep.mubr.bf16.mxu0 %v13242_v49 }
  0xa7   : > { %1743 = vmatmul.mubr.bf16.gmra.mxu1 %v1556_v23  ;;  %v12230_v23 = vld [vmem:[%s12980_s15 + $0x30] sm:$0xff]   ;;  %v2009_v45 = vsel %vm17275_vm2, %v1999_v20, %v2008_v36 }
  0xa8   : > { %1752 = vmatprep.mubr.bf16.mxu1 %v13242_v49  ;;  %v2014_v39 = vshll.u32 %v12230_v23, 16 }
  0xaa   : > { %v2016_v46 = vrot.slane %v2014_v39, 2 }
  0xad   : > { %1330 = vmatmul.mubr.bf16.gmra.mxu0 %v1135_v27  ;;  %v2000_v27 = vsel %vm17275_vm2, %v1990_v3, %v1999_v20 }
  0xae   : > { %1339 = vmatprep.mubr.bf16.mxu0 %v13242_v49 }
  0xaf   : > { %1753 = vmatmul.mubr.bf16.gmra.mxu1 %v1558_v34  ;;  %v12247_v34 = vld [vmem:[%s17258_s1 + $0x314] ss:$8 sps:$4 sm:$0xff]  }
  0xb0   : > { %1762 = vmatprep.mubr.bf16.mxu1 %v13242_v49 }
  0xb5   : > { %1340 = vmatmul.mubr.bf16.gmra.mxu0 %v1137_v38  ;;  %v2011_v38 = vshrl.u32 %v12230_v23, 16 }
  0xb6   : > { %2176 = vmatprep.mubr.bf16.mxu0 %v13242_v49 }
  0xb7   : > { %1763 = vmatmul.mubr.bf16.gmra.mxu1 %v1560_v50  ;;  %v2013_v2 = vrot.slane %v2011_v38, 1  ;;  %v12259_v50 = vld [vmem:[%s17258_s1 + $0x300] ss:$8 sps:$4 sm:$0xff]   ;;  %v12287_v38 = vld [vmem:[%s12980_s15 + $0x18] sm:$0xff]  }
  0xb8   : > { %2600 = vmatprep.mubr.bf16.mxu1 %v13242_v49  ;;  %v3319_v56 = vshll.u32 %v12287_v38, 16 }
  0xb9   : > { %v2017_v54 = vor.u32 %v2016_v46, %v2013_v2  ;;  %v12270_v46 = vld [vmem:[%s12980_s15 + $0x10] sm:$0xfc]  }
  0xbd   : > { %2177 = vmatmul.mubr.bf16.vlgmr.msra.gmra.mxu0 %v1982_v57  ;;  %v2023_v57 = vshll.u32 %v12235_v41, 16  ;;  %v12286_v41 = vld [vmem:[%s12980_s15 + $0x10] sm:$0xfc]  }
  0xbe   : > { %2992 = vmatpush1.bf16.msra.mxu0 %v12204_v52  ;;  %2186 = vmatprep.mubr.bf16.mxu0 %v13242_v49  ;;  %v12274_v52 = vld [vmem:[%s17258_s1 + $0x474] ss:$8 sps:$4 sm:$0xff]   ;;  %v3308_v59 = vshrl.u32 %v12286_v41, 16 }
  0xbf   : > { %2993 = vmatprep.subr.bf16.mxu0 %v12217_v60  ;;  %2601 = vmatmul.mubr.bf16.vlgmr.msra.gmra.mxu1 %v2462_v4  ;;  %v12279_v60 = vld [vmem:[%s17258_s1 + $0x380] ss:$8 sps:$4 sm:$0xff]   ;;  %v2025_v63 = vrot.slane %v2023_v57, 2 }
  0xc0   : > { %2610 = vmatprep.mubr.bf16.mxu1 %v13242_v49  ;;  %3486 = vmatpush1.bf16.msra.mxu1 %v12242_v1  ;;  %v12241_v1 = vld [vmem:[%s12980_s15 + $0x38] sm:$0xff]  }
  0xc1   : > { %3487 = vmatprep.subr.bf16.mxu1 %v12250_v7  ;;  %v2026_v3 = vor.u32 %v2025_v63, %v2022_v62  ;;  %v12251_v7 = vld [vmem:[%s12980_s15 + $0x48] sm:$0xff]   ;;  %v2471_v11 = vrot.slane %v12241_v1, 2  ;;  %v12289_v1 = vld [vmem:[%s12980_s15 + $0x20] sm:$0xff]  }
  0xc2   : > { %2994 = vmatpush1.bf16.msra.mxu0 %v12215_v61  ;;  %v2018_v61 = vsel %vm17275_vm2, %v2008_v36, %v2017_v54 }
  0xc3   : > { %2995 = vmatprep.subr.bf16.mxu0 %v12224_v0  ;;  %v2469_v0 = vrot.slane %v12236_v48, 2 }
  0xc4   : > { %3488 = vmatpush1.bf16.msra.mxu1 %v12248_v12  ;;  %v12252_v12 = vld [vmem:[%s12980_s15 + $0x40] sm:$0xff]  }
  0xc5   : > { %2187 = vmatmul.mubr.bf16.gmra.mxu0 %v1991_v10  ;;  %3489 = vmatprep.subr.bf16.mxu1 %v12255_v16  ;;  %v2470_v4 = vsel %vm17270_vm3, %v2467_v47, %v2469_v0  ;;  %v2034_v10 = vrot.slane %v2032_v6, 2  ;;  %v2472_v14 = vsel %vm17270_vm3, %v2469_v0, %v2471_v11  ;;  %v2041_v16 = vshll.u32 %v12251_v7, 16 }
  0xc6   : > { %2196 = vmatprep.mubr.bf16.mxu0 %v13242_v49  ;;  %2996 = vmatpush1.bf16.msra.mxu0 %v12222_v8  ;;  %v2027_v8 = vsel %vm17275_vm2, %v2017_v54, %v2026_v3  ;;  %v2883_v0 = vrot.slane %v12270_v46, 2 }
  0xc7   : > { %2997 = vmatprep.subr.bf16.mxu0 %v12229_v9  ;;  %2611 = vmatmul.mubr.bf16.gmra.mxu1 %v2464_v21  ;;  %v2031_v9 = vrot.slane %v2029_v5, 1  ;;  %v2043_v20 = vrot.slane %v2041_v16, 2  ;;  %v2473_v21 = vrot.slane %v12252_v12, 2  ;;  %v12272_v16 = vld [vmem:[%s17258_s1 + $0x470] ss:$8 sps:$4 sm:$0xff]  }
  0xc8   : > { %2620 = vmatprep.mubr.bf16.mxu1 %v13242_v49  ;;  %3490 = vmatpush1.bf16.msra.mxu1 %v12253_v19 }
  0xc9   : > { %3491 = vmatprep.subr.bf16.mxu1 %v12258_v22  ;;  %v2035_v13 = vor.u32 %v2034_v10, %v2031_v9  ;;  %v13466_v22 = vld [vmem:[%s12980_s15 + $0x48] sm:$0xff]   ;;  %v3310_v10 = vrot.slane %v3308_v59, 2 }
  0xca   : > { %2998 = vmatpush1.bf16.msra.mxu0 %v12227_v15  ;;  %v2038_v15 = vshrl.u32 %v12251_v7, 16  ;;  %v3321_v7 = vrot.slane %v3319_v56, 3 }
  0xcb   : > { %2999 = vmatprep.subr.bf16.mxu0 %v12234_v18  ;;  %v2036_v18 = vsel %vm17275_vm2, %v2026_v3, %v2035_v13 }
  0xcc   : > { %3492 = vmatpush1.bf16.msra.mxu1 %v12256_v26  ;;  %v2040_v19 = vrot.slane %v2038_v15, 1 }
  0xcd   : > { %2197 = vmatmul.mubr.bf16.gmra.mxu0 %v2000_v27  ;;  %3493 = vmatprep.subr.bf16.mxu1 %v12266_v33  ;;  %v2474_v27 = vsel %vm17270_vm3, %v2471_v11, %v2473_v21 }
  0xce   : > { %2206 = vmatprep.mubr.bf16.mxu0 %v13242_v49  ;;  %3000 = vmatpush1.bf16.msra.mxu0 %v12232_v24  ;;  %v2047_v24 = vshrl.u32 %v12262_v17, 16  ;;  %v2044_v26 = vor.u32 %v2043_v20, %v2040_v19  ;;  %v12285_v20 = vld [vmem:[%s17258_s1 + $0x464] ss:$8 sps:$4 sm:$0xff]  }
  0xcf   : > { %3001 = vmatprep.subr.bf16.mxu0 %v12239_v25  ;;  %2621 = vmatmul.mubr.bf16.gmra.mxu1 %v2466_v37  ;;  %v2050_v25 = vshll.u32 %v12262_v17, 16 }
  0xd0   : > { %2630 = vmatprep.mubr.bf16.mxu1 %v13242_v49  ;;  %3494 = vmatpush1.bf16.msra.mxu1 %v12264_v35  ;;  %v2049_v31 = vrot.slane %v2047_v24, 1  ;;  %v13473_v35 = vld [vmem:[#allocation2 + $0xb0] sm:$0xff]  ;;  %v3325_v24 = vshrl.u32 %v12289_v1, 16 }
  0xd1   : > { %3495 = vmatprep.subr.bf16.mxu1 %v12269_v40  ;;  %v12275_v40 = vld [vmem:[%s12980_s15 + $0x50] ss:$0 sps:$4 sm:$0x33]  }
  0xd2   : > { %3002 = vmatpush1.bf16.msra.mxu0 %v12237_v32  ;;  %v2052_v32 = vrot.slane %v2050_v25, 2  ;;  %v3328_v25 = vshll.u32 %v12289_v1, 16 }
  0xd3   : > { %3003 = vmatprep.subr.bf16.mxu0 %v12247_v34  ;;  %v2045_v34 = vsel %vm17275_vm2, %v2035_v13, %v2044_v26 }
  0xd4   : > { %3496 = vmatpush1.bf16.msra.mxu1 %v12267_v44  ;;  %v2053_v44 = vor.u32 %v2052_v32, %v2049_v31 }
  0xd5   : > { %2207 = vmatmul.mubr.bf16.gmra.mxu0 %v2009_v45  ;;  %3497 = vmatprep.subr.bf16.mxu1 %v12278_v51 }
  0xd6   : > { %2216 = vmatprep.mubr.bf16.mxu0 %v13242_v49  ;;  %3004 = vmatpush1.bf16.msra.mxu0 %v12245_v42  ;;  %v2054_v54 = vsel %vm17275_vm2, %v2044_v26, %v2053_v44 }
  0xd7   : > { %3005 = vmatprep.subr.bf16.mxu0 %v12261_v43  ;;  %2631 = vmatmul.mubr.bf16.gmra.mxu1 %v2468_v55  ;;  %v3316_v55 = vshrl.u32 %v12287_v38, 16  ;;  %v3327_v38 = vrot.slane %v3325_v24, 2 }
  0xd8   : > { %2640 = vmatprep.mubr.bf16.mxu1 %v13242_v49  ;;  %3498 = vmatpush1.bf16.msra.mxu1 %v12276_v53 }
  0xd9   : > { %3499 = vmatprep.subr.bf16.mxu1 %v12281_v58  ;;  %v2477_v58 = vrot.slane %v12275_v40, 2  ;;  %v3318_v6 = vrot.slane %v3316_v55, 2  ;;  %v3330_v40 = vrot.slane %v3328_v25, 3 }
  0xda   : > { %3006 = vmatpush1.bf16.msra.mxu0 %v12259_v50  ;;  %v13488_v50 = vld [vmem:[%s12980_s15 + $0x18] sm:$0xff]  }
  0xdb   : > { %3909 = vmatprep.subr.bf16.mxu0 %v12274_v52  ;;  %v2884_v5 = vrot.slane %v13488_v50, 2  ;;  %v12297_v50 = vld [vmem:[%s17258_s1 + $0x444] ss:$8 sps:$4 sm:$0xff]  }
  0xdc   : > { %3500 = vmatpush1.bf16.msra.mxu1 %v12279_v60  ;;  %v3311_v60 = vshll.u32 %v12286_v41, 16 }
  0xdd   : > { %2217 = vmatmul.mubr.bf16.gmra.mxu0 %v2018_v61  ;;  %v2885_v19 = vsel %vm17270_vm3, %v2883_v0, %v2884_v5 }
  0xde   : > { %2226 = vmatprep.mubr.bf16.mxu0 %v13242_v49  ;;  %v3313_v11 = vrot.slane %v3311_v60, 3  ;;  %v12295_v60 = vld [vmem:[%s17258_s1 + $0x440] ss:$8 sps:$4 sm:$0xff]  }
  0xdf   : > { %2641 = vmatmul.mubr.bf16.gmra.mxu1 %v2470_v4 }
  0xe0   : > { %2650 = vmatprep.mubr.bf16.mxu1 %v13242_v49 }
  0xe5   : > { %2227 = vmatmul.mubr.bf16.gmra.mxu0 %v2027_v8 }
  0xe6   : > { %2236 = vmatprep.mubr.bf16.mxu0 %v13242_v49 }
  0xe7   : > { %2651 = vmatmul.mubr.bf16.gmra.mxu1 %v2472_v14  ;;  %v13505_v14 = vld [vmem:[%s12980_s15 + $0x20] sm:$0xff]  }
  0xe8   : > { %2660 = vmatprep.mubr.bf16.mxu1 %v13242_v49 }
  0xed   : > { %v428_v23 = vpop.f32.mrf.mxu0  ;;  %2237 = vmatmul.mubr.bf16.gmra.mxu0 %v2036_v18 }
  0xee   : > { %2246 = vmatprep.mubr.bf16.mxu0 %v13242_v49  ;;  %v2475_v49 = vrot.slane %v13466_v22, 2 }
  0xef   : > { %v430_v28 = vpop.f32.mrf.mxu0  ;;  %v837_v30 = vpop.f32.mrf.mxu1  ;;  %2661 = vmatmul.mubr.bf16.gmra.mxu1 %v2474_v27 }
  0xf0   : > { %v13470_v33 = vadd.f32 %v837_v30, %v428_v23  ;;  %2670 = vmatprep.mubr.bf16.mxu1 %v13473_v35  ;;  %v2476_v2 = vsel %vm17270_vm3, %v2473_v21, %v2475_v49  ;;  %v2478_v9 = vsel %vm17270_vm3, %v2475_v49, %v2477_v58  ;;  %v3322_v21 = vor.u32 %v3321_v7, %v3318_v6  ;;  %v12294_v30 = vld [vmem:[%s12980_s15 + $0x28] sm:$0xff]   ;;  %v12292_v49 = vld [vmem:[%s17258_s1 + $0x454] ss:$8 sps:$4 sm:$0xff]  }
  0xf1   : > { %v432_v29 = vpop.f32.mrf.mxu0  ;;  %v839_v37 = vpop.f32.mrf.mxu1  ;;  %v3314_v23 = vor.u32 %v3313_v11, %v3310_v10  ;;  %v3337_v55 = vshll.u32 %v12294_v30, 16  ;;  %v13563_v11 = vld [vmem:[%s12980_s15 + $0x30] sm:$0xff]  }
  0xf2   : > { %v13478_v39 = vadd.f32 %v839_v37, %v430_v28 }
  0xf3   : > { %v434_v36 = vpop.f32.mrf.mxu0  ;;  %v841_v43 = vpop.f32.mrf.mxu1  ;;  %v3323_v37 = vsel %vm17268_vm4, %v3314_v23, %v3322_v21  ;;  %v3339_v7 = vrot.slane %v3337_v55, 3 }
  0xf4   : > { %v13482_v45 = vadd.f32 %v841_v43, %v432_v29  ;;  %v12283_v29 = vld [vmem:[%s17258_s1 + $0x460] ss:$8 sps:$4 sm:$0xff]  }
  0xf5   : > { %v438_v42 = vpop.f32.mrf.mxu0  ;;  %2247 = vmatmul.mubr.bf16.gmra.mxu0 %v2045_v34  ;;  %v843_v48 = vpop.f32.mrf.mxu1  ;;  %v2886_v34 = vrot.slane %v13505_v14, 2  ;;  %v13534_v43 = vld [vmem:[%s12980_s15 + $0x28] sm:$0xff]  }
  0xf6   : > { %2256 = vmatprep.mubr.bf16.mxu0 %v13473_v35  ;;  %v13490_v51 = vadd.f32 %v843_v48, %v434_v36  ;;  %v2888_v1 = vrot.slane %v13534_v43, 2  ;;  %v13592_v43 = vld [vmem:[%s12980_s15 + $0x38] sm:$0xff]  }
  0xf7   : > { %v440_v47 = vpop.f32.mrf.mxu0  ;;  %v847_v53 = vpop.f32.mrf.mxu1  ;;  %2671 = vmatmul.mubr.bf16.gmra.mxu1 %v2476_v2  ;;  %v12290_v2 = vld [vmem:[%s17258_s1 + $0x450] ss:$8 sps:$4 sm:$0xff]   ;;  %v2887_v48 = vsel %vm17270_vm3, %v2884_v5, %v2886_v34 }
  0xf8   : > { %v13493_v57 = vadd.f32 %v847_v53, %v438_v42  ;;  %2680 = vmatprep.mubr.bf16.mxu1 %v13473_v35  ;;  %v3331_v53 = vor.u32 %v3330_v40, %v3327_v38 }
  0xf9   : > { %v442_v52 = vpop.f32.mrf.mxu0  ;;  %v849_v62 = vpop.f32.mrf.mxu1 }
  0xfa   : > { %v13496_v63 = vadd.f32 %v849_v62, %v440_v47  ;;  %v3332_v5 = vsel %vm17268_vm4, %v3322_v21, %v3331_v53 }
  0xfb   : > { %v444_v61 = vpop.f32.mrf.mxu0  ;;  %v851_v4 = vpop.f32.mrf.mxu1 }
  0xfc   : > { %v13500_v8 = vadd.f32 %v851_v4, %v442_v52 }
  0xfd   : > { %v448_v3 = vpop.f32.mrf.mxu0  ;;  %2257 = vmatmul.mubr.bf16.gmra.mxu0 %v2054_v54  ;;  %v853_v13 = vpop.f32.mrf.mxu1  ;;  %v3334_v54 = vshrl.u32 %v12294_v30, 16 }
  0xfe   : > { %3023 = vmatprep.mubr.bf16.mxu0 %v13473_v35  ;;  %v13507_v15 = vadd.f32 %v853_v13, %v444_v61  ;;  %v12299_v61 = vld [vmem:[%s12980_s15 + $0x30] sm:$0xff]  }
  0xff   : > { %v450_v12 = vpop.f32.mrf.mxu0  ;;  %v857_v18 = vpop.f32.mrf.mxu1  ;;  %2681 = vmatmul.mubr.bf16.gmra.mxu1 %v2478_v9  ;;  %v3336_v6 = vrot.slane %v3334_v54, 2  ;;  %v12300_v13 = vld [vmem:[%s17258_s1 + $0x430] ss:$8 sps:$4 sm:$0xff]   ;;  %v3343_v21 = vshrl.u32 %v12299_v61, 16  ;;  %v3346_v23 = vshll.u32 %v12299_v61, 16 }
 0x100   : > { %v13516_v22 = vadd.f32 %v857_v18, %v448_v3  ;;  %3517 = vmatprep.mubr.bf16.mxu1 %v13473_v35  ;;  %v12302_v3 = vld [vmem:[%s17258_s1 + $0x434] ss:$8 sps:$4 sm:$0xff]   ;;  %v12307_v18 = vld [vmem:[%s17258_s1 + $0x424] ss:$8 sps:$4 sm:$0xff]  }
 0x101   : > { %v452_v17 = vpop.f32.mrf.mxu0  ;;  %v859_v27 = vpop.f32.mrf.mxu1  ;;  %v3345_v38 = vrot.slane %v3343_v21, 2  ;;  %v3348_v40 = vrot.slane %v3346_v23, 3 }
 0x102   : > { %v13519_v28 = vadd.f32 %v859_v27, %v450_v12  ;;  %v12304_v27 = vld [vmem:[%s12980_s15 + $0x38] sm:$0xff]  }
 0x103   : > { %v454_v26 = vpop.f32.mrf.mxu0  ;;  %v861_v32 = vpop.f32.mrf.mxu1  ;;  %v3349_v55 = vor.u32 %v3348_v40, %v3345_v38 }
 0x104   : > { %v13529_v36 = vadd.f32 %v861_v32, %v452_v17  ;;  %v2889_v17 = vsel %vm17270_vm3, %v2886_v34, %v2888_v1  ;;  %v2890_v32 = vrot.slane %v13563_v11, 2  ;;  %v12312_v34 = vld [vmem:[%s17258_s1 + $0x414] ss:$8 sps:$4 sm:$0xff]  }
 0x105   : > { %v458_v31 = vpop.f32.mrf.mxu0  ;;  %3024 = vmatmul.mubr.bf16.vlgmr.msra.gmra.mxu0 %v2885_v19  ;;  %v863_v42 = vpop.f32.mrf.mxu1 }
 0x106   : > { %3910 = vmatpush1.bf16.msra.mxu0 %v12272_v16  ;;  %3033 = vmatprep.mubr.bf16.mxu0 %v13473_v35  ;;  %v13536_v44 = vadd.f32 %v863_v42, %v454_v26 }
 0x107   : > { %v460_v41 = vpop.f32.mrf.mxu0  ;;  %3911 = vmatprep.subr.bf16.mxu0 %v12285_v20  ;;  %v867_v47 = vpop.f32.mrf.mxu1  ;;  %3518 = vmatmul.mubr.bf16.vlgmr.msra.gmra.mxu1 %v3323_v37  ;;  %v3340_v20 = vor.u32 %v3339_v7, %v3336_v6  ;;  %v2892_v6 = vrot.slane %v13592_v43, 2 }
 0x108   : > { %v13545_v52 = vadd.f32 %v867_v47, %v458_v31  ;;  %3527 = vmatprep.mubr.bf16.mxu1 %v13473_v35 }
 0x109   : > { %v462_v46 = vpop.f32.mrf.mxu0  ;;  %v869_v58 = vpop.f32.mrf.mxu1  ;;  %v3341_v37 = vsel %vm17268_vm4, %v3331_v53, %v3340_v20  ;;  %v12317_v53 = vld [vmem:[%s17258_s1 + $0x404] ss:$8 sps:$4 sm:$0xff]   ;;  %v2893_v23 = vsel %vm17270_vm3, %v2890_v32, %v2892_v6 }
 0x10a   : > { %3912 = vmatpush1.bf16.msra.mxu0 %v12283_v29  ;;  %v13548_v59 = vadd.f32 %v869_v58, %v460_v41  ;;  %v12305_v29 = vld [vmem:[%s17258_s1 + $0x420] ss:$8 sps:$4 sm:$0xff]   ;;  %v3355_v58 = vshll.u32 %v12304_v27, 16 }
 0x10b   : > { %v464_v56 = vpop.f32.mrf.mxu0  ;;  %3913 = vmatprep.subr.bf16.mxu0 %v12292_v49  ;;  %v871_v0 = vpop.f32.mrf.mxu1 }
 0x10c   : > { %v13558_v4 = vadd.f32 %v871_v0, %v462_v46  ;;  %v12310_v46 = vld [vmem:[%s17258_s1 + $0x410] ss:$8 sps:$4 sm:$0xff]   ;;  %v12309_v0 = vld [vmem:[%s12980_s15 + $0x40] sm:$0xff]   ;;  %v3357_v11 = vrot.slane %v3355_v58, 3 }
 0x10d   : > { %v468_v62 = vpop.f32.mrf.mxu0  ;;  %3034 = vmatmul.mubr.bf16.gmra.mxu0 %v2887_v48  ;;  %v873_v10 = vpop.f32.mrf.mxu1 }
 0x10e   : > { %3043 = vmatprep.mubr.bf16.mxu0 %v13473_v35  ;;  %3914 = vmatpush1.bf16.msra.mxu0 %v12290_v2  ;;  %v13565_v12 = vadd.f32 %v873_v10, %v464_v56  ;;  %v3352_v56 = vshrl.u32 %v12304_v27, 16  ;;  %v3364_v27 = vshll.u32 %v12309_v0, 16 }
 0x10f   : > { %v470_v9 = vpop.f32.mrf.mxu0  ;;  %3915 = vmatprep.subr.bf16.mxu0 %v12297_v50  ;;  %v877_v16 = vpop.f32.mrf.mxu1  ;;  %3528 = vmatmul.mubr.bf16.gmra.mxu1 %v3332_v5  ;;  %v2891_v50 = vsel %vm17270_vm3, %v2888_v1, %v2890_v32  ;;  %v12315_v1 = vld [vmem:[%s17258_s1 + $0x400] ss:$8 sps:$4 sm:$0xff]  }
 0x110   : > { %v13574_v19 = vadd.f32 %v877_v16, %v468_v62  ;;  %3537 = vmatprep.mubr.bf16.mxu1 %v13473_v35  ;;  %v3354_v10 = vrot.slane %v3352_v56, 2  ;;  %v13618_v16 = vld [vmem:[%s12980_s15 + $0x40] sm:$0xff]   ;;  %v3366_v43 = vrot.slane %v3364_v27, 3 }
 0x111   : > { %v472_v14 = vpop.f32.mrf.mxu0  ;;  %v879_v25 = vpop.f32.mrf.mxu1  ;;  %v2894_v40 = vrot.slane %v13618_v16, 2 }
 0x112   : > { %3916 = vmatpush1.bf16.msra.mxu0 %v12295_v60  ;;  %v13577_v26 = vadd.f32 %v879_v25, %v470_v9  ;;  %v3350_v9 = vsel %vm17268_vm4, %v3340_v20, %v3349_v55  ;;  %v3358_v20 = vor.u32 %v3357_v11, %v3354_v10  ;;  %v3361_v25 = vshrl.u32 %v12309_v0, 16  ;;  %v12308_v0 = vld [vmem:[%s12980_s15 + $0x48] sm:$0xff]  }
 0x113   : > { %v474_v24 = vpop.f32.mrf.mxu0  ;;  %3917 = vmatprep.subr.bf16.mxu0 %v12302_v3  ;;  %v881_v31 = vpop.f32.mrf.mxu1 }
 0x114   : > { %v13587_v49 = vadd.f32 %v881_v31, %v472_v14  ;;  %v12314_v31 = vld [vmem:[%s12980_s15 + $0x48] sm:$0xff]  }
 0x115   : > { %v478_v30 = vpop.f32.mrf.mxu0  ;;  %3044 = vmatmul.mubr.bf16.gmra.mxu0 %v2889_v17  ;;  %v883_v42 = vpop.f32.mrf.mxu1  ;;  %v3370_v56 = vshrl.u32 %v12314_v31, 16  ;;  %v3373_v58 = vshll.u32 %v12314_v31, 16 }
 0x116   : > { %3053 = vmatprep.mubr.bf16.mxu0 %v13473_v35  ;;  %3918 = vmatpush1.bf16.msra.mxu0 %v12300_v13  ;;  %v13594_v2 = vadd.f32 %v883_v42, %v474_v24  ;;  %v3363_v42 = vrot.slane %v3361_v25, 2 }
 0x117   : > { %v480_v41 = vpop.f32.mrf.mxu0  ;;  %3919 = vmatprep.subr.bf16.mxu0 %v12307_v18  ;;  %v887_v48 = vpop.f32.mrf.mxu1  ;;  %3538 = vmatmul.mubr.bf16.gmra.mxu1 %v3341_v37  ;;  %v3372_v11 = vrot.slane %v3370_v56, 2 }
 0x118   : > { %v13603_v54 = vadd.f32 %v887_v48, %v478_v30  ;;  %3547 = vmatprep.mubr.bf16.mxu1 %v13473_v35 }
 0x119   : > { %v482_v47 = vpop.f32.mrf.mxu0  ;;  %v889_v61 = vpop.f32.mrf.mxu1 }
 0x11a   : > { %3920 = vmatpush1.bf16.msra.mxu0 %v12305_v29  ;;  %v13606_v62 = vadd.f32 %v889_v61, %v480_v41  ;;  %v3359_v41 = vsel %vm17268_vm4, %v3349_v55, %v3358_v20  ;;  %v2895_v61 = vsel %vm17270_vm3, %v2892_v6, %v2894_v40  ;;  %v3367_v55 = vor.u32 %v3366_v43, %v3363_v42 }
 0x11b   : > { %v484_v60 = vpop.f32.mrf.mxu0  ;;  %3921 = vmatprep.subr.bf16.mxu0 %v12312_v34  ;;  %v891_v5 = vpop.f32.mrf.mxu1  ;;  %v2896_v6 = vrot.slane %v12308_v0, 2 }
 0x11c   : > { %v13613_v7 = vadd.f32 %v891_v5, %v482_v47  ;;  %v3368_v16 = vsel %vm17268_vm4, %v3358_v20, %v3367_v55 }
 0x11d   : > { %v488_v3 = vpop.f32.mrf.mxu0  ;;  %3054 = vmatmul.mubr.bf16.gmra.mxu0 %v2891_v50  ;;  %v893_v14 = vpop.f32.mrf.mxu1 }
 0x11e   : > { %3063 = vmatprep.mubr.bf16.mxu0 %v13473_v35  ;;  %3922 = vmatpush1.bf16.msra.mxu0 %v12310_v46  ;;  %v13620_v17 = vadd.f32 %v893_v14, %v484_v60 }
 0x11f   : > { %v490_v13 = vpop.f32.mrf.mxu0  ;;  %3923 = vmatprep.subr.bf16.mxu0 %v12317_v53  ;;  %v897_v21 = vpop.f32.mrf.mxu1  ;;  %3548 = vmatmul.mubr.bf16.gmra.mxu1 %v3350_v9 }
 0x120   : > { %v13623_v24 = vadd.f32 %v897_v21, %v488_v3  ;;  %3557 = vmatprep.mubr.bf16.mxu1 %v13473_v35 }
 0x121   : > { %v492_v18 = vpop.f32.mrf.mxu0  ;;  %v899_v30 = vpop.f32.mrf.mxu1 }
 0x122   : > { %3924 = vmatpush1.bf16.msra.mxu0 %v12315_v1  ;;  %v13627_v34 = vadd.f32 %v899_v30, %v490_v13  ;;  %v3375_v13 = vrot.slane %v3373_v58, 3  ;;  %v12313_v30 = vld [vmem:[%s12980_s15 + $0x50] sm:$0xff]   ;;  %v12322_v58 = vld [vmem:[%s12980_s15 + $0x58] ss:$0 sps:$4 sm:$0x77]  }
 0x123   : > { %v494_v29 = vpop.f32.mrf.mxu0  ;;  %v901_v38 = vpop.f32.mrf.mxu1 }
 0x124   : > { %v13630_v32 = vadd.f32 %v901_v38, %v492_v18  ;;  %v12319_v18 = vld [vmem:[%s12980_s15 + $0x50] sm:$0xff]   ;;  %v3376_v31 = vor.u32 %v3375_v13, %v3372_v11  ;;  %v2897_v38 = vsel %vm17270_vm3, %v2894_v40, %v2896_v6 }
 0x125   : > { %v498_v37 = vpop.f32.mrf.mxu0  ;;  %3064 = vmatmul.mubr.bf16.gmra.mxu0 %v2893_v23  ;;  %v903_v47 = vpop.f32.mrf.mxu1  ;;  %v3382_v42 = vshll.u32 %v12319_v18, 16 }
 0x126   : > { %3073 = vmatprep.mubr.bf16.mxu0 %v13473_v35  ;;  %v13634_v48 = vadd.f32 %v903_v47, %v494_v29  ;;  %v3377_v56 = vsel %vm17268_vm4, %v3367_v55, %v3376_v31  ;;  %v3391_v55 = vshll.u32 %v12322_v58, 16 }
 0x127   : > { %v500_v46 = vpop.f32.mrf.mxu0  ;;  %v907_v53 = vpop.f32.mrf.mxu1  ;;  %3558 = vmatmul.mubr.bf16.gmra.mxu1 %v3359_v41  ;;  %v3379_v41 = vshrl.u32 %v12319_v18, 16 }
 0x128   : > { %v13636_v60 = vadd.f32 %v907_v53, %v498_v37  ;;  %3567 = vmatprep.mubr.bf16.mxu1 %v13473_v35  ;;  %v2898_v53 = vrot.slane %v12313_v30, 2 }
 0x129   : > { %v502_v50 = vpop.f32.mrf.mxu0  ;;  %v909_v3 = vpop.f32.mrf.mxu1  ;;  %v3381_v0 = vrot.slane %v3379_v41, 2 }
 0x12a   : > { %v13641_v5 = vadd.f32 %v909_v3, %v500_v46 }
 0x12b   : > { %v504_v1 = vpop.f32.mrf.mxu0  ;;  %v911_v10 = vpop.f32.mrf.mxu1 }
 0x12c   : > { %v13643_v14 = vadd.f32 %v911_v10, %v502_v50 }
 0x12d   : > { %v508_v9 = vpop.f32.mrf.mxu0  ;;  %3074 = vmatmul.mubr.bf16.gmra.mxu0 %v2895_v61  ;;  %v913_v23 = vpop.f32.mrf.mxu1 }
 0x12e   : > { %3083 = vmatprep.mubr.bf16.mxu0 %v13473_v35  ;;  %v13648_v25 = vadd.f32 %v913_v23, %v504_v1  ;;  %v3384_v1 = vrot.slane %v3382_v42, 3  ;;  %v12318_v23 = vld [vmem:[%s12980_s15 + $0x58] ss:$0 sps:$4 sm:$0x33]  }
 0x12f   : > { %v510_v21 = vpop.f32.mrf.mxu0  ;;  %v917_v29 = vpop.f32.mrf.mxu1  ;;  %3568 = vmatmul.mubr.bf16.gmra.mxu1 %v3368_v16  ;;  %v3388_v16 = vshrl.u32 %v12322_v58, 16 }
 0x130   : > { %v13651_v37 = vadd.f32 %v917_v29, %v508_v9  ;;  %3577 = vmatprep.mubr.bf16.mxu1 %v13473_v35 }
 0x131   : > { %v512_v27 = vpop.f32.mrf.mxu0  ;;  %v919_v43 = vpop.f32.mrf.mxu1 }
 0x132   : > { %v13657_v46 = vadd.f32 %v919_v43, %v510_v21  ;;  %v3390_v43 = vrot.slane %v3388_v16, 2  ;;  %v12321_v16 = vld [vmem:[%s12980_s15 + $0x18] sm:$0xff]  }
 0x133   : > { %v13655_v20 = vpop.f32.mrf.mxu0  ;;  %v921_v50 = vpop.f32.mrf.mxu1 }
 0x134   : > { %v13662_v40 = vadd.f32 %v921_v50, %v512_v27  ;;  %v3385_v27 = vor.u32 %v3384_v1, %v3381_v0  ;;  %v2900_v50 = vrot.slane %v12318_v23, 2 }
 0x135   : > { %v1261_v47 = vpop.f32.mrf.mxu0  ;;  %3084 = vmatmul.mubr.bf16.gmra.mxu0 %v2897_v38  ;;  %v13665_v9 = vpop.f32.mrf.mxu1 }
 0x136   : > { %v1386_v61 = vadd.f32 %v1261_v47, %v13470_v33  ;;  %3093 = vmatprep.mubr.bf16.mxu0 %v13473_v35  ;;  %v2899_v33 = vsel %vm17270_vm3, %v2896_v6, %v2898_v53 }
 0x137   : > { %v1263_v3 = vpop.f32.mrf.mxu0  ;;  %v1684_v13 = vpop.f32.mrf.mxu1  ;;  %3578 = vmatmul.mubr.bf16.gmra.mxu1 %v3377_v56  ;;  %v3386_v56 = vsel %vm17268_vm4, %v3376_v31, %v3385_v27 }
 0x138   : > { %v1387_v10 = vadd.f32 %v1263_v3, %v13478_v39  ;;  %v13670_v21 = vadd.f32 %v1684_v13, %v1386_v61  ;;  %3587 = vmatprep.mubr.bf16.mxu1 %v13473_v35  ;;  %v12320_v13 = vld [vmem:[%s12980_s15 + $0x10] sm:$0xf8]  }
 0x139   : > { %v1265_v11 = vpop.f32.mrf.mxu0  ;;  %v1686_v30 = vpop.f32.mrf.mxu1 }
 0x13a   : > { %v1388_v18 = vadd.f32 %v1265_v11, %v13482_v45  ;;  %v13677_v39 = vadd.f32 %v1686_v30, %v1387_v10  ;;  %v3393_v45 = vrot.slane %v3391_v55, 3  ;;  %v3801_v30 = vrot.slane %v12320_v13, 3 }
 0x13b   : > { %v1267_v29 = vpop.f32.mrf.mxu0  ;;  %v1688_v42 = vpop.f32.mrf.mxu1 }
 0x13c   : > { %v13675_v38 = vadd.f32 %v1267_v29, %v13490_v51  ;;  %v13680_v47 = vadd.f32 %v1688_v42, %v1388_v18  ;;  %v3394_v3 = vor.u32 %v3393_v45, %v3390_v43 }
 0x13d   : > { %v1271_v41 = vpop.f32.mrf.mxu0  ;;  %3094 = vmatmul.mubr.bf16.gmra.mxu0 %v2899_v33  ;;  %v13684_v58 = vpop.f32.mrf.mxu1 }
 0x13e   : > { %v1390_v6 = vadd.f32 %v1271_v41, %v13493_v57  ;;  %3103 = vmatprep.mubr.bf16.mxu0 %v13473_v35  ;;  %v2901_v57 = vsel %vm17270_vm3, %v2898_v53, %v2900_v50  ;;  %v3802_v41 = vrot.slane %v12321_v16, 3  ;;  %vm4343_vm3 = vsmask.f32 2304 }
 0x13f   : > { %v1273_v51 = vpop.f32.mrf.mxu0  ;;  %v1694_v1 = vpop.f32.mrf.mxu1  ;;  %3588 = vmatmul.mubr.bf16.gmra.mxu1 %v3386_v56  ;;  %v12323_v56 = vld [vmem:[%s12980_s15 + $0x20] sm:$0xff]  }
 0x140   : > { %v1391_v61 = vadd.f32 %v1273_v51, %v13496_v63  ;;  %v13689_v11 = vadd.f32 %v1694_v1, %v1390_v6  ;;  %3597 = vmatprep.mubr.bf16.mxu1 %v13473_v35  ;;  %v3803_v50 = vsel %vm17269_vm5, %v3801_v30, %v3802_v41 }
 0x141   : > { %v1275_v0 = vpop.f32.mrf.mxu0  ;;  %v1696_v55 = vpop.f32.mrf.mxu1 }
 0x142   : > { %v1392_v10 = vadd.f32 %v1275_v0, %v13500_v8  ;;  %v13697_v63 = vadd.f32 %v1696_v55, %v1391_v61  ;;  %v3395_v8 = vsel %vm17268_vm4, %v3385_v27, %v3394_v3  ;;  %vm4335_vm4 = vsmask.f32 7962 }
 0x143   : > { %v1277_v31 = vpop.f32.mrf.mxu0  ;;  %v1698_v23 = vpop.f32.mrf.mxu1 }
 0x144   : > { %v13695_v18 = vadd.f32 %v1277_v31, %v13507_v15  ;;  %v13701_v29 = vadd.f32 %v1698_v23, %v1392_v10 }
 0x145   : > { %v1281_v33 = vpop.f32.mrf.mxu0  ;;  %3104 = vmatmul.mubr.bf16.gmra.mxu0 %v2901_v57  ;;  %v13704_v43 = vpop.f32.mrf.mxu1 }
 0x146   : > { %17309 = vst [vmem:[#allocation5_spill] sm:$0xff] %v13695_v18  ;;  %v1394_v53 = vadd.f32 %v1281_v33, %v13516_v22  ;;  %3941 = vmatprep.mubr.bf16.mxu0 %v13473_v35  ;;  %17310 = vst [vmem:[#allocation6_spill] sm:$0xff] %v13704_v43 }
 0x147   : > { %v1283_v42 = vpop.f32.mrf.mxu0  ;;  %v1704_v6 = vpop.f32.mrf.mxu1  ;;  %3598 = vmatmul.mubr.bf16.gmra.mxu1 %v3395_v8 }
 0x148   : > { %v1395_v15 = vadd.f32 %v1283_v42, %v13519_v28  ;;  %v13709_v22 = vadd.f32 %v1704_v6, %v1394_v53  ;;  %v12324_v53 = vld [vmem:[%s12980_s15 + $0x28] sm:$0xff]  }
 0x149   : > { %v1285_v45 = vpop.f32.mrf.mxu0  ;;  %v1706_v61 = vpop.f32.mrf.mxu1 }
 0x14a   : > { %v1396_v27 = vadd.f32 %v1285_v45, %v13529_v36  ;;  %v13715_v1 = vadd.f32 %v1706_v61, %v1395_v15  ;;  %v3804_v36 = vrot.slane %v12323_v56, 3 }
 0x14b   : > { %v1287_v51 = vpop.f32.mrf.mxu0  ;;  %v1708_v28 = vpop.f32.mrf.mxu1 }
 0x14c   : > { %v13713_v0 = vadd.f32 %v1287_v51, %v13536_v44  ;;  %v13718_v57 = vadd.f32 %v1708_v28, %v1396_v27  ;;  %v3805_v23 = vsel %vm17269_vm5, %v3802_v41, %v3804_v36  ;;  %v3806_v41 = vrot.slane %v12324_v53, 3 }
 0x14d   : > { %v1291_v3 = vpop.f32.mrf.mxu0  ;;  %3942 = vmatmul.mubr.bf16.vlgmr.msra.gmra.mxu0 %v3803_v50  ;;  %v13721_v16 = vpop.f32.mrf.mxu1 }
 0x14e   : > { %17311 = vst [vmem:[#allocation7_spill] sm:$0xff] %v13713_v0  ;;  %v1398_v10 = vadd.f32 %v1291_v3, %v13545_v52  ;;  %3951 = vmatprep.mubr.bf16.mxu0 %v13473_v35  ;;  %17312 = vst [vmem:[#allocation8_spill] sm:$0xff] %v13721_v16  ;;  %v3807_v3 = vsel %vm17269_vm5, %v3804_v36, %v3806_v41 }
 0x14f   : > { %v1293_v13 = vpop.f32.mrf.mxu0  ;;  %v1714_v55 = vpop.f32.mrf.mxu1 }
 0x150   : > { %v1399_v31 = vadd.f32 %v1293_v13, %v13548_v59  ;;  %v13726_v8 = vadd.f32 %v1714_v55, %v1398_v10 }
 0x151   : > { %v1295_v44 = vpop.f32.mrf.mxu0  ;;  %v1716_v30 = vpop.f32.mrf.mxu1 }
 0x152   : > { %v1400_v33 = vadd.f32 %v1295_v44, %v13558_v4  ;;  %v13732_v35 = vadd.f32 %v1716_v30, %v1399_v31  ;;  %v13737_v4 = vld [vmem:[#allocation2 + $0xb0] sm:$0xff] }
 0x153   : > { %v1297_v52 = vpop.f32.mrf.mxu0  ;;  %v1718_v59 = vpop.f32.mrf.mxu1 }
 0x154   : > { %v13730_v42 = vadd.f32 %v1297_v52, %v13565_v12  ;;  %v13735_v6 = vadd.f32 %v1718_v59, %v1400_v33 }
 0x155   : > { %v1301_v15 = vpop.f32.mrf.mxu0  ;;  %3952 = vmatmul.mubr.bf16.gmra.mxu0 %v3805_v23  ;;  %v13740_v50 = vpop.f32.mrf.mxu1 }
 0x156   : > { %17313 = vst [vmem:[#allocation9_spill] sm:$0xff] %v13730_v42  ;;  %v1402_v45 = vadd.f32 %v1301_v15, %v13574_v19  ;;  %3961 = vmatprep.mubr.bf16.mxu0 %v13737_v4  ;;  %17314 = vst [vmem:[#allocation10_spill] sm:$0xff] %v13740_v50  ;;  %v12325_v19 = vld [vmem:[%s12980_s15 + $0x30] sm:$0xff]   ;;  %v12430_v42 = vld [vmem:[%s17259_s2 + $0x180] ss:$8 sps:$4 sm:$0xff]  }
 0x157   : > { %v1303_v27 = vpop.f32.mrf.mxu0  ;;  %v1724_v51 = vpop.f32.mrf.mxu1 }
 0x158   : > { %v1403_v12 = vadd.f32 %v1303_v27, %v13577_v26  ;;  %v13745_v28 = vadd.f32 %v1724_v51, %v1402_v45  ;;  %v12326_v27 = vld [vmem:[%s12980_s15 + $0x38] sm:$0xff]  }
 0x159   : > { %v1305_v56 = vpop.f32.mrf.mxu0  ;;  %v1726_v13 = vpop.f32.mrf.mxu1 }
 0x15a   : > { %v1404_v61 = vadd.f32 %v1305_v56, %v13587_v49  ;;  %v13751_v44 = vadd.f32 %v1726_v13, %v1403_v12  ;;  %v3808_v49 = vrot.slane %v12325_v19, 3  ;;  %v12331_v13 = vld [vmem:[%s17259_s2 + $0x70] ss:$8 sps:$4 sm:$0xff]  }
 0x15b   : > { %v1307_v10 = vpop.f32.mrf.mxu0  ;;  %v1728_v26 = vpop.f32.mrf.mxu1 }
 0x15c   : > { %v13749_v31 = vadd.f32 %v1307_v10, %v13594_v2  ;;  %v13754_v23 = vadd.f32 %v1728_v26, %v1404_v61  ;;  %v3809_v59 = vsel %vm17269_vm5, %v3806_v41, %v3808_v49  ;;  %v12333_v41 = vld [vmem:[%s17259_s2 + $0x74] ss:$8 sps:$4 sm:$0xff]  }
 0x15d   : > { %v1311_v55 = vpop.f32.mrf.mxu0  ;;  %3962 = vmatmul.mubr.bf16.gmra.mxu0 %v3807_v3  ;;  %v13757_v53 = vpop.f32.mrf.mxu1  ;;  %5200 = vmatprep.subr.bf16.mxu1 %v12333_v41 }
 0x15e   : > { %v1406_v33 = vadd.f32 %v1311_v55, %v13603_v54  ;;  %3971 = vmatprep.mubr.bf16.mxu0 %v13737_v4  ;;  %5201 = vmatpush1.bf16.msra.mxu1 %v12331_v13 }
 0x15f   : > { %v1313_v36 = vpop.f32.mrf.mxu0  ;;  %v1734_v30 = vpop.f32.mrf.mxu1 }
 0x160   : > { %v1407_v52 = vadd.f32 %v1313_v36, %v13606_v62  ;;  %v13762_v45 = vadd.f32 %v1734_v30, %v1406_v33  ;;  %v12336_v30 = vld [vmem:[%s17259_s2 + $0x64] ss:$8 sps:$4 sm:$0xff]  }
 0x161   : > { %v1315_v2 = vpop.f32.mrf.mxu0  ;;  %v1736_v12 = vpop.f32.mrf.mxu1  ;;  %5202 = vmatprep.subr.bf16.mxu1 %v12336_v30 }
 0x162   : > { %v1408_v15 = vadd.f32 %v1315_v2, %v13613_v7  ;;  %v13768_v51 = vadd.f32 %v1736_v12, %v1407_v52  ;;  %v3810_v7 = vrot.slane %v12326_v27, 3  ;;  %v13788_v2 = vld [vmem:[%s12980_s15 + $0x40] sm:$0xff]  }
 0x163   : > { %v1317_v54 = vpop.f32.mrf.mxu0  ;;  %v1738_v3 = vpop.f32.mrf.mxu1 }
 0x164   : > { %v13766_v56 = vadd.f32 %v1317_v54, %v13620_v17  ;;  %v13771_v19 = vadd.f32 %v1738_v3, %v1408_v15  ;;  %v3811_v36 = vsel %vm17269_vm5, %v3808_v49, %v3810_v7  ;;  %v3812_v3 = vrot.slane %v13788_v2, 3  ;;  %v12342_v2 = vld [vmem:[%s17259_s2 + $0x44] ss:$8 sps:$4 sm:$0xff]  }
 0x165   : > { %v1321_v61 = vpop.f32.mrf.mxu0  ;;  %3972 = vmatmul.mubr.bf16.gmra.mxu0 %v3809_v59  ;;  %v13777_v17 = vpop.f32.mrf.mxu1 }
 0x166   : > { %v1410_v62 = vadd.f32 %v1321_v61, %v13623_v24  ;;  %3981 = vmatprep.mubr.bf16.mxu0 %v13737_v4 }
 0x167   : > { %v1323_v10 = vpop.f32.mrf.mxu0  ;;  %v1744_v26 = vpop.f32.mrf.mxu1 }
 0x168   : > { %v1411_v55 = vadd.f32 %v1323_v10, %v13627_v34  ;;  %v13785_v52 = vadd.f32 %v1744_v26, %v1410_v62  ;;  %v12334_v34 = vld [vmem:[%s17259_s2 + $0x60] ss:$8 sps:$4 sm:$0xff]   ;;  %v12337_v10 = vld [vmem:[%s17259_s2 + $0x50] ss:$8 sps:$4 sm:$0xff]   ;;  %v3813_v26 = vsel %vm17269_vm5, %v3810_v7, %v3812_v3 }
 0x169   : > { %v1325_v24 = vpop.f32.mrf.mxu0  ;;  %v1746_v59 = vpop.f32.mrf.mxu1  ;;  %5203 = vmatpush1.bf16.msra.mxu1 %v12334_v34  ;;  %v12346_v34 = vld [vmem:[%s17259_s2 + $0x170] ss:$8 sps:$4 sm:$0xff]  }
 0x16a   : > { %v1412_v33 = vadd.f32 %v1325_v24, %v13630_v32  ;;  %v13799_v32 = vadd.f32 %v1746_v59, %v1411_v55 }
 0x16b   : > { %v1327_v15 = vpop.f32.mrf.mxu0  ;;  %v1748_v54 = vpop.f32.mrf.mxu1 }
 0x16c   : > { %v13797_v27 = vadd.f32 %v1327_v15, %v13634_v48  ;;  %v13802_v61 = vadd.f32 %v1748_v54, %v1412_v33  ;;  %v12339_v48 = vld [vmem:[%s17259_s2 + $0x54] ss:$8 sps:$4 sm:$0xff]  }
 0x16d   : > { %v1331_v49 = vpop.f32.mrf.mxu0  ;;  %3982 = vmatmul.mubr.bf16.gmra.mxu0 %v3811_v36  ;;  %v13809_v41 = vpop.f32.mrf.mxu1  ;;  %5204 = vmatprep.subr.bf16.mxu1 %v12339_v48  ;;  %v13820_v36 = vld [vmem:[%s12980_s15 + $0x48] sm:$0xff]  }
 0x16e   : > { %v1414_v12 = vadd.f32 %v1331_v49, %v13636_v60  ;;  %3991 = vmatprep.mubr.bf16.mxu0 %v13737_v4  ;;  %5205 = vmatpush1.bf16.msra.mxu1 %v12337_v10 }
 0x16f   : > { %v1333_v62 = vpop.f32.mrf.mxu0  ;;  %v1754_v55 = vpop.f32.mrf.mxu1  ;;  %5206 = vmatprep.subr.bf16.mxu1 %v12342_v2 }
 0x170   : > { %v1415_v60 = vadd.f32 %v1333_v62, %v13641_v5  ;;  %v13817_v33 = vadd.f32 %v1754_v55, %v1414_v12  ;;  %v12340_v5 = vld [vmem:[%s17259_s2 + $0x40] ss:$8 sps:$4 sm:$0xff]   ;;  %v12345_v62 = vld [vmem:[%s17259_s2 + $0x34] ss:$8 sps:$4 sm:$0xff]  }
 0x171   : > { %v1335_v13 = vpop.f32.mrf.mxu0  ;;  %v1756_v15 = vpop.f32.mrf.mxu1 }
 0x172   : > { %v1416_v24 = vadd.f32 %v1335_v13, %v13643_v14  ;;  %v12348_v14 = vld [vmem:[%s17259_s2 + $0x174] ss:$8 sps:$4 sm:$0xff]   ;;  %v13834_v59 = vadd.f32 %v1756_v15, %v1415_v60  ;;  %5207 = vmatpush1.bf16.msra.mxu1 %v12340_v5  ;;  %v12343_v13 = vld [vmem:[%s17259_s2 + $0x30] ss:$8 sps:$4 sm:$0xff]  }
 0x173   : > { %v1337_v30 = vpop.f32.mrf.mxu0  ;;  %v1758_v54 = vpop.f32.mrf.mxu1  ;;  %5818 = vmatprep.subr.bf16.mxu0 %v12348_v14  ;;  %5208 = vmatprep.subr.bf16.mxu1 %v12345_v62  ;;  %v13864_v5 = vld [vmem:[%s12980_s15 + $0x50] sm:$0xff]  }
 0x174   : > { %v13832_v7 = vadd.f32 %v1337_v30, %v13648_v25  ;;  %v13840_v48 = vadd.f32 %v1758_v54, %v1416_v24  ;;  %v3814_v25 = vrot.slane %v13820_v36, 3  ;;  %5819 = vmatpush1.bf16.msra.mxu0 %v12346_v34  ;;  %v12352_v24 = vld [vmem:[%s17259_s2 + $0x160] ss:$8 sps:$4 sm:$0xff]   ;;  %v12358_v54 = vld [vmem:[%s17259_s2 + $0x150] ss:$8 sps:$4 sm:$0xff]  }
 0x175   : > { %v1341_v49 = vpop.f32.mrf.mxu0  ;;  %3992 = vmatmul.mubr.bf16.gmra.mxu0 %v3813_v26  ;;  %v13847_v60 = vpop.f32.mrf.mxu1 }
 0x176   : > { %v1418_v12 = vadd.f32 %v1341_v49, %v13651_v37  ;;  %4001 = vmatprep.mubr.bf16.mxu0 %v13737_v4  ;;  %v12354_v37 = vld [vmem:[%s17259_s2 + $0x164] ss:$8 sps:$4 sm:$0xff]   ;;  %5209 = vmatpush1.bf16.msra.mxu1 %v12343_v13  ;;  %v3815_v30 = vsel %vm17269_vm5, %v3812_v3, %v3814_v25  ;;  %v12349_v49 = vld [vmem:[%s17259_s2 + $0x20] ss:$8 sps:$4 sm:$0xff]  }
 0x177   : > { %v1343_v10 = vpop.f32.mrf.mxu0  ;;  %v1764_v36 = vpop.f32.mrf.mxu1  ;;  %5820 = vmatprep.subr.bf16.mxu0 %v12354_v37  ;;  %v3816_v37 = vrot.slane %v13864_v5, 3 }
 0x178   : > { %v1419_v55 = vadd.f32 %v1343_v10, %v13657_v46  ;;  %v13861_v15 = vadd.f32 %v1764_v36, %v1418_v12  ;;  %v12351_v46 = vld [vmem:[%s17259_s2 + $0x24] ss:$8 sps:$4 sm:$0xff]   ;;  %5821 = vmatpush1.bf16.msra.mxu0 %v12352_v24  ;;  %v12355_v36 = vld [vmem:[%s17259_s2 + $0x10] ss:$8 sps:$4 sm:$0xff]  }
 0x179   : > { %v1345_v26 = vpop.f32.mrf.mxu0  ;;  %v1766_v34 = vpop.f32.mrf.mxu1  ;;  %5210 = vmatprep.subr.bf16.mxu1 %v12351_v46 }
 0x17a   : > { %v1420_v2 = vadd.f32 %v1345_v26, %v13662_v40  ;;  %v12360_v40 = vld [vmem:[%s17259_s2 + $0x154] ss:$8 sps:$4 sm:$0xff]   ;;  %v13877_v3 = vadd.f32 %v1766_v34, %v1419_v55  ;;  %5211 = vmatpush1.bf16.msra.mxu1 %v12349_v49  ;;  %v3817_v49 = vsel %vm17269_vm5, %v3814_v25, %v3816_v37 }
 0x17b   : > { %v13869_v14 = vpop.f32.mrf.mxu0  ;;  %v1768_v62 = vpop.f32.mrf.mxu1  ;;  %v12357_v55 = vld [vmem:[%s17259_s2 + $0x14] ss:$8 sps:$4 sm:$0xff]   ;;  %5822 = vmatprep.subr.bf16.mxu0 %v12360_v40 }
 0x17c   : > { %v13883_v13 = vadd.f32 %v1768_v62, %v1420_v2  ;;  %5823 = vmatpush1.bf16.msra.mxu0 %v12358_v54  ;;  %5212 = vmatprep.subr.bf16.mxu1 %v12357_v55  ;;  %v12330_v54 = vld [vmem:[%s12980_s15 + $0x58] ss:$0 sps:$4 sm:$0x77]   ;;  %v12361_v55 = vld [vmem:[%s17259_s2] ss:$8 sps:$4 sm:$0xff]  }
 0x17d   : > { %v2178_v12 = vpop.f32.mrf.mxu0  ;;  %4002 = vmatmul.mubr.bf16.gmra.mxu0 %v3815_v30  ;;  %v13890_v26 = vpop.f32.mrf.mxu1  ;;  %v12364_v30 = vld [vmem:[%s17259_s2 + $0x140] ss:$8 sps:$4 sm:$0xff]  }
 0x17e   : > { %v2303_v10 = vadd.f32 %v2178_v12, %v13670_v21  ;;  %4011 = vmatprep.mubr.bf16.mxu0 %v13737_v4  ;;  %v12366_v21 = vld [vmem:[%s17259_s2 + $0x144] ss:$8 sps:$4 sm:$0xff]   ;;  %5213 = vmatpush1.bf16.msra.mxu1 %v12355_v36 }
 0x17f   : > { %v2180_v24 = vpop.f32.mrf.mxu0  ;;  %v2602_v46 = vpop.f32.mrf.mxu1  ;;  %5824 = vmatprep.subr.bf16.mxu0 %v12366_v21 }
 0x180   : > { %v2304_v2 = vadd.f32 %v2180_v24, %v13677_v39  ;;  %v13904_v40 = vadd.f32 %v2602_v46, %v2303_v10  ;;  %v12363_v39 = vld [vmem:[%s17259_s2 + $0x4] ss:$8 sps:$4 sm:$0xff]   ;;  %5825 = vmatpush1.bf16.msra.mxu0 %v12364_v30  ;;  %v12370_v10 = vld [vmem:[%s17259_s2 + $0x130] ss:$8 sps:$4 sm:$0xff]   ;;  %v3818_v30 = vrot.slane %v12330_v54, 3 }
 0x181   : > { %v2182_v5 = vpop.f32.mrf.mxu0  ;;  %v2604_v62 = vpop.f32.mrf.mxu1  ;;  %5214 = vmatprep.subr.bf16.mxu1 %v12363_v39  ;;  %v12376_v54 = vld [vmem:[%s17259_s2 + $0x120] ss:$8 sps:$4 sm:$0xff]  }
 0x182   : > { %v2305_v34 = vadd.f32 %v2182_v5, %v13680_v47  ;;  %v12372_v47 = vld [vmem:[%s17259_s2 + $0x134] ss:$8 sps:$4 sm:$0xff]   ;;  %v13918_v25 = vadd.f32 %v2604_v62, %v2304_v2  ;;  %5215 = vmatpush1.bf16.msra.mxu1 %v12361_v55 }
 0x183   : > { %v13910_v12 = vpop.f32.mrf.mxu0  ;;  %v2606_v36 = vpop.f32.mrf.mxu1  ;;  %v12369_v2 = vld [vmem:[%s17259_s2 + $0xf4] ss:$8 sps:$4 sm:$0xff]   ;;  %5826 = vmatprep.subr.bf16.mxu0 %v12372_v47 }
 0x184   : > { %v13924_v5 = vadd.f32 %v2606_v36, %v2305_v34  ;;  %5827 = vmatpush1.bf16.msra.mxu0 %v12370_v10  ;;  %5216 = vmatprep.subr.bf16.mxu1 %v12369_v2  ;;  %v12375_v36 = vld [vmem:[%s17259_s2 + $0xe4] ss:$8 sps:$4 sm:$0xff]  }
 0x185   : > { %v2188_v24 = vpop.f32.mrf.mxu0  ;;  %4012 = vmatmul.mubr.bf16.gmra.mxu0 %v3817_v49  ;;  %v13930_v39 = vpop.f32.mrf.mxu1  ;;  %v12367_v49 = vld [vmem:[%s17259_s2 + $0xf0] ss:$8 sps:$4 sm:$0xff]  }
 0x186   : > { %v2307_v21 = vadd.f32 %v2188_v24, %v13689_v11  ;;  %4021 = vmatprep.mubr.bf16.mxu0 %v13737_v4  ;;  %17315 = vst [vmem:[#allocation11_spill] sm:$0xff] %v13930_v39  ;;  %v12378_v11 = vld [vmem:[%s17259_s2 + $0x124] ss:$8 sps:$4 sm:$0xff]   ;;  %5217 = vmatpush2.bf16.msra.mxu1 %v12367_v49  ;;  %v3819_v24 = vsel %vm17269_vm5, %v3816_v37, %v3818_v30  ;;  %v12382_v37 = vld [vmem:[%s17259_s2 + $0x110] ss:$8 sps:$4 sm:$0xff]   ;;  %vm4342_vm5 = vcmask 1042432  }
 0x187   : > { %v2190_v46 = vpop.f32.mrf.mxu0  ;;  %v2612_v55 = vpop.f32.mrf.mxu1  ;;  %5828 = vmatprep.subr.bf16.mxu0 %v12378_v11  ;;  %5218 = vmatprep.subr.bf16.mxu1 %v12375_v36  ;;  %v12379_v36 = vld [vmem:[%s17259_s2 + $0xd0] ss:$8 sps:$4 sm:$0xff]  }
 0x188   : > { %v2308_v34 = vadd.f32 %v2190_v46, %v13697_v63  ;;  %v13944_v10 = vadd.f32 %v2612_v55, %v2307_v21  ;;  %v12373_v46 = vld [vmem:[%s17259_s2 + $0xe0] ss:$8 sps:$4 sm:$0xff]   ;;  %5829 = vmatpush1.bf16.msra.mxu0 %v12376_v54  ;;  %v12381_v54 = vld [vmem:[%s17259_s2 + $0xd4] ss:$8 sps:$4 sm:$0xff]  }
 0x189   : > { %v2192_v62 = vpop.f32.mrf.mxu0  ;;  %v2614_v2 = vpop.f32.mrf.mxu1 }
 0x18a   : > { %v2309_v47 = vadd.f32 %v2192_v62, %v13701_v29  ;;  %v12384_v29 = vld [vmem:[%s17259_s2 + $0x114] ss:$8 sps:$4 sm:$0xff]   ;;  %v13957_v49 = vadd.f32 %v2614_v2, %v2308_v34  ;;  %5219 = vmatpush2.bf16.msra.mxu1 %v12373_v46 }
 0x18b   : > { %v13949_v63 = vpop.f32.mrf.mxu0  ;;  %v2616_v30 = vpop.f32.mrf.mxu1  ;;  %5830 = vmatprep.subr.bf16.mxu0 %v12384_v29  ;;  %5220 = vmatprep.subr.bf16.mxu1 %v12381_v54  ;;  %v12385_v54 = vld [vmem:[%s17259_s2 + $0xc0] ss:$8 sps:$4 sm:$0xff]  }
 0x18c   : > { %17316 = vst [vmem:[#allocation12_spill] sm:$0xff] %v13949_v63  ;;  %v13963_v62 = vadd.f32 %v2616_v30, %v2309_v47  ;;  %5831 = vmatpush1.bf16.msra.mxu0 %v12382_v37  ;;  %v12388_v47 = vld [vmem:[%s17259_s2 + $0x100] ss:$8 sps:$4 sm:$0xff]   ;;  %v12387_v37 = vld [vmem:[%s17259_s2 + $0xc4] ss:$8 sps:$4 sm:$0xff]  }
 0x18d   : > { %v2198_v21 = vpop.f32.mrf.mxu0  ;;  %4022 = vmatmul.mubr.bf16.gmra.mxu0 %v3819_v24  ;;  %v13968_v55 = vpop.f32.mrf.mxu1  ;;  %v12390_v24 = vld [vmem:[%s17259_s2 + $0x104] ss:$8 sps:$4 sm:$0xff]  }
 0x18e   : > { %v2311_v11 = vadd.f32 %v2198_v21, %v13709_v22  ;;  %17317 = vst [vmem:[#allocation13_spill] sm:$0xff] %v13968_v55  ;;  %5221 = vmatpush2.bf16.msra.mxu1 %v12379_v36  ;;  %5832 = vmatprep.subr.bf16.mxu0 %v12390_v24 }
 0x18f   : > { %v2200_v34 = vpop.f32.mrf.mxu0  ;;  %v2622_v46 = vpop.f32.mrf.mxu1  ;;  %5222 = vmatprep.subr.bf16.mxu1 %v12387_v37  ;;  %v12391_v37 = vld [vmem:[%s17259_s2 + $0xb0] ss:$8 sps:$4 sm:$0xff]  }
 0x190   : > { %v2312_v22 = vadd.f32 %v2200_v34, %v13715_v1  ;;  %v13981_v21 = vadd.f32 %v2622_v46, %v2311_v11  ;;  %5833 = vmatpush1.bf16.msra.mxu0 %v12388_v47  ;;  %v12396_v34 = vld [vmem:[%s17259_s2 + $0x1f4] ss:$8 sps:$4 sm:$0xff]  }
 0x191   : > { %v2202_v2 = vpop.f32.mrf.mxu0  ;;  %v2624_v1 = vpop.f32.mrf.mxu1  ;;  %5834 = vmatprep.subr.bf16.mxu0 %v12396_v34  ;;  %v12393_v47 = vld [vmem:[%s17259_s2 + $0xb4] ss:$8 sps:$4 sm:$0xff]  }
 0x192   : > { %v2313_v29 = vadd.f32 %v2202_v2, %v13718_v57  ;;  %v13994_v36 = vadd.f32 %v2624_v1, %v2312_v22  ;;  %v12394_v57 = vld [vmem:[%s17259_s2 + $0x1f0] ss:$8 sps:$4 sm:$0xff]   ;;  %5223 = vmatpush2.bf16.msra.mxu1 %v12385_v54  ;;  %v12402_v1 = vld [vmem:[%s17259_s2 + $0x1e4] ss:$8 sps:$4 sm:$0xff]  }
 0x193   : > { %v13986_v30 = vpop.f32.mrf.mxu0  ;;  %v2626_v24 = vpop.f32.mrf.mxu1  ;;  %5224 = vmatprep.subr.bf16.mxu1 %v12393_v47  ;;  %v12408_v47 = vld [vmem:[%s17259_s2 + $0x1d4] ss:$8 sps:$4 sm:$0xff]  }
 0x194   : > { %17318 = vst [vmem:[#allocation14_spill] sm:$0xff] %v13986_v30  ;;  %v14000_v46 = vadd.f32 %v2626_v24, %v2313_v29  ;;  %5835 = vmatpush2.bf16.msra.mxu0 %v12394_v57  ;;  %v12400_v29 = vld [vmem:[%s17259_s2 + $0x1e0] ss:$8 sps:$4 sm:$0xff]   ;;  %v12399_v57 = vld [vmem:[%s17259_s2 + $0xa4] ss:$8 sps:$4 sm:$0xff]  }
 0x195   : > { %v2208_v11 = vpop.f32.mrf.mxu0  ;;  %v14005_v22 = vpop.f32.mrf.mxu1  ;;  %5836 = vmatprep.subr.bf16.mxu0 %v12402_v1 }
 0x196   : > { %v2315_v2 = vadd.f32 %v2208_v11, %v13726_v8  ;;  %17319 = vst [vmem:[#allocation15_spill] sm:$0xff] %v14005_v22  ;;  %5225 = vmatpush2.bf16.msra.mxu1 %v12391_v37 }
 0x197   : > { %v2210_v30 = vpop.f32.mrf.mxu0  ;;  %v2632_v34 = vpop.f32.mrf.mxu1  ;;  %5226 = vmatprep.subr.bf16.mxu1 %v12399_v57  ;;  %v12403_v57 = vld [vmem:[%s17259_s2 + $0x90] ss:$8 sps:$4 sm:$0xff]  }
 0x198   : > { %v2316_v8 = vadd.f32 %v2210_v30, %v13732_v35  ;;  %v14018_v24 = vadd.f32 %v2632_v34, %v2315_v2  ;;  %v12397_v30 = vld [vmem:[%s17259_s2 + $0xa0] ss:$8 sps:$4 sm:$0xff]   ;;  %5837 = vmatpush2.bf16.msra.mxu0 %v12400_v29  ;;  %v12405_v29 = vld [vmem:[%s17259_s2 + $0x94] ss:$8 sps:$4 sm:$0xff]  }
 0x199   : > { %v2212_v54 = vpop.f32.mrf.mxu0  ;;  %v2634_v35 = vpop.f32.mrf.mxu1  ;;  %5838 = vmatprep.subr.bf16.mxu0 %v12408_v47 }
 0x19a   : > { %v2317_v11 = vadd.f32 %v2212_v54, %v13735_v6  ;;  %v14031_v37 = vadd.f32 %v2634_v35, %v2316_v8  ;;  %v12406_v6 = vld [vmem:[%s17259_s2 + $0x1d0] ss:$8 sps:$4 sm:$0xff]   ;;  %5227 = vmatpush2.bf16.msra.mxu1 %v12397_v30  ;;  %v12414_v35 = vld [vmem:[%s17259_s2 + $0x1c4] ss:$8 sps:$4 sm:$0xff]  }
 0x19b   : > { %v14023_v22 = vpop.f32.mrf.mxu0  ;;  %v2636_v1 = vpop.f32.mrf.mxu1  ;;  %5228 = vmatprep.subr.bf16.mxu1 %v12405_v29 }
 0x19c   : > { %17320 = vst [vmem:[#allocation16_spill] sm:$0xff] %v14023_v22  ;;  %v14037_v34 = vadd.f32 %v2636_v1, %v2317_v11  ;;  %5839 = vmatpush2.bf16.msra.mxu0 %v12406_v6  ;;  %v12412_v11 = vld [vmem:[%s17259_s2 + $0x1c0] ss:$8 sps:$4 sm:$0xff]   ;;  %v12411_v6 = vld [vmem:[%s17259_s2 + $0x84] ss:$8 sps:$4 sm:$0xff]  }
 0x19d   : > { %v2218_v2 = vpop.f32.mrf.mxu0  ;;  %v14042_v8 = vpop.f32.mrf.mxu1  ;;  %5840 = vmatprep.subr.bf16.mxu0 %v12414_v35 }
 0x19e   : > { %v2319_v54 = vadd.f32 %v2218_v2, %v13745_v28  ;;  %17321 = vst [vmem:[#allocation17_spill] sm:$0xff] %v14042_v8  ;;  %5229 = vmatpush2.bf16.msra.mxu1 %v12403_v57 }
 0x19f   : > { %v2220_v22 = vpop.f32.mrf.mxu0  ;;  %v2642_v47 = vpop.f32.mrf.mxu1  ;;  %5230 = vmatprep.subr.bf16.mxu1 %v12411_v6  ;;  %v14081_v6 = vcombine.high %v13737_v4, %v13737_v4 }
 0x1a0   : > { %v2320_v28 = vadd.f32 %v2220_v22, %v13751_v44  ;;  %v14055_v1 = vadd.f32 %v2642_v47, %v2319_v54  ;;  %v12409_v22 = vld [vmem:[%s17259_s2 + $0x80] ss:$8 sps:$4 sm:$0xff]   ;;  %5841 = vmatpush2.bf16.msra.mxu0 %v12412_v11 }
 0x1a1   : > { %v2222_v30 = vpop.f32.mrf.mxu0  ;;  %v2644_v44 = vpop.f32.mrf.mxu1  ;;  %17322 = vst [vmem:[#allocation18_spill] sm:$0xff] %v14081_v6  ;;  %5232 = vmatprep.mubr.bf16.mxu1 %v14081_v6 }
 0x1a2   : > { %v2321_v2 = vadd.f32 %v2222_v30, %v13754_v23  ;;  %v14065_v29 = vadd.f32 %v2644_v44, %v2320_v28  ;;  %5231 = vmatpush2.bf16.msra.mxu1 %v12409_v22  ;;  %v12417_v30 = vld [vmem:[%s17259_s2 + $0x1b4] ss:$8 sps:$4 sm:$0xff]   ;;  %v12415_v28 = vld [vmem:[%s17259_s2 + $0x1b0] ss:$8 sps:$4 sm:$0xff]   ;;  %v14085_v44 = vcombine.low %v13737_v4, %v13737_v4  ;;  %v12418_v4 = vld [vmem:[%s17259_s2 + $0x1a0] ss:$8 sps:$4 sm:$0xff]  }
 0x1a3   : > { %v14060_v8 = vpop.f32.mrf.mxu0  ;;  %v2646_v35 = vpop.f32.mrf.mxu1  ;;  %5842 = vmatprep.subr.bf16.mxu0 %v12417_v30 }
 0x1a4   : > { %v14068_v54 = vadd.f32 %v2646_v35, %v2321_v2  ;;  %17323 = vst [vmem:[#allocation19_spill] sm:$0xff] %v14085_v44  ;;  %5843 = vmatpush2.bf16.msra.mxu0 %v12415_v28 }
 0x1a5   : > { %v2228_v57 = vpop.f32.mrf.mxu0  ;;  %v14073_v55 = vpop.f32.mrf.mxu1  ;;  %5233 = vmatmul.mubr.bf16.vlgmr.msra.gmra.mxu1 %v14085_v44 }
 0x1a6   : > { %v2323_v23 = vadd.f32 %v2228_v57, %v13762_v45 }
 0x1a7   : > { %v2230_v47 = vpop.f32.mrf.mxu0  ;;  %v2652_v2 = vpop.f32.mrf.mxu1 }
 0x1a8   : > { %v2324_v11 = vadd.f32 %v2230_v47, %v13768_v51  ;;  %v14088_v57 = vadd.f32 %v2652_v2, %v2323_v23  ;;  %v12420_v51 = vld [vmem:[%s17259_s2 + $0x1a4] ss:$8 sps:$4 sm:$0xff]   ;;  %v12426_v2 = vld [vmem:[%s17259_s2 + $0x194] ss:$8 sps:$4 sm:$0xff]  }
 0x1a9   : > { %v2232_v45 = vpop.f32.mrf.mxu0  ;;  %v2654_v30 = vpop.f32.mrf.mxu1  ;;  %5844 = vmatprep.subr.bf16.mxu0 %v12420_v51 }
 0x1aa   : > { %v2325_v22 = vadd.f32 %v2232_v45, %v13771_v19  ;;  %v14100_v47 = vadd.f32 %v2654_v30, %v2324_v11  ;;  %5845 = vmatpush2.bf16.msra.mxu0 %v12418_v4  ;;  %v12424_v11 = vld [vmem:[%s17259_s2 + $0x190] ss:$8 sps:$4 sm:$0xff]  }
 0x1ab   : > { %v14094_v35 = vpop.f32.mrf.mxu0  ;;  %v2656_v23 = vpop.f32.mrf.mxu1  ;;  %5846 = vmatprep.subr.bf16.mxu0 %v12426_v2 }
 0x1ac   : > { %v14103_v45 = vadd.f32 %v2656_v23, %v2325_v22 }
 0x1ad   : > { %v2238_v19 = vpop.f32.mrf.mxu0  ;;  %v14108_v44 = vpop.f32.mrf.mxu1 }
 0x1ae   : > { %v2327_v28 = vadd.f32 %v2238_v19, %v13785_v52  ;;  %5847 = vmatpush2.bf16.msra.mxu0 %v12424_v11  ;;  %v12432_v19 = vld [vmem:[%s17259_s2 + $0x184] ss:$8 sps:$4 sm:$0xff]  }
 0x1af   : > { %v2240_v6 = vpop.f32.mrf.mxu0  ;;  %v2662_v4 = vpop.f32.mrf.mxu1  ;;  %5848 = vmatprep.subr.bf16.mxu0 %v12432_v19 }
 0x1b0   : > { %v2328_v51 = vadd.f32 %v2240_v6, %v13799_v32  ;;  %v14115_v22 = vadd.f32 %v2662_v4, %v2327_v28 }
 0x1b1   : > { %v2242_v30 = vpop.f32.mrf.mxu0  ;;  %v2664_v50 = vpop.f32.mrf.mxu1 }
 0x1b2   : > { %v2329_v52 = vadd.f32 %v2242_v30, %v13802_v61  ;;  %v14125_v32 = vadd.f32 %v2664_v50, %v2328_v51  ;;  %5849 = vmatpush2.bf16.msra.mxu0 %v12430_v42 }
 0x1b3   : > { %v14120_v23 = vpop.f32.mrf.mxu0  ;;  %v2666_v2 = vpop.f32.mrf.mxu1 }
 0x1b4   : > { %v14128_v28 = vadd.f32 %v2666_v2, %v2329_v52 }
 0x1b5   : > { %v2248_v6 = vpop.f32.mrf.mxu0  ;;  %v14130_v30 = vpop.f32.mrf.mxu1 }
 0x1b6   : > { %v2331_v61 = vadd.f32 %v2248_v6, %v13817_v33 }
 0x1b7   : > { %v2250_v11 = vpop.f32.mrf.mxu0  ;;  %v2672_v0 = vpop.f32.mrf.mxu1 }
 0x1b8   : > { %v2332_v4 = vadd.f32 %v2250_v11, %v13834_v59  ;;  %v14134_v43 = vadd.f32 %v2672_v0, %v2331_v61  ;;  %v12423_v59 = vld [vmem:[%s17259_s2 + $0x274] ss:$8 sps:$4 sm:$0xff]   ;;  %v12421_v0 = vld [vmem:[%s17259_s2 + $0x270] ss:$8 sps:$4 sm:$0xff]  }
 0x1b9   : > { %v2252_v16 = vpop.f32.mrf.mxu0  ;;  %v2674_v51 = vpop.f32.mrf.mxu1  ;;  %6394 = vmatprep.subr.bf16.mxu1 %v12423_v59 }
 0x1ba   : > { %v2333_v63 = vadd.f32 %v2252_v16, %v13840_v48  ;;  %v14138_v19 = vadd.f32 %v2674_v51, %v2332_v4  ;;  %6395 = vmatpush1.bf16.msra.mxu1 %v12421_v0  ;;  %v12429_v4 = vld [vmem:[%s17259_s2 + $0x264] ss:$8 sps:$4 sm:$0xff]   ;;  %v12435_v0 = vld [vmem:[%s17259_s2 + $0x254] ss:$8 sps:$4 sm:$0xff]  }
 0x1bb   : > { %v14136_v50 = vpop.f32.mrf.mxu0  ;;  %v2676_v33 = vpop.f32.mrf.mxu1  ;;  %6396 = vmatprep.subr.bf16.mxu1 %v12429_v4 }
 0x1bc   : > { %v14141_v6 = vadd.f32 %v2676_v33, %v2333_v63  ;;  %v12427_v33 = vld [vmem:[%s17259_s2 + $0x260] ss:$8 sps:$4 sm:$0xff]  }
 0x1bd   : > { %v2258_v42 = vpop.f32.mrf.mxu0  ;;  %v14146_v11 = vpop.f32.mrf.mxu1 }
 0x1be   : > { %v2335_v52 = vadd.f32 %v2258_v42, %v13861_v15  ;;  %6397 = vmatpush1.bf16.msra.mxu1 %v12427_v33 }
 0x1bf   : > { %v2260_v2 = vpop.f32.mrf.mxu0  ;;  %v2682_v61 = vpop.f32.mrf.mxu1  ;;  %6398 = vmatprep.subr.bf16.mxu1 %v12435_v0 }
 0x1c0   : > { %v2336_v16 = vadd.f32 %v2260_v2, %v13877_v3  ;;  %v14153_v63 = vadd.f32 %v2682_v61, %v2335_v52 }
 0x1c1   : > { %v2262_v48 = vpop.f32.mrf.mxu0  ;;  %v2684_v42 = vpop.f32.mrf.mxu1 }
 0x1c2   : > { %v2337_v15 = vadd.f32 %v2262_v48, %v13883_v13  ;;  %v14163_v3 = vadd.f32 %v2684_v42, %v2336_v16  ;;  %v12433_v16 = vld [vmem:[%s17259_s2 + $0x250] ss:$8 sps:$4 sm:$0xff]  }
 0x1c3   : > { %v14158_v51 = vpop.f32.mrf.mxu0  ;;  %v2686_v2 = vpop.f32.mrf.mxu1  ;;  %6399 = vmatpush1.bf16.msra.mxu1 %v12433_v16 }
 0x1c4   : > { %17324 = vst [vmem:[#allocation20_spill] sm:$0xff] %v14163_v3  ;;  %v14166_v52 = vadd.f32 %v2686_v2, %v2337_v15 }
 0x1c5   : > { %v3025_v59 = vpop.f32.mrf.mxu0  ;;  %v14171_v61 = vpop.f32.mrf.mxu1 }
 0x1c6   : > { %v3150_v13 = vadd.f32 %v3025_v59, %v13904_v40  ;;  %17325 = vst [vmem:[#allocation21_spill] sm:$0xff] %v14166_v52  ;;  %17326 = vst [vmem:[#allocation22_spill] sm:$0xff] %v14171_v61 }
 0x1c7   : > { %v3027_v48 = vpop.f32.mrf.mxu0  ;;  %v3519_v33 = vpop.f32.mrf.mxu1 }
 0x1c8   : > { %v3151_v4 = vadd.f32 %v3027_v48, %v13918_v25  ;;  %v14178_v15 = vadd.f32 %v3519_v33, %v3150_v13 }
 0x1c9   : > { %v3029_v42 = vpop.f32.mrf.mxu0  ;;  %v3521_v2 = vpop.f32.mrf.mxu1 }
 0x1ca   : > { %v3152_v40 = vadd.f32 %v3029_v42, %v13924_v5  ;;  %v14182_v18 = vadd.f32 %v3521_v2, %v3151_v4 }
 0x1cb   : > { %v14180_v59 = vpop.f32.mrf.mxu0  ;;  %v3523_v52 = vpop.f32.mrf.mxu1 }
 0x1cc   : > { %17327 = vst [vmem:[#allocation23_spill] sm:$0xff] %v14182_v18  ;;  %v14185_v3 = vadd.f32 %v3523_v52, %v3152_v40 }
 0x1cd   : > { %v3035_v39 = vpop.f32.mrf.mxu0  ;;  %v14187_v0 = vpop.f32.mrf.mxu1 }
 0x1ce   : > { %v3154_v61 = vadd.f32 %v3035_v39, %v13944_v10  ;;  %v12436_v10 = vld [vmem:[%s17259_s2 + $0x240] ss:$8 sps:$4 sm:$0xff]  }
 0x1cf   : > { %v3037_v25 = vpop.f32.mrf.mxu0  ;;  %v3529_v5 = vpop.f32.mrf.mxu1 }
 0x1d0   : > { %v3155_v48 = vadd.f32 %v3037_v25, %v13957_v49  ;;  %v14191_v42 = vadd.f32 %v3529_v5, %v3154_v61  ;;  %v12438_v49 = vld [vmem:[%s17259_s2 + $0x244] ss:$8 sps:$4 sm:$0xff]  }
 0x1d1   : > { %v3039_v16 = vpop.f32.mrf.mxu0  ;;  %v3531_v4 = vpop.f32.mrf.mxu1  ;;  %6400 = vmatprep.subr.bf16.mxu1 %v12438_v49 }
 0x1d2   : > { %v3156_v13 = vadd.f32 %v3039_v16, %v13963_v62  ;;  %17328 = vst [vmem:[#allocation24_spill] sm:$0xff] %v14191_v42  ;;  %v14195_v2 = vadd.f32 %v3531_v4, %v3155_v48  ;;  %6401 = vmatpush1.bf16.msra.mxu1 %v12436_v10 }
 0x1d3   : > { %v14193_v33 = vpop.f32.mrf.mxu0  ;;  %v3533_v39 = vpop.f32.mrf.mxu1 }
 0x1d4   : > { %17329 = vst [vmem:[#allocation25_spill] sm:$0xff] %v14193_v33  ;;  %17330 = vst [vmem:[#allocation26_spill] sm:$0xff] %v14195_v2  ;;  %v14204_v62 = vadd.f32 %v3533_v39, %v3156_v13 }
 0x1d5   : > { %v3045_v18 = vpop.f32.mrf.mxu0  ;;  %v14206_v40 = vpop.f32.mrf.mxu1 }
 0x1d6   : > { %v3158_v52 = vadd.f32 %v3045_v18, %v13981_v21 }
 0x1d7   : > { %v3047_v61 = vpop.f32.mrf.mxu0  ;;  %v3539_v16 = vpop.f32.mrf.mxu1 }
 0x1d8   : > { %v3159_v25 = vadd.f32 %v3047_v61, %v13994_v36  ;;  %v14210_v4 = vadd.f32 %v3539_v16, %v3158_v52  ;;  %v12439_v36 = vld [vmem:[%s17259_s2 + $0x230] ss:$8 sps:$4 sm:$0xff]  }
 0x1d9   : > { %v3049_v48 = vpop.f32.mrf.mxu0  ;;  %v3541_v33 = vpop.f32.mrf.mxu1 }
 0x1da   : > { %v3160_v5 = vadd.f32 %v3049_v48, %v14000_v46  ;;  %v14214_v42 = vadd.f32 %v3541_v33, %v3159_v25  ;;  %v12441_v46 = vld [vmem:[%s17259_s2 + $0x234] ss:$8 sps:$4 sm:$0xff]  }
 0x1db   : > { %v14212_v2 = vpop.f32.mrf.mxu0  ;;  %v3543_v21 = vpop.f32.mrf.mxu1  ;;  %v12444_v33 = vld [vmem:[%s17259_s2 + $0x374] ss:$8 sps:$4 sm:$0xff]   ;;  %6402 = vmatprep.subr.bf16.mxu1 %v12441_v46 }
 0x1dc   : > { %v14217_v39 = vadd.f32 %v3543_v21, %v3160_v5  ;;  %6403 = vmatpush1.bf16.msra.mxu1 %v12439_v36  ;;  %6970 = vmatprep.subr.bf16.mxu0 %v12444_v33  ;;  %v12447_v36 = vld [vmem:[%s17259_s2 + $0x224] ss:$8 sps:$4 sm:$0xff]  }
 0x1dd   : > { %v3055_v18 = vpop.f32.mrf.mxu0  ;;  %v14225_v49 = vpop.f32.mrf.mxu1  ;;  %6404 = vmatprep.subr.bf16.mxu1 %v12447_v36 }
 0x1de   : > { %v3162_v13 = vadd.f32 %v3055_v18, %v14018_v24  ;;  %v1828_v18 = vadd.f32 %v13757_v53, %v13749_v31 }
 0x1df   : > { %v3057_v10 = vpop.f32.mrf.mxu0  ;;  %v3549_v61 = vpop.f32.mrf.mxu1 }
 0x1e0   : > { %v3163_v52 = vadd.f32 %v3057_v10, %v14031_v37  ;;  %v14232_v48 = vadd.f32 %v3549_v61, %v3162_v13  ;;  %v12445_v37 = vld [vmem:[%s17259_s2 + $0x220] ss:$8 sps:$4 sm:$0xff]   ;;  %v2322_v13 = vadd.f32 %v14060_v8, %v1828_v18 }
 0x1e1   : > { %v3059_v24 = vpop.f32.mrf.mxu0  ;;  %v3551_v5 = vpop.f32.mrf.mxu1  ;;  %6405 = vmatpush1.bf16.msra.mxu1 %v12445_v37 }
 0x1e2   : > { %v3164_v25 = vadd.f32 %v3059_v24, %v14037_v34  ;;  %v14238_v21 = vadd.f32 %v3551_v5, %v3163_v52  ;;  %v2746_v5 = vadd.f32 %v14073_v55, %v2322_v13 }
 0x1e3   : > { %v14234_v16 = vpop.f32.mrf.mxu0  ;;  %v3553_v34 = vpop.f32.mrf.mxu1 }
 0x1e4   : > { %17331 = vst [vmem:[#allocation27_spill] sm:$0xff] %v14234_v16  ;;  %17332 = vst [vmem:[#allocation28_spill] sm:$0xff] %v14238_v21  ;;  %v14248_v33 = vadd.f32 %v3553_v34, %v3164_v25 }
 0x1e5   : > { %v3065_v46 = vpop.f32.mrf.mxu0  ;;  %v14250_v53 = vpop.f32.mrf.mxu1 }
 0x1e6   : > { %v3166_v10 = vadd.f32 %v3065_v46, %v14055_v1  ;;  %v1832_v1 = vadd.f32 %v13777_v17, %v13766_v56 }
 0x1e7   : > { %v3067_v31 = vpop.f32.mrf.mxu0  ;;  %v3559_v61 = vpop.f32.mrf.mxu1 }
 0x1e8   : > { %v3167_v52 = vadd.f32 %v3067_v31, %v14065_v29  ;;  %v14255_v16 = vadd.f32 %v3559_v61, %v3166_v10  ;;  %v2326_v29 = vadd.f32 %v14094_v35, %v1832_v1  ;;  %v12453_v35 = vld [vmem:[%s17259_s2 + $0x214] ss:$8 sps:$4 sm:$0xff]  }
 0x1e9   : > { %v3069_v24 = vpop.f32.mrf.mxu0  ;;  %v3561_v18 = vpop.f32.mrf.mxu1  ;;  %6406 = vmatprep.subr.bf16.mxu1 %v12453_v35 }
 0x1ea   : > { %v3168_v21 = vadd.f32 %v3069_v24, %v14068_v54  ;;  %v14259_v36 = vadd.f32 %v3561_v18, %v3167_v52  ;;  %v2750_v56 = vadd.f32 %v14108_v44, %v2326_v29 }
 0x1eb   : > { %v3071_v8 = vpop.f32.mrf.mxu0  ;;  %v3563_v37 = vpop.f32.mrf.mxu1 }
 0x1ec   : > { %v3169_v25 = vadd.f32 %v3071_v8, %v2746_v5  ;;  %v14263_v31 = vadd.f32 %v3563_v37, %v3168_v21 }
 0x1ed   : > { %v3075_v46 = vpop.f32.mrf.mxu0  ;;  %v3565_v54 = vpop.f32.mrf.mxu1 }
 0x1ee   : > { %v3170_v34 = vadd.f32 %v3075_v46, %v14088_v57  ;;  %v3663_v10 = vadd.f32 %v3565_v54, %v3169_v25  ;;  %v12451_v57 = vld [vmem:[%s17259_s2 + $0x210] ss:$8 sps:$4 sm:$0xff]  }
 0x1ef   : > { %v3077_v55 = vpop.f32.mrf.mxu0  ;;  %v3569_v61 = vpop.f32.mrf.mxu1  ;;  %6407 = vmatpush1.bf16.msra.mxu1 %v12451_v57 }
 0x1f0   : > { %v3171_v13 = vadd.f32 %v3077_v55, %v14100_v47  ;;  %3699 = vst [vmem:[#allocation3 + $0x80] sm:$0xff] %v3663_v10  ;;  %v3664_v52 = vadd.f32 %v3569_v61, %v3170_v34  ;;  %v1836_v47 = vadd.f32 %v13809_v41, %v13797_v27  ;;  %v12457_v27 = vld [vmem:[%s17259_s2 + $0x200] ss:$8 sps:$4 sm:$0xff]   ;;  %v12465_v34 = vld [vmem:[%s17259_s2 + $0x2f4] ss:$8 sps:$4 sm:$0xff]  }
 0x1f1   : > { %v3079_v24 = vpop.f32.mrf.mxu0  ;;  %v3571_v8 = vpop.f32.mrf.mxu1  ;;  %v12463_v61 = vld [vmem:[%s17259_s2 + $0x2f0] ss:$8 sps:$4 sm:$0xff]  }
 0x1f2   : > { %v3172_v17 = vadd.f32 %v3079_v24, %v14103_v45  ;;  %3700 = vst [vmem:[#allocation3 + $0xa0] sm:$0xff] %v3664_v52  ;;  %v3665_v44 = vadd.f32 %v3571_v8, %v3171_v13  ;;  %v12459_v45 = vld [vmem:[%s17259_s2 + $0x204] ss:$8 sps:$4 sm:$0xff]   ;;  %v2330_v25 = vadd.f32 %v14120_v23, %v1836_v47 }
 0x1f3   : > { %v3081_v5 = vpop.f32.mrf.mxu0  ;;  %v3573_v1 = vpop.f32.mrf.mxu1  ;;  %6408 = vmatprep.subr.bf16.mxu1 %v12459_v45 }
 0x1f4   : > { %v3173_v21 = vadd.f32 %v3081_v5, %v2750_v56  ;;  %3701 = vst [vmem:[#allocation3 + $0x40] sm:$0xff] %v3665_v44  ;;  %v3666_v37 = vadd.f32 %v3573_v1, %v3172_v17  ;;  %v2754_v13 = vadd.f32 %v14130_v30, %v2330_v25  ;;  %6409 = vmatpush1.bf16.msra.mxu1 %v12457_v27 }
 0x1f5   : > { %v3085_v18 = vpop.f32.mrf.mxu0  ;;  %v3575_v29 = vpop.f32.mrf.mxu1  ;;  %6410 = vmatprep.subr.bf16.mxu1 %v12465_v34  ;;  %v12475_v34 = vld [vmem:[%s17259_s2 + $0x2d0] ss:$8 sps:$4 sm:$0xff]  }
 0x1f6   : > { %v3174_v46 = vadd.f32 %v3085_v18, %v14115_v22  ;;  %3702 = vst [vmem:[#allocation3 + $0x48] sm:$0xff] %v3666_v37  ;;  %v3667_v23 = vadd.f32 %v3575_v29, %v3173_v21 }
 0x1f7   : > { %v3087_v41 = vpop.f32.mrf.mxu0  ;;  %v3579_v22 = vpop.f32.mrf.mxu1 }
 0x1f8   : > { %v3175_v55 = vadd.f32 %v3087_v41, %v14125_v32  ;;  %3703 = vst [vmem:[#allocation3 + $0x30] sm:$0xff] %v3667_v23  ;;  %v3668_v24 = vadd.f32 %v3579_v22, %v3174_v46  ;;  %v1840_v32 = vadd.f32 %v13847_v60, %v13832_v7  ;;  %6411 = vmatpush2.bf16.msra.mxu1 %v12463_v61  ;;  %v12469_v7 = vld [vmem:[%s17259_s2 + $0x2e0] ss:$8 sps:$4 sm:$0xff]   ;;  %v12471_v60 = vld [vmem:[%s17259_s2 + $0x2e4] ss:$8 sps:$4 sm:$0xff]  }
 0x1f9   : > { %v3089_v54 = vpop.f32.mrf.mxu0  ;;  %v3581_v17 = vpop.f32.mrf.mxu1  ;;  %6412 = vmatprep.subr.bf16.mxu1 %v12471_v60  ;;  %v1812_v23 = vadd.f32 %v13684_v58, %v13675_v38  ;;  %v17333_v61 = vld [vmem:[#allocation20_spill] sm:$0xff] }
 0x1fa   : > { %v3176_v10 = vadd.f32 %v3089_v54, %v14128_v28  ;;  %3704 = vst [vmem:[#allocation3 + $0xf8] sm:$0xff] %v3668_v24  ;;  %v3669_v5 = vadd.f32 %v3581_v17, %v3175_v55  ;;  %v997_v28 = vadd.f32 %v13665_v9, %v13655_v20  ;;  %v2334_v57 = vadd.f32 %v14136_v50, %v1840_v32  ;;  %v12484_v38 = vld [vmem:[%s17259_s2 + $0x2c0] ss:$8 sps:$4 sm:$0xff]   ;;  %v12486_v58 = vld [vmem:[%s17259_s2 + $0x2c4] ss:$8 sps:$4 sm:$0xff]  }
 0x1fb   : > { %v3091_v56 = vpop.f32.mrf.mxu0  ;;  %v3583_v30 = vpop.f32.mrf.mxu1  ;;  %v2306_v24 = vadd.f32 %v13910_v12, %v1812_v23 }
 0x1fc   : > { %v3177_v52 = vadd.f32 %v3091_v56, %v2754_v13  ;;  %3705 = vst [vmem:[#allocation3 + $0x88] sm:$0xff] %v3669_v5  ;;  %v3670_v47 = vadd.f32 %v3583_v30, %v3176_v10  ;;  %v1421_v45 = vadd.f32 %v13869_v14, %v997_v28  ;;  %v2758_v1 = vadd.f32 %v14146_v11, %v2334_v57  ;;  %v12477_v11 = vld [vmem:[%s17259_s2 + $0x2d4] ss:$8 sps:$4 sm:$0xff]  }
 0x1fd   : > { %v3095_v8 = vpop.f32.mrf.mxu0  ;;  %v3585_v44 = vpop.f32.mrf.mxu1  ;;  %6413 = vmatpush2.bf16.msra.mxu1 %v12469_v7 }
 0x1fe   : > { %v3178_v35 = vadd.f32 %v3095_v8, %v14134_v43  ;;  %3706 = vst [vmem:[#allocation3 + $0xd8] sm:$0xff] %v3670_v47  ;;  %v3671_v9 = vadd.f32 %v3585_v44, %v3177_v52  ;;  %v4171_v43 = vlaneseq  ;;  %v1844_v41 = vadd.f32 %v13890_v26, %v1421_v45  ;;  %6414 = vmatprep.subr.bf16.mxu1 %v12477_v11  ;;  %v17335_v52 = vld [vmem:[#allocation22_spill] sm:$0xff]  ;;  %v17336_v8 = vld [vmem:[#allocation21_spill] sm:$0xff] }
 0x1ff   : > { %v3097_v21 = vpop.f32.mrf.mxu0  ;;  %v3589_v18 = vpop.f32.mrf.mxu1 }
 0x200   : > { %v3179_v20 = vadd.f32 %v3097_v21, %v14138_v19  ;;  %3707 = vst [vmem:[#allocation3 + $0xb0] sm:$0xff] %v3671_v9  ;;  %v3672_v46 = vadd.f32 %v3589_v18, %v3178_v35  ;;  %v4172_v29 = vshrl.u32 %v4171_v43, 7  ;;  %v2338_v54 = vadd.f32 %v14158_v51, %v1844_v41  ;;  %v4169_v51 = vld [vmem:[%s17260_s3] sm:$0x3]  ;;  %v17338_v21 = vld [vmem:[#allocation11_spill] sm:$0xff]  ;;  %v17339_v9 = vld [vmem:[#allocation5_spill] sm:$0xff] }
 0x201   : > { %v3099_v50 = vpop.f32.mrf.mxu0  ;;  %v3591_v27 = vpop.f32.mrf.mxu1  ;;  %6415 = vmatpush2.bf16.msra.mxu1 %v12475_v34  ;;  %v2730_v44 = vadd.f32 %v17338_v21, %v2306_v24  ;;  %v17340_v43 = vld [vmem:[#allocation6_spill] sm:$0xff]  ;;  %v4253_v24 = vld [vmem:[%s17260_s3] sm:$0x3] }
 0x202   : > { %v3180_v25 = vadd.f32 %v3099_v50, %v14141_v6  ;;  %3708 = vst [vmem:[#allocation3 + $0x20] sm:$0xff] %v3672_v46  ;;  %v3673_v19 = vadd.f32 %v3591_v27, %v3179_v20  ;;  %v14322_v32 = vsub.s32 0, %v4172_v29  ;;  %v2762_v5 = vadd.f32 %v17335_v52, %v2338_v54  ;;  %6416 = vmatprep.subr.bf16.mxu1 %v12486_v58  ;;  %v12490_v20 = vld [vmem:[%s17259_s2 + $0x2b0] ss:$8 sps:$4 sm:$0xff]  }
 0x203   : > { %v3101_v37 = vpop.f32.mrf.mxu0  ;;  %v3593_v55 = vpop.f32.mrf.mxu1  ;;  %v14335_v57 = vsub.s32 1, %v4172_v29  ;;  %v1816_v50 = vadd.f32 %v17340_v43, %v17339_v9  ;;  %v3153_v46 = vadd.f32 %v14180_v59, %v2730_v44  ;;  %v17341_v29 = vld [vmem:[#allocation12_spill] sm:$0xff]  ;;  %v17346_v58 = vld [vmem:[#allocation10_spill] sm:$0xff] }
 0x204   : > { %v3181_v14 = vadd.f32 %v3101_v37, %v2758_v1  ;;  %3709 = vst [vmem:[#allocation3 + $0x70] sm:$0xff] %v3673_v19  ;;  %v3674_v22 = vadd.f32 %v3593_v55, %v3180_v25  ;;  %17334 = vst [vmem:[#allocation20_spill] sm:$0xff] %v14322_v32  ;;  %v4174_v60 = vrot.slane %v4169_v51, %v14322_v32  ;;  %v12492_v25 = vld [vmem:[%s17259_s2 + $0x2b4] ss:$8 sps:$4 sm:$0xff]   ;;  %v12496_v59 = vld [vmem:[%s17259_s2 + $0x2a0] ss:$8 sps:$4 sm:$0xff]  }
 0x205   : > { %v3105_v6 = vpop.f32.mrf.mxu0  ;;  %v3595_v10 = vpop.f32.mrf.mxu1  ;;  %17337 = vst [vmem:[#allocation22_spill] sm:$0xff] %v14335_v57  ;;  %6417 = vmatpush2.bf16.msra.mxu1 %v12484_v38  ;;  %v4178_v27 = vrot.slane %v4169_v51, %v14335_v57  ;;  %v2310_v34 = vadd.f32 %v17341_v29, %v1816_v50  ;;  %v17345_v38 = vld [vmem:[#allocation9_spill] sm:$0xff]  ;;  %v14371_v44 = vrot.slane %v4253_v24, %v14322_v32  ;;  %v17350_v43 = vld [vmem:[#allocation24_spill] sm:$0xff] }
 0x206   : > { %v3182_v26 = vadd.f32 %v3105_v6, %v14153_v63  ;;  %3710 = vst [vmem:[#allocation3 + $0x60] sm:$0xff] %v3674_v22  ;;  %v3675_v17 = vadd.f32 %v3595_v10, %v3181_v14  ;;  %6418 = vmatprep.subr.bf16.mxu1 %v12492_v25  ;;  %v17342_v6 = vld [vmem:[#allocation23_spill] sm:$0xff] }
 0x207   : > { %v3107_v13 = vpop.f32.mrf.mxu0  ;;  %v3599_v12 = vpop.f32.mrf.mxu1 }
 0x208   : > { %v3183_v56 = vadd.f32 %v3107_v13, %v17333_v61  ;;  %3711 = vst [vmem:[#allocation3 + $0x18] sm:$0xff] %v3675_v17  ;;  %v3676_v28 = vadd.f32 %v3599_v12, %v3182_v26  ;;  %v3647_v26 = vadd.f32 %v14187_v0, %v3153_v46  ;;  %v17343_v61 = vld [vmem:[#allocation7_spill] sm:$0xff]  ;;  %v17347_v12 = vld [vmem:[#allocation13_spill] sm:$0xff] }
 0x209   : > { %v3109_v63 = vpop.f32.mrf.mxu0  ;;  %v3601_v47 = vpop.f32.mrf.mxu1  ;;  %6419 = vmatpush2.bf16.msra.mxu1 %v12490_v20  ;;  %v2734_v52 = vadd.f32 %v17347_v12, %v2310_v34  ;;  %v17354_v34 = vld [vmem:[#allocation17_spill] sm:$0xff]  ;;  %v17359_v12 = vld [vmem:[#allocation18_spill] sm:$0xff] }
 0x20a   : > { %v3184_v30 = vadd.f32 %v3109_v63, %v17336_v8  ;;  %3712 = vst [vmem:[#allocation3 + $0xa8] sm:$0xff] %v3676_v28  ;;  %v3677_v45 = vadd.f32 %v3601_v47, %v3183_v56  ;;  %v17344_v56 = vld [vmem:[#allocation8_spill] sm:$0xff]  ;;  %v1824_v63 = vadd.f32 %v17346_v58, %v17345_v38 }
 0x20b   : > { %v3111_v35 = vpop.f32.mrf.mxu0  ;;  %v3603_v1 = vpop.f32.mrf.mxu1  ;;  %v1820_v17 = vadd.f32 %v17344_v56, %v17343_v61  ;;  %v17349_v28 = vld [vmem:[#allocation16_spill] sm:$0xff] }
 0x20c   : > { %v3185_v7 = vadd.f32 %v3111_v35, %v2762_v5  ;;  %3713 = vst [vmem:[#allocation3 + $0x68] sm:$0xff] %v3677_v45  ;;  %v3678_v41 = vadd.f32 %v3603_v1, %v3184_v30  ;;  %v2318_v35 = vadd.f32 %v17349_v28, %v1824_v63  ;;  %v12504_v45 = vld [vmem:[%s17259_s2 + $0x294] ss:$8 sps:$4 sm:$0xff]  }
 0x20d   : > { %v3943_v18 = vpop.f32.mrf.mxu0  ;;  %v3605_v19 = vpop.f32.mrf.mxu1 }
 0x20e   : > { %v4068_v37 = vadd.f32 %v3943_v18, %v14178_v15  ;;  %3714 = vst [vmem:[#allocation3 + $0x28] sm:$0xff] %v3678_v41  ;;  %v3679_v23 = vadd.f32 %v3605_v19, %v3185_v7  ;;  %v12498_v15 = vld [vmem:[%s17259_s2 + $0x2a4] ss:$8 sps:$4 sm:$0xff]   ;;  %v12502_v7 = vld [vmem:[%s17259_s2 + $0x290] ss:$8 sps:$4 sm:$0xff]  }
 0x20f   : > { %v3945_v14 = vpop.f32.mrf.mxu0  ;;  %6420 = vmatprep.subr.bf16.mxu1 %v12498_v15  ;;  %v17351_v18 = vld [vmem:[#allocation25_spill] sm:$0xff]  ;;  %v17352_v41 = vld [vmem:[#allocation26_spill] sm:$0xff]  ;;  %v4357_v19 = vld [vmem:[%s17260_s3] sm:$0x3] }
 0x210   : > { %v4181_v11 = vadd.f32 %v4174_v60, %v4068_v37  ;;  %v4069_v55 = vadd.f32 %v3945_v14, %v17342_v6  ;;  %3715 = vst [vmem:[#allocation3 + $0x100] sm:$0xff] %v3679_v23  ;;  %6421 = vmatpush2.bf16.msra.mxu1 %v12496_v59  ;;  %v3157_v1 = vadd.f32 %v17351_v18, %v2734_v52  ;;  %v12510_v59 = vld [vmem:[%s17259_s2 + $0x280] ss:$8 sps:$4 sm:$0xff]   ;;  %v12512_v15 = vld [vmem:[%s17259_s2 + $0x284] ss:$8 sps:$4 sm:$0xff]   ;;  %v5503_v52 = vshll.u32 %v17359_v12, 16 }
 0x211   : > { %v3947_v54 = vpop.f32.mrf.mxu0  ;;  %6422 = vmatprep.subr.bf16.mxu1 %v12504_v45  ;;  %v14407_v56 = vrot.slane %v4357_v19, %v14322_v32 }
 0x212   : > { %v4185_v22 = vmul.f32 0.01, %v4181_v11  ;;  %v4182_v13 = vadd.f32 %v4178_v27, %v4069_v55  ;;  %v4070_v10 = vadd.f32 %v3947_v54, %v14185_v3  ;;  %v17348_v3 = vld [vmem:[#allocation14_spill] sm:$0xff]  ;;  %v14390_v55 = vrot.slane %v4253_v24, %v14335_v57 }
 0x213   : > { %v3949_v51 = vpop.f32.mrf.mxu0  ;;  %v2314_v30 = vadd.f32 %v17348_v3, %v1820_v17  ;;  %v3651_v24 = vadd.f32 %v14206_v40, %v3157_v1  ;;  %v4710_v17 = vld [vmem:[#allocation2 + $0x68] sm:$0xcc] }
 0x214   : > { %v4186_v0 = vmul.f32 0.01, %v4182_v13  ;;  %v4183_v5 = vadd.f32 %v4174_v60, %v4070_v10  ;;  %v4071_v8 = vadd.f32 %v3949_v51, %v3647_v26  ;;  %v4189_v47 = vmax.f32 %v4181_v11, %v4185_v22  ;;  %6423 = vmatpush2.bf16.msra.mxu1 %v12502_v7 }
 0x215   : > { %v3953_v21 = vpop.f32.mrf.mxu0  ;;  %v14387_v11 = vadd.f32 %v17354_v34, %v2318_v35  ;;  %6424 = vmatprep.subr.bf16.mxu1 %v12512_v15  ;;  %v14425_v7 = vrot.slane %v4357_v19, %v14335_v57 }
 0x216   : > { %v4190_v60 = vmax.f32 %v4182_v13, %v4186_v0  ;;  %v4187_v20 = vmul.f32 0.01, %v4183_v5  ;;  %v4184_v9 = vadd.f32 %v4178_v27, %v4071_v8  ;;  %v4072_v50 = vadd.f32 %v3953_v21, %v17350_v43  ;;  %v17353_v27 = vld [vmem:[#allocation15_spill] sm:$0xff] }
 0x217   : > { %v3955_v25 = vpop.f32.mrf.mxu0  ;;  %v2738_v29 = vadd.f32 %v17353_v27, %v2314_v30  ;;  %v4235_v30 = vld [vmem:[#allocation2 + $0x10] sm:$0xee]  ;;  %v5501_v43 = vshrl.u32 %v17359_v12, 16 }
 0x218   : > { %v11994_v46 = vpack.c.bf16 %v4190_v60, %v4189_v47  ;;  %v4188_v37 = vmul.f32 0.01, %v4184_v9  ;;  %4108 = vst [vmem:[#allocation3 + $0x10] sm:$0xff] %v4072_v50  ;;  %v4073_v14 = vadd.f32 %v3955_v25, %v17352_v41  ;;  %v4191_v6 = vmax.f32 %v4183_v5, %v4187_v20  ;;  %6425 = vmatpush2.bf16.msra.mxu1 %v12510_v59  ;;  %v17360_v20 = vld [vmem:[#allocation19_spill] sm:$0xff] }
 0x219   : > { %v3957_v23 = vpop.f32.mrf.mxu0  ;;  %v3161_v0 = vadd.f32 %v14212_v2, %v2738_v29  ;;  %v12519_v2 = vld [vmem:[%s17259_s2 + $0x474] ss:$8 sps:$4 sm:$0xff]   ;;  %v17361_v50 = vmov 0  ;;  %v17364_v41 = vmov 0 }
 0x21a   : > { %v4207_v54 = vshrl.u32 %v11994_v46, 16  ;;  %v4210_v26 = vshll.u32 %v11994_v46, 16  ;;  %v4192_v22 = vmax.f32 %v4184_v9, %v4188_v37  ;;  %4109 = vst [vmem:[#allocation3 + $0x8] sm:$0xff] %v4073_v14  ;;  %v4074_v13 = vadd.f32 %v3957_v23, %v14204_v62  ;;  %7686 = vmatprep.subr.bf16.mxu1 %v12519_v2 }
 0x21b   : > { %v3959_v61 = vpop.f32.mrf.mxu0  ;;  %v5491_v9 = vshll.u32 %v17360_v20, 16  ;;  %v17362_v50 = vsel %vm14435_vm7, 4294967295, %v17361_v50  ;;  %v5505_v37 = vrot.slane %v5503_v52, 1  ;;  %v17365_v41 = vsel %vm14446_vm8, 4294967295, %v17364_v41 }
 0x21c   : > { %v4209_v62 = vrot.slane %v4207_v54, 6  ;;  %v4212_v38 = vrot.slane %v4210_v26, 7  ;;  %v11995_v58 = vpack.c.bf16 %v4192_v22, %v4191_v6  ;;  %v4267_v63 = vadd.f32 %v14371_v44, %v4074_v13  ;;  %17363 = vst [vmem:[#allocation21_spill] sm:$0xff] %v17362_v50  ;;  %17366 = vst [vmem:[#allocation11_spill] sm:$0xff] %v17365_v41  ;;  %v4063_v41 = vld [vmem:[#allocation3 + $0x18] sm:$0xff] }
 0x21d   : > { %v4075_v40 = vadd.f32 %v3959_v61, %v3651_v24  ;;  %v3963_v51 = vpop.f32.mrf.mxu0  ;;  %v3655_v14 = vadd.f32 %v14225_v49, %v3161_v0  ;;  %v4461_v49 = vld [vmem:[%s17260_s3] sm:$0x3]  ;;  %v5489_v13 = vshrl.u32 %v17360_v20, 16  ;;  %vm4553_vm7 = vsmask.f32 4352 }
 0x21e   : > { %v4216_v5 = vshrl.u32 %v11995_v58, 16  ;;  %v4219_v8 = vshll.u32 %v11995_v58, 16  ;;  %v4076_v3 = vadd.f32 %v3963_v51, %v14210_v4  ;;  %v4273_v35 = vmul.f32 0.01, %v4267_v63  ;;  %v4244_v24 = vld [vmem:[#allocation2 + $0x60] sm:$0x33] }
 0x21f   : > { %v4247_v28 = vld [vmem:[#allocation3 + $0x10] sm:$0xfc]  ;;  %v4268_v47 = vadd.f32 %v14390_v55, %v4075_v40  ;;  %v3965_v21 = vpop.f32.mrf.mxu0  ;;  %v4213_v45 = vor.u32 %v4212_v38, %v4209_v62  ;;  %v4563_v38 = vld [vmem:[%s17260_s3] sm:$0x3] }
 0x220   : > { %4112 = vst [vmem:[#allocation3 + $0x118] sm:$0xff] %v4076_v3  ;;  %v4077_v4 = vadd.f32 %v3965_v21, %v14214_v42  ;;  %v4218_v60 = vrot.slane %v4216_v5, 6  ;;  %v4221_v46 = vrot.slane %v4219_v8, 7  ;;  %v14452_v19 = vadd.f32 %v14371_v44, %v4247_v28  ;;  %v17369_v21 = vld [vmem:[#allocation27_spill] sm:$0xff] }
 0x221   : > { %v4248_v18 = vld [vmem:[#allocation3 + $0x8] sm:$0xfc]  ;;  %v4274_v1 = vmul.f32 0.01, %v4268_v47  ;;  %v3967_v25 = vpop.f32.mrf.mxu0  ;;  %v4236_v42 = vsel %vm17273_vm6, %v4213_v45, %v4235_v30  ;;  %v4279_v6 = vmax.f32 %v4267_v63, %v4273_v35  ;;  %v4214_v15 = vrot.slane %v4213_v45, 4  ;;  %vm14631_vm6 = vmand %vm4334_vm14, %vm4335_vm4 }
 0x222   : > { %v4266_v27 = vadd.f32 %v14390_v55, %v4248_v18  ;;  %4113 = vst [vmem:[#allocation3 + $0xc8] sm:$0xff] %v4077_v4  ;;  %v4078_v29 = vadd.f32 %v3967_v25, %v14217_v39  ;;  %4237 = vst [vmem:[#allocation2 + $0x10] sm:$0xee] %v4236_v42  ;;  %v4222_v54 = vor.u32 %v4221_v46, %v4218_v60  ;;  %v5493_v63 = vrot.slane %v5491_v9, 1  ;;  %v4632_v35 = vld [vmem:[%s17260_s3] sm:$0x3] }
 0x223   : > { %v4280_v23 = vmax.f32 %v4268_v47, %v4274_v1  ;;  %v3969_v59 = vpop.f32.mrf.mxu0  ;;  %v4271_v51 = vmul.f32 0.01, %v14452_v19  ;;  %v14482_v3 = vrot.slane %v4461_v49, %v14322_v32  ;;  %v14485_v28 = vrot.slane %v4461_v49, %v14335_v57  ;;  %v17370_v18 = vld [vmem:[#allocation28_spill] sm:$0xff]  ;;  %vm14686_vm4 = vmand %vm4342_vm5, %vm4343_vm3 }
 0x224   : > { %v4272_v26 = vmul.f32 0.01, %v4266_v27  ;;  %v4371_v22 = vadd.f32 %v14407_v56, %v4078_v29  ;;  %v4079_v39 = vadd.f32 %v3969_v59, %v3655_v14  ;;  %v4223_v58 = vsel %vm14458_vm9, %v4214_v15, %v4222_v54  ;;  %vm14707_vm3 = vmand %vm4345_vm1, %vm17275_vm2 }
 0x225   : > { %v14471_v61 = vpack.c.bf16 %v4280_v23, %v4279_v6  ;;  %v3973_v62 = vpop.f32.mrf.mxu0  ;;  %v4224_v40 = vrot.slane %v4222_v54, 4  ;;  %4238 = vst [vmem:[#allocation2 + $0x48] sm:$0xff] %v4223_v58  ;;  %v14490_v47 = vor.u32 %v5505_v37, %v5501_v43  ;;  %v3165_v45 = vadd.f32 %v17369_v21, %v14387_v11  ;;  %vm17277_vm2 = vmor %vm14707_vm3, %vm14686_vm4 }
 0x226   : > { %v4377_v12 = vmul.f32 0.01, %v4371_v22  ;;  %v4372_v52 = vadd.f32 %v14425_v7, %v4079_v39  ;;  %v4080_v0 = vadd.f32 %v3973_v62, %v14232_v48  ;;  %v4278_v2 = vmax.f32 %v4266_v27, %v4272_v26 }
 0x227   : > { %v4251_v5 = vld [vmem:[#allocation3 + $0x118] sm:$0x3]  ;;  %v4351_v8 = vld [vmem:[#allocation3 + $0x118] sm:$0xf0]  ;;  %v3975_v30 = vpop.f32.mrf.mxu0  ;;  %v4245_v48 = vsel %vm17272_vm11, %v4224_v40, %v4244_v24  ;;  %v14503_v60 = vrot.slane %v4563_v38, %v14322_v32  ;;  %v14507_v46 = vrot.slane %v4563_v38, %v14335_v57  ;;  %v14509_v42 = vor.u32 %v5493_v63, %v5489_v13  ;;  %vm14618_vm11 = vmand %vm4331_vm12, %vm4332_vm15 }
 0x228   : > { %v14500_v4 = vadd.f32 %v14371_v44, %v4251_v5  ;;  %4116 = vst [vmem:[#allocation3 + $0x38] sm:$0xff] %v4080_v0  ;;  %4246 = vst [vmem:[#allocation2 + $0x60] sm:$0x33] %v4245_v48  ;;  %v4378_v43 = vmul.f32 0.01, %v4372_v52  ;;  %v4081_v1 = vadd.f32 %v3975_v30, %v17370_v18  ;;  %v4277_v11 = vmax.f32 %v14452_v19, %v4271_v51 }
 0x229   : > { %v4252_v20 = vld [vmem:[#allocation3 + $0xc8] sm:$0x3]  ;;  %v4352_v9 = vld [vmem:[#allocation3 + $0xc8] sm:$0xf0]  ;;  %v3977_v25 = vpop.f32.mrf.mxu0  ;;  %v4369_v44 = vadd.f32 %v14407_v56, %v4351_v8  ;;  %v4383_v37 = vmax.f32 %v4371_v22, %v4377_v12  ;;  %v14514_v14 = vrot.slane %v4632_v35, %v14322_v32  ;;  %v3659_v15 = vadd.f32 %v14250_v53, %v3165_v45  ;;  %v4814_v53 = vld [vmem:[%s17260_s3] sm:$0x3] }
 0x22a   : > { %v4270_v27 = vadd.f32 %v14390_v55, %v4252_v20  ;;  %v4370_v29 = vadd.f32 %v14425_v7, %v4352_v9  ;;  %v4384_v6 = vmax.f32 %v4372_v52, %v4378_v43  ;;  %4117 = vst [vmem:[#allocation3 + $0xd0] sm:$0xff] %v4081_v1  ;;  %v4082_v23 = vadd.f32 %v3977_v25, %v14248_v33  ;;  %v4902_v49 = vld [vmem:[#allocation2 + $0x10] sm:$0xff]  ;;  %v4723_v55 = vld [vmem:[%s17260_s3] sm:$0x3]  ;;  %vm17276_vm12 = vmor %vm14631_vm6, %vm14618_vm11 }
 0x22b   : > { %v3979_v59 = vpop.f32.mrf.mxu0  ;;  %v11996_v54 = vpack.c.bf16 %v4278_v2, %v4277_v11  ;;  %v4275_v19 = vmul.f32 0.01, %v14500_v4  ;;  %v14522_v26 = vrot.slane %v4632_v35, %v14335_v57  ;;  %v14536_v63 = vcombine.low %v4902_v49, %v4223_v58 }
 0x22c   : > { %v4276_v22 = vmul.f32 0.01, %v4270_v27  ;;  %v4376_v39 = vmul.f32 0.01, %v4370_v29  ;;  %v14527_v13 = vpack.c.bf16 %v4384_v6, %v4383_v37  ;;  %v14530_v33 = vadd.f32 %v14482_v3, %v4082_v23 }
 0x22d   : > { %v3983_v24 = vpop.f32.mrf.mxu0  ;;  %v4083_v62 = vadd.f32 %v3979_v59, %v3659_v15  ;;  %v14538_v40 = vcombine.high %v4902_v49, %v4223_v58  ;;  %v4375_v51 = vmul.f32 0.01, %v4369_v44  ;;  %v14541_v8 = vrot.slane %v4723_v55, %v14322_v32 }
 0x22e   : > { %v4084_v38 = vadd.f32 %v3983_v24, %v14255_v16  ;;  %v4282_v12 = vmax.f32 %v4270_v27, %v4276_v22  ;;  %v14544_v30 = vrot.slane %v4723_v55, %v14335_v57  ;;  %v4301_v35 = vshrl.u32 %v11996_v54, 16  ;;  %v4052_v22 = vld [vmem:[#allocation3 + $0xa0] sm:$0xff] }
 0x22f   : > { %v4355_v52 = vld [vmem:[#allocation3 + $0x38] sm:$0xf]  ;;  %v4455_v0 = vld [vmem:[#allocation3 + $0x38] sm:$0xc0]  ;;  %v3985_v5 = vpop.f32.mrf.mxu0  ;;  %v4304_v48 = vshll.u32 %v11996_v54, 16  ;;  %5242 = vmatprep.mubr.bf16.mxu1 %v14538_v40  ;;  %v14549_v16 = vrot.slane %v4814_v53, %v14322_v32  ;;  %v4281_v58 = vmax.f32 %v14500_v4, %v4275_v19  ;;  %v4382_v45 = vmax.f32 %v4370_v29, %v4376_v39  ;;  %v4051_v19 = vld [vmem:[#allocation3 + $0x80] sm:$0xff] }
 0x230   : > { %v4473_v21 = vadd.f32 %v14482_v3, %v4455_v0  ;;  %4120 = vst [vmem:[#allocation3 + $0x50] sm:$0xff] %v4084_v38  ;;  %v4373_v2 = vadd.f32 %v14407_v56, %v4355_v52  ;;  %v4085_v20 = vadd.f32 %v3985_v5, %v14259_v36  ;;  %5243 = vmatmul.mubr.bf16.gmra.mxu1 %v14536_v63  ;;  %v4481_v18 = vmul.f32 0.01, %v14530_v33 }
 0x231   : > { %v3987_v9 = vpop.f32.mrf.mxu0  ;;  %v4356_v43 = vld [vmem:[#allocation3 + $0xd0] sm:$0xf]  ;;  %v4476_v1 = vadd.f32 %v14485_v28, %v4083_v62  ;;  %v14559_v11 = vrot.slane %v4814_v53, %v14335_v57  ;;  %v4310_v4 = vshrl.u32 %v14471_v61, 16  ;;  %v4381_v37 = vmax.f32 %v4369_v44, %v4375_v51  ;;  %v4456_v29 = vld [vmem:[#allocation3 + $0xd0] sm:$0xc0] }
 0x232   : > { %v4086_v25 = vadd.f32 %v3987_v9, %v14263_v31  ;;  %v11998_v27 = vpack.c.bf16 %v4282_v12, %v4281_v58  ;;  %v4479_v56 = vmul.f32 0.01, %v4473_v21  ;;  %4121 = vst [vmem:[#allocation3 + $0xf0] sm:$0xff] %v4085_v20  ;;  %v14562_v6 = vrot.slane %v4301_v35, 6 }
 0x233   : > { %v3989_v36 = vpop.f32.mrf.mxu0  ;;  %v4313_v23 = vshll.u32 %v14471_v61, 16  ;;  %v4374_v59 = vadd.f32 %v14425_v7, %v4356_v43  ;;  %v4474_v49 = vadd.f32 %v14485_v28, %v4456_v29  ;;  %v14567_v31 = vrot.slane %v4304_v48, 7 }
 0x234   : > { %v14569_v15 = vpack.c.bf16 %v4382_v45, %v4381_v37  ;;  %v4379_v44 = vmul.f32 0.01, %v4373_v2  ;;  %v4487_v53 = vmax.f32 %v14530_v33, %v4481_v18  ;;  %v4482_v62 = vmul.f32 0.01, %v4476_v1  ;;  %v4053_v45 = vld [vmem:[#allocation3 + $0x40] sm:$0xff] }
 0x235   : > { %v3993_v55 = vpop.f32.mrf.mxu0  ;;  %v4380_v39 = vmul.f32 0.01, %v4374_v59  ;;  %v4480_v24 = vmul.f32 0.01, %v4474_v49  ;;  %v4320_v38 = vshrl.u32 %v11998_v27, 16  ;;  %v4485_v51 = vmax.f32 %v4473_v21, %v4479_v56 }
 0x236   : > { %v4087_v12 = vadd.f32 %v4051_v19, %v3989_v36  ;;  %v4088_v52 = vadd.f32 %v4052_v22, %v3993_v55  ;;  %v4488_v48 = vmax.f32 %v4476_v1, %v4482_v62  ;;  %v4323_v20 = vshll.u32 %v11998_v27, 16 }
 0x237   : > { %v4459_v7 = vld [vmem:[#allocation3 + $0x50] sm:$0x3f]  ;;  %v3995_v0 = vpop.f32.mrf.mxu0  ;;  %v4386_v5 = vmax.f32 %v4374_v59, %v4380_v39  ;;  %v4486_v35 = vmax.f32 %v4474_v49, %v4480_v24  ;;  %v4405_v33 = vshll.u32 %v14569_v15, 16  ;;  %v4385_v9 = vmax.f32 %v4373_v2, %v4379_v44 }
 0x238   : > { %v4477_v58 = vadd.f32 %v14482_v3, %v4459_v7  ;;  %4123 = vst [vmem:[#allocation3 + $0x80] sm:$0xff] %v4087_v12  ;;  %4124 = vst [vmem:[#allocation3 + $0xa0] sm:$0xff] %v4088_v52  ;;  %v4089_v21 = vadd.f32 %v4053_v45, %v3995_v0  ;;  %v14575_v37 = vpack.c.bf16 %v4488_v48, %v4487_v53  ;;  %v14588_v49 = vrot.slane %v4320_v38, 6  ;;  %v4054_v45 = vld [vmem:[#allocation3 + $0x48] sm:$0xff] }
 0x239   : > { %v3997_v43 = vpop.f32.mrf.mxu0  ;;  %v12002_v18 = vpack.c.bf16 %v4486_v35, %v4485_v51  ;;  %v4460_v56 = vld [vmem:[#allocation3 + $0xf0] sm:$0x3f]  ;;  %v14578_v29 = vadd.f32 %v14503_v60, %v4086_v25  ;;  %v14581_v3 = vadd.f32 %v14507_v46, %v4087_v12  ;;  %v12001_v27 = vpack.c.bf16 %v4386_v5, %v4385_v9 }
 0x23a   : > { %v4478_v36 = vadd.f32 %v14485_v28, %v4460_v56  ;;  %v14586_v2 = vadd.f32 %v14503_v60, %v4088_v52  ;;  %4125 = vst [vmem:[#allocation3 + $0x40] sm:$0xff] %v4089_v21  ;;  %v4408_v44 = vshrl.u32 %v14569_v15, 16  ;;  %v4483_v19 = vmul.f32 0.01, %v4477_v58 }
 0x23b   : > { %v3999_v59 = vpop.f32.mrf.mxu0  ;;  %v5496_v25 = vshll.u32 %v14536_v63, 16  ;;  %v14592_v55 = vrot.slane %v4323_v20, 7  ;;  %v4509_v22 = vshrl.u32 %v12002_v18, 16  ;;  %v4512_v39 = vshll.u32 %v12002_v18, 16  ;;  %v4055_v20 = vld [vmem:[#allocation3 + $0x30] sm:$0xff] }
 0x23c   : > { %v4484_v24 = vmul.f32 0.01, %v4478_v36  ;;  %v14594_v28 = vrot.slane %v4405_v33, 7  ;;  %v4579_v60 = vmul.f32 0.01, %v14578_v29  ;;  %v5508_v38 = vshll.u32 %v14538_v40, 16 }
 0x23d   : > { %v4003_v53 = vpop.f32.mrf.mxu0  ;;  %v4580_v62 = vmul.f32 0.01, %v14581_v3  ;;  %v4424_v15 = vshrl.u32 %v12001_v27, 16  ;;  %v4427_v51 = vshll.u32 %v12001_v27, 16  ;;  %v14600_v12 = vmul.f32 0.01, %v14586_v2 }
 0x23e   : > { %v4490_v7 = vmax.f32 %v4478_v36, %v4484_v24  ;;  %v4518_v0 = vshrl.u32 %v14575_v37, 16  ;;  %v4521_v5 = vshll.u32 %v14575_v37, 16  ;;  %v4489_v35 = vmax.f32 %v4477_v58, %v4483_v19  ;;  %v4056_v27 = vld [vmem:[#allocation3 + $0xf8] sm:$0xff] }
 0x23f   : > { %v4005_v52 = vpop.f32.mrf.mxu0  ;;  %v14605_v48 = vadd.f32 %v14507_v46, %v4089_v21  ;;  %v14607_v33 = vrot.slane %v4509_v22, 6  ;;  %v14609_v9 = vrot.slane %v4512_v39, 7  ;;  %v4090_v18 = vadd.f32 %v4054_v45, %v3997_v43 }
 0x240   : > { %v4091_v56 = vadd.f32 %v4055_v20, %v3999_v59  ;;  %v14611_v24 = vpack.c.bf16 %v4490_v7, %v4489_v35  ;;  %v4584_v1 = vmax.f32 %v14581_v3, %v4580_v62  ;;  %v14614_v54 = vrot.slane %v5508_v38, 1 }
 0x241   : > { %v4007_v36 = vpop.f32.mrf.mxu0  ;;  %v4092_v58 = vadd.f32 %v4056_v27, %v4003_v53  ;;  %v4326_v21 = vor.u32 %v14592_v55, %v14588_v49  ;;  %v14624_v43 = vrot.slane %v4408_v44, 6  ;;  %v14626_v37 = vrot.slane %v4424_v15, 6  ;;  %4126 = vst [vmem:[#allocation3 + $0x48] sm:$0xff] %v4090_v18  ;;  %v12442_v53 = vld [vmem:[%s17259_s2 + $0x370] ss:$8 sps:$4 sm:$0xff]  }
 0x242   : > { %v4583_v59 = vmax.f32 %v14578_v29, %v4579_v60  ;;  %4127 = vst [vmem:[#allocation3 + $0x30] sm:$0xff] %v4091_v56  ;;  %v14635_v22 = vrot.slane %v4427_v51, 7  ;;  %v14638_v39 = vmul.f32 0.01, %v14605_v48  ;;  %v5511_v44 = vsel %vm17274_vm0, %v14490_v47, %v14614_v54  ;;  %v4057_v51 = vld [vmem:[#allocation3 + $0x88] sm:$0xff] }
 0x243   : > { %v4009_v19 = vpop.f32.mrf.mxu0  ;;  %4128 = vst [vmem:[#allocation3 + $0xf8] sm:$0xff] %v4092_v58  ;;  %v14643_v29 = vrot.slane %v5496_v25, 1  ;;  %v4515_v60 = vor.u32 %v14609_v9, %v14607_v33  ;;  %v14650_v62 = vrot.slane %v4518_v0, 6  ;;  %v14652_v38 = vrot.slane %v4521_v5, 7  ;;  %5850 = vmatprep.mubr.bf16.mxu0 %v5511_v44  ;;  %v12450_v25 = vld [vmem:[%s17259_s2 + $0x364] ss:$8 sps:$4 sm:$0xff]  }
 0x244   : > { %v4585_v15 = vmax.f32 %v14586_v2, %v14600_v12  ;;  %vm4436_vm14 = vsmask.f32 7950  ;;  %v4528_v7 = vshrl.u32 %v14611_v24, 16  ;;  %v14660_v35 = vpack.c.bf16 %v4584_v1, %v4583_v59  ;;  %v4338_v2 = vld [vmem:[#allocation2 + $0x60] sm:$0xcc]  ;;  %v4061_v59 = vld [vmem:[#allocation3 + $0x70] sm:$0xff] }
 0x245   : > { %v4013_v47 = vpop.f32.mrf.mxu0  ;;  %v5499_v0 = vsel %vm17274_vm0, %v14509_v42, %v14643_v29  ;;  %v4093_v5 = vadd.f32 %v4057_v51, %v4005_v52  ;;  %v4058_v12 = vld [vmem:[#allocation3 + $0xd8] sm:$0xff]  ;;  %v4307_v45 = vor.u32 %v14567_v31, %v14562_v6  ;;  %v4312_v1 = vrot.slane %v4310_v4, 6  ;;  %v4059_v4 = vld [vmem:[#allocation3 + $0xb0] sm:$0xff] }
 0x246   : > { %5851 = vmatmul.mubr.bf16.vlgmr.msra.gmra.mxu0 %v5499_v0  ;;  %v4315_v20 = vrot.slane %v4313_v23, 7  ;;  %v4094_v18 = vadd.f32 %v4058_v12, %v4007_v36  ;;  %vm4438_vm15 = vcmask 1047559   ;;  %vm4439_vm0 = vsmask.f32 7966  ;;  %v12448_v23 = vld [vmem:[%s17259_s2 + $0x360] ss:$8 sps:$4 sm:$0xff]  }
 0x247   : > { %v4015_v42 = vpop.f32.mrf.mxu0  ;;  %v4531_v52 = vshll.u32 %v14611_v24, 16  ;;  %v4586_v56 = vmax.f32 %v14605_v48, %v14638_v39  ;;  %v14679_v27 = vadd.f32 %v14514_v14, %v4092_v58  ;;  %4129 = vst [vmem:[#allocation3 + $0x88] sm:$0xff] %v4093_v5  ;;  %v14682_v6 = vadd.f32 %v14522_v26, %v4093_v5  ;;  %6971 = vmatpush1.bf16.msra.mxu0 %v12442_v53  ;;  %v4060_v58 = vld [vmem:[#allocation3 + $0x20] sm:$0xff]  ;;  %v12456_v44 = vld [vmem:[%s17259_s2 + $0x354] ss:$8 sps:$4 sm:$0xff]  }
 0x248   : > { %v17375_v61 = vmov 0  ;;  %v4308_v31 = vrot.slane %v4307_v45, 4  ;;  %v4316_v48 = vor.u32 %v4315_v20, %v4312_v1  ;;  %v4339_v36 = vsel %vm17276_vm12, %v4307_v45, %v4338_v2  ;;  %4130 = vst [vmem:[#allocation3 + $0xd8] sm:$0xff] %v4094_v18  ;;  %6972 = vmatprep.subr.bf16.mxu0 %v12450_v25  ;;  %v4626_v0 = vld [vmem:[#allocation3 + $0x48] sm:$0xfc] }
 0x249   : > { %v17376_v61 = vsel %vm14686_vm4, 4294967295, %v17375_v61  ;;  %v4095_v24 = vadd.f32 %v4059_v4, %v4009_v19  ;;  %v14698_v39 = vpop.f32.mrf.mxu0  ;;  %v4598_v53 = vshrl.u32 %v14660_v35, 16  ;;  %v4601_v51 = vshll.u32 %v14660_v35, 16  ;;  %v4627_v5 = vld [vmem:[#allocation3 + $0x30] sm:$0xfc] }
 0x24a   : > { %17377 = vst [vmem:[#allocation5_spill] sm:$0xff] %v17376_v61  ;;  %4340 = vst [vmem:[#allocation2 + $0x60] sm:$0xcc] %v4339_v36  ;;  %v4096_v12 = vadd.f32 %v4060_v58, %v4013_v47  ;;  %v4097_v2 = vadd.f32 %v4061_v59, %v4015_v42  ;;  %v17378_v19 = vmov 0  ;;  %v4644_v25 = vadd.f32 %v14514_v14, %v4626_v0  ;;  %v4348_v20 = vld [vmem:[#allocation2 + $0x40] sm:$0x77] }
 0x24b   : > { %v17379_v19 = vsel %vm14707_vm3, 4294967295, %v17378_v19  ;;  %v4645_v45 = vadd.f32 %v14522_v26, %v4627_v5  ;;  %v4653_v1 = vmul.f32 0.01, %v14682_v6  ;;  %v4317_v35 = vsel %vm14458_vm9, %v4308_v31, %v4316_v48  ;;  %4131 = vst [vmem:[#allocation3 + $0xb0] sm:$0xff] %v4095_v24  ;;  %v12454_v47 = vld [vmem:[%s17259_s2 + $0x350] ss:$8 sps:$4 sm:$0xff]   ;;  %6973 = vmatpush1.bf16.msra.mxu0 %v12448_v23  ;;  %v14739_v23 = vpop.f32.mrf.mxu0 }
 0x24c   : > { %17380 = vst [vmem:[#allocation6_spill] sm:$0xff] %v17379_v19  ;;  %v14719_v18 = vpack.c.bf16 %v4586_v56, %v4585_v15  ;;  %v4652_v42 = vmul.f32 0.01, %v14679_v27  ;;  %v4318_v4 = vrot.slane %v4316_v48, 4  ;;  %4341 = vst [vmem:[#allocation2 + $0x28] sm:$0xff] %v4317_v35  ;;  %v14723_v36 = vadd.f32 %v14541_v8, %v4096_v12  ;;  %6974 = vmatprep.subr.bf16.mxu0 %v12456_v44  ;;  %v4062_v61 = vld [vmem:[#allocation3 + $0x60] sm:$0xff] }
 0x24d   : > { %4132 = vst [vmem:[#allocation3 + $0x20] sm:$0xff] %v4096_v12  ;;  %4133 = vst [vmem:[#allocation3 + $0x70] sm:$0xff] %v4097_v2  ;;  %vm4447_vm5 = vsmask.f32 3328  ;;  %v12462_v31 = vld [vmem:[%s17259_s2 + $0x344] ss:$8 sps:$4 sm:$0xff]   ;;  %v4659_v59 = vmax.f32 %v14682_v6, %v4653_v1  ;;  %v14745_v33 = vadd.f32 %v14544_v30, %v4097_v2 }
 0x24e   : > { %v14731_v15 = vrot.slane %v4515_v60, 4  ;;  %v14733_v56 = vrot.slane %v4528_v7, 6  ;;  %v4650_v48 = vmul.f32 0.01, %v4644_v25  ;;  %v4651_v24 = vmul.f32 0.01, %v4645_v45 }
 0x24f   : > { %v14741_v58 = vrot.slane %v4531_v52, 7  ;;  %v4327_v9 = vsel %vm14458_vm9, %v4318_v4, %v4326_v21  ;;  %v14752_v60 = vrot.slane %v4598_v53, 6  ;;  %v14754_v7 = vrot.slane %v4601_v51, 7  ;;  %v12460_v52 = vld [vmem:[%s17259_s2 + $0x340] ss:$8 sps:$4 sm:$0xff]   ;;  %6975 = vmatpush1.bf16.msra.mxu0 %v12454_v47 }
 0x250   : > { %v4657_v0 = vmax.f32 %v4645_v45, %v4651_v24  ;;  %v14757_v44 = vmul.f32 0.01, %v14723_v36  ;;  %v4607_v6 = vshrl.u32 %v14719_v18, 16  ;;  %v4658_v49 = vmax.f32 %v14679_v27, %v4652_v42  ;;  %v4630_v55 = vld [vmem:[#allocation3 + $0xd8] sm:$0x3]  ;;  %v14783_v42 = vpop.f32.mrf.mxu0  ;;  %6976 = vmatprep.subr.bf16.mxu0 %v12462_v31 }
 0x251   : > { %v4349_v21 = vsel %vm17277_vm2, %v4327_v9, %v4348_v20  ;;  %vm17381_vm12 = vcmask 1043459   ;;  %v17382_v53 = vmov 0  ;;  %v12468_v51 = vld [vmem:[%s17259_s2 + $0x334] ss:$8 sps:$4 sm:$0xff]   ;;  %v4656_v12 = vmax.f32 %v4644_v25, %v4650_v48  ;;  %v4904_v2 = vld [vmem:[#allocation2 + $0x60] sm:$0xff] }
 0x252   : > { %vm14772_vm1 = vmand %vm17381_vm12, %vm4436_vm14  ;;  %v4717_v45 = vld [vmem:[#allocation3 + $0xd8] sm:$0xf0]  ;;  %v5520_v1 = vshrl.u32 %v14538_v40, 16  ;;  %v5512_v20 = vshrl.u32 %v14536_v63, 16  ;;  %4350 = vst [vmem:[#allocation2 + $0x40] sm:$0x77] %v4349_v21  ;;  %v14785_v47 = vpack.c.bf16 %v4659_v59, %v4658_v49  ;;  %v14787_v4 = vcombine.low %v4904_v2, %v4317_v35 }
 0x253   : > { %v17383_v53 = vsel %vm14772_vm1, 4294967295, %v17382_v53  ;;  %v14789_v24 = vcombine.high %v4904_v2, %v4317_v35  ;;  %v4631_v9 = vld [vmem:[#allocation3 + $0xb0] sm:$0x3]  ;;  %v4718_v27 = vld [vmem:[#allocation3 + $0xb0] sm:$0xf0]  ;;  %vm14794_vm12 = vmand %vm4438_vm15, %vm4439_vm0  ;;  %v14798_v63 = vpack.c.bf16 %v4657_v0, %v4656_v12  ;;  %v4749_v48 = vmax.f32 %v14723_v36, %v14757_v44  ;;  %6977 = vmatpush1.bf16.msra.mxu0 %v12460_v52  ;;  %v14831_v52 = vpop.f32.mrf.mxu0 }
 0x254   : > { %17384 = vst [vmem:[#allocation12_spill] sm:$0xff] %v17383_v53  ;;  %v4744_v25 = vmul.f32 0.01, %v14745_v33  ;;  %v5522_v31 = vor.u32 %v5520_v1, %v14614_v54  ;;  %v5514_v35 = vor.u32 %v5512_v20, %v14643_v29  ;;  %v14804_v59 = vrot.slane %v4607_v6, 6  ;;  %v12466_v54 = vld [vmem:[%s17259_s2 + $0x330] ss:$8 sps:$4 sm:$0xff]   ;;  %vm17289_vm0 = vmor %vm14794_vm12, %vm14772_vm1  ;;  %6978 = vmatprep.subr.bf16.mxu0 %v12468_v51 }
 0x255   : > { %5252 = vmatprep.mubr.bf16.mxu1 %v14789_v24  ;;  %v14808_v49 = vadd.f32 %v14514_v14, %v4630_v55  ;;  %v14811_v21 = vadd.f32 %v14541_v8, %v4717_v45  ;;  %v14814_v0 = vadd.f32 %v14522_v26, %v4631_v9  ;;  %v14821_v29 = vadd.f32 %v14544_v30, %v4718_v27  ;;  %v4442_v26 = vld [vmem:[#allocation2 + $0x40] sm:$0x88] }
 0x256   : > { %5253 = vmatmul.mubr.bf16.gmra.mxu1 %v14787_v4  ;;  %v5524_v36 = vshll.u32 %v14789_v24, 16  ;;  %v5516_v14 = vshll.u32 %v14787_v4, 16  ;;  %v4411_v44 = vor.u32 %v14624_v43, %v14594_v28  ;;  %v12474_v6 = vld [vmem:[%s17259_s2 + $0x324] ss:$8 sps:$4 sm:$0xff]   ;;  %v4689_v55 = vshrl.u32 %v14785_v47, 16 }
 0x257   : > { %v4655_v27 = vmul.f32 0.01, %v14814_v0  ;;  %v4750_v12 = vmax.f32 %v14745_v33, %v4744_v25  ;;  %v17387_v43 = vshrl.u32 %v14527_v13, 16  ;;  %v12472_v45 = vld [vmem:[%s17259_s2 + $0x320] ss:$8 sps:$4 sm:$0xff]   ;;  %v4680_v1 = vshrl.u32 %v14798_v63, 16  ;;  %6979 = vmatpush1.bf16.msra.mxu0 %v12466_v54 }
 0x258   : > { %v4692_v51 = vshll.u32 %v14785_v47, 16  ;;  %v14846_v20 = vrot.slane %v5524_v36, 1  ;;  %v14848_v9 = vrot.slane %v5516_v14, 1  ;;  %vm17388_vm15 = vcmask 1043456   ;;  %6980 = vmatprep.subr.bf16.mxu0 %v12474_v6 }
 0x259   : > { %v4416_v2 = vrot.slane %v17387_v43, 6  ;;  %vm14852_vm2 = vmand %vm17388_vm15, %vm4447_vm5  ;;  %v4654_v33 = vmul.f32 0.01, %v14808_v49  ;;  %v14858_v25 = vmul.f32 0.01, %v14811_v21  ;;  %v17391_v43 = vshll.u32 %v14527_v13, 16 }
 0x25a   : > { %v4443_v47 = vsel %vm17289_vm0, %v14594_v28, %v4442_v26  ;;  %vm17392_vm14 = vsmask.f32 7424  ;;  %vm17393_vm5 = vcmask 1047556   ;;  %v14875_v14 = vmul.f32 0.01, %v14821_v29  ;;  %v4027_v28 = vpop.f32.mrf.mxu0 }
 0x25b   : > { %v4419_v57 = vrot.slane %v17391_v43, 7  ;;  %vm14870_vm15 = vmand %vm17393_vm5, %vm17392_vm14  ;;  %v4412_v32 = vrot.slane %v4411_v44, 4  ;;  %4444 = vst [vmem:[#allocation2 + $0x40] sm:$0x88] %v4443_v47  ;;  %v12480_v26 = vld [vmem:[%s17259_s2 + $0x314] ss:$8 sps:$4 sm:$0xff]   ;;  %v4661_v54 = vmax.f32 %v14814_v0, %v4655_v27  ;;  %v14885_v19 = vpack.c.bf16 %v4750_v12, %v4749_v48  ;;  %6981 = vmatpush1.bf16.msra.mxu0 %v12472_v45 }
 0x25c   : > { %vm17396_vm4 = vmmov %vm17392_vm14  ;;  %v4683_v47 = vshll.u32 %v14798_v63, 16  ;;  %v14893_v6 = vrot.slane %v4689_v55, 6  ;;  %v4099_v53 = vadd.f32 %v4063_v41, %v14739_v23  ;;  %v4064_v48 = vld [vmem:[#allocation3 + $0xa8] sm:$0xff]  ;;  %vm17400_vm14 = vcmask 1043456   ;;  %v4029_v12 = vpop.f32.mrf.mxu0  ;;  %6982 = vmatprep.subr.bf16.mxu0 %v12480_v26  ;;  %v12481_v26 = vld [vmem:[%s17259_s2 + $0x300] ss:$8 sps:$4 sm:$0xff]  }
 0x25d   : > { %v5527_v13 = vsel %vm17396_vm4, %v5522_v31, %v14846_v20  ;;  %vm17397_vm3 = vmmov %vm17396_vm4  ;;  %v4420_v50 = vor.u32 %v4419_v57, %v4416_v2  ;;  %v4098_v31 = vadd.f32 %v4062_v61, %v14698_v39  ;;  %v14900_v57 = vrot.slane %v4680_v1, 6  ;;  %v12478_v23 = vld [vmem:[%s17259_s2 + $0x310] ss:$8 sps:$4 sm:$0xff]   ;;  %v12483_v2 = vld [vmem:[%s17259_s2 + $0x304] ss:$8 sps:$4 sm:$0xff]  }
 0x25e   : > { %v5519_v43 = vsel %vm17397_vm3, %v5514_v35, %v14848_v9  ;;  %5860 = vmatprep.mubr.bf16.mxu0 %v5527_v13  ;;  %v17398_v35 = vshll.u32 %v14719_v18, 16  ;;  %vm17292_vm4 = vmor %vm14870_vm15, %vm14852_vm2  ;;  %v14902_v61 = vrot.slane %v4692_v51, 7  ;;  %v4660_v39 = vmax.f32 %v14808_v49, %v4654_v33  ;;  %4135 = vst [vmem:[#allocation3 + $0x18] sm:$0xff] %v4099_v53  ;;  %v4067_v13 = vld [vmem:[#allocation3 + $0x100] sm:$0xff] }
 0x25f   : > { %5861 = vmatmul.mubr.bf16.gmra.mxu0 %v5519_v43  ;;  %v4747_v18 = vmax.f32 %v14811_v21, %v14858_v25  ;;  %4134 = vst [vmem:[#allocation3 + $0x60] sm:$0xff] %v4098_v31  ;;  %vm17399_vm3 = vsmask.f32 7938  ;;  %v17401_v41 = vmov 0  ;;  %v4748_v0 = vmax.f32 %v14821_v29, %v14875_v14  ;;  %v4066_v14 = vld [vmem:[#allocation3 + $0x28] sm:$0xff] }
 0x260   : > { %v14890_v44 = vrot.slane %v17398_v35, 7  ;;  %vm14909_vm5 = vmand %vm17400_vm14, %vm17399_vm3  ;;  %v4421_v49 = vsel %vm14458_vm9, %v4412_v32, %v4420_v50  ;;  %v4422_v21 = vrot.slane %v4420_v50, 4  ;;  %v4100_v55 = vadd.f32 %v4064_v48, %v14783_v42  ;;  %v4065_v42 = vld [vmem:[#allocation3 + $0x68] sm:$0xff]  ;;  %6983 = vmatpush1.bf16.msra.mxu0 %v12478_v23 }
 0x261   : > { %v17402_v41 = vsel %vm14909_vm5, 4294967295, %v17401_v41  ;;  %vm17403_vm0 = vsmask.f32 7954  ;;  %vm17404_vm3 = vcmask 1047556   ;;  %v17405_v27 = vmov 0  ;;  %4445 = vst [vmem:[#allocation2 + $0x78] sm:$0xff] %v4421_v49  ;;  %6984 = vmatprep.subr.bf16.mxu0 %v12483_v2 }
 0x262   : > { %vm14923_vm14 = vmand %vm17404_vm3, %vm17403_vm0  ;;  %v14930_v29 = vpack.c.bf16 %v4661_v54, %v4660_v39  ;;  %v4780_v32 = vshrl.u32 %v14885_v19, 16  ;;  %v4783_v50 = vshll.u32 %v14885_v19, 16  ;;  %v5536_v53 = vshrl.u32 %v14789_v24, 16  ;;  %4136 = vst [vmem:[#allocation3 + $0xa8] sm:$0xff] %v4100_v55  ;;  %v14945_v24 = vld [vmem:[#allocation2 + $0x40] sm:$0xff]  ;;  %v14947_v43 = vld [vmem:[#allocation2 + $0xb0] sm:$0xff] }
 0x263   : > { %v17406_v27 = vsel %vm14923_vm14, 4294967295, %v17405_v27  ;;  %v14936_v45 = vadd.f32 %v14549_v16, %v4100_v55  ;;  %v5528_v1 = vshrl.u32 %v14787_v4, 16  ;;  %v4101_v51 = vadd.f32 %v4065_v42, %v14831_v52  ;;  %vm17291_vm0 = vmor %vm14923_vm14, %vm14909_vm5  ;;  %v7917_v19 = vld [vmem:[#allocation2 + $0x10] sm:$0xcc] }
 0x264   : > { %v17407_v33 = vor.u32 %v14635_v22, %v14626_v37  ;;  %v14957_v37 = vor.u32 %v14652_v38, %v14650_v62  ;;  %v4102_v22 = vadd.f32 %v4066_v14, %v4027_v28  ;;  %v4103_v52 = vadd.f32 %v4067_v13, %v4029_v12  ;;  %v12489_v28 = vld [vmem:[%s17259_s2 + $0x3f4] ss:$8 sps:$4 sm:$0xff]   ;;  %6985 = vmatpush1.bf16.msra.mxu0 %v12481_v26 }
 0x265   : > { %v14967_v54 = vcombine.low %v14945_v24, %v4421_v49  ;;  %v14970_v62 = vcombine.high %v14945_v24, %v4421_v49  ;;  %v4834_v38 = vmul.f32 0.01, %v14936_v45  ;;  %4137 = vst [vmem:[#allocation3 + $0x68] sm:$0xff] %v4101_v51  ;;  %v4829_v31 = vadd.f32 %v14559_v11, %v4101_v51  ;;  %v4722_v12 = vld [vmem:[#allocation3 + $0x18] sm:$0xf]  ;;  %6986 = vmatprep.subr.bf16.mxu0 %v12489_v28 }
 0x266   : > { %v4431_v25 = vsel %vm14458_vm9, %v4422_v21, %v17407_v33  ;;  %v14977_v35 = vpack.c.bf16 %v4748_v0, %v4747_v18  ;;  %v5538_v39 = vor.u32 %v5536_v53, %v14846_v20  ;;  %v5530_v48 = vor.u32 %v5528_v1, %v14848_v9  ;;  %4138 = vst [vmem:[#allocation3 + $0x28] sm:$0xff] %v4102_v22  ;;  %v4721_v49 = vld [vmem:[#allocation3 + $0x60] sm:$0xf]  ;;  %v4808_v21 = vld [vmem:[#allocation3 + $0x60] sm:$0xc0] }
 0x267   : > { %v4453_v4 = vsel %vm17292_vm4, %v4431_v25, %v14947_v43  ;;  %v4525_v23 = vsel %vm14458_vm9, %v14731_v15, %v14957_v37  ;;  %4139 = vst [vmem:[#allocation3 + $0x100] sm:$0xff] %v4103_v52  ;;  %5262 = vmatprep.mubr.bf16.mxu1 %v14970_v62  ;;  %v5540_v55 = vshll.u32 %v14970_v62, 16  ;;  %v4840_v18 = vmax.f32 %v14936_v45, %v4834_v38  ;;  %v4809_v2 = vld [vmem:[#allocation3 + $0x18] sm:$0xc0]  ;;  %v12487_v22 = vld [vmem:[%s17259_s2 + $0x3f0] ss:$8 sps:$4 sm:$0xff]  }
 0x268   : > { %4454 = vst [vmem:[#allocation2 + $0x80] sm:$0xff] %v4453_v4  ;;  %v5532_v0 = vshll.u32 %v14967_v54, 16  ;;  %v4546_v20 = vsel %vm17291_vm0, %v4525_v23, %v14947_v43  ;;  %5263 = vmatmul.mubr.bf16.gmra.mxu1 %v14967_v54  ;;  %v4739_v15 = vadd.f32 %v14541_v8, %v4721_v49  ;;  %v4826_v9 = vadd.f32 %v14549_v16, %v4808_v21  ;;  %v12495_v23 = vld [vmem:[%s17259_s2 + $0x3e4] ss:$8 sps:$4 sm:$0xff]  }
 0x269   : > { %v4835_v53 = vmul.f32 0.01, %v4829_v31  ;;  %4547 = vst [vmem:[#allocation2 + $0x88] sm:$0xff] %v4546_v20  ;;  %v14998_v42 = vcombine.low %v4453_v4, %v4546_v20  ;;  %v4740_v45 = vadd.f32 %v14544_v30, %v4722_v12  ;;  %v4827_v1 = vadd.f32 %v14559_v11, %v4809_v2  ;;  %6987 = vmatpush2.bf16.msra.mxu0 %v12487_v22  ;;  %v4556_v22 = vld [vmem:[#allocation2 + $0x70] sm:$0x11] }
 0x26a   : > { %v5542_v51 = vrot.slane %v5540_v55, 1  ;;  %v5534_v33 = vrot.slane %v5532_v0, 1  ;;  %v4745_v25 = vmul.f32 0.01, %v4739_v15  ;;  %v4832_v14 = vmul.f32 0.01, %v4826_v9  ;;  %6988 = vmatprep.subr.bf16.mxu0 %v12495_v23 }
 0x26b   : > { %v4841_v13 = vmax.f32 %v4829_v31, %v4835_v53  ;;  %v15002_v8 = vcombine.high %v4453_v4, %v4546_v20  ;;  %v4746_v52 = vmul.f32 0.01, %v4740_v45  ;;  %v4833_v38 = vmul.f32 0.01, %v4827_v1 }
 0x26c   : > { %vm17408_vm0 = vsmask.f32 7424  ;;  %v15014_v28 = vrot.slane %v4683_v47, 7  ;;  %v4751_v4 = vmax.f32 %v4739_v15, %v4745_v25  ;;  %v4838_v31 = vmax.f32 %v4826_v9, %v4832_v14 }
 0x26d   : > { %v5543_v26 = vsel %vm17408_vm0, %v5538_v39, %v5542_v51  ;;  %vm17409_vm4 = vmmov %vm17408_vm0  ;;  %v12014_v49 = vpack.c.bf16 %v4841_v13, %v4840_v18  ;;  %5272 = vmatprep.mubr.bf16.mxu1 %v15002_v8  ;;  %v4752_v21 = vmax.f32 %v4740_v45, %v4746_v52  ;;  %v4839_v55 = vmax.f32 %v4827_v1, %v4833_v38 }
 0x26e   : > { %v5535_v30 = vsel %vm17409_vm4, %v5530_v48, %v5534_v33  ;;  %5870 = vmatprep.mubr.bf16.mxu0 %v5543_v26  ;;  %v5552_v39 = vshrl.u32 %v14970_v62, 16  ;;  %v5556_v48 = vshll.u32 %v15002_v8, 16  ;;  %v4699_v0 = vshrl.u32 %v14930_v29, 16  ;;  %v12493_v62 = vld [vmem:[%s17259_s2 + $0x3e0] ss:$8 sps:$4 sm:$0xff]  }
 0x26f   : > { %5871 = vmatmul.mubr.bf16.gmra.mxu0 %v5535_v30  ;;  %v15022_v63 = vrot.slane %v4780_v32, 6  ;;  %v15026_v47 = vrot.slane %v4783_v50, 7  ;;  %v4871_v18 = vshrl.u32 %v12014_v49, 16  ;;  %vm17410_vm4 = vsmask.f32 256 }
 0x270   : > { %vm17411_vm0 = vcmask 1040384   ;;  %v12012_v15 = vpack.c.bf16 %v4752_v21, %v4751_v4  ;;  %v12013_v9 = vpack.c.bf16 %v4839_v55, %v4838_v31  ;;  %v5554_v32 = vor.u32 %v5552_v39, %v5542_v51  ;;  %v12501_v50 = vld [vmem:[%s17259_s2 + $0x3d4] ss:$8 sps:$4 sm:$0xff]   ;;  %5273 = vmatmul.mubr.bf16.gmra.mxu1 %v14998_v42  ;;  %6989 = vmatpush2.bf16.msra.mxu0 %v12493_v62 }
 0x271   : > { %vm15030_vm3 = vmand %vm17411_vm0, %vm17410_vm4  ;;  %v15037_v12 = vrot.slane %v5556_v48, 1  ;;  %vm17414_vm5 = vcmask 1044484   ;;  %v4702_v2 = vshll.u32 %v14930_v29, 16  ;;  %v4771_v53 = vshll.u32 %v14977_v35, 16  ;;  %6990 = vmatprep.subr.bf16.mxu0 %v12501_v50  ;;  %v4619_v55 = vld [vmem:[#allocation2 + $0x70] sm:$0xee] }
 0x272   : > { %vm15041_vm14 = vmand %vm17414_vm5, %vm4553_vm7  ;;  %v4874_v45 = vshll.u32 %v12014_v49, 16  ;;  %v4534_v1 = vor.u32 %v14741_v58, %v14733_v56  ;;  %v4862_v51 = vshrl.u32 %v12013_v9, 16  ;;  %v4865_v25 = vshll.u32 %v12013_v9, 16  ;;  %v12499_v58 = vld [vmem:[%s17259_s2 + $0x3d0] ss:$8 sps:$4 sm:$0xff]  }
 0x273   : > { %v4526_v14 = vrot.slane %v14957_v37, 4  ;;  %v4536_v13 = vrot.slane %v14733_v56, 4  ;;  %v4790_v52 = vshrl.u32 %v12012_v15, 16  ;;  %v4793_v38 = vshll.u32 %v12012_v15, 16  ;;  %vm4555_vm5 = vmor %vm15041_vm14, %vm15030_vm3  ;;  %v4813_v48 = vld [vmem:[#allocation3 + $0x100] sm:$0x3f] }
 0x274   : > { %vm17417_vm7 = vsmask.f32 7424  ;;  %v5544_v26 = vshrl.u32 %v14967_v54, 16  ;;  %v4774_v56 = vshrl.u32 %v14977_v35, 16  ;;  %v4864_v37 = vrot.slane %v4862_v51, 6  ;;  %6991 = vmatpush2.bf16.msra.mxu0 %v12499_v58  ;;  %vm17418_vm4 = vmor %vm14411_vm13, %vm14401_vm10 }
 0x275   : > { %v5559_v29 = vsel %vm17417_vm7, %v5554_v32, %v15037_v12  ;;  %v4867_v30 = vrot.slane %v4865_v25, 7  ;;  %v4873_v23 = vrot.slane %v4871_v18, 6  ;;  %v12509_v54 = vld [vmem:[%s17259_s2 + $0x3c4] ss:$8 sps:$4 sm:$0xff]   ;;  %v4876_v4 = vrot.slane %v4874_v45, 7  ;;  %vm17419_vm0 = vmmov %vm17417_vm7 }
 0x276   : > { %5880 = vmatprep.mubr.bf16.mxu0 %v5559_v29  ;;  %v5546_v31 = vor.u32 %v5544_v26, %v5534_v33  ;;  %v5548_v49 = vshll.u32 %v14998_v42, 16  ;;  %v15072_v21 = vsel %vm14458_vm9, %v4526_v14, %v4534_v1  ;;  %v4701_v39 = vrot.slane %v4699_v0, 6  ;;  %v12507_v0 = vld [vmem:[%s17259_s2 + $0x3c0] ss:$8 sps:$4 sm:$0xff]   ;;  %6992 = vmatprep.subr.bf16.mxu0 %v12509_v54  ;;  %vm17420_vm10 = vmor %vm14631_vm6, %vm14618_vm11 }
 0x277   : > { %v4868_v35 = vor.u32 %v4867_v30, %v4864_v37  ;;  %4548 = vst [vmem:[#allocation2 + $0xb8] sm:$0xff] %v15072_v21  ;;  %v4557_v18 = vsel %vm4555_vm5, %v4536_v13, %v4556_v22  ;;  %v4604_v33 = vor.u32 %v14754_v7, %v14752_v60  ;;  %v4704_v62 = vrot.slane %v4702_v2, 7  ;;  %v12515_v60 = vld [vmem:[%s17259_s2 + $0x3b4] ss:$8 sps:$4 sm:$0xff]   ;;  %v4623_v14 = vld [vmem:[#allocation2 + $0x68] sm:$0x33]  ;;  %vm17422_vm13 = vmor %vm14794_vm12, %vm14772_vm1 }
 0x278   : > { %v4792_v15 = vrot.slane %v4790_v52, 6  ;;  %v4795_v9 = vrot.slane %v4793_v38, 7  ;;  %v15082_v32 = vrot.slane %v5548_v49, 1  ;;  %4558 = vst [vmem:[#allocation2 + $0x70] sm:$0x11] %v4557_v18  ;;  %v4776_v50 = vrot.slane %v4774_v56, 6  ;;  %6993 = vmatpush2.bf16.msra.mxu0 %v12507_v0  ;;  %vm17432_vm7 = vmor %vm14870_vm15, %vm14852_vm2 }
 0x279   : > { %v4620_v45 = vsel %vm17418_vm4, %v4604_v33, %v4619_v55  ;;  %v4869_v7 = vrot.slane %v4868_v35, 4  ;;  %v15095_v2 = vor.u32 %v4876_v4, %v4873_v23  ;;  %v15098_v1 = vadd.f32 %v14559_v11, %v4813_v48  ;;  %v4801_v52 = vld [vmem:[#allocation2 + $0xa0] sm:$0x88]  ;;  %v4812_v11 = vld [vmem:[#allocation3 + $0x28] sm:$0x3f]  ;;  %6994 = vmatprep.subr.bf16.mxu0 %v12515_v60  ;;  %v17424_v23 = vld [vmem:[#allocation21_spill] sm:$0xff] }
 0x27a   : > { %v5551_v51 = vsel %vm17419_vm0, %v5546_v31, %v15082_v32  ;;  %4621 = vst [vmem:[#allocation2 + $0x70] sm:$0xee] %v4620_v45  ;;  %v4605_v10 = vrot.slane %v4604_v33, 4  ;;  %v4613_v25 = vor.u32 %v14890_v44, %v14804_v59  ;;  %v4686_v13 = vor.u32 %v15014_v28, %v14900_v57  ;;  %v12513_v59 = vld [vmem:[%s17259_s2 + $0x3b0] ss:$8 sps:$4 sm:$0xff]   ;;  %v17429_v18 = vld [vmem:[#allocation5_spill] sm:$0xff] }
 0x27b   : > { %5881 = vmatmul.mubr.bf16.gmra.mxu0 %v5551_v51  ;;  %v4695_v22 = vor.u32 %v14902_v61, %v14893_v6  ;;  %v4705_v38 = vor.u32 %v4704_v62, %v4701_v39  ;;  %v4773_v29 = vrot.slane %v4771_v53, 7  ;;  %v4786_v26 = vor.u32 %v15026_v47, %v15022_v63  ;;  %v12524_v28 = vld [vmem:[%s17259_s2 + $0x3a4] ss:$8 sps:$4 sm:$0xff]   ;;  %v12522_v55 = vld [vmem:[%s17259_s2 + $0x3a0] ss:$8 sps:$4 sm:$0xff]   ;;  %v17427_v48 = vld [vmem:[#allocation6_spill] sm:$0xff] }
 0x27c   : > { %v4796_v58 = vor.u32 %v4795_v9, %v4792_v15  ;;  %v4614_v44 = vsel %vm14458_vm9, %v4605_v10, %v4613_v25  ;;  %v4615_v57 = vrot.slane %v4613_v25, 4  ;;  %v4711_v6 = vsel %vm17420_vm10, %v4686_v13, %v4710_v17  ;;  %v4714_v47 = vld [vmem:[#allocation2 + $0xa0] sm:$0x77]  ;;  %6995 = vmatpush2.bf16.msra.mxu0 %v12513_v59  ;;  %v12528_v9 = vld [vmem:[%s17259_s2 + $0x394] ss:$8 sps:$4 sm:$0xff]  }
 0x27d   : > { %v4687_v61 = vrot.slane %v4686_v13, 4  ;;  %4622 = vst [vmem:[#allocation2 + $0x18] sm:$0xff] %v4614_v44  ;;  %4712 = vst [vmem:[#allocation2 + $0x68] sm:$0xcc] %v4711_v6  ;;  %v4697_v63 = vrot.slane %v4695_v22, 4  ;;  %v4802_v3 = vsel %vm17422_vm13, %v4773_v29, %v4801_v52  ;;  %v4777_v56 = vor.u32 %v4776_v50, %v4773_v29  ;;  %6996 = vmatprep.subr.bf16.mxu0 %v12524_v28  ;;  %v15224_v28 = vld [vmem:[#allocation2 + $0x48] sm:$0xff] }
 0x27e   : > { %v4788_v46 = vrot.slane %v4786_v26, 4  ;;  %v4830_v37 = vadd.f32 %v14549_v16, %v4812_v11  ;;  %vm17425_vm6 = vnez %v17424_v23  ;;  %4803 = vst [vmem:[#allocation2 + $0xa0] sm:$0x88] %v4802_v3  ;;  %v4878_v49 = vsel %vm14458_vm9, %v4869_v7, %v15095_v2  ;;  %v12526_v60 = vld [vmem:[%s17259_s2 + $0x390] ss:$8 sps:$4 sm:$0xff]  }
 0x27f   : > { %vm17426_vm11 = vmor %vm14446_vm8, %vm17425_vm6  ;;  %v15136_v4 = vsel %vm14458_vm9, %v4687_v61, %v4695_v22  ;;  %v4706_v40 = vsel %vm14458_vm9, %v4697_v63, %v4705_v38  ;;  %v4778_v31 = vrot.slane %v4777_v56, 4  ;;  %v4837_v39 = vmul.f32 0.01, %v15098_v1  ;;  %v12538_v22 = vld [vmem:[%s17259_s2 + $0x384] ss:$8 sps:$4 sm:$0xff]   ;;  %v15235_v23 = vld [vmem:[#allocation2 + $0x10] sm:$0xff] }
 0x280   : > { %v4624_v54 = vsel %vm17426_vm11, %v4615_v57, %v4623_v14  ;;  %4713 = vst [vmem:[#allocation2 + $0x98] sm:$0xff] %v15136_v4  ;;  %v4797_v16 = vsel %vm14458_vm9, %v4788_v46, %v4796_v58  ;;  %vm17428_vm8 = vnez %v17427_v48  ;;  %vm17430_vm1 = vnez %v17429_v18  ;;  %6997 = vmatpush2.bf16.msra.mxu0 %v12522_v55  ;;  %v12553_v59 = vld [vmem:[%s17259_s2 + $0x574] ss:$8 sps:$4 sm:$0xff]  }
 0x281   : > { %4625 = vst [vmem:[#allocation2 + $0x68] sm:$0x33] %v4624_v54  ;;  %v4911_v35 = vld [vmem:[#allocation2 + $0x70] sm:$0xff]  ;;  %vm17431_vm12 = vmor %vm17428_vm8, %vm17430_vm1  ;;  %v15161_v62 = vsel %vm17432_vm7, %v4797_v16, %v14947_v43  ;;  %vm17433_vm4 = vnez %v17406_v27  ;;  %vm17434_vm0 = vnez %v17402_v41  ;;  %v15182_v27 = vsel %vm14458_vm9, %v4778_v31, %v4786_v26  ;;  %6998 = vmatprep.subr.bf16.mxu0 %v12528_v9  ;;  %v15246_v48 = vld [vmem:[#allocation2 + $0x78] sm:$0xff] }
 0x282   : > { %v4715_v33 = vsel %vm17431_vm12, %v4706_v40, %v4714_v47  ;;  %vm17435_vm10 = vmor %vm17433_vm4, %vm17434_vm0  ;;  %v15175_v36 = vcombine.low %v15072_v21, %v4911_v35  ;;  %v15178_v5 = vcombine.high %v15072_v21, %v4911_v35  ;;  %4807 = vst [vmem:[#allocation2 + $0x30] sm:$0xff] %v15161_v62  ;;  %v4836_v41 = vmul.f32 0.01, %v4830_v37  ;;  %v15222_v61 = vld [vmem:[#allocation2 + $0xb0] sm:$0xee] }
 0x283   : > { %v15169_v15 = vsel %vm17435_vm10, %v4878_v49, %v14947_v43  ;;  %4716 = vst [vmem:[#allocation2 + $0xa0] sm:$0x77] %v4715_v33  ;;  %4804 = vst [vmem:[#allocation2 + $0x20] sm:$0xff] %v15182_v27  ;;  %v5568_v0 = vshrl.u32 %v15002_v8, 16  ;;  %v5560_v21 = vshrl.u32 %v14998_v42, 16  ;;  %v4843_v7 = vmax.f32 %v15098_v1, %v4837_v39 }
 0x284   : > { %4895 = vst [vmem:[#allocation2 + $0x90] sm:$0xff] %v15169_v15  ;;  %5282 = vmatprep.mubr.bf16.mxu1 %v15178_v5  ;;  %v5572_v50 = vshll.u32 %v15178_v5, 16  ;;  %v5564_v45 = vshll.u32 %v15175_v36, 16  ;;  %v4842_v14 = vmax.f32 %v4830_v37, %v4836_v41  ;;  %vm17436_vm2 = vsmask.f32 7424  ;;  %6999 = vmatpush2.bf16.msra.mxu0 %v12526_v60 }
 0x285   : > { %5283 = vmatmul.mubr.bf16.gmra.mxu1 %v15175_v36  ;;  %v5570_v51 = vor.u32 %v5568_v0, %v15037_v12  ;;  %v5562_v10 = vor.u32 %v5560_v21, %v15082_v32  ;;  %vm17437_vm15 = vmmov %vm17436_vm2  ;;  %v12536_v12 = vld [vmem:[%s17259_s2 + $0x380] ss:$8 sps:$4 sm:$0xff]   ;;  %v5584_v29 = vshrl.u32 %v15178_v5, 16  ;;  %v5576_v26 = vshrl.u32 %v15175_v36, 16  ;;  %7000 = vmatprep.subr.bf16.mxu0 %v12538_v22 }
 0x286   : > { %v5574_v17 = vrot.slane %v5572_v50, 1  ;;  %v5566_v25 = vrot.slane %v5564_v45, 1  ;;  %v12015_v32 = vpack.c.bf16 %v4843_v7, %v4842_v14  ;;  %v15231_v3 = vcombine.high %v15182_v27, %v15161_v62  ;;  %vm17438_vm13 = vmmov %vm17436_vm2 }
 0x287   : > { %v11410_v31 = vcombine.high %v15235_v23, %v15224_v28  ;;  %vm17439_vm6 = vmmov %vm17436_vm2  ;;  %v11407_v33 = vcombine.low %v15222_v61, %v14947_v43  ;;  %v15262_v7 = vcombine.low %v15182_v27, %v15161_v62  ;;  %v11413_v14 = vcombine.low %v14945_v24, %v15246_v48 }
 0x288   : > { %v4913_v13 = vld [vmem:[#allocation2 + $0x68] sm:$0xff]  ;;  %v5575_v52 = vsel %vm17436_vm2, %v5570_v51, %v5574_v17  ;;  %v5567_v11 = vsel %vm17437_vm15, %v5562_v10, %v5566_v25  ;;  %v5586_v63 = vor.u32 %v5584_v29, %v5574_v17  ;;  %v5578_v47 = vor.u32 %v5576_v26, %v5566_v25  ;;  %7001 = vmatpush2.bf16.msra.mxu0 %v12536_v12  ;;  %vm17440_vm11 = vmmov %vm17436_vm2 }
 0x289   : > { %v15204_v1 = vcombine.low %v4614_v44, %v4913_v13  ;;  %v15206_v38 = vcombine.high %v4614_v44, %v4913_v13  ;;  %5890 = vmatprep.mubr.bf16.mxu0 %v5575_v52  ;;  %v4881_v54 = vshrl.u32 %v12015_v32, 16  ;;  %v4884_v40 = vshll.u32 %v12015_v32, 16  ;;  %8262 = vmatprep.subr.bf16.mxu0 %v12553_v59  ;;  %vm17443_vm12 = vmmov %vm17436_vm2 }
 0x28a   : > { %v4915_v58 = vld [vmem:[#allocation2 + $0xa0] sm:$0xff]  ;;  %5891 = vmatmul.mubr.bf16.gmra.mxu0 %v5567_v11  ;;  %v5620_v9 = vshll.u32 %v15231_v3, 16  ;;  %v15264_v51 = vrot.slane %v11410_v31, 1  ;;  %v11409_v13 = vcombine.low %v15235_v23, %v15224_v28  ;;  %v15277_v27 = vrot.slane %v15002_v8, 1  ;;  %vm17444_vm7 = vmmov %vm17436_vm2 }
 0x28b   : > { %5292 = vmatprep.mubr.bf16.mxu1 %v15206_v38  ;;  %v5588_v44 = vshll.u32 %v15206_v38, 16  ;;  %v5580_v57 = vshll.u32 %v15204_v1, 16  ;;  %v15220_v6 = vcombine.high %v15136_v4, %v4915_v58  ;;  %v15227_v53 = vcombine.low %v15136_v4, %v4915_v58  ;;  %v15252_v41 = vld [vmem:[#allocation2 + $0x90] sm:$0x11] }
 0x28c   : > { %v5600_v37 = vshrl.u32 %v15206_v38, 16  ;;  %v11408_v4 = vcombine.high %v15222_v61, %v14947_v43  ;;  %v15254_v0 = vrot.slane %v4881_v54, 6  ;;  %v15256_v50 = vrot.slane %v4884_v40, 7 }
 0x28d   : > { %v5590_v56 = vrot.slane %v5588_v44, 1  ;;  %v5582_v46 = vrot.slane %v5580_v57, 1  ;;  %v5604_v30 = vshll.u32 %v15220_v6, 16  ;;  %5293 = vmatmul.mubr.bf16.gmra.mxu1 %v15204_v1  ;;  %v5596_v35 = vshll.u32 %v15227_v53, 16 }
 0x28e   : > { %5302 = vmatprep.mubr.bf16.mxu1 %v15220_v6  ;;  %v6181_v21 = vrot.slane %v11408_v4, 1  ;;  %v5616_v45 = vshrl.u32 %v15220_v6, 16  ;;  %v5592_v60 = vshrl.u32 %v15204_v1, 16  ;;  %v11414_v43 = vcombine.high %v14945_v24, %v15246_v48 }
 0x28f   : > { %v5591_v16 = vsel %vm17438_vm13, %v5586_v63, %v5590_v56  ;;  %v5583_v49 = vsel %vm17439_vm6, %v5578_v47, %v5582_v46  ;;  %v5602_v55 = vor.u32 %v5600_v37, %v5590_v56  ;;  %v5606_v39 = vrot.slane %v5604_v30, 1  ;;  %v15318_v30 = vld [vmem:[#allocation2 + $0x64] ss:$-56 sps:$4 sm:$0xff]  }
 0x290   : > { %5900 = vmatprep.mubr.bf16.mxu0 %v5591_v16  ;;  %v5598_v17 = vrot.slane %v5596_v35, 1  ;;  %v11342_v25 = vcombine.high %v15252_v41, %v15252_v41  ;;  %v5622_v22 = vrot.slane %v5620_v9, 1  ;;  %v15274_v62 = vrot.slane %v11414_v43, 1  ;;  %v12531_v43 = vld [vmem:[%s17259_s2 + $0x464] ss:$8 sps:$4 sm:$0xff]  }
 0x291   : > { %v5607_v18 = vsel %vm17440_vm11, %v5602_v55, %v5606_v39  ;;  %v5618_v10 = vor.u32 %v5616_v45, %v5606_v39  ;;  %v5594_v52 = vor.u32 %v5592_v60, %v5582_v46  ;;  %v15280_v11 = vrot.slane %v11413_v14, 1  ;;  %v12517_v45 = vld [vmem:[%s17259_s2 + $0x470] ss:$8 sps:$4 sm:$0xff]  }
 0x292   : > { %5901 = vmatmul.mubr.bf16.gmra.mxu0 %v5583_v49  ;;  %v15283_v12 = vrot.slane %v14998_v42, 1  ;;  %v6198_v32 = vrot.slane %v15178_v5, 1  ;;  %vm17441_vm8 = vcmask 1046528   ;;  %v5612_v29 = vshll.u32 %v15262_v7, 16  ;;  %v6625_v60 = vld [vmem:[#allocation2 + $0x10] sm:$0xee] }
 0x293   : > { %5910 = vmatprep.mubr.bf16.mxu0 %v5607_v18  ;;  %v6183_v24 = vsel %vm17441_vm8, %v6181_v21, %v15264_v51  ;;  %v5632_v8 = vshrl.u32 %v15231_v3, 16  ;;  %vm17442_vm1 = vmmov %vm17441_vm8  ;;  %v5599_v58 = vsel %vm17443_vm12, %v5594_v52, %v5598_v17  ;;  %v5623_v42 = vsel %vm17444_vm7, %v5618_v10, %v5622_v22 }
 0x294   : > { %v15294_v26 = vsel %vm17442_vm1, %v15274_v62, %v15277_v27  ;;  %v5636_v59 = vshll.u32 %v11342_v25, 16  ;;  %vm17445_vm4 = vmmov %vm17442_vm1  ;;  %v6196_v57 = vrot.slane %v15175_v36, 1  ;;  %v6202_v61 = vrot.slane %v15206_v38, 1  ;;  %v15371_v25 = vld [vmem:[#allocation2 + $0x60] ss:$-56 sps:$4 sm:$0xff]  }
 0x295   : > { %5303 = vmatmul.mubr.bf16.gmra.mxu1 %v15227_v53  ;;  %v15301_v5 = vsel %vm17445_vm4, %v15280_v11, %v15283_v12  ;;  %vm17446_vm0 = vmmov %vm17442_vm1  ;;  %v5608_v63 = vshrl.u32 %v15227_v53, 16  ;;  %v6200_v47 = vrot.slane %v15204_v1, 1  ;;  %v6778_v38 = vrot.slane %v15220_v6, 1 }
 0x296   : > { %5312 = vmatprep.mubr.bf16.mxu1 %v15231_v3  ;;  %v15305_v44 = vsel %vm17446_vm0, %v15277_v27, %v6198_v32  ;;  %vm17447_vm10 = vmmov %vm17446_vm0  ;;  %v5638_v37 = vrot.slane %v5636_v59, 1  ;;  %v11341_v1 = vcombine.low %v15252_v41, %v15252_v41  ;;  %v6776_v54 = vrot.slane %v15227_v53, 1 }
 0x297   : > { %v15313_v56 = vsel %vm17447_vm10, %v15283_v12, %v6196_v57  ;;  %vm17448_vm2 = vmmov %vm17446_vm0  ;;  %v5610_v23 = vor.u32 %v5608_v63, %v5598_v17  ;;  %v15329_v40 = vrot.slane %v15231_v3, 1  ;;  %v5634_v4 = vor.u32 %v5632_v8, %v5622_v22  ;;  %v12539_v63 = vld [vmem:[%s17259_s2 + $0x450] ss:$8 sps:$4 sm:$0xff]  }
 0x298   : > { %v15316_v46 = vsel %vm17448_vm2, %v6198_v32, %v6202_v61  ;;  %vm17449_vm15 = vmmov %vm17446_vm0  ;;  %v15335_v16 = vrot.slane %v15262_v7, 1  ;;  %v6178_v6 = vrot.slane %v11407_v33, 1  ;;  %v5614_v49 = vrot.slane %v5612_v29, 1 }
 0x299   : > { %v15321_v36 = vsel %vm17449_vm15, %v6196_v57, %v6200_v47  ;;  %vm17450_vm13 = vmmov %vm17446_vm0  ;;  %v6179_v53 = vrot.slane %v11409_v13, 1  ;;  %v15346_v35 = vrot.slane %v15318_v30, 1  ;;  %v5628_v9 = vshll.u32 %v11341_v1, 16  ;;  %v4897_v13 = vld [vmem:[#allocation2 + $0x58] sm:$0x11] }
 0x29a   : > { %5911 = vmatmul.mubr.bf16.gmra.mxu0 %v5599_v58  ;;  %v15332_v31 = vsel %vm17450_vm13, %v6202_v61, %v6778_v38  ;;  %vm17451_vm6 = vmmov %vm17446_vm0  ;;  %v4879_v41 = vrot.slane %v15095_v2, 4  ;;  %v4887_v21 = vor.u32 %v15256_v50, %v15254_v0  ;;  %v11492_v17 = vcombine.high %v6625_v60, %v15224_v28  ;;  %v6629_v58 = vld [vmem:[#allocation2 + $0x40] sm:$0xff] }
 0x29b   : > { %5920 = vmatprep.mubr.bf16.mxu0 %v5623_v42  ;;  %v15338_v55 = vsel %vm17451_vm6, %v6200_v47, %v6776_v54  ;;  %vm17452_vm11 = vmmov %vm17446_vm0  ;;  %v5624_v22 = vshrl.u32 %v15262_v7, 16  ;;  %v5630_v34 = vrot.slane %v5628_v9, 1  ;;  %v4889_v32 = vrot.slane %v15254_v0, 4  ;;  %v12545_v1 = vld [vmem:[%s17259_s2 + $0x444] ss:$8 sps:$4 sm:$0xff]  }
 0x29c   : > { %v15342_v39 = vsel %vm17452_vm11, %v6778_v38, %v15329_v40  ;;  %vm17453_vm8 = vmmov %vm17444_vm7  ;;  %v15365_v10 = vsel %vm14458_vm9, %v4879_v41, %v4887_v21  ;;  %v6757_v8 = vrot.slane %v11492_v17, 1  ;;  %v15396_v0 = vrot.slane %v15371_v25, 1  ;;  %v12543_v41 = vld [vmem:[%s17259_s2 + $0x440] ss:$8 sps:$4 sm:$0xff]  }
 0x29d   : > { %5313 = vmatmul.mubr.bf16.gmra.mxu1 %v15262_v7  ;;  %v5639_v3 = vsel %vm17453_vm8, %v5634_v4, %v5638_v37  ;;  %vm17454_vm1 = vmmov %vm17446_vm0  ;;  %4896 = vst [vmem:[#allocation2 + $0x38] sm:$0xff] %v15365_v10  ;;  %v11508_v14 = vcombine.high %v15169_v15, %v15365_v10  ;;  %v11507_v52 = vcombine.low %v15169_v15, %v15365_v10  ;;  %v12541_v7 = vld [vmem:[%s17259_s2 + $0x454] ss:$8 sps:$4 sm:$0xff]   ;;  %v8050_v4 = vrot.slane %v15318_v30, 2 }
 0x29e   : > { %6426 = vmatprep.mubr.bf16.mxu1 %v6183_v24  ;;  %v15350_v18 = vsel %vm17454_vm1, %v6776_v54, %v15335_v16  ;;  %vm17455_vm12 = vmmov %vm17444_vm7  ;;  %v5626_v29 = vor.u32 %v5624_v22, %v5614_v49  ;;  %v4898_v15 = vsel %vm4555_vm5, %v4889_v32, %v4897_v13  ;;  %v15415_v47 = vcombine.high %v6629_v58, %v15246_v48  ;;  %v12547_v22 = vld [vmem:[%s17259_s2 + $0x430] ss:$8 sps:$4 sm:$0xff]   ;;  %v12565_v32 = vld [vmem:[%s17259_s2 + $0x554] ss:$8 sps:$4 sm:$0xff]  }
 0x29f   : > { %v5615_v33 = vsel %vm17455_vm12, %v5610_v23, %v5614_v49  ;;  %vm17456_vm7 = vmmov %vm17446_vm0  ;;  %v15383_v24 = vrot.slane %v11508_v14, 1  ;;  %v15388_v42 = vrot.slane %v11507_v52, 1  ;;  %4899 = vst [vmem:[#allocation2 + $0x58] sm:$0x11] %v4898_v15  ;;  %v11659_v37 = vcombine.low %v7917_v19, %v15224_v28  ;;  %v12559_v14 = vld [vmem:[%s17259_s2 + $0x564] ss:$8 sps:$4 sm:$0xff]  }
 0x2a0   : > { %v6180_v2 = vsel %vm17456_vm7, %v6178_v6, %v6179_v53  ;;  %vm17457_vm4 = vmmov %vm17446_vm0  ;;  %v11660_v38 = vcombine.high %v7917_v19, %v15224_v28  ;;  %v11491_v23 = vcombine.low %v6625_v60, %v15224_v28  ;;  %v8047_v54 = vrot.slane %v15371_v25, 2  ;;  %v12566_v19 = vld [vmem:[%s17259_s2 + $0x400] ss:$8 sps:$4 sm:$0xff]  }
 0x2a1   : > { %v6187_v50 = vsel %vm17457_vm4, %v15264_v51, %v15346_v35  ;;  %v12529_v51 = vld [vmem:[%s17259_s2 + $0x460] ss:$8 sps:$4 sm:$0xff]   ;;  %vm17458_vm9 = vmmov %vm17446_vm0  ;;  %v8046_v49 = vrot.slane %v11659_v37, 2  ;;  %v6762_v9 = vrot.slane %v15415_v47, 1  ;;  %vm17464_vm5 = vcmask 1045504  }
 0x2a2   : > { %5921 = vmatmul.mubr.bf16.gmra.mxu0 %v5615_v33  ;;  %v15401_v59 = vsel %vm17458_vm9, %v15329_v40, %v15383_v24  ;;  %vm17459_vm0 = vmmov %vm17453_vm8  ;;  %v6754_v60 = vrot.slane %v11491_v23, 1  ;;  %v12572_v23 = vld [vmem:[%s17259_s2 + $0x4f0] ss:$8 sps:$4 sm:$0xff]  }
 0x2a3   : > { %5930 = vmatprep.mubr.bf16.mxu0 %v5639_v3  ;;  %v5631_v57 = vsel %vm17459_vm0, %v5626_v29, %v5630_v34  ;;  %vm17460_vm10 = vmmov %vm17454_vm1  ;;  %v8049_v3 = vrot.slane %v11660_v38, 2  ;;  %v12562_v29 = vld [vmem:[%s17259_s2 + $0x414] ss:$8 sps:$4 sm:$0xff]   ;;  %v12583_v38 = vld [vmem:[%s17259_s2 + $0x524] ss:$8 sps:$4 sm:$0xff]  }
 0x2a4   : > { %v6759_v61 = vsel %vm17460_vm10, %v6757_v8, %v15346_v35  ;;  %vm17461_vm2 = vmmov %vm17454_vm1 }
 0x2a5   : > { %6427 = vmatmul.mubr.bf16.vlgmr.msra.gmra.mxu1 %v6180_v2  ;;  %v15409_v20 = vsel %vm17461_vm2, %v15335_v16, %v15388_v42  ;;  %vm17462_vm14 = vmmov %vm17454_vm1  ;;  %v15435_v21 = vsel %vm17464_vm5, %v8049_v3, %v8050_v4  ;;  %v12584_v3 = vld [vmem:[%s17259_s2 + $0x4d0] ss:$8 sps:$4 sm:$0xff]  }
 0x2a6   : > { %6436 = vmatprep.mubr.bf16.mxu1 %v6187_v50  ;;  %7687 = vmatpush1.bf16.msra.mxu1 %v12517_v45  ;;  %v6185_v6 = vsel %vm17462_vm14, %v6179_v53, %v15396_v0  ;;  %vm17463_vm3 = vmmov %vm17454_vm1  ;;  %v8054_v45 = vrot.slane %v15415_v47, 2  ;;  %v15455_v50 = vcombine.low %v6629_v58, %v15246_v48  ;;  %v12556_v48 = vld [vmem:[%s17259_s2 + $0x424] ss:$8 sps:$4 sm:$0xff]  }
 0x2a7   : > { %7688 = vmatprep.subr.bf16.mxu1 %v12531_v43  ;;  %v6191_v33 = vsel %vm17463_vm3, %v15346_v35, %v15274_v62  ;;  %vm17465_vm15 = vmmov %vm17464_vm5  ;;  %v12549_v62 = vld [vmem:[%s17259_s2 + $0x434] ss:$8 sps:$4 sm:$0xff]   ;;  %v12551_v43 = vld [vmem:[%s17259_s2 + $0x570] ss:$8 sps:$4 sm:$0xff]  }
 0x2a8   : > { %v15438_v53 = vsel %vm17465_vm15, %v8046_v49, %v8047_v54  ;;  %vm17466_vm13 = vmmov %vm17464_vm5  ;;  %v6760_v52 = vrot.slane %v15455_v50, 1  ;;  %v12571_v58 = vld [vmem:[%s17259_s2 + $0x544] ss:$8 sps:$4 sm:$0xff]  }
 0x2a9   : > { %v15450_v17 = vsel %vm17466_vm13, %v8050_v4, %v8054_v45  ;;  %vm17467_vm6 = vmmov %vm17454_vm1  ;;  %v12586_v4 = vld [vmem:[%s17259_s2 + $0x4d4] ss:$8 sps:$4 sm:$0xff]   ;;  %v12592_v49 = vld [vmem:[%s17259_s2 + $0x504] ss:$8 sps:$4 sm:$0xff]  }
 0x2aa   : > { %5931 = vmatmul.mubr.bf16.gmra.mxu0 %v5631_v57  ;;  %7689 = vmatpush1.bf16.msra.mxu1 %v12529_v51  ;;  %v6756_v2 = vsel %vm17467_vm6, %v6754_v60, %v15396_v0  ;;  %vm17468_vm11 = vmmov %vm17454_vm1  ;;  %v8052_v51 = vrot.slane %v15455_v50, 2  ;;  %v12560_v57 = vld [vmem:[%s17259_s2 + $0x410] ss:$8 sps:$4 sm:$0xff]   ;;  %v12601_v60 = vld [vmem:[%s17259_s2 + $0x4b4] ss:$8 sps:$4 sm:$0xff]  }
 0x2ab   : > { %7002 = vmatprep.mubr.bf16.mxu0 %v6759_v61  ;;  %7690 = vmatprep.subr.bf16.mxu1 %v12541_v7  ;;  %v6763_v13 = vsel %vm17468_vm11, %v15346_v35, %v6762_v9  ;;  %vm17469_vm8 = vmmov %vm17454_vm1  ;;  %v12557_v35 = vld [vmem:[%s17259_s2 + $0x560] ss:$8 sps:$4 sm:$0xff]  }
 0x2ac   : > { %v6189_v34 = vsel %vm17469_vm8, %v15396_v0, %v15280_v11  ;;  %v12554_v11 = vld [vmem:[%s17259_s2 + $0x420] ss:$8 sps:$4 sm:$0xff]   ;;  %vm17470_vm1 = vmmov %vm17464_vm5  ;;  %vm17479_vm5 = vsmask.f32 6400 }
 0x2ad   : > { %6437 = vmatmul.mubr.bf16.gmra.mxu1 %v6185_v6  ;;  %v15489_v8 = vsel %vm17470_vm1, %v8047_v54, %v8052_v51  ;;  %vm17471_vm12 = vmmov %vm17461_vm2  ;;  %v12569_v61 = vld [vmem:[%s17259_s2 + $0x540] ss:$8 sps:$4 sm:$0xff]   ;;  %v12589_v54 = vld [vmem:[%s17259_s2 + $0x514] ss:$8 sps:$4 sm:$0xff]  }
 0x2ae   : > { %6446 = vmatprep.mubr.bf16.mxu1 %v6191_v33  ;;  %7691 = vmatpush1.bf16.msra.mxu1 %v12539_v63  ;;  %v6761_v7 = vsel %vm17471_vm12, %v15396_v0, %v6760_v52  ;;  %vm17472_vm7 = vmmov %vm17461_vm2  ;;  %v12568_v0 = vld [vmem:[%s17259_s2 + $0x404] ss:$8 sps:$4 sm:$0xff]   ;;  %v12574_v63 = vld [vmem:[%s17259_s2 + $0x4f4] ss:$8 sps:$4 sm:$0xff]  }
 0x2af   : > { %7692 = vmatprep.subr.bf16.mxu1 %v12545_v1  ;;  %v6767_v15 = vsel %vm17472_vm7, %v6762_v9, %v15277_v27  ;;  %v12577_v27 = vld [vmem:[%s17259_s2 + $0x534] ss:$8 sps:$4 sm:$0xff]   ;;  %vm17473_vm4 = vmmov %vm17461_vm2  ;;  %v12580_v1 = vld [vmem:[%s17259_s2 + $0x4e4] ss:$8 sps:$4 sm:$0xff]  }
 0x2b0   : > { %v6765_v37 = vsel %vm17473_vm4, %v6760_v52, %v15283_v12  ;;  %v12581_v12 = vld [vmem:[%s17259_s2 + $0x520] ss:$8 sps:$4 sm:$0xff]   ;;  %v12587_v6 = vld [vmem:[%s17259_s2 + $0x510] ss:$8 sps:$4 sm:$0xff]   ;;  %v12595_v33 = vld [vmem:[%s17259_s2 + $0x4c4] ss:$8 sps:$4 sm:$0xff]  }
 0x2b1   : > { %v12590_v9 = vld [vmem:[%s17259_s2 + $0x500] ss:$8 sps:$4 sm:$0xff]   ;;  %v7211_v52 = vld [vmem:[#allocation2 + $0x18] sm:$0xff]  ;;  %vm17474_vm9 = vmmov %vm17470_vm1  ;;  %vm17491_vm4 = vcmask 1044480  }
 0x2b2   : > { %7003 = vmatmul.mubr.bf16.vlgmr.msra.gmra.mxu0 %v6756_v2  ;;  %7693 = vmatpush1.bf16.msra.mxu1 %v12543_v41  ;;  %v12596_v41 = vld [vmem:[%s17259_s2 + $0x5f0] ss:$8 sps:$4 sm:$0xff]   ;;  %vm17475_vm0 = vmmov %vm17470_vm1 }
 0x2b3   : > { %7012 = vmatprep.mubr.bf16.mxu0 %v6763_v13  ;;  %7694 = vmatprep.subr.bf16.mxu1 %v12549_v62  ;;  %v12605_v62 = vld [vmem:[%s17259_s2 + $0x5e4] ss:$8 sps:$4 sm:$0xff]   ;;  %v15586_v2 = vld [vmem:[#allocation2 + $0x90] sm:$0x11]  ;;  %vm17476_vm10 = vmmov %vm17475_vm0 }
 0x2b4   : > { %8263 = vmatpush1.bf16.msra.mxu0 %v12551_v43  ;;  %v15584_v43 = vld [vmem:[#allocation2 + $0x84] ss:$8 sps:$4 sm:$0xff]   ;;  %v12599_v13 = vld [vmem:[%s17259_s2 + $0x4b0] ss:$8 sps:$4 sm:$0xff]   ;;  %vm17477_vm14 = vmmov %vm17475_vm0 }
 0x2b5   : > { %6447 = vmatmul.mubr.bf16.gmra.mxu1 %v6189_v34  ;;  %8264 = vmatprep.subr.bf16.mxu0 %v12559_v14  ;;  %v15588_v14 = vld [vmem:[#allocation2 + $0xbc] ss:$-72 sps:$4 sm:$0xff]   ;;  %v11426_v34 = vcombine.high %v15586_v2, %v15586_v2  ;;  %vm17478_vm3 = vmmov %vm17461_vm2 }
 0x2b6   : > { %6456 = vmatprep.mubr.bf16.mxu1 %v15294_v26  ;;  %7695 = vmatpush1.bf16.msra.mxu1 %v12547_v22  ;;  %v12563_v26 = vld [vmem:[%s17259_s2 + $0x550] ss:$8 sps:$4 sm:$0xff]   ;;  %v7212_v22 = vld [vmem:[#allocation2 + $0x68] sm:$0xff]  ;;  %vm17480_vm15 = vmmov %vm17461_vm2 }
 0x2b7   : > { %7696 = vmatprep.subr.bf16.mxu1 %v12556_v48  ;;  %v12608_v48 = vld [vmem:[%s17259_s2 + $0x4a4] ss:$8 sps:$4 sm:$0xff]   ;;  %vm17481_vm13 = vmmov %vm17479_vm5 }
 0x2b8   : > { %8265 = vmatpush1.bf16.msra.mxu0 %v12557_v35  ;;  %v12611_v35 = vld [vmem:[%s17259_s2 + $0x5d4] ss:$8 sps:$4 sm:$0xff]   ;;  %vm17482_vm6 = vmmov %vm17479_vm5 }
 0x2b9   : > { %8266 = vmatprep.subr.bf16.mxu0 %v12565_v32  ;;  %v15609_v32 = vld [vmem:[#allocation2 + $0xb8] ss:$-72 sps:$4 sm:$0xff]   ;;  %vm17483_vm11 = vmmov %vm17461_vm2 }
 0x2ba   : > { %7013 = vmatmul.mubr.bf16.gmra.mxu0 %v6761_v7  ;;  %7697 = vmatpush1.bf16.msra.mxu1 %v12554_v11  ;;  %v15611_v11 = vcombine.high %v7211_v52, %v7212_v22  ;;  %v12606_v7 = vld [vmem:[%s17259_s2 + $0x4a0] ss:$8 sps:$4 sm:$0xff]   ;;  %vm17484_vm8 = vmmov %vm17479_vm5 }
 0x2bb   : > { %7022 = vmatprep.mubr.bf16.mxu0 %v6767_v15  ;;  %7698 = vmatprep.subr.bf16.mxu1 %v12562_v29  ;;  %v15614_v29 = vrot.slane %v15584_v43, 2  ;;  %v12614_v15 = vld [vmem:[%s17259_s2 + $0x494] ss:$8 sps:$4 sm:$0xff]   ;;  %vm17485_vm1 = vmmov %vm17479_vm5 }
 0x2bc   : > { %8267 = vmatpush1.bf16.msra.mxu0 %v12563_v26  ;;  %v8634_v26 = vrot.slane %v15588_v14, 2  ;;  %vm17488_vm12 = vmmov %vm17485_vm1 }
 0x2bd   : > { %6457 = vmatmul.mubr.bf16.gmra.mxu1 %v15301_v5  ;;  %8268 = vmatprep.subr.bf16.mxu0 %v12571_v58  ;;  %v12575_v5 = vld [vmem:[%s17259_s2 + $0x530] ss:$8 sps:$4 sm:$0xff]   ;;  %vm17489_vm7 = vmmov %vm17485_vm1 }
 0x2be   : > { %6466 = vmatprep.mubr.bf16.mxu1 %v15305_v44  ;;  %7699 = vmatpush1.bf16.msra.mxu1 %v12560_v57  ;;  %v7201_v58 = vld [vmem:[#allocation2 + $0x10] sm:$0xee] }
 0x2bf   : > { %7700 = vmatprep.subr.bf16.mxu1 %v12568_v0  ;;  %v11576_v57 = vcombine.high %v7201_v58, %v15224_v28  ;;  %v15627_v0 = vsel %vm17474_vm9, %v15614_v29, %v8634_v26  ;;  %vm17493_vm9 = vmmov %vm17491_vm4 }
 0x2c0   : > { %8269 = vmatpush1.bf16.msra.mxu0 %v12569_v61  ;;  %v6214_v61 = vrot.slane %v11426_v34, 1 }
 0x2c1   : > { %8270 = vmatprep.subr.bf16.mxu0 %v12577_v27  ;;  %v12609_v27 = vld [vmem:[%s17259_s2 + $0x5d0] ss:$8 sps:$4 sm:$0xff]  }
 0x2c2   : > { %7023 = vmatmul.mubr.bf16.gmra.mxu0 %v6765_v37  ;;  %7701 = vmatpush1.bf16.msra.mxu1 %v12566_v19  ;;  %v7356_v19 = vshrl.u32 %v15318_v30, 16 }
 0x2c3   : > { %7032 = vmatprep.mubr.bf16.mxu0 %v15305_v44  ;;  %7702 = vmatprep.subr.bf16.mxu1 %v12574_v63  ;;  %v12578_v44 = vld [vmem:[%s17259_s2 + $0x4e0] ss:$8 sps:$4 sm:$0xff]   ;;  %v7359_v63 = vshll.u32 %v15318_v30, 16  ;;  %v7348_v30 = vshrl.u32 %v11576_v57, 16 }
 0x2c4   : > { %8271 = vmatpush1.bf16.msra.mxu0 %v12575_v5  ;;  %v12620_v5 = vld [vmem:[%s17259_s2 + $0x5c4] ss:$8 sps:$4 sm:$0xff]  }
 0x2c5   : > { %6467 = vmatmul.mubr.bf16.gmra.mxu1 %v15313_v56  ;;  %8272 = vmatprep.subr.bf16.mxu0 %v12583_v38  ;;  %v8632_v38 = vrot.slane %v15609_v32, 2 }
 0x2c6   : > { %6476 = vmatprep.mubr.bf16.mxu1 %v15316_v46  ;;  %7703 = vmatpush2.bf16.msra.mxu1 %v12572_v23  ;;  %v15642_v23 = vrot.slane %v15611_v11, 2 }
 0x2c7   : > { %7704 = vmatprep.subr.bf16.mxu1 %v12580_v1  ;;  %v12612_v1 = vld [vmem:[%s17259_s2 + $0x490] ss:$8 sps:$4 sm:$0xff]  }
 0x2c8   : > { %8273 = vmatpush1.bf16.msra.mxu0 %v12581_v12  ;;  %v7351_v12 = vshll.u32 %v11576_v57, 16 }
 0x2c9   : > { %8274 = vmatprep.subr.bf16.mxu0 %v12589_v54  ;;  %v12623_v54 = vld [vmem:[%s17259_s2 + $0x484] ss:$8 sps:$4 sm:$0xff]  }
 0x2ca   : > { %7033 = vmatmul.mubr.bf16.gmra.mxu0 %v15313_v56  ;;  %7705 = vmatpush2.bf16.msra.mxu1 %v12578_v44  ;;  %v12598_v56 = vld [vmem:[%s17259_s2 + $0x5f4] ss:$8 sps:$4 sm:$0xff]  }
 0x2cb   : > { %7042 = vmatprep.mubr.bf16.mxu0 %v15316_v46  ;;  %7706 = vmatprep.subr.bf16.mxu1 %v12586_v4  ;;  %v12593_v46 = vld [vmem:[%s17259_s2 + $0x4c0] ss:$8 sps:$4 sm:$0xff]   ;;  %v11425_v4 = vcombine.low %v15586_v2, %v15586_v2 }
 0x2cc   : > { %8275 = vmatpush1.bf16.msra.mxu0 %v12587_v6  ;;  %v6215_v6 = vsel %vm17461_vm2, %v15329_v40, %v6214_v61  ;;  %v12630_v40 = vld [vmem:[%s17259_s2 + $0x674] ss:$8 sps:$4 sm:$0xff]   ;;  %vm17499_vm2 = vmmov %vm17477_vm14 }
 0x2cd   : > { %6477 = vmatmul.mubr.bf16.gmra.mxu1 %v15321_v36  ;;  %8276 = vmatprep.subr.bf16.mxu0 %v12592_v49  ;;  %v7358_v49 = vrot.slane %v7356_v19, 1  ;;  %v12631_v19 = vld [vmem:[%s17259_s2 + $0x5a0] ss:$8 sps:$4 sm:$0xff]  }
 0x2ce   : > { %6486 = vmatprep.mubr.bf16.mxu1 %v15332_v31  ;;  %7707 = vmatpush2.bf16.msra.mxu1 %v12584_v3  ;;  %v7361_v3 = vrot.slane %v7359_v63, 2 }
 0x2cf   : > { %7708 = vmatprep.subr.bf16.mxu1 %v12595_v33  ;;  %v12626_v33 = vld [vmem:[%s17259_s2 + $0x5b4] ss:$8 sps:$4 sm:$0xff]  }
 0x2d0   : > { %8277 = vmatpush1.bf16.msra.mxu0 %v12590_v9  ;;  %v15671_v9 = vcombine.low %v7211_v52, %v7212_v22  ;;  %v7339_v22 = vshrl.u32 %v15371_v25, 16  ;;  %v7362_v34 = vor.u32 %v7361_v3, %v7358_v49  ;;  %v12633_v52 = vld [vmem:[%s17259_s2 + $0x5a4] ss:$8 sps:$4 sm:$0xff]   ;;  %v7392_v49 = vshrl.u32 %v15584_v43, 16 }
 0x2d1   : > { %8278 = vmatprep.subr.bf16.mxu0 %v12598_v56  ;;  %v11575_v56 = vcombine.low %v7201_v58, %v15224_v28  ;;  %v7342_v28 = vshll.u32 %v15371_v25, 16  ;;  %v7395_v3 = vshll.u32 %v15584_v43, 16 }
 0x2d2   : > { %7043 = vmatmul.mubr.bf16.gmra.mxu0 %v15321_v36  ;;  %7709 = vmatpush2.bf16.msra.mxu1 %v12593_v46  ;;  %v12603_v36 = vld [vmem:[%s17259_s2 + $0x5e0] ss:$8 sps:$4 sm:$0xff]   ;;  %v15681_v2 = vrot.slane %v15671_v9, 2  ;;  %v7341_v61 = vrot.slane %v7339_v22, 1  ;;  %v7394_v22 = vrot.slane %v7392_v49, 1 }
 0x2d3   : > { %7052 = vmatprep.mubr.bf16.mxu0 %v15332_v31  ;;  %7710 = vmatprep.subr.bf16.mxu1 %v12601_v60  ;;  %v15607_v31 = vld [vmem:[#allocation2 + $0x80] ss:$8 sps:$4 sm:$0xff]   ;;  %v7353_v60 = vrot.slane %v7351_v12, 2  ;;  %v7331_v25 = vshrl.u32 %v11575_v56, 16  ;;  %v12635_v12 = vld [vmem:[%s17259_s2 + $0x590] ss:$8 sps:$4 sm:$0xff]  }
 0x2d4   : > { %8279 = vmatpush2.bf16.msra.mxu0 %v12596_v41  ;;  %v15638_v37 = vrot.slane %v15607_v31, 2  ;;  %v12621_v46 = vld [vmem:[%s17259_s2 + $0x480] ss:$8 sps:$4 sm:$0xff]   ;;  %v7350_v41 = vrot.slane %v7348_v30, 1  ;;  %v12670_v49 = vld [vmem:[%s17259_s2 + $0x764] ss:$8 sps:$4 sm:$0xff]  }
 0x2d5   : > { %6487 = vmatmul.mubr.bf16.gmra.mxu1 %v15338_v55  ;;  %8280 = vmatprep.subr.bf16.mxu0 %v12605_v62  ;;  %v6643_v62 = vld [vmem:[#allocation2 + $0x58] sm:$0x11] }
 0x2d6   : > { %6496 = vmatprep.mubr.bf16.mxu1 %v15342_v39  ;;  %7711 = vmatpush2.bf16.msra.mxu1 %v12599_v13  ;;  %v15654_v44 = vsel %vm17475_vm0, %v15638_v37, %v8632_v38  ;;  %v6212_v13 = vrot.slane %v11425_v4, 1  ;;  %v11510_v58 = vcombine.high %v6643_v62, %v6643_v62  ;;  %v7368_v4 = vshll.u32 %v15455_v50, 16  ;;  %vm17495_vm0 = vmmov %vm17491_vm4 }
 0x2d7   : > { %7712 = vmatprep.subr.bf16.mxu1 %v12608_v48  ;;  %v12624_v48 = vld [vmem:[%s17259_s2 + $0x5b0] ss:$8 sps:$4 sm:$0xff]  }
 0x2d8   : > { %8281 = vmatpush2.bf16.msra.mxu0 %v12603_v36  ;;  %v7374_v36 = vshrl.u32 %v15415_v47, 16  ;;  %v6213_v57 = vsel %vm17478_vm3, %v15335_v16, %v6212_v13  ;;  %v7333_v16 = vrot.slane %v7331_v25, 1  ;;  %v7410_v25 = vshrl.u32 %v15588_v14, 16  ;;  %vm17502_vm3 = vmmov %vm17495_vm0 }
 0x2d9   : > { %8282 = vmatprep.subr.bf16.mxu0 %v12611_v35  ;;  %v7377_v35 = vshll.u32 %v15415_v47, 16  ;;  %v12680_v47 = vld [vmem:[%s17259_s2 + $0x604] ss:$8 sps:$4 sm:$0xff]  }
 0x2da   : > { %7053 = vmatmul.mubr.bf16.gmra.mxu0 %v15338_v55  ;;  %7713 = vmatpush2.bf16.msra.mxu1 %v12606_v7  ;;  %v15658_v55 = vsel %vm17476_vm10, %v8634_v26, %v15642_v23  ;;  %v15695_v26 = vsel %vm17477_vm14, %v8632_v38, %v15681_v2  ;;  %v7334_v7 = vshll.u32 %v11575_v56, 16  ;;  %v7376_v63 = vrot.slane %v7374_v36, 1  ;;  %v12638_v36 = vld [vmem:[%s17259_s2 + $0x660] ss:$8 sps:$4 sm:$0xff]   ;;  %vm17497_vm10 = vmmov %vm17495_vm0 }
 0x2db   : > { %7062 = vmatprep.mubr.bf16.mxu0 %v15342_v39  ;;  %7714 = vmatprep.subr.bf16.mxu1 %v12614_v15  ;;  %v12618_v39 = vld [vmem:[%s17259_s2 + $0x5c0] ss:$8 sps:$4 sm:$0xff]   ;;  %v7354_v15 = vor.u32 %v7353_v60, %v7350_v41  ;;  %v6790_v38 = vrot.slane %v11510_v58, 1  ;;  %v12640_v41 = vld [vmem:[%s17259_s2 + $0x664] ss:$8 sps:$4 sm:$0xff]   ;;  %vm17500_vm14 = vmmov %vm17495_vm0 }
 0x2dc   : > { %8283 = vmatpush2.bf16.msra.mxu0 %v12609_v27  ;;  %v7344_v27 = vrot.slane %v7342_v28, 2  ;;  %v7397_v28 = vrot.slane %v7395_v3, 2  ;;  %v15784_v3 = vld [vmem:[#allocation2 + $0x18] ss:$80 sps:$4 sm:$0xff]  }
 0x2dd   : > { %6497 = vmatmul.mubr.bf16.gmra.mxu1 %v15350_v18  ;;  %8284 = vmatprep.subr.bf16.mxu0 %v12620_v5  ;;  %v7379_v5 = vrot.slane %v7377_v35, 2  ;;  %v6791_v56 = vsel %vm17480_vm15, %v15383_v24, %v6790_v38  ;;  %v7383_v35 = vshrl.u32 %v15607_v31, 16  ;;  %v15760_v38 = vld [vmem:[#allocation2 + $0x80] ss:$8 sps:$4 sm:$0xff]   ;;  %17487 = vst [vmem:[#allocation7_spill] sm:$0xff] %v15784_v3  ;;  %vm17505_vm15 = vmmov %vm17485_vm1 }
 0x2de   : > { %6506 = vmatprep.mubr.bf16.mxu1 %v6215_v6  ;;  %7715 = vmatpush2.bf16.msra.mxu1 %v12612_v1  ;;  %v7336_v1 = vrot.slane %v7334_v7, 2  ;;  %v7345_v30 = vor.u32 %v7344_v27, %v7341_v61  ;;  %v11509_v6 = vcombine.low %v6643_v62, %v6643_v62  ;;  %v7370_v62 = vrot.slane %v7368_v4, 2  ;;  %v12660_v4 = vld [vmem:[%s17259_s2 + $0x770] ss:$8 sps:$4 sm:$0xff]  }
 0x2df   : > { %7716 = vmatprep.subr.bf16.mxu1 %v12623_v54  ;;  %v7365_v54 = vshrl.u32 %v15455_v50, 16  ;;  %v7413_v7 = vshll.u32 %v15588_v14, 16  ;;  %v7385_v61 = vrot.slane %v7383_v35, 1  ;;  %v12653_v14 = vld [vmem:[%s17259_s2 + $0x644] ss:$8 sps:$4 sm:$0xff]  }
 0x2e0   : > { %8285 = vmatpush2.bf16.msra.mxu0 %v12618_v39  ;;  %v7380_v39 = vor.u32 %v7379_v5, %v7376_v63  ;;  %v6788_v13 = vrot.slane %v11509_v6, 1  ;;  %v15755_v63 = vld [vmem:[#allocation2 + $0xbc] ss:$-72 sps:$4 sm:$0xff]   ;;  %v12686_v50 = vld [vmem:[%s17259_s2 + $0x6f0] ss:$8 sps:$4 sm:$0xff]  }
 0x2e1   : > { %8286 = vmatprep.subr.bf16.mxu0 %v12626_v33  ;;  %v12647_v33 = vld [vmem:[%s17259_s2 + $0x584] ss:$8 sps:$4 sm:$0xff]   ;;  %v7367_v60 = vrot.slane %v7365_v54, 1 }
 0x2e2   : > { %7063 = vmatmul.mubr.bf16.gmra.mxu0 %v15350_v18  ;;  %7717 = vmatpush2.bf16.msra.mxu1 %v12621_v46  ;;  %v7363_v18 = vsel %vm17479_vm5, %v7354_v15, %v7362_v34  ;;  %v7337_v46 = vor.u32 %v7336_v1, %v7333_v16  ;;  %v7381_v24 = vsel %vm17482_vm6, %v7362_v34, %v7380_v39  ;;  %v12650_v34 = vld [vmem:[%s17259_s2 + $0x654] ss:$8 sps:$4 sm:$0xff]   ;;  %v15762_v16 = vld [vmem:[#allocation2 + $0xb8] ss:$-72 sps:$4 sm:$0xff]   ;;  %vm17504_vm5 = vmmov %vm17485_vm1 }
 0x2e3   : > { %7072 = vmatprep.mubr.bf16.mxu0 %v15401_v59  ;;  %8838 = vmatprep.subr.bf16.mxu1 %v12630_v40  ;;  %v12637_v59 = vld [vmem:[%s17259_s2 + $0x594] ss:$8 sps:$4 sm:$0xff]   ;;  %v12628_v40 = vld [vmem:[%s17259_s2 + $0x670] ss:$8 sps:$4 sm:$0xff]   ;;  %v7371_v58 = vor.u32 %v7370_v62, %v7367_v60  ;;  %v6789_v15 = vsel %vm17483_vm11, %v15388_v42, %v6788_v13  ;;  %v12665_v62 = vld [vmem:[%s17259_s2 + $0x624] ss:$8 sps:$4 sm:$0xff]  }
 0x2e4   : > { %8287 = vmatpush2.bf16.msra.mxu0 %v12624_v48  ;;  %v7346_v43 = vsel %vm17481_vm13, %v7337_v46, %v7345_v30  ;;  %v12662_v48 = vld [vmem:[%s17259_s2 + $0x774] ss:$8 sps:$4 sm:$0xff]   ;;  %v7431_v46 = vshll.u32 %v15611_v11, 16  ;;  %v12657_v60 = vld [vmem:[%s17259_s2 + $0x630] ss:$8 sps:$4 sm:$0xff]   ;;  %vm17506_vm13 = vmmov %vm17499_vm2 }
 0x2e5   : > { %6507 = vmatmul.mubr.bf16.gmra.mxu1 %v6213_v57  ;;  %8288 = vmatprep.subr.bf16.mxu0 %v12633_v52  ;;  %v7386_v52 = vshll.u32 %v15607_v31, 16  ;;  %v7398_v57 = vor.u32 %v7397_v28, %v7394_v22  ;;  %v12648_v31 = vld [vmem:[%s17259_s2 + $0x650] ss:$8 sps:$4 sm:$0xff]   ;;  %v7372_v42 = vsel %vm17484_vm8, %v7345_v30, %v7371_v58  ;;  %v12659_v30 = vld [vmem:[%s17259_s2 + $0x634] ss:$8 sps:$4 sm:$0xff]   ;;  %vm17507_vm6 = vmmov %vm17485_vm1 }
 0x2e6   : > { %7718 = vmatprep.mubr.bf16.mxu1 %v7363_v18  ;;  %v7415_v18 = vrot.slane %v7413_v7, 2  ;;  %v15779_v6 = vld [vmem:[#allocation2 + $0x1c] ss:$80 sps:$4 sm:$0xff]   ;;  %v15806_v22 = vld [vmem:[#allocation2 + $0x90] ss:$-88 sps:$4 sm:$0xff]   ;;  %v7433_v7 = vrot.slane %v7431_v46, 2  ;;  %vm17508_vm11 = vmmov %vm17485_vm1 }
 0x2e7   : > { %v7388_v27 = vrot.slane %v7386_v52, 2  ;;  %v7399_v5 = vsel %vm17485_vm1, %v7380_v39, %v7398_v57  ;;  %v7404_v39 = vshll.u32 %v15609_v32, 16  ;;  %17486 = vst [vmem:[#allocation23_spill] sm:$0xff] %v15779_v6  ;;  %v15804_v13 = vld [vmem:[#allocation2 + $0x94] ss:$-88 sps:$4 sm:$0xff]   ;;  %vm17509_vm8 = vmmov %vm17485_vm1 }
 0x2e8   : > { %8289 = vmatpush2.bf16.msra.mxu0 %v12631_v19  ;;  %v7412_v19 = vrot.slane %v7410_v25, 1  ;;  %17490 = vst [vmem:[#allocation8_spill] sm:$0xff] %v15804_v13 }
 0x2e9   : > { %8290 = vmatprep.subr.bf16.mxu0 %v12637_v59  ;;  %v15758_v59 = vld [vmem:[#allocation2 + $0x84] ss:$8 sps:$4 sm:$0xff]   ;;  %v15767_v1 = vor.u32 %v7388_v27, %v7385_v61  ;;  %v12663_v27 = vld [vmem:[%s17259_s2 + $0x620] ss:$8 sps:$4 sm:$0xff]  }
 0x2ea   : > { %7073 = vmatmul.mubr.bf16.gmra.mxu0 %v15409_v20  ;;  %v12645_v20 = vld [vmem:[%s17259_s2 + $0x580] ss:$8 sps:$4 sm:$0xff]   ;;  %v15773_v54 = vor.u32 %v7415_v18, %v7412_v19  ;;  %v12673_v19 = vld [vmem:[%s17259_s2 + $0x614] ss:$8 sps:$4 sm:$0xff]   ;;  %v17298_v18 = vrot.slane %v15804_v13, 3 }
 0x2eb   : > { %7082 = vmatprep.mubr.bf16.mxu0 %v6791_v56  ;;  %v7428_v56 = vshrl.u32 %v15611_v11, 16 }
 0x2ec   : > { %8291 = vmatpush2.bf16.msra.mxu0 %v12635_v12  ;;  %v7401_v12 = vshrl.u32 %v15609_v32, 16  ;;  %v7390_v32 = vsel %vm17488_vm12, %v7371_v58, %v15767_v1  ;;  %v12676_v58 = vld [vmem:[%s17259_s2 + $0x754] ss:$8 sps:$4 sm:$0xff]   ;;  %vm17510_vm12 = vmmov %vm17499_vm2 }
 0x2ed   : > { %7719 = vmatmul.mubr.bf16.vlgmr.msra.gmra.mxu1 %v7346_v43  ;;  %8292 = vmatprep.subr.bf16.mxu0 %v12647_v33  ;;  %v9926_v33 = vrot.slane %v15755_v63, 3  ;;  %v9924_v43 = vrot.slane %v15762_v16, 3  ;;  %v7430_v25 = vrot.slane %v7428_v56, 1  ;;  %v12685_v56 = vld [vmem:[%s17259_s2 + $0x744] ss:$8 sps:$4 sm:$0xff]  }
 0x2ee   : > { %7728 = vmatprep.mubr.bf16.mxu1 %v7381_v24  ;;  %8839 = vmatpush1.bf16.msra.mxu1 %v12628_v40  ;;  %v8509_v40 = vld [vmem:[#allocation2 + $0x58] sm:$0xff]  ;;  %v7403_v11 = vrot.slane %v7401_v12, 1  ;;  %v7406_v24 = vrot.slane %v7404_v39, 2  ;;  %v7422_v12 = vshll.u32 %v15671_v9, 16 }
 0x2ef   : > { %8840 = vmatprep.subr.bf16.mxu1 %v12640_v41  ;;  %v17302_v41 = vrot.slane %v15758_v59, 3  ;;  %v7434_v39 = vor.u32 %v7433_v7, %v7430_v25 }
 0x2f0   : > { %8293 = vmatpush2.bf16.msra.mxu0 %v12645_v20  ;;  %v17301_v20 = vrot.slane %v15760_v38, 3 }
 0x2f1   : > { %9554 = vmatprep.subr.bf16.mxu0 %v12662_v48  ;;  %v15811_v28 = vsel %vm17491_vm4, %v17302_v41, %v9926_v33  ;;  %v17300_v48 = vrot.slane %v15779_v6, 3  ;;  %vm17512_vm4 = vmmov %vm17485_vm1 }
 0x2f2   : > { %7083 = vmatmul.mubr.bf16.gmra.mxu0 %v6789_v15  ;;  %8841 = vmatpush1.bf16.msra.mxu1 %v12638_v36  ;;  %17492 = vst [vmem:[#allocation9_spill] sm:$0xff] %v15811_v28  ;;  %v12850_v36 = vld [vmem:[#allocation2 + $0xb0] sm:$0xff]  ;;  %v15822_v52 = vsel %vm17493_vm9, %v17301_v20, %v9924_v43  ;;  %v15828_v15 = vld [vmem:[#allocation2 + $0x9c] ss:$8 sps:$4 sm:$0xff]   ;;  %vm17513_vm9 = vmmov %vm17499_vm2 }
 0x2f3   : > { %8294 = vmatprep.mubr.bf16.mxu0 %v15435_v21  ;;  %8842 = vmatprep.subr.bf16.mxu1 %v12650_v34  ;;  %v12651_v21 = vld [vmem:[%s17259_s2 + $0x640] ss:$8 sps:$4 sm:$0xff]   ;;  %v15817_v35 = vcombine.high %v8509_v40, %v12850_v36  ;;  %17494 = vst [vmem:[#allocation10_spill] sm:$0xff] %v15822_v52  ;;  %v17299_v34 = vrot.slane %v15784_v3, 3  ;;  %v15837_v61 = vsel %vm17495_vm0, %v9926_v33, %v17300_v48  ;;  %v7449_v33 = vshll.u32 %v15828_v15, 16  ;;  %vm17514_vm0 = vmmov %vm17499_vm2 }
 0x2f4   : > { %17496 = vst [vmem:[#allocation13_spill] sm:$0xff] %v15837_v61 }
 0x2f5   : > { %7729 = vmatmul.mubr.bf16.gmra.mxu1 %v7372_v42  ;;  %v17297_v42 = vrot.slane %v15806_v22, 3  ;;  %v7451_v25 = vrot.slane %v7449_v33, 2 }
 0x2f6   : > { %7738 = vmatprep.mubr.bf16.mxu1 %v7399_v5  ;;  %8843 = vmatpush1.bf16.msra.mxu1 %v12648_v31  ;;  %v15832_v31 = vcombine.low %v8509_v40, %v12850_v36  ;;  %v7407_v5 = vor.u32 %v7406_v24, %v7403_v11  ;;  %v7424_v11 = vrot.slane %v7422_v12, 2  ;;  %v15898_v24 = vld [vmem:[#allocation2 + $0x24] ss:$16 sps:$4 sm:$0xff]   ;;  %v8057_v12 = vsel %vm17506_vm13, %v8052_v51, %v15638_v37  ;;  %vm17523_vm13 = vmmov %vm17514_vm0 }
 0x2f7   : > { %8844 = vmatprep.subr.bf16.mxu1 %v12653_v14  ;;  %v15845_v14 = vsel %vm17497_vm10, %v9924_v43, %v17299_v34  ;;  %v12671_v43 = vld [vmem:[%s17259_s2 + $0x610] ss:$8 sps:$4 sm:$0xff]   ;;  %v7464_v33 = vshrl.u32 %v15898_v24, 16  ;;  %v12697_v51 = vld [vmem:[%s17259_s2 + $0x6e4] ss:$8 sps:$4 sm:$0xff]   ;;  %vm17515_vm10 = vmmov %vm17485_vm1 }
 0x2f8   : > { %17498 = vst [vmem:[#allocation14_spill] sm:$0xff] %v15845_v14  ;;  %v17295_v40 = vrot.slane %v15832_v31, 3 }
 0x2fa   : > { %8295 = vmatmul.mubr.bf16.vlgmr.msra.gmra.mxu0 %v15438_v53  ;;  %8845 = vmatpush1.bf16.msra.mxu1 %v12651_v21  ;;  %v7417_v53 = vsel %vm17489_vm7, %v7398_v57, %v15773_v54  ;;  %v15830_v57 = vpop.f32.mrf.mxu1  ;;  %v12674_v21 = vld [vmem:[%s17259_s2 + $0x750] ss:$8 sps:$4 sm:$0xff]   ;;  %vm17511_vm7 = vmmov %vm17485_vm1 }
 0x2fb   : > { %8304 = vmatprep.mubr.bf16.mxu0 %v15450_v17  ;;  %8846 = vmatprep.subr.bf16.mxu1 %v12659_v30  ;;  %v12668_v17 = vld [vmem:[%s17259_s2 + $0x760] ss:$8 sps:$4 sm:$0xff]   ;;  %v7419_v30 = vshrl.u32 %v15671_v9, 16  ;;  %v8059_v9 = vsel %vm17499_vm2, %v8054_v45, %v15614_v29  ;;  %v15891_v45 = vsel %vm17502_vm3, %v17297_v42, %v17295_v40  ;;  %vm17516_vm2 = vmmov %vm17485_vm1 }
 0x2fc   : > { %9555 = vmatpush1.bf16.msra.mxu0 %v12660_v4  ;;  %v17296_v4 = vrot.slane %v15817_v35, 3  ;;  %v15863_v46 = vpop.f32.mrf.mxu1  ;;  %17503 = vst [vmem:[#allocation24_spill] sm:$0xff] %v15891_v45  ;;  %v12754_v45 = vld [vmem:[%s17259_s2 + $0x7a4] ss:$8 sps:$4 sm:$0xff]   ;;  %vm17520_vm3 = vmmov %vm17514_vm0 }
 0x2fd   : > { %7739 = vmatmul.mubr.bf16.gmra.mxu1 %v7390_v32  ;;  %9556 = vmatprep.subr.bf16.mxu0 %v12670_v49  ;;  %v7446_v49 = vshrl.u32 %v15828_v15, 16 }
 0x2fe   : > { %7748 = vmatprep.mubr.bf16.mxu1 %v7417_v53  ;;  %8847 = vmatpush1.bf16.msra.mxu1 %v12657_v60  ;;  %v15879_v32 = vsel %vm17500_vm14, %v17298_v18, %v17296_v4  ;;  %v7408_v60 = vsel %vm17504_vm5, %v15767_v1, %v7407_v5  ;;  %v12683_v53 = vld [vmem:[%s17259_s2 + $0x740] ss:$8 sps:$4 sm:$0xff]   ;;  %v12691_v1 = vld [vmem:[%s17259_s2 + $0x734] ss:$8 sps:$4 sm:$0xff]   ;;  %v15905_v7 = vpop.f32.mrf.mxu1  ;;  %vm17518_vm14 = vmmov %vm17514_vm0 }
 0x2ff   : > { %8848 = vmatprep.subr.bf16.mxu1 %v12665_v62  ;;  %17501 = vst [vmem:[#allocation16_spill] sm:$0xff] %v15879_v32  ;;  %v7421_v62 = vrot.slane %v7419_v30, 1  ;;  %v7448_v36 = vrot.slane %v7446_v49, 1  ;;  %vm17521_vm5 = vmmov %vm17485_vm1 }
 0x300   : > { %9557 = vmatpush1.bf16.msra.mxu0 %v12668_v17  ;;  %v7435_v17 = vsel %vm17505_vm15, %v15773_v54, %v7434_v39  ;;  %v12688_v54 = vld [vmem:[%s17259_s2 + $0x6f4] ss:$8 sps:$4 sm:$0xff]   ;;  %vm17522_vm15 = vmmov %vm17514_vm0 }
 0x301   : > { %9558 = vmatprep.subr.bf16.mxu0 %v12676_v58  ;;  %v12678_v58 = vld [vmem:[%s17259_s2 + $0x600] ss:$8 sps:$4 sm:$0xff]   ;;  %v7452_v49 = vor.u32 %v7451_v25, %v7448_v36  ;;  %v7466_v25 = vrot.slane %v7464_v33, 1 }
 0x302   : > { %8305 = vmatmul.mubr.bf16.gmra.mxu0 %v15489_v8  ;;  %8849 = vmatpush1.bf16.msra.mxu1 %v12663_v27  ;;  %v15884_v8 = vld [vmem:[#allocation2 + $0x98] ss:$8 sps:$4 sm:$0xff]   ;;  %v7425_v27 = vor.u32 %v7424_v11, %v7421_v62 }
 0x303   : > { %8314 = vmatprep.mubr.bf16.mxu0 %v8059_v9  ;;  %8850 = vmatprep.subr.bf16.mxu1 %v12673_v19  ;;  %v12689_v19 = vld [vmem:[%s17259_s2 + $0x730] ss:$8 sps:$4 sm:$0xff]   ;;  %v7440_v30 = vshll.u32 %v15884_v8, 16  ;;  %v12700_v9 = vld [vmem:[%s17259_s2 + $0x724] ss:$8 sps:$4 sm:$0xff]   ;;  %v7453_v36 = vsel %vm17508_vm11, %v7434_v39, %v7452_v49  ;;  %vm17526_vm11 = vmmov %vm17514_vm0 }
 0x304   : > { %9559 = vmatpush1.bf16.msra.mxu0 %v12674_v21  ;;  %v7437_v21 = vshrl.u32 %v15884_v8, 16  ;;  %v7426_v62 = vsel %vm17507_vm6, %v7407_v5, %v7425_v27  ;;  %v12703_v39 = vld [vmem:[%s17259_s2 + $0x6d4] ss:$8 sps:$4 sm:$0xff]   ;;  %vm17524_vm6 = vmmov %vm17514_vm0 }
 0x305   : > { %7749 = vmatmul.mubr.bf16.gmra.mxu1 %v7408_v60  ;;  %9560 = vmatprep.subr.bf16.mxu0 %v12685_v56  ;;  %v7467_v56 = vshll.u32 %v15898_v24, 16  ;;  %v15936_v60 = vld [vmem:[#allocation2 + $0x20] ss:$16 sps:$4 sm:$0xff]  }
 0x306   : > { %7758 = vmatprep.mubr.bf16.mxu1 %v7435_v17  ;;  %8851 = vmatpush1.bf16.msra.mxu1 %v12671_v43  ;;  %v15927_v43 = vpop.f32.mrf.mxu1  ;;  %v7439_v11 = vrot.slane %v7437_v21, 1  ;;  %v12698_v17 = vld [vmem:[%s17259_s2 + $0x720] ss:$8 sps:$4 sm:$0xff]   ;;  %v7458_v33 = vshll.u32 %v15936_v60, 16 }
 0x307   : > { %8852 = vmatprep.subr.bf16.mxu1 %v12680_v47  ;;  %v7217_v47 = vld [vmem:[#allocation2 + $0x90] sm:$0xff] }
 0x308   : > { %9561 = vmatpush1.bf16.msra.mxu0 %v12683_v53  ;;  %v7442_v53 = vrot.slane %v7440_v30, 2  ;;  %v15949_v5 = vpop.f32.mrf.mxu1  ;;  %v12704_v30 = vld [vmem:[%s17259_s2 + $0x710] ss:$8 sps:$4 sm:$0xff]   ;;  %v15986_v40 = vcombine.low %v7217_v47, %v15365_v10 }
 0x309   : > { %9562 = vmatprep.subr.bf16.mxu0 %v12691_v1  ;;  %v7469_v1 = vrot.slane %v7467_v56, 2 }
 0x30a   : > { %8315 = vmatmul.mubr.bf16.gmra.mxu0 %v8057_v12  ;;  %8853 = vmatpush1.bf16.msra.mxu1 %v12678_v58  ;;  %v12706_v58 = vld [vmem:[%s17259_s2 + $0x714] ss:$8 sps:$4 sm:$0xff]   ;;  %v7443_v21 = vor.u32 %v7442_v53, %v7439_v11  ;;  %v7455_v12 = vshrl.u32 %v15936_v60, 16  ;;  %v12701_v11 = vld [vmem:[%s17259_s2 + $0x6d0] ss:$8 sps:$4 sm:$0xff]  }
 0x30b   : > { %8324 = vmatprep.mubr.bf16.mxu0 %v15627_v0  ;;  %8854 = vmatprep.subr.bf16.mxu1 %v12688_v54  ;;  %v15947_v54 = vcombine.high %v7217_v47, %v15365_v10  ;;  %v15962_v56 = vor.u32 %v7469_v1, %v7466_v25  ;;  %v7219_v53 = vld [vmem:[#allocation2 + $0x58] sm:$0x33]  ;;  %v12711_v10 = vld [vmem:[%s17259_s2 + $0x6c0] ss:$8 sps:$4 sm:$0xff]  }
 0x30c   : > { %9563 = vmatpush1.bf16.msra.mxu0 %v12689_v19  ;;  %v12695_v19 = vld [vmem:[%s17259_s2 + $0x6e0] ss:$8 sps:$4 sm:$0xff]   ;;  %v7444_v25 = vsel %vm17509_vm8, %v7425_v27, %v7443_v21  ;;  %v7457_v1 = vrot.slane %v7455_v12, 1  ;;  %v12716_v27 = vld [vmem:[%s17259_s2 + $0x7f4] ss:$8 sps:$4 sm:$0xff]   ;;  %v11593_v48 = vcombine.low %v7219_v53, %v7219_v53  ;;  %vm17527_vm8 = vmmov %vm17514_vm0 }
 0x30d   : > { %7759 = vmatmul.mubr.bf16.gmra.mxu1 %v7426_v62  ;;  %9564 = vmatprep.subr.bf16.mxu0 %v12700_v9  ;;  %v7482_v9 = vshrl.u32 %v15947_v54, 16  ;;  %v15969_v62 = vpop.f32.mrf.mxu1 }
 0x30e   : > { %7768 = vmatprep.mubr.bf16.mxu1 %v7453_v36  ;;  %8855 = vmatpush2.bf16.msra.mxu1 %v12686_v50  ;;  %v7485_v50 = vshll.u32 %v15947_v54, 16  ;;  %v15979_v36 = vpop.f32.mrf.mxu0 }
 0x30f   : > { %8856 = vmatprep.subr.bf16.mxu1 %v12697_v51  ;;  %v12710_v51 = vld [vmem:[%s17259_s2 + $0x704] ss:$8 sps:$4 sm:$0xff]   ;;  %v7484_v4 = vrot.slane %v7482_v9, 1  ;;  %v15993_v12 = vpop.f32.mrf.mxu1 }
 0x310   : > { %9565 = vmatpush1.bf16.msra.mxu0 %v12698_v17  ;;  %v12713_v17 = vld [vmem:[%s17259_s2 + $0x6c4] ss:$8 sps:$4 sm:$0xff]   ;;  %v7487_v42 = vrot.slane %v7485_v50, 2  ;;  %v16002_v47 = vpop.f32.mrf.mxu0  ;;  %v12714_v50 = vld [vmem:[%s17259_s2 + $0x7f0] ss:$8 sps:$4 sm:$0xff]  }
 0x311   : > { %9566 = vmatprep.subr.bf16.mxu0 %v12706_v58  ;;  %v7460_v58 = vrot.slane %v7458_v33, 2  ;;  %v8070_v33 = vrot.slane %v15828_v15, 2  ;;  %v7473_v15 = vshrl.u32 %v15986_v40, 16  ;;  %v16014_v18 = vpop.f32.mrf.mxu1 }
 0x312   : > { %8325 = vmatmul.mubr.bf16.gmra.mxu0 %v15654_v44  ;;  %8857 = vmatpush2.bf16.msra.mxu1 %v12695_v19  ;;  %v12708_v19 = vld [vmem:[%s17259_s2 + $0x700] ss:$8 sps:$4 sm:$0xff]  }
 0x313   : > { %8334 = vmatprep.mubr.bf16.mxu0 %v15658_v55  ;;  %8858 = vmatprep.subr.bf16.mxu1 %v12703_v39  ;;  %v7471_v39 = vsel %vm17485_vm1, %v7452_v49, %v15962_v56  ;;  %v12719_v49 = vld [vmem:[%s17259_s2 + $0x6b4] ss:$8 sps:$4 sm:$0xff]   ;;  %v7461_v9 = vor.u32 %v7460_v58, %v7457_v1  ;;  %v8071_v1 = vsel %vm17510_vm12, %v15642_v23, %v8070_v33  ;;  %vm17528_vm1 = vmmov %vm17514_vm0  ;;  %vm17529_vm12 = vsmask.f32 5376 }
 0x314   : > { %9567 = vmatpush1.bf16.msra.mxu0 %v12704_v30  ;;  %v11594_v30 = vcombine.high %v7219_v53, %v7219_v53  ;;  %v12724_v53 = vld [vmem:[%s17259_s2 + $0x6a0] ss:$8 sps:$4 sm:$0xff]  }
 0x315   : > { %7769 = vmatmul.mubr.bf16.gmra.mxu1 %v7444_v25  ;;  %9568 = vmatprep.subr.bf16.mxu0 %v12710_v51  ;;  %v7476_v51 = vshll.u32 %v15986_v40, 16 }
 0x316   : > { %7778 = vmatprep.mubr.bf16.mxu1 %v7471_v39  ;;  %8859 = vmatpush2.bf16.msra.mxu1 %v12701_v11  ;;  %v16009_v11 = vor.u32 %v7487_v42, %v7484_v4  ;;  %v7503_v25 = vshll.u32 %v11594_v30, 16  ;;  %v12723_v39 = vld [vmem:[%s17259_s2 + $0x7e4] ss:$8 sps:$4 sm:$0xff]   ;;  %v12717_v42 = vld [vmem:[%s17259_s2 + $0x6b0] ss:$8 sps:$4 sm:$0xff]   ;;  %v16025_v58 = vpop.f32.mrf.mxu1 }
 0x317   : > { %8860 = vmatprep.subr.bf16.mxu1 %v12713_v17  ;;  %v7500_v17 = vshrl.u32 %v11594_v30, 16  ;;  %v12726_v4 = vld [vmem:[%s17259_s2 + $0x6a4] ss:$8 sps:$4 sm:$0xff]   ;;  %v7475_v30 = vrot.slane %v7473_v15, 1  ;;  %v7478_v34 = vrot.slane %v7476_v51, 2 }
 0x318   : > { %9569 = vmatpush1.bf16.msra.mxu0 %v12708_v19  ;;  %v16027_v19 = vpop.f32.mrf.mxu0  ;;  %v7505_v41 = vrot.slane %v7503_v25, 2  ;;  %v16044_v15 = vpop.f32.mrf.mxu1  ;;  %v12727_v25 = vld [vmem:[%s17259_s2 + $0x7d0] ss:$8 sps:$4 sm:$0xff]  }
 0x319   : > { %9570 = vmatprep.subr.bf16.mxu0 %v12716_v27  ;;  %v7462_v27 = vsel %vm17511_vm7, %v7443_v21, %v7461_v9  ;;  %v7502_v20 = vrot.slane %v7500_v17, 1  ;;  %v12729_v21 = vld [vmem:[%s17259_s2 + $0x7d4] ss:$8 sps:$4 sm:$0xff]   ;;  %v16051_v17 = vor.u32 %v7478_v34, %v7475_v30  ;;  %vm17531_vm7 = vmmov %vm17514_vm0 }
 0x31a   : > { %8335 = vmatmul.mubr.bf16.gmra.mxu0 %v15695_v26  ;;  %8861 = vmatpush2.bf16.msra.mxu1 %v12711_v10  ;;  %v12721_v10 = vld [vmem:[%s17259_s2 + $0x7e0] ss:$8 sps:$4 sm:$0xff]   ;;  %v16049_v51 = vpop.f32.mrf.mxu0 }
 0x31b   : > { %8344 = vmatprep.mubr.bf16.mxu0 %v8071_v1  ;;  %8862 = vmatprep.subr.bf16.mxu1 %v12719_v49  ;;  %v7489_v49 = vsel %vm17512_vm4, %v15962_v56, %v16009_v11  ;;  %v17304_v1 = vrot.slane %v15884_v8, 2  ;;  %v12732_v56 = vld [vmem:[%s17259_s2 + $0x694] ss:$8 sps:$4 sm:$0xff]   ;;  %vm17532_vm4 = vmmov %vm17529_vm12 }
 0x31c   : > { %9571 = vmatpush2.bf16.msra.mxu0 %v12714_v50  ;;  %v17303_v50 = vrot.slane %v15898_v24, 2 }
 0x31d   : > { %7779 = vmatmul.mubr.bf16.gmra.mxu1 %v7462_v27  ;;  %9572 = vmatprep.subr.bf16.mxu0 %v12723_v39  ;;  %v7491_v39 = vshrl.u32 %v11593_v48, 16  ;;  %v7506_v27 = vor.u32 %v7505_v41, %v7502_v20  ;;  %v12744_v20 = vld [vmem:[%s17259_s2 + $0x684] ss:$8 sps:$4 sm:$0xff]  }
 0x31e   : > { %7788 = vmatprep.mubr.bf16.mxu1 %v7489_v49  ;;  %8863 = vmatpush2.bf16.msra.mxu1 %v12717_v42  ;;  %v7494_v42 = vshll.u32 %v11593_v48, 16  ;;  %v12741_v49 = vld [vmem:[%s17259_s2 + $0x7c4] ss:$8 sps:$4 sm:$0xff]   ;;  %v8075_v30 = vsel %vm17514_vm0, %v8070_v33, %v17303_v50  ;;  %v12730_v48 = vld [vmem:[%s17259_s2 + $0x690] ss:$8 sps:$4 sm:$0xff]   ;;  %v7480_v33 = vsel %vm17515_vm10, %v7461_v9, %v16051_v17  ;;  %vm17534_vm0 = vmmov %vm17532_vm4 }
 0x31f   : > { %8864 = vmatprep.subr.bf16.mxu1 %v12726_v4  ;;  %v8069_v4 = vsel %vm17513_vm9, %v15681_v2, %v17304_v1  ;;  %v5862_v34 = vpop.f32.mrf.mxu0  ;;  %v16079_v50 = vld [vmem:[#allocation2 + $0x28] sm:$0xff]  ;;  %v16090_v1 = vld [vmem:[#allocation2 + $0x44] ss:$56 sps:$4 sm:$0xff]   ;;  %vm17533_vm9 = vmmov %vm17532_vm4 }
 0x320   : > { %9573 = vmatpush2.bf16.msra.mxu0 %v12721_v10  ;;  %v16069_v10 = vpop.f32.mrf.mxu1  ;;  %v16072_v41 = vadd.f32 %v5862_v34, %v15949_v5  ;;  %v12739_v5 = vld [vmem:[%s17259_s2 + $0x7c0] ss:$8 sps:$4 sm:$0xff]   ;;  %v12747_v9 = vld [vmem:[%s17259_s2 + $0x7b4] ss:$8 sps:$4 sm:$0xff]   ;;  %v9227_v32 = vshll.u32 %v16090_v1, 16  ;;  %vm17535_vm10 = vmmov %vm17534_vm0 }
 0x321   : > { %9574 = vmatprep.subr.bf16.mxu0 %v12729_v21  ;;  %v5864_v21 = vpop.f32.mrf.mxu0 }
 0x322   : > { %8345 = vmatmul.mubr.bf16.gmra.mxu0 %v8069_v4  ;;  %8865 = vmatpush2.bf16.msra.mxu1 %v12724_v53  ;;  %v7493_v53 = vrot.slane %v7491_v39, 1  ;;  %v7496_v4 = vrot.slane %v7494_v42, 2  ;;  %v16085_v34 = vadd.f32 %v5864_v21, %v15969_v62  ;;  %v8078_v39 = vrot.slane %v15947_v54, 2  ;;  %v8493_v62 = vld [vmem:[#allocation2 + $0x60] sm:$0xcc] }
 0x323   : > { %8354 = vmatprep.mubr.bf16.mxu0 %v8075_v30  ;;  %8866 = vmatprep.subr.bf16.mxu1 %v12732_v56  ;;  %v7507_v56 = vsel %vm17516_vm2, %v16009_v11, %v7506_v27  ;;  %v8072_v30 = vrot.slane %v15936_v60, 2  ;;  %v12742_v42 = vld [vmem:[%s17259_s2 + $0x680] ss:$8 sps:$4 sm:$0xff]   ;;  %v16099_v11 = vpop.f32.mrf.mxu1  ;;  %v11744_v27 = vcombine.high %v8493_v62, %v16079_v50  ;;  %v12751_v54 = vld [vmem:[%s17259_s2 + $0x874] ss:$8 sps:$4 sm:$0xff]   ;;  %vm17536_vm2 = vmmov %vm17528_vm1 }
 0x324   : > { %9575 = vmatpush2.bf16.msra.mxu0 %v12727_v25  ;;  %v5866_v25 = vpop.f32.mrf.mxu0  ;;  %v7497_v21 = vor.u32 %v7496_v4, %v7493_v53  ;;  %v17519_v53 = vrot.slane %v15898_v24, 2  ;;  %v12752_v24 = vld [vmem:[%s17259_s2 + $0x7a0] ss:$8 sps:$4 sm:$0xff]  }
 0x325   : > { %7789 = vmatmul.mubr.bf16.gmra.mxu1 %v7480_v33  ;;  %9576 = vmatprep.subr.bf16.mxu0 %v12741_v49  ;;  %v16102_v60 = vadd.f32 %v5866_v25, %v15993_v12  ;;  %v16105_v49 = vld [vmem:[#allocation2 + $0x58] sm:$0x33]  ;;  %v17517_v12 = vrot.slane %v15884_v8, 2  ;;  %v8626_v25 = vrot.slane %v16090_v1, 2  ;;  %v8625_v8 = vrot.slane %v11744_v27, 2 }
 0x326   : > { %7798 = vmatprep.mubr.bf16.mxu1 %v7507_v56  ;;  %8867 = vmatpush2.bf16.msra.mxu1 %v12730_v48  ;;  %v5868_v48 = vpop.f32.mrf.mxu0  ;;  %v12745_v33 = vld [vmem:[%s17259_s2 + $0x7b0] ss:$8 sps:$4 sm:$0xff]   ;;  %v8079_v4 = vsel %vm17520_vm3, %v17519_v53, %v8078_v39  ;;  %v11743_v53 = vcombine.low %v8493_v62, %v16079_v50  ;;  %vm17538_vm3 = vmmov %vm17534_vm0 }
 0x327   : > { %8868 = vmatprep.subr.bf16.mxu1 %v12744_v20  ;;  %v16114_v56 = vadd.f32 %v5868_v48, %v16014_v18  ;;  %v8073_v20 = vsel %vm17518_vm14, %v17517_v12, %v8072_v30  ;;  %v11678_v18 = vcombine.high %v16105_v49, %v16105_v49  ;;  %v9069_v48 = vld [vmem:[#allocation2 + $0x60] sm:$0xcc]  ;;  %v8627_v27 = vsel %vm17522_vm15, %v8625_v8, %v8626_v25  ;;  %vm17537_vm14 = vmmov %vm17534_vm0 }
 0x328   : > { %9577 = vmatpush2.bf16.msra.mxu0 %v12739_v5  ;;  %v16128_v5 = vpop.f32.mrf.mxu1  ;;  %v16132_v12 = vld [vmem:[#allocation2 + $0x40] ss:$56 sps:$4 sm:$0xff]   ;;  %vm17541_vm15 = vmmov %vm17528_vm1 }
 0x329   : > { %9578 = vmatprep.subr.bf16.mxu0 %v12747_v9  ;;  %v7498_v9 = vsel %vm17521_vm5, %v16051_v17, %v7497_v21  ;;  %v12758_v17 = vld [vmem:[%s17259_s2 + $0x794] ss:$8 sps:$4 sm:$0xff]   ;;  %v8082_v21 = vrot.slane %v11678_v18, 2  ;;  %v8622_v18 = vrot.slane %v11743_v53, 2  ;;  %vm17539_vm5 = vmmov %vm17528_vm1 }
 0x32a   : > { %8355 = vmatmul.mubr.bf16.gmra.mxu0 %v8073_v20  ;;  %8869 = vmatpush2.bf16.msra.mxu1 %v12742_v42  ;;  %v16134_v20 = vpop.f32.mrf.mxu1  ;;  %v11828_v42 = vcombine.high %v9069_v48, %v16079_v50 }
 0x32b   : > { %8364 = vmatprep.mubr.bf16.mxu0 %v8079_v4  ;;  %10130 = vmatprep.subr.bf16.mxu1 %v12751_v54  ;;  %v8076_v54 = vrot.slane %v15986_v40, 2  ;;  %v9224_v4 = vshrl.u32 %v16090_v1, 16  ;;  %v12756_v40 = vld [vmem:[%s17259_s2 + $0x790] ss:$8 sps:$4 sm:$0xff]   ;;  %v11677_v1 = vcombine.low %v16105_v49, %v16105_v49  ;;  %v12761_v49 = vld [vmem:[%s17259_s2 + $0x864] ss:$8 sps:$4 sm:$0xff]  }
 0x32c   : > { %9579 = vmatpush2.bf16.msra.mxu0 %v12745_v33  ;;  %v16146_v33 = vpop.f32.mrf.mxu1 }
 0x32d   : > { %7799 = vmatmul.mubr.bf16.gmra.mxu1 %v7498_v9  ;;  %9580 = vmatprep.subr.bf16.mxu0 %v12754_v45  ;;  %v9216_v45 = vshrl.u32 %v11828_v42, 16  ;;  %v8077_v14 = vsel %vm17523_vm13, %v8072_v30, %v8076_v54  ;;  %v9226_v53 = vrot.slane %v9224_v4, 2  ;;  %v9207_v4 = vshrl.u32 %v16132_v12, 16  ;;  %vm17542_vm13 = vmmov %vm17534_vm0 }
 0x32e   : > { %8870 = vmatprep.mubr.bf16.mxu1 %v8627_v27  ;;  %v9219_v27 = vshll.u32 %v11828_v42, 16  ;;  %v16158_v61 = vpop.f32.mrf.mxu1  ;;  %v12749_v42 = vld [vmem:[%s17259_s2 + $0x870] ss:$8 sps:$4 sm:$0xff]  }
 0x32f   : > { %v5872_v9 = vpop.f32.mrf.mxu0 }
 0x330   : > { %9581 = vmatpush2.bf16.msra.mxu0 %v12752_v24  ;;  %v16152_v8 = vadd.f32 %v5872_v9, %v16025_v58  ;;  %v12766_v58 = vld [vmem:[%s17259_s2 + $0x784] ss:$8 sps:$4 sm:$0xff]   ;;  %v8083_v24 = vsel %vm17524_vm6, %v8078_v39, %v8082_v21  ;;  %v9229_v9 = vrot.slane %v9227_v32, 3  ;;  %v9218_v21 = vrot.slane %v9216_v45, 2  ;;  %v12764_v32 = vld [vmem:[%s17259_s2 + $0x780] ss:$8 sps:$4 sm:$0xff]   ;;  %vm17543_vm6 = vmmov %vm17534_vm0 }
 0x331   : > { %9582 = vmatprep.subr.bf16.mxu0 %v12758_v17  ;;  %v5874_v62 = vpop.f32.mrf.mxu0  ;;  %v11827_v17 = vcombine.low %v9069_v48, %v16079_v50  ;;  %v9221_v28 = vrot.slane %v9219_v27, 3  ;;  %v8631_v50 = vsel %vm17527_vm8, %v8626_v25, %v15614_v29  ;;  %v8080_v48 = vrot.slane %v11677_v1, 2  ;;  %vm17547_vm8 = vmmov %vm17528_vm1 }
 0x332   : > { %8365 = vmatmul.mubr.bf16.gmra.mxu0 %v8077_v14  ;;  %v5986_v30 = vadd.f32 %v5874_v62, %v16044_v15  ;;  %v17525_v14 = vrot.slane %v16132_v12, 2  ;;  %v9210_v62 = vshll.u32 %v16132_v12, 16  ;;  %v9242_v29 = vshrl.u32 %v15758_v59, 16 }
 0x333   : > { %8374 = vmatprep.mubr.bf16.mxu0 %v8083_v24  ;;  %v5876_v52 = vpop.f32.mrf.mxu0  ;;  %v9245_v25 = vshll.u32 %v15758_v59, 16  ;;  %v9199_v27 = vshrl.u32 %v11827_v17, 16  ;;  %v9202_v1 = vshll.u32 %v11827_v17, 16  ;;  %v9222_v24 = vor.u32 %v9221_v28, %v9218_v21 }
 0x334   : > { %v8624_v39 = vsel %vm17526_vm11, %v8622_v18, %v17525_v14  ;;  %6022 = vst [vmem:[#allocation4 + $0x110] sm:$0xff] %v5986_v30  ;;  %9583 = vmatpush2.bf16.msra.mxu0 %v12756_v40  ;;  %v16178_v15 = vadd.f32 %v5876_v52, %v16069_v10  ;;  %v16187_v18 = vpop.f32.mrf.mxu1  ;;  %v12759_v52 = vld [vmem:[%s17259_s2 + $0x860] ss:$8 sps:$4 sm:$0xff]   ;;  %v9230_v10 = vor.u32 %v9229_v9, %v9226_v53  ;;  %v9209_v53 = vrot.slane %v9207_v4, 2  ;;  %vm17545_vm11 = vmmov %vm17528_vm1 }
 0x335   : > { %8871 = vmatmul.mubr.bf16.vlgmr.msra.gmra.mxu1 %v8624_v39  ;;  %9584 = vmatprep.subr.bf16.mxu0 %v12766_v58  ;;  %v5878_v40 = vpop.f32.mrf.mxu0  ;;  %v12769_v58 = vld [vmem:[%s17259_s2 + $0x854] ss:$8 sps:$4 sm:$0xff]   ;;  %v9244_v17 = vrot.slane %v9242_v29, 2  ;;  %v9247_v14 = vrot.slane %v9245_v25, 3  ;;  %v9201_v39 = vrot.slane %v9199_v27, 2  ;;  %v9204_v21 = vrot.slane %v9202_v1, 3 }
 0x336   : > { %8880 = vmatprep.mubr.bf16.mxu1 %v8631_v50  ;;  %10131 = vmatpush1.bf16.msra.mxu1 %v12749_v42  ;;  %v16193_v45 = vadd.f32 %v5878_v40, %v16099_v11  ;;  %v8081_v42 = vsel %vm17528_vm1, %v8076_v54, %v8080_v48  ;;  %v16201_v30 = vpop.f32.mrf.mxu1  ;;  %v9212_v11 = vrot.slane %v9210_v62, 3  ;;  %v9231_v9 = vsel %vm17529_vm12, %v9222_v24, %v9230_v10  ;;  %v12774_v54 = vld [vmem:[%s17259_s2 + $0x844] ss:$8 sps:$4 sm:$0xff]   ;;  %vm17549_vm1 = vmmov %vm17534_vm0 }
 0x337   : > { %10132 = vmatprep.subr.bf16.mxu1 %v12761_v49  ;;  %v12767_v49 = vld [vmem:[%s17259_s2 + $0x850] ss:$8 sps:$4 sm:$0xff]   ;;  %v9236_v29 = vshll.u32 %v15760_v38, 16  ;;  %v9248_v25 = vor.u32 %v9247_v14, %v9244_v17  ;;  %v9263_v27 = vshll.u32 %v15755_v63, 16  ;;  %v9205_v1 = vor.u32 %v9204_v21, %v9201_v39  ;;  %v16249_v39 = vld [vmem:[#allocation2 + $0x9c] ss:$8 sps:$4 sm:$0xff]   ;;  %vm17551_vm12 = vmmov %vm17534_vm0 }
 0x338   : > { %9585 = vmatpush2.bf16.msra.mxu0 %v12764_v32  ;;  %v17530_v32 = vrot.slane %v16132_v12, 2  ;;  %v16217_v4 = vpop.f32.mrf.mxu1  ;;  %v9213_v62 = vor.u32 %v9212_v11, %v9209_v53  ;;  %v9260_v12 = vshrl.u32 %v15755_v63, 16 }
 0x339   : > { %v9249_v63 = vsel %vm17533_vm9, %v9230_v10, %v9248_v25  ;;  %v9265_v14 = vrot.slane %v9263_v27, 3  ;;  %vm17557_vm9 = vmmov %vm17534_vm0 }
 0x33a   : > { %8375 = vmatmul.mubr.bf16.gmra.mxu0 %v8081_v42  ;;  %10133 = vmatpush1.bf16.msra.mxu1 %v12759_v52  ;;  %v8629_v50 = vsel %vm17531_vm7, %v17530_v32, %v15638_v37  ;;  %v9233_v52 = vshrl.u32 %v15760_v38, 16  ;;  %v12772_v37 = vld [vmem:[%s17259_s2 + $0x840] ss:$8 sps:$4 sm:$0xff]   ;;  %v9214_v42 = vsel %vm17532_vm4, %v9205_v1, %v9213_v62  ;;  %v16237_v53 = vpop.f32.mrf.mxu1  ;;  %vm17554_vm7 = vmmov %vm17536_vm2 }
 0x33b   : > { %9586 = vmatprep.mubr.bf16.mxu0 %v9231_v9  ;;  %10134 = vmatprep.subr.bf16.mxu1 %v12769_v58  ;;  %v5882_v28 = vpop.f32.mrf.mxu0  ;;  %v9238_v9 = vrot.slane %v9236_v29, 3  ;;  %vm17556_vm4 = vmmov %vm17536_vm2 }
 0x33c   : > { %v16215_v48 = vadd.f32 %v5882_v28, %v16128_v5  ;;  %v9235_v11 = vrot.slane %v9233_v52, 2  ;;  %v12783_v28 = vld [vmem:[%s17259_s2 + $0x824] ss:$8 sps:$4 sm:$0xff]   ;;  %v9281_v52 = vshll.u32 %v15779_v6, 16 }
 0x33d   : > { %8881 = vmatmul.mubr.bf16.gmra.mxu1 %v8629_v50  ;;  %v5884_v40 = vpop.f32.mrf.mxu0  ;;  %v12781_v50 = vld [vmem:[%s17259_s2 + $0x820] ss:$8 sps:$4 sm:$0xff]  }
 0x33e   : > { %8890 = vmatprep.mubr.bf16.mxu1 %v15627_v0  ;;  %10135 = vmatpush1.bf16.msra.mxu1 %v12767_v49  ;;  %v16226_v5 = vadd.f32 %v5884_v40, %v16134_v20  ;;  %v12777_v0 = vld [vmem:[%s17259_s2 + $0x834] ss:$8 sps:$4 sm:$0xff]   ;;  %v12775_v49 = vld [vmem:[%s17259_s2 + $0x830] ss:$8 sps:$4 sm:$0xff]   ;;  %v9239_v10 = vor.u32 %v9238_v9, %v9235_v11  ;;  %v9278_v40 = vshrl.u32 %v15779_v6, 16 }
 0x33f   : > { %10136 = vmatprep.subr.bf16.mxu1 %v12774_v54  ;;  %v5886_v58 = vpop.f32.mrf.mxu0  ;;  %v9251_v54 = vshrl.u32 %v15762_v16, 16 }
 0x340   : > { %v16234_v24 = vadd.f32 %v5886_v58, %v16146_v33  ;;  %v9262_v33 = vrot.slane %v9260_v12, 2 }
 0x341   : > { %v5888_v20 = vpop.f32.mrf.mxu0  ;;  %v9253_v12 = vrot.slane %v9251_v54, 2  ;;  %v9269_v54 = vshrl.u32 %v15784_v3, 16 }
 0x342   : > { %9587 = vmatmul.mubr.bf16.vlgmr.msra.gmra.mxu0 %v9214_v42  ;;  %10137 = vmatpush1.bf16.msra.mxu1 %v12772_v37  ;;  %v16244_v17 = vadd.f32 %v5888_v20, %v16158_v61  ;;  %v9254_v61 = vshll.u32 %v15762_v16, 16  ;;  %v9266_v32 = vor.u32 %v9265_v14, %v9262_v33  ;;  %v17305_v16 = vrot.slane %v16249_v39, 2  ;;  %v16289_v33 = vld [vmem:[#allocation2 + $0x24] ss:$16 sps:$4 sm:$0xff]  }
 0x343   : > { %9596 = vmatprep.mubr.bf16.mxu0 %v9249_v63  ;;  %10138 = vmatprep.subr.bf16.mxu1 %v12777_v0  ;;  %v9240_v37 = vsel %vm17534_vm0, %v9213_v62, %v9239_v10  ;;  %v12787_v0 = vld [vmem:[%s17259_s2 + $0x810] ss:$8 sps:$4 sm:$0xff]   ;;  %v9280_v42 = vrot.slane %v9278_v40, 2  ;;  %v9283_v20 = vrot.slane %v9281_v52, 3  ;;  %v12796_v62 = vld [vmem:[%s17259_s2 + $0x804] ss:$8 sps:$4 sm:$0xff]  }
 0x344   : > { %v9256_v27 = vrot.slane %v9254_v61, 3  ;;  %v9267_v58 = vsel %vm17535_vm10, %v9248_v25, %v9266_v32  ;;  %v8643_v25 = vsel %vm17536_vm2, %v15642_v23, %v17305_v16  ;;  %v9272_v61 = vshll.u32 %v15784_v3, 16  ;;  %v12794_v40 = vld [vmem:[%s17259_s2 + $0x800] ss:$8 sps:$4 sm:$0xff]   ;;  %vm17559_vm10 = vmmov %vm17536_vm2 }
 0x345   : > { %v16251_v21 = vpop.f32.mrf.mxu1  ;;  %8891 = vmatmul.mubr.bf16.gmra.mxu1 %v15654_v44  ;;  %v12789_v44 = vld [vmem:[%s17259_s2 + $0x814] ss:$8 sps:$4 sm:$0xff]   ;;  %v9284_v23 = vor.u32 %v9283_v20, %v9280_v42  ;;  %v9299_v52 = vshll.u32 %v16249_v39, 16  ;;  %v9271_v42 = vrot.slane %v9269_v54, 2  ;;  %v12806_v3 = vld [vmem:[%s17259_s2 + $0x8e0] ss:$8 sps:$4 sm:$0xff]  }
 0x346   : > { %8900 = vmatprep.mubr.bf16.mxu1 %v15658_v55  ;;  %10139 = vmatpush1.bf16.msra.mxu1 %v12775_v49  ;;  %v16287_v49 = vld [vmem:[#allocation2 + $0x98] ss:$8 sps:$4 sm:$0xff]   ;;  %v9274_v20 = vrot.slane %v9272_v61, 3 }
 0x347   : > { %v16262_v29 = vpop.f32.mrf.mxu1  ;;  %10140 = vmatprep.subr.bf16.mxu1 %v12783_v28  ;;  %v16297_v28 = vor.u32 %v9256_v27, %v9253_v12  ;;  %v8640_v27 = vrot.slane %v16287_v49, 2  ;;  %v9301_v16 = vrot.slane %v9299_v52, 3  ;;  %v16337_v61 = vld [vmem:[#allocation2 + $0x20] ss:$16 sps:$4 sm:$0xff]  }
 0x349   : > { %v16268_v55 = vpop.f32.mrf.mxu1 }
 0x34a   : > { %v5892_v1 = vpop.f32.mrf.mxu0  ;;  %9597 = vmatmul.mubr.bf16.gmra.mxu0 %v9240_v37  ;;  %10141 = vmatpush1.bf16.msra.mxu1 %v12781_v50  ;;  %v12801_v37 = vld [vmem:[%s17259_s2 + $0x8f4] ss:$8 sps:$4 sm:$0xff]  }
 0x34b   : > { %v16276_v11 = vadd.f32 %v5892_v1, %v16187_v18  ;;  %v16278_v9 = vpop.f32.mrf.mxu1  ;;  %9606 = vmatprep.mubr.bf16.mxu0 %v9267_v58  ;;  %10142 = vmatprep.subr.bf16.mxu1 %v12789_v44  ;;  %v8646_v1 = vrot.slane %v16289_v33, 2 }
 0x34c   : > { %v5894_v63 = vpop.f32.mrf.mxu0 }
 0x34d   : > { %v16292_v18 = vadd.f32 %v5894_v63, %v16201_v30  ;;  %v16294_v14 = vpop.f32.mrf.mxu1  ;;  %8901 = vmatmul.mubr.bf16.gmra.mxu1 %v15695_v26  ;;  %v9296_v30 = vshrl.u32 %v16249_v39, 16  ;;  %v9285_v63 = vsel %vm17538_vm3, %v9266_v32, %v9284_v23  ;;  %v8641_v32 = vsel %vm17539_vm5, %v15681_v2, %v8640_v27  ;;  %vm17561_vm3 = vmmov %vm17534_vm0 }
 0x34e   : > { %v5896_v50 = vpop.f32.mrf.mxu0  ;;  %8910 = vmatprep.mubr.bf16.mxu1 %v8643_v25  ;;  %10143 = vmatpush1.bf16.msra.mxu1 %v12787_v0  ;;  %v12799_v25 = vld [vmem:[%s17259_s2 + $0x8f0] ss:$8 sps:$4 sm:$0xff]   ;;  %vm17562_vm5 = vmmov %vm17536_vm2 }
 0x34f   : > { %v16307_v26 = vadd.f32 %v5896_v50, %v16217_v4  ;;  %v16309_v44 = vpop.f32.mrf.mxu1  ;;  %10144 = vmatprep.subr.bf16.mxu1 %v12796_v62  ;;  %v9258_v4 = vsel %vm17537_vm14, %v9239_v10, %v16297_v28  ;;  %v9298_v50 = vrot.slane %v9296_v30, 2  ;;  %v12808_v10 = vld [vmem:[%s17259_s2 + $0x8e4] ss:$8 sps:$4 sm:$0xff]   ;;  %v9290_v30 = vshll.u32 %v16287_v49, 16  ;;  %vm17560_vm14 = vmmov %vm17534_vm0 }
 0x350   : > { %v5898_v12 = vpop.f32.mrf.mxu0 }
 0x351   : > { %v16317_v58 = vadd.f32 %v5898_v12, %v16237_v53  ;;  %v16319_v0 = vpop.f32.mrf.mxu1  ;;  %v9302_v2 = vor.u32 %v9301_v16, %v9298_v50  ;;  %v8644_v16 = vrot.slane %v16337_v61, 2  ;;  %v9292_v50 = vrot.slane %v9290_v30, 3 }
 0x352   : > { %v5902_v62 = vpop.f32.mrf.mxu0  ;;  %9607 = vmatmul.mubr.bf16.gmra.mxu0 %v9258_v4  ;;  %10145 = vmatpush1.bf16.msra.mxu1 %v12794_v40  ;;  %v9287_v40 = vshrl.u32 %v16287_v49, 16  ;;  %v9314_v49 = vshrl.u32 %v16289_v33, 16 }
 0x353   : > { %v16328_v53 = vadd.f32 %v5902_v62, %v16251_v21  ;;  %v16330_v12 = vpop.f32.mrf.mxu1  ;;  %9616 = vmatprep.mubr.bf16.mxu0 %v9285_v63  ;;  %10146 = vmatprep.subr.bf16.mxu1 %v12801_v37  ;;  %v17540_v37 = vrot.slane %v16249_v39, 2  ;;  %v9275_v62 = vor.u32 %v9274_v20, %v9271_v42  ;;  %v12811_v39 = vld [vmem:[%s17259_s2 + $0x8d4] ss:$8 sps:$4 sm:$0xff]  }
 0x354   : > { %v5904_v54 = vpop.f32.mrf.mxu0  ;;  %v9316_v20 = vrot.slane %v9314_v49, 2 }
 0x355   : > { %v16342_v21 = vadd.f32 %v5904_v54, %v16262_v29  ;;  %v16344_v52 = vpop.f32.mrf.mxu1  ;;  %8911 = vmatmul.mubr.bf16.gmra.mxu1 %v8641_v32  ;;  %v8647_v4 = vsel %vm17541_vm15, %v17540_v37, %v8646_v1  ;;  %v9317_v29 = vshll.u32 %v16289_v33, 16  ;;  %vm17563_vm15 = vcmask 1044480  }
 0x356   : > { %v5906_v63 = vpop.f32.mrf.mxu0  ;;  %8920 = vmatprep.mubr.bf16.mxu1 %v8647_v4  ;;  %10147 = vmatpush2.bf16.msra.mxu1 %v12799_v25  ;;  %v9289_v25 = vrot.slane %v9287_v40, 2  ;;  %v9303_v4 = vsel %vm17543_vm6, %v9284_v23, %v9302_v2  ;;  %v17546_v23 = vrot.slane %v15804_v13, 2  ;;  %vm17565_vm6 = vmmov %vm17534_vm0 }
 0x357   : > { %v16355_v54 = vadd.f32 %v5906_v63, %v16268_v55  ;;  %v16357_v32 = vpop.f32.mrf.mxu1  ;;  %10148 = vmatprep.subr.bf16.mxu1 %v12808_v10  ;;  %v9276_v55 = vsel %vm17542_vm13, %v16297_v28, %v9275_v62  ;;  %v12809_v63 = vld [vmem:[%s17259_s2 + $0x8d0] ss:$8 sps:$4 sm:$0xff]   ;;  %v9319_v40 = vrot.slane %v9317_v29, 3  ;;  %v12815_v28 = vld [vmem:[%s17259_s2 + $0x8c4] ss:$8 sps:$4 sm:$0xff]   ;;  %vm17564_vm13 = vmmov %vm17534_vm0 }
 0x358   : > { %v5908_v42 = vpop.f32.mrf.mxu0  ;;  %v16387_v49 = vor.u32 %v9292_v50, %v9289_v25  ;;  %v12818_v50 = vld [vmem:[%s17259_s2 + $0x8b4] ss:$8 sps:$4 sm:$0xff]  }
 0x359   : > { %v16365_v37 = vadd.f32 %v5908_v42, %v16278_v9  ;;  %v16367_v33 = vpop.f32.mrf.mxu1  ;;  %v16398_v6 = vor.u32 %v9319_v40, %v9316_v20 }
 0x35a   : > { %v5912_v10 = vpop.f32.mrf.mxu0  ;;  %9617 = vmatmul.mubr.bf16.gmra.mxu0 %v9276_v55  ;;  %10149 = vmatpush2.bf16.msra.mxu1 %v12806_v3  ;;  %v8645_v3 = vsel %vm17545_vm11, %v8640_v27, %v8644_v16  ;;  %v8651_v55 = vsel %vm17547_vm8, %v8646_v1, %v17546_v23  ;;  %v9335_v27 = vshll.u32 %v15804_v13, 16  ;;  %v12813_v1 = vld [vmem:[%s17259_s2 + $0x8c0] ss:$8 sps:$4 sm:$0xff]   ;;  %v9294_v20 = vsel %vm17549_vm1, %v9275_v62, %v16387_v49  ;;  %v12816_v62 = vld [vmem:[%s17259_s2 + $0x8b0] ss:$8 sps:$4 sm:$0xff]   ;;  %vm17566_vm11 = vmmov %vm17563_vm15 }
 0x35b   : > { %v16376_v30 = vadd.f32 %v5912_v10, %v16294_v14  ;;  %v16378_v9 = vpop.f32.mrf.mxu1  ;;  %9626 = vmatprep.mubr.bf16.mxu0 %v9303_v4  ;;  %10150 = vmatprep.subr.bf16.mxu1 %v12811_v39  ;;  %v9305_v14 = vshrl.u32 %v16337_v61, 16  ;;  %v9308_v39 = vshll.u32 %v16337_v61, 16  ;;  %v9332_v4 = vshrl.u32 %v15804_v13, 16  ;;  %vm17568_vm8 = vmmov %vm17566_vm11 }
 0x35c   : > { %v5914_v42 = vpop.f32.mrf.mxu0  ;;  %vm17569_vm1 = vmmov %vm17534_vm0 }
 0x35d   : > { %17544 = vst [vmem:[#allocation25_spill] sm:$0xff] %v16376_v30  ;;  %v16391_v29 = vadd.f32 %v5914_v42, %v16309_v44  ;;  %v16393_v10 = vpop.f32.mrf.mxu1  ;;  %8921 = vmatmul.mubr.bf16.gmra.mxu1 %v8645_v3  ;;  %v9307_v40 = vrot.slane %v9305_v14, 2  ;;  %v16415_v3 = vld [vmem:[#allocation2 + $0x8] sm:$0x33]  ;;  %v9310_v23 = vrot.slane %v9308_v39, 3  ;;  %v17553_v39 = vrot.slane %v15806_v22, 2 }
 0x35e   : > { %v5916_v30 = vpop.f32.mrf.mxu0  ;;  %8930 = vmatprep.mubr.bf16.mxu1 %v8651_v55  ;;  %10151 = vmatpush2.bf16.msra.mxu1 %v12809_v63  ;;  %v8654_v63 = vrot.slane %v15817_v35, 2  ;;  %v9337_v55 = vrot.slane %v9335_v27, 3  ;;  %v11762_v27 = vcombine.high %v16415_v3, %v16415_v3 }
 0x35f   : > { %v16404_v44 = vadd.f32 %v5916_v30, %v16319_v0  ;;  %v16406_v25 = vpop.f32.mrf.mxu1  ;;  %10152 = vmatprep.subr.bf16.mxu1 %v12815_v28  ;;  %v9334_v28 = vrot.slane %v9332_v4, 2  ;;  %v8649_v4 = vsel %vm17554_vm7, %v8644_v16, %v17553_v39  ;;  %vm17578_vm7 = vmmov %vm17568_vm8 }
 0x360   : > { %v5918_v42 = vpop.f32.mrf.mxu0 }
 0x361   : > { %17548 = vst [vmem:[#allocation26_spill] sm:$0xff] %v16404_v44  ;;  %v16418_v0 = vadd.f32 %v5918_v42, %v16330_v12  ;;  %v16420_v30 = vpop.f32.mrf.mxu1  ;;  %v9321_v44 = vsel %vm17551_vm12, %v9302_v2, %v16398_v6  ;;  %v12822_v2 = vld [vmem:[%s17259_s2 + $0x8a4] ss:$8 sps:$4 sm:$0xff]   ;;  %v12851_v42 = vld [vmem:[#allocation2 + $0x90] ss:$-88 sps:$4 sm:$0xff]   ;;  %vm17571_vm12 = vmmov %vm17568_vm8 }
 0x362   : > { %v5922_v61 = vpop.f32.mrf.mxu0  ;;  %9627 = vmatmul.mubr.bf16.gmra.mxu0 %v9294_v20  ;;  %10153 = vmatpush2.bf16.msra.mxu1 %v12813_v1  ;;  %v5977_v1 = vadd.f32 %v15979_v36, %v15830_v57  ;;  %v9323_v16 = vshrl.u32 %v12851_v42, 16  ;;  %v9350_v57 = vshrl.u32 %v15817_v35, 16  ;;  %v5978_v36 = vadd.f32 %v16002_v47, %v15863_v46  ;;  %v12825_v46 = vld [vmem:[%s17259_s2 + $0x894] ss:$8 sps:$4 sm:$0xff]   ;;  %v9087_v47 = vld [vmem:[#allocation2 + $0x8] sm:$0x77] }
 0x363   : > { %17550 = vst [vmem:[#allocation15_spill] sm:$0xff] %v16418_v0  ;;  %v16428_v14 = vadd.f32 %v5922_v61, %v16344_v52  ;;  %v16430_v12 = vpop.f32.mrf.mxu1  ;;  %9636 = vmatprep.mubr.bf16.mxu0 %v9321_v44  ;;  %10154 = vmatprep.subr.bf16.mxu1 %v12818_v50  ;;  %v17555_v44 = vrot.slane %v15804_v13, 2  ;;  %v9326_v50 = vshll.u32 %v12851_v42, 16  ;;  %v16452_v0 = vor.u32 %v9337_v55, %v9334_v28 }
 0x364   : > { %v5924_v52 = vpop.f32.mrf.mxu0  ;;  %v8652_v28 = vrot.slane %v15832_v31, 2  ;;  %v8658_v55 = vrot.slane %v11762_v27, 2 }
 0x365   : > { %17552 = vst [vmem:[#allocation17_spill] sm:$0xff] %v16428_v14  ;;  %v8655_v61 = vsel %vm17556_vm4, %v17555_v44, %v8654_v63  ;;  %v16448_v20 = vadd.f32 %v5924_v52, %v16357_v32  ;;  %v6428_v39 = vpop.f32.mrf.mxu1  ;;  %8931 = vmatmul.mubr.bf16.gmra.mxu1 %v8649_v4  ;;  %v16450_v14 = vor.u32 %v9310_v23, %v9307_v40  ;;  %v12820_v32 = vld [vmem:[%s17259_s2 + $0x8a0] ss:$8 sps:$4 sm:$0xff]   ;;  %v9353_v4 = vshll.u32 %v15817_v35, 16  ;;  %vm17584_vm4 = vmmov %vm17578_vm7 }
 0x366   : > { %v16457_v13 = vadd.f32 %v6428_v39, %v5977_v1  ;;  %v5926_v44 = vpop.f32.mrf.mxu0  ;;  %8940 = vmatprep.mubr.bf16.mxu1 %v8655_v61  ;;  %10155 = vmatpush2.bf16.msra.mxu1 %v12816_v62  ;;  %v5979_v62 = vadd.f32 %v16027_v19, %v15905_v7  ;;  %v9325_v61 = vrot.slane %v9323_v16, 2  ;;  %v9328_v42 = vrot.slane %v9326_v50, 3  ;;  %v12823_v50 = vld [vmem:[%s17259_s2 + $0x890] ss:$8 sps:$4 sm:$0xff]  }
 0x367   : > { %v16464_v40 = vadd.f32 %v5926_v44, %v16367_v33  ;;  %v6430_v23 = vpop.f32.mrf.mxu1  ;;  %10156 = vmatprep.subr.bf16.mxu1 %v12822_v2  ;;  %v9312_v27 = vsel %vm17557_vm9, %v16387_v49, %v16450_v14  ;;  %v9339_v2 = vsel %vm17534_vm0, %v16398_v6, %v16452_v0  ;;  %v9352_v44 = vrot.slane %v9350_v57, 2  ;;  %vm17585_vm9 = vmmov %vm17584_vm4 }
 0x368   : > { %v16472_v1 = vadd.f32 %v6430_v23, %v5978_v36  ;;  %v5928_v52 = vpop.f32.mrf.mxu0  ;;  %v5980_v7 = vadd.f32 %v16049_v51, %v15927_v43  ;;  %v11846_v36 = vcombine.high %v9087_v47, %v9087_v47  ;;  %v11761_v6 = vcombine.low %v16415_v3, %v16415_v3  ;;  %v12835_v43 = vld [vmem:[%s17259_s2 + $0x884] ss:$8 sps:$4 sm:$0xff]   ;;  %vm17587_vm0 = vmmov %vm17584_vm4 }
 0x369   : > { %v16475_v33 = vadd.f32 %v5928_v52, %v16378_v9  ;;  %v6432_v39 = vpop.f32.mrf.mxu1  ;;  %v9355_v9 = vrot.slane %v9353_v4, 3  ;;  %v16505_v4 = vor.u32 %v9328_v42, %v9325_v61 }
 0x36a   : > { %v16485_v19 = vadd.f32 %v6432_v39, %v5979_v62  ;;  %v5932_v16 = vpop.f32.mrf.mxu0  ;;  %9637 = vmatmul.mubr.bf16.gmra.mxu0 %v9312_v27  ;;  %10157 = vmatpush2.bf16.msra.mxu1 %v12820_v32  ;;  %v17558_v32 = vrot.slane %v15806_v22, 2  ;;  %v12829_v62 = vld [vmem:[#allocation2 + $0x64] ss:$-56 sps:$4 sm:$0xf8]   ;;  %v8659_v39 = vsel %vm17536_vm2, %v8654_v63, %v8658_v55  ;;  %v9341_v27 = vshrl.u32 %v15832_v31, 16  ;;  %vm17592_vm2 = vmmov %vm17587_vm0 }
 0x36b   : > { %v16491_v49 = vadd.f32 %v5932_v16, %v16393_v10  ;;  %v6434_v23 = vpop.f32.mrf.mxu1  ;;  %9646 = vmatprep.mubr.bf16.mxu0 %v9339_v2  ;;  %10158 = vmatprep.subr.bf16.mxu1 %v12825_v46  ;;  %v16507_v46 = vld [vmem:[#allocation2 + $0x44] ss:$56 sps:$4 sm:$0xff]   ;;  %v9344_v2 = vshll.u32 %v15832_v31, 16  ;;  %v9356_v42 = vor.u32 %v9355_v9, %v9352_v44  ;;  %v9368_v16 = vshrl.u32 %v11846_v36, 16 }
 0x36c   : > { %v16498_v51 = vadd.f32 %v6434_v23, %v5980_v7  ;;  %v5934_v57 = vpop.f32.mrf.mxu0  ;;  %v8653_v10 = vsel %vm17559_vm10, %v17558_v32, %v8652_v28  ;;  %v9371_v23 = vshll.u32 %v11846_v36, 16  ;;  %v8656_v55 = vrot.slane %v11761_v6, 2  ;;  %vm17590_vm10 = vmmov %vm17587_vm0 }
 0x36d   : > { %v16510_v3 = vadd.f32 %v5934_v57, %v16406_v25  ;;  %v6438_v52 = vpop.f32.mrf.mxu1  ;;  %8941 = vmatmul.mubr.bf16.gmra.mxu1 %v8653_v10  ;;  %v12833_v25 = vld [vmem:[%s17259_s2 + $0x880] ss:$8 sps:$4 sm:$0xff]   ;;  %v9330_v44 = vsel %vm17560_vm14, %v16450_v14, %v16505_v4  ;;  %v9917_v9 = vrot.slane %v12829_v62, 3  ;;  %vm17596_vm14 = vmmov %vm17587_vm0 }
 0x36e   : > { %v16518_v7 = vadd.f32 %v6438_v52, %v16072_v41  ;;  %v5936_v61 = vpop.f32.mrf.mxu0  ;;  %8950 = vmatprep.mubr.bf16.mxu1 %v8659_v39  ;;  %10159 = vmatpush2.bf16.msra.mxu1 %v12823_v50  ;;  %v9918_v50 = vrot.slane %v16507_v46, 3  ;;  %v9343_v52 = vrot.slane %v9341_v27, 2  ;;  %v11845_v39 = vcombine.low %v9087_v47, %v9087_v47  ;;  %v12830_v47 = vld [vmem:[#allocation2 + $0x40] ss:$56 sps:$4 sm:$0xff]  }
 0x36f   : > { %v16524_v57 = vadd.f32 %v5936_v61, %v16420_v30  ;;  %v6440_v63 = vpop.f32.mrf.mxu1  ;;  %10160 = vmatprep.subr.bf16.mxu1 %v12835_v43  ;;  %v9346_v30 = vrot.slane %v9344_v2, 3  ;;  %v9370_v61 = vrot.slane %v9368_v16, 2  ;;  %v9373_v14 = vrot.slane %v9371_v23, 3 }
 0x370   : > { %v6558_v32 = vadd.f32 %v6440_v63, %v16085_v34  ;;  %v5938_v41 = vpop.f32.mrf.mxu0  ;;  %v9357_v34 = vsel %vm17561_vm3, %v16452_v0, %v9356_v42  ;;  %v9919_v2 = vsel %vm17563_vm15, %v9917_v9, %v9918_v50  ;;  %v9362_v23 = vshll.u32 %v11845_v39, 16  ;;  %vm17598_vm3 = vmmov %vm17587_vm0 }
 0x371   : > { %v16532_v10 = vadd.f32 %v5938_v41, %v16430_v12  ;;  %v6442_v36 = vpop.f32.mrf.mxu1  ;;  %v9347_v16 = vor.u32 %v9346_v30, %v9343_v52  ;;  %vm17608_vm15 = vmmov %vm17562_vm5 }
 0x372   : > { %v6559_v6 = vadd.f32 %v6442_v36, %v16102_v60  ;;  %v7004_v43 = vpop.f32.mrf.mxu0  ;;  %9647 = vmatmul.mubr.bf16.gmra.mxu0 %v9330_v44  ;;  %10161 = vmatpush2.bf16.msra.mxu1 %v12833_v25  ;;  %v8657_v60 = vsel %vm17562_vm5, %v8652_v28, %v8656_v55  ;;  %v9374_v44 = vor.u32 %v9373_v14, %v9370_v61  ;;  %v9915_v55 = vrot.slane %v12830_v47, 3 }
 0x373   : > { %v16538_v62 = vadd.f32 %v7004_v43, %v16457_v13  ;;  %v6444_v46 = vpop.f32.mrf.mxu1  ;;  %9656 = vmatprep.mubr.bf16.mxu0 %v9357_v34  ;;  %v9359_v13 = vshrl.u32 %v11845_v39, 16  ;;  %v9348_v52 = vsel %vm17564_vm13, %v16505_v4, %v9347_v16  ;;  %v9364_v39 = vrot.slane %v9362_v23, 3  ;;  %vm17609_vm13 = vmmov %vm17562_vm5 }
 0x374   : > { %v6560_v12 = vadd.f32 %v6444_v46, %v16114_v56  ;;  %v7006_v27 = vpop.f32.mrf.mxu0  ;;  %v12827_v56 = vld [vmem:[#allocation2 + $0x60] ss:$-56 sps:$4 sm:$0xf8]  }
 0x375   : > { %v16546_v0 = vadd.f32 %v7006_v27, %v16472_v1  ;;  %v6448_v25 = vpop.f32.mrf.mxu1  ;;  %8951 = vmatmul.mubr.bf16.gmra.mxu1 %v8657_v60  ;;  %v9361_v30 = vrot.slane %v9359_v13, 2 }
 0x376   : > { %v6561_v63 = vadd.f32 %v6448_v25, %v16152_v8  ;;  %v7008_v41 = vpop.f32.mrf.mxu0  ;;  %10162 = vmatprep.mubr.bf16.mxu1 %v9919_v2  ;;  %v9914_v8 = vrot.slane %v12827_v56, 3 }
 0x377   : > { %v16550_v36 = vadd.f32 %v7008_v41, %v16485_v19  ;;  %v6450_v28 = vpop.f32.mrf.mxu1  ;;  %v9375_v19 = vsel %vm17565_vm6, %v9356_v42, %v9374_v44  ;;  %v9365_v25 = vor.u32 %v9364_v39, %v9361_v30  ;;  %vm17610_vm6 = vcmask 1043456  }
 0x378   : > { %v7010_v9 = vpop.f32.mrf.mxu0  ;;  %v9916_v60 = vsel %vm17566_vm11, %v9914_v8, %v9915_v55  ;;  %vm17611_vm11 = vmmov %vm17562_vm5 }
 0x379   : > { %v16553_v1 = vadd.f32 %v7010_v9, %v16498_v51  ;;  %v6452_v43 = vpop.f32.mrf.mxu1  ;;  %v9366_v44 = vsel %vm17569_vm1, %v9347_v16, %v9365_v25  ;;  %v6526_v9 = vld [vmem:[#allocation4 + $0x110] sm:$0xff]  ;;  %v17573_v25 = vld [vmem:[#allocation10_spill] sm:$0xff]  ;;  %vm17613_vm1 = vmmov %vm17610_vm6 }
 0x37a   : > { %v6563_v34 = vadd.f32 %v6452_v43, %v16178_v15  ;;  %v7014_v46 = vpop.f32.mrf.mxu0  ;;  %9657 = vmatmul.mubr.bf16.gmra.mxu0 %v9348_v52  ;;  %v17567_v15 = vrot.slane %v15758_v59, 3  ;;  %v6562_v43 = vadd.f32 %v6526_v9, %v6450_v28 }
 0x37b   : > { %v16560_v61 = vadd.f32 %v7014_v46, %v16518_v7  ;;  %v6454_v14 = vpop.f32.mrf.mxu1  ;;  %9666 = vmatprep.mubr.bf16.mxu0 %v9375_v19  ;;  %v17572_v46 = vld [vmem:[#allocation9_spill] sm:$0xff] }
 0x37c   : > { %v6564_v51 = vadd.f32 %v6454_v14, %v16193_v45  ;;  %v7016_v27 = vpop.f32.mrf.mxu0  ;;  %v9923_v2 = vsel %vm17568_vm8, %v9918_v50, %v17567_v15  ;;  %vm17612_vm8 = vmmov %vm17610_vm6 }
 0x37d   : > { %v16564_v4 = vadd.f32 %v7016_v27, %v6558_v32  ;;  %v6458_v47 = vpop.f32.mrf.mxu1  ;;  %10163 = vmatmul.mubr.bf16.vlgmr.msra.gmra.mxu1 %v9916_v60 }
 0x37e   : > { %v6565_v42 = vadd.f32 %v6458_v47, %v16215_v48  ;;  %v7018_v7 = vpop.f32.mrf.mxu0  ;;  %10172 = vmatprep.mubr.bf16.mxu1 %v9923_v2 }
 0x37f   : > { %v16570_v13 = vadd.f32 %v7018_v7, %v6559_v6  ;;  %v6460_v23 = vpop.f32.mrf.mxu1  ;;  %v12838_v7 = vld [vmem:[#allocation2 + $0x9c] ss:$8 sps:$4 sm:$0xff]  }
 0x380   : > { %v6566_v45 = vadd.f32 %v6460_v23, %v16226_v5  ;;  %v7020_v41 = vpop.f32.mrf.mxu0  ;;  %v17570_v5 = vrot.slane %v15760_v38, 3  ;;  %v17574_v23 = vld [vmem:[#allocation13_spill] sm:$0xff] }
 0x381   : > { %v16573_v56 = vadd.f32 %v7020_v41, %v6560_v12  ;;  %v6462_v32 = vpop.f32.mrf.mxu1 }
 0x382   : > { %v6567_v59 = vadd.f32 %v6462_v32, %v16234_v24  ;;  %v7024_v50 = vpop.f32.mrf.mxu0  ;;  %9667 = vmatmul.mubr.bf16.gmra.mxu0 %v9366_v44  ;;  %v9921_v12 = vsel %vm17571_vm12, %v9915_v55, %v17570_v5  ;;  %v12840_v5 = vld [vmem:[#allocation2 + $0x98] ss:$8 sps:$4 sm:$0xff]   ;;  %vm17614_vm12 = vcmask 1041408  }
 0x383   : > { %v16577_v48 = vadd.f32 %v7024_v50, %v6561_v63  ;;  %v6464_v52 = vpop.f32.mrf.mxu1 }
 0x384   : > { %v6568_v6 = vadd.f32 %v6464_v52, %v16244_v17  ;;  %v7026_v30 = vpop.f32.mrf.mxu0 }
 0x385   : > { %v16583_v39 = vadd.f32 %v7026_v30, %v6562_v43  ;;  %v6468_v8 = vpop.f32.mrf.mxu1  ;;  %10173 = vmatmul.mubr.bf16.gmra.mxu1 %v9921_v12 }
 0x386   : > { %v6569_v16 = vadd.f32 %v6468_v8, %v16276_v11  ;;  %v7028_v24 = vpop.f32.mrf.mxu0  ;;  %10182 = vmatprep.mubr.bf16.mxu1 %v17572_v46  ;;  %v17575_v8 = vld [vmem:[#allocation14_spill] sm:$0xff] }
 0x387   : > { %v16587_v28 = vadd.f32 %v7028_v24, %v6563_v34  ;;  %v6470_v63 = vpop.f32.mrf.mxu1  ;;  %v12841_v46 = vld [vmem:[#allocation2 + $0x24] ss:$16 sps:$4 sm:$0xff]  }
 0x388   : > { %v6570_v19 = vadd.f32 %v6470_v63, %v16292_v18  ;;  %v7030_v17 = vpop.f32.mrf.mxu0  ;;  %v17579_v63 = vld [vmem:[#allocation25_spill] sm:$0xff] }
 0x389   : > { %v16590_v14 = vadd.f32 %v7030_v17, %v6564_v51  ;;  %v6472_v38 = vpop.f32.mrf.mxu1 }
 0x38a   : > { %v6571_v55 = vadd.f32 %v6472_v38, %v16307_v26  ;;  %v7034_v27 = vpop.f32.mrf.mxu0 }
 0x38b   : > { %v16593_v60 = vadd.f32 %v7034_v27, %v6565_v42  ;;  %v6474_v47 = vpop.f32.mrf.mxu1 }
 0x38c   : > { %v6572_v11 = vadd.f32 %v6474_v47, %v16317_v58  ;;  %v7036_v15 = vpop.f32.mrf.mxu0 }
 0x38d   : > { %v16596_v2 = vadd.f32 %v7036_v15, %v6566_v45  ;;  %v6478_v34 = vpop.f32.mrf.mxu1  ;;  %10183 = vmatmul.mubr.bf16.gmra.mxu1 %v17573_v25  ;;  %v9934_v45 = vrot.slane %v12838_v7, 3  ;;  %v17580_v25 = vld [vmem:[#allocation26_spill] sm:$0xff] }
 0x38e   : > { %v6573_v18 = vadd.f32 %v6478_v34, %v16328_v53  ;;  %v7038_v51 = vpop.f32.mrf.mxu0  ;;  %10192 = vmatprep.mubr.bf16.mxu1 %v17574_v23  ;;  %v9938_v34 = vrot.slane %v12841_v46, 3 }
 0x38f   : > { %v16601_v41 = vadd.f32 %v7038_v51, %v6567_v59  ;;  %v6480_v26 = vpop.f32.mrf.mxu1 }
 0x390   : > { %v6574_v42 = vadd.f32 %v6480_v26, %v16342_v21  ;;  %v7040_v32 = vpop.f32.mrf.mxu0  ;;  %v17576_v21 = vld [vmem:[#allocation23_spill] sm:$0xff] }
 0x391   : > { %v16604_v44 = vadd.f32 %v7040_v32, %v6568_v6  ;;  %v6482_v58 = vpop.f32.mrf.mxu1  ;;  %v17577_v6 = vrot.slane %v17576_v21, 3  ;;  %v17581_v32 = vld [vmem:[#allocation15_spill] sm:$0xff] }
 0x392   : > { %v6575_v9 = vadd.f32 %v6482_v58, %v16355_v54  ;;  %v7044_v50 = vpop.f32.mrf.mxu0 }
 0x393   : > { %v16607_v43 = vadd.f32 %v7044_v50, %v6569_v16  ;;  %v6484_v52 = vpop.f32.mrf.mxu1  ;;  %v9935_v24 = vsel %vm17578_vm7, %v17577_v6, %v9934_v45  ;;  %vm17615_vm7 = vmmov %vm17613_vm1 }
 0x394   : > { %v6576_v53 = vadd.f32 %v6484_v52, %v16365_v37  ;;  %v7046_v30 = vpop.f32.mrf.mxu0 }
 0x395   : > { %v16610_v59 = vadd.f32 %v7046_v30, %v6570_v19  ;;  %v6488_v12 = vpop.f32.mrf.mxu1  ;;  %10193 = vmatmul.mubr.bf16.gmra.mxu1 %v17575_v8  ;;  %v9932_v19 = vrot.slane %v12840_v5, 3  ;;  %v9939_v5 = vsel %vm17585_vm9, %v9934_v45, %v9938_v34  ;;  %v17586_v8 = vld [vmem:[#allocation17_spill] sm:$0xff] }
 0x396   : > { %v6577_v54 = vadd.f32 %v6488_v12, %v17579_v63  ;;  %v7048_v17 = vpop.f32.mrf.mxu0  ;;  %10202 = vmatprep.mubr.bf16.mxu1 %v9935_v24 }
 0x397   : > { %v16617_v16 = vadd.f32 %v7048_v17, %v6571_v55  ;;  %v6490_v38 = vpop.f32.mrf.mxu1  ;;  %v17582_v55 = vld [vmem:[#allocation7_spill] sm:$0xff] }
 0x398   : > { %v6578_v37 = vadd.f32 %v6490_v38, %v16391_v29  ;;  %v7050_v27 = vpop.f32.mrf.mxu0  ;;  %v17583_v52 = vrot.slane %v17582_v55, 3  ;;  %v12843_v29 = vld [vmem:[#allocation2 + $0x20] ss:$16 sps:$4 sm:$0xff]  }
 0x399   : > { %v16620_v47 = vadd.f32 %v7050_v27, %v6572_v11  ;;  %v6492_v15 = vpop.f32.mrf.mxu1  ;;  %v9936_v17 = vrot.slane %v12843_v29, 3 }
 0x39a   : > { %v6579_v7 = vadd.f32 %v6492_v15, %v17580_v25  ;;  %v7054_v51 = vpop.f32.mrf.mxu0  ;;  %v9933_v30 = vsel %vm17584_vm4, %v17583_v52, %v9932_v19  ;;  %vm17616_vm4 = vmmov %vm17614_vm12 }
 0x39b   : > { %v16623_v23 = vadd.f32 %v7054_v51, %v6573_v18  ;;  %v6494_v26 = vpop.f32.mrf.mxu1  ;;  %vm17617_vm9 = vmmov %vm17616_vm4 }
 0x39c   : > { %v6580_v58 = vadd.f32 %v6494_v26, %v17581_v32  ;;  %v7056_v50 = vpop.f32.mrf.mxu0 }
 0x39d   : > { %v16629_v12 = vadd.f32 %v7056_v50, %v6574_v42  ;;  %v6498_v11 = vpop.f32.mrf.mxu1  ;;  %10203 = vmatmul.mubr.bf16.gmra.mxu1 %v9933_v30 }
 0x39e   : > { %v6581_v21 = vadd.f32 %v6498_v11, %v17586_v8  ;;  %v7058_v6 = vpop.f32.mrf.mxu0  ;;  %10212 = vmatprep.mubr.bf16.mxu1 %v9939_v5  ;;  %v9803_v8 = vld [vmem:[#allocation2 + $0x8] sm:$0x77] }
 0x39f   : > { %v16633_v18 = vadd.f32 %v7058_v6, %v6575_v9  ;;  %v6500_v24 = vpop.f32.mrf.mxu1  ;;  %v9937_v9 = vsel %vm17587_vm0, %v9932_v19, %v9936_v17  ;;  %vm17618_vm0 = vmmov %vm17616_vm4 }
 0x3a0   : > { %v6582_v46 = vadd.f32 %v6500_v24, %v16448_v20  ;;  %v7060_v63 = vpop.f32.mrf.mxu0  ;;  %v17588_v20 = vld [vmem:[#allocation8_spill] sm:$0xff] }
 0x3a1   : > { %v16636_v38 = vadd.f32 %v7060_v63, %v6576_v53  ;;  %v6502_v27 = vpop.f32.mrf.mxu1  ;;  %v17589_v55 = vrot.slane %v17588_v20, 3 }
 0x3a2   : > { %v6583_v42 = vadd.f32 %v6502_v27, %v16464_v40  ;;  %v7064_v15 = vpop.f32.mrf.mxu0 }
 0x3a3   : > { %v16639_v25 = vadd.f32 %v7064_v15, %v6577_v54  ;;  %v6504_v45 = vpop.f32.mrf.mxu1  ;;  %v9943_v53 = vsel %vm17590_vm10, %v9938_v34, %v17589_v55  ;;  %vm17623_vm10 = vmmov %vm17562_vm5 }
 0x3a4   : > { %v6584_v51 = vadd.f32 %v6504_v45, %v16475_v33  ;;  %v7066_v26 = vpop.f32.mrf.mxu0  ;;  %v17593_v45 = vld [vmem:[#allocation16_spill] sm:$0xff] }
 0x3a5   : > { %v16643_v32 = vadd.f32 %v7066_v26, %v6578_v37  ;;  %v6508_v50 = vpop.f32.mrf.mxu1  ;;  %10213 = vmatmul.mubr.bf16.gmra.mxu1 %v9937_v9 }
 0x3a6   : > { %v6585_v52 = vadd.f32 %v6508_v50, %v16491_v49  ;;  %v7068_v40 = vpop.f32.mrf.mxu0  ;;  %10222 = vmatprep.mubr.bf16.mxu1 %v9943_v53 }
 0x3a7   : > { %v16649_v54 = vadd.f32 %v7068_v40, %v6579_v7  ;;  %v6510_v30 = vpop.f32.mrf.mxu1  ;;  %v17591_v7 = vrot.slane %v15806_v22, 3 }
 0x3a8   : > { %v6586_v33 = vadd.f32 %v6510_v30, %v16510_v3  ;;  %v7070_v29 = vpop.f32.mrf.mxu0  ;;  %v11929_v30 = vcombine.low %v9803_v8, %v9803_v8 }
 0x3a9   : > { %v16652_v11 = vadd.f32 %v7070_v29, %v6580_v58  ;;  %v6512_v37 = vpop.f32.mrf.mxu1  ;;  %v9941_v63 = vsel %vm17592_vm2, %v9936_v17, %v17591_v7  ;;  %v11930_v58 = vcombine.high %v9803_v8, %v9803_v8  ;;  %vm17626_vm2 = vmmov %vm17562_vm5 }
 0x3aa   : > { %v6587_v19 = vadd.f32 %v6512_v37, %v16524_v57  ;;  %v7074_v5 = vpop.f32.mrf.mxu0  ;;  %v17594_v37 = vld [vmem:[#allocation24_spill] sm:$0xff]  ;;  %v9948_v8 = vrot.slane %v11929_v30, 3 }
 0x3ab   : > { %v16655_v6 = vadd.f32 %v7074_v5, %v6581_v21  ;;  %v6514_v34 = vpop.f32.mrf.mxu1  ;;  %v9950_v17 = vrot.slane %v11930_v58, 3 }
 0x3ac   : > { %v6588_v49 = vadd.f32 %v6514_v34, %v16532_v10  ;;  %v7076_v24 = vpop.f32.mrf.mxu0 }
 0x3ad   : > { %v16661_v27 = vadd.f32 %v7076_v24, %v6582_v46  ;;  %v7720_v3 = vpop.f32.mrf.mxu1  ;;  %10223 = vmatmul.mubr.bf16.gmra.mxu1 %v9941_v63 }
 0x3ae   : > { %v7845_v15 = vadd.f32 %v7720_v3, %v16538_v62  ;;  %v7078_v57 = vpop.f32.mrf.mxu0  ;;  %10232 = vmatprep.mubr.bf16.mxu1 %v17593_v45 }
 0x3af   : > { %v16665_v21 = vadd.f32 %v7078_v57, %v6583_v42  ;;  %v7722_v26 = vpop.f32.mrf.mxu1 }
 0x3b0   : > { %v7846_v10 = vadd.f32 %v7722_v26, %v16546_v0  ;;  %v7080_v9 = vpop.f32.mrf.mxu0  ;;  %v17595_v0 = vrot.slane %v15817_v35, 3 }
 0x3b1   : > { %v16668_v50 = vadd.f32 %v7080_v9, %v6584_v51  ;;  %v7724_v22 = vpop.f32.mrf.mxu1 }
 0x3b2   : > { %v7847_v46 = vadd.f32 %v7724_v22, %v16550_v36  ;;  %v7084_v20 = vpop.f32.mrf.mxu0  ;;  %v9951_v51 = vsel %vm17596_vm14, %v17595_v0, %v9950_v17  ;;  %vm17628_vm14 = vmmov %vm17626_vm2 }
 0x3b3   : > { %v16671_v55 = vadd.f32 %v7084_v20, %v6585_v52  ;;  %v7726_v53 = vpop.f32.mrf.mxu1 }
 0x3b4   : > { %v7848_v62 = vadd.f32 %v7726_v53, %v16553_v1  ;;  %v7086_v40 = vpop.f32.mrf.mxu0 }
 0x3b5   : > { %v16674_v42 = vadd.f32 %v7086_v40, %v6586_v33  ;;  %v7730_v29 = vpop.f32.mrf.mxu1  ;;  %10233 = vmatmul.mubr.bf16.gmra.mxu1 %v17594_v37 }
 0x3b6   : > { %v7849_v5 = vadd.f32 %v7730_v29, %v16560_v61  ;;  %v7088_v36 = vpop.f32.mrf.mxu0  ;;  %10242 = vmatprep.mubr.bf16.mxu1 %v9951_v51 }
 0x3b7   : > { %v16681_v52 = vadd.f32 %v7088_v36, %v6587_v19  ;;  %v7732_v34 = vpop.f32.mrf.mxu1  ;;  %v17597_v19 = vrot.slane %v15832_v31, 3 }
 0x3b8   : > { %v7850_v1 = vadd.f32 %v7732_v34, %v16564_v4  ;;  %v7090_v24 = vpop.f32.mrf.mxu0 }
 0x3b9   : > { %v16684_v33 = vadd.f32 %v7090_v24, %v6588_v49  ;;  %v7734_v7 = vpop.f32.mrf.mxu1  ;;  %v9949_v45 = vsel %vm17598_vm3, %v17597_v19, %v9948_v8  ;;  %vm17629_vm3 = vmmov %vm17613_vm1 }
 0x3ba   : > { %v7851_v63 = vadd.f32 %v7734_v7, %v16570_v13  ;;  %v8296_v3 = vpop.f32.mrf.mxu0 }
 0x3bb   : > { %v16687_v35 = vadd.f32 %v8296_v3, %v7845_v15  ;;  %v7736_v58 = vpop.f32.mrf.mxu1 }
 0x3bc   : > { %v7852_v61 = vadd.f32 %v7736_v58, %v16573_v56  ;;  %v8298_v57 = vpop.f32.mrf.mxu0 }
 0x3bd   : > { %v16693_v26 = vadd.f32 %v8298_v57, %v7846_v10  ;;  %v7740_v4 = vpop.f32.mrf.mxu1  ;;  %10243 = vmatmul.mubr.bf16.gmra.mxu1 %v9949_v45 }
 0x3be   : > { %v7853_v49 = vadd.f32 %v7740_v4, %v16577_v48  ;;  %v8300_v9 = vpop.f32.mrf.mxu0 }
 0x3bf   : > { %v16696_v22 = vadd.f32 %v8300_v9, %v7847_v46  ;;  %v7742_v13 = vpop.f32.mrf.mxu1 }
 0x3c0   : > { %v7854_v15 = vadd.f32 %v7742_v13, %v16583_v39  ;;  %v8302_v17 = vpop.f32.mrf.mxu0 }
 0x3c1   : > { %v16699_v20 = vadd.f32 %v8302_v17, %v7848_v62  ;;  %v7744_v56 = vpop.f32.mrf.mxu1 }
 0x3c2   : > { %v7855_v31 = vadd.f32 %v7744_v56, %v16587_v28  ;;  %v8306_v53 = vpop.f32.mrf.mxu0 }
 0x3c3   : > { %v16702_v40 = vadd.f32 %v8306_v53, %v7849_v5  ;;  %v7746_v10 = vpop.f32.mrf.mxu1 }
 0x3c4   : > { %v7856_v30 = vadd.f32 %v7746_v10, %v16590_v14  ;;  %v8308_v29 = vpop.f32.mrf.mxu0 }
 0x3c5   : > { %v16705_v48 = vadd.f32 %v8308_v29, %v7850_v1  ;;  %v7750_v46 = vpop.f32.mrf.mxu1 }
 0x3c6   : > { %v7857_v37 = vadd.f32 %v7750_v46, %v16593_v60  ;;  %v8310_v0 = vpop.f32.mrf.mxu0 }
 0x3c7   : > { %v16708_v39 = vadd.f32 %v8310_v0, %v7851_v63  ;;  %v7752_v62 = vpop.f32.mrf.mxu1 }
 0x3c8   : > { %v7858_v51 = vadd.f32 %v7752_v62, %v16596_v2  ;;  %v8312_v36 = vpop.f32.mrf.mxu0 }
 0x3c9   : > { %v16711_v28 = vadd.f32 %v8312_v36, %v7852_v61  ;;  %v7754_v5 = vpop.f32.mrf.mxu1 }
 0x3ca   : > { %v7859_v34 = vadd.f32 %v7754_v5, %v16601_v41  ;;  %v8316_v24 = vpop.f32.mrf.mxu0 }
 0x3cb   : > { %v16714_v14 = vadd.f32 %v8316_v24, %v7853_v49  ;;  %v7756_v1 = vpop.f32.mrf.mxu1 }
 0x3cc   : > { %v7860_v8 = vadd.f32 %v7756_v1, %v16604_v44  ;;  %v8318_v7 = vpop.f32.mrf.mxu0 }
 0x3cd   : > { %v16717_v60 = vadd.f32 %v8318_v7, %v7854_v15  ;;  %v7760_v63 = vpop.f32.mrf.mxu1 }
 0x3ce   : > { %v7861_v3 = vadd.f32 %v7760_v63, %v16607_v43  ;;  %v8320_v58 = vpop.f32.mrf.mxu0 }
 0x3cf   : > { %v16720_v2 = vadd.f32 %v8320_v58, %v7855_v31  ;;  %v7762_v61 = vpop.f32.mrf.mxu1 }
 0x3d0   : > { %v7862_v57 = vadd.f32 %v7762_v61, %v16610_v59  ;;  %v8322_v19 = vpop.f32.mrf.mxu0 }
 0x3d1   : > { %v16723_v41 = vadd.f32 %v8322_v19, %v7856_v30  ;;  %v7764_v45 = vpop.f32.mrf.mxu1 }
 0x3d2   : > { %v7863_v4 = vadd.f32 %v7764_v45, %v16617_v16  ;;  %v8326_v49 = vpop.f32.mrf.mxu0 }
 0x3d3   : > { %v16726_v44 = vadd.f32 %v8326_v49, %v7857_v37  ;;  %v7766_v9 = vpop.f32.mrf.mxu1 }
 0x3d4   : > { %v7864_v13 = vadd.f32 %v7766_v9, %v16620_v47  ;;  %v8328_v15 = vpop.f32.mrf.mxu0 }
 0x3d5   : > { %v16729_v43 = vadd.f32 %v8328_v15, %v7858_v51  ;;  %v7770_v17 = vpop.f32.mrf.mxu1 }
 0x3d6   : > { %v7865_v56 = vadd.f32 %v7770_v17, %v16623_v23  ;;  %v8330_v31 = vpop.f32.mrf.mxu0 }
 0x3d7   : > { %v16732_v59 = vadd.f32 %v8330_v31, %v7859_v34  ;;  %v7772_v53 = vpop.f32.mrf.mxu1 }
 0x3d8   : > { %v7866_v10 = vadd.f32 %v7772_v53, %v16629_v12  ;;  %v8332_v30 = vpop.f32.mrf.mxu0 }
 0x3d9   : > { %v16735_v16 = vadd.f32 %v8332_v30, %v7860_v8  ;;  %v7774_v29 = vpop.f32.mrf.mxu1 }
 0x3da   : > { %v7867_v46 = vadd.f32 %v7774_v29, %v16633_v18  ;;  %v8336_v37 = vpop.f32.mrf.mxu0 }
 0x3db   : > { %v16738_v47 = vadd.f32 %v8336_v37, %v7861_v3  ;;  %v7776_v0 = vpop.f32.mrf.mxu1 }
 0x3dc   : > { %v7868_v62 = vadd.f32 %v7776_v0, %v16636_v38  ;;  %v8338_v51 = vpop.f32.mrf.mxu0 }
 0x3dd   : > { %v16741_v23 = vadd.f32 %v8338_v51, %v7862_v57  ;;  %v7780_v36 = vpop.f32.mrf.mxu1 }
 0x3de   : > { %v7869_v5 = vadd.f32 %v7780_v36, %v16639_v25  ;;  %v8340_v34 = vpop.f32.mrf.mxu0 }
 0x3df   : > { %v16744_v12 = vadd.f32 %v8340_v34, %v7863_v4  ;;  %v7782_v24 = vpop.f32.mrf.mxu1 }
 0x3e0   : > { %v7870_v1 = vadd.f32 %v7782_v24, %v16643_v32  ;;  %v8342_v8 = vpop.f32.mrf.mxu0 }
 0x3e1   : > { %v16747_v18 = vadd.f32 %v8342_v8, %v7864_v13  ;;  %v7784_v7 = vpop.f32.mrf.mxu1 }
 0x3e2   : > { %v7871_v63 = vadd.f32 %v7784_v7, %v16649_v54  ;;  %v8346_v3 = vpop.f32.mrf.mxu0 }
 0x3e3   : > { %v16750_v38 = vadd.f32 %v8346_v3, %v7865_v56  ;;  %v7786_v58 = vpop.f32.mrf.mxu1 }
 0x3e4   : > { %v7872_v61 = vadd.f32 %v7786_v58, %v16652_v11  ;;  %v8348_v57 = vpop.f32.mrf.mxu0 }
 0x3e5   : > { %v16753_v25 = vadd.f32 %v8348_v57, %v7866_v10  ;;  %v7790_v19 = vpop.f32.mrf.mxu1 }
 0x3e6   : > { %v7873_v45 = vadd.f32 %v7790_v19, %v16655_v6  ;;  %v8350_v4 = vpop.f32.mrf.mxu0 }
 0x3e7   : > { %v16756_v32 = vadd.f32 %v8350_v4, %v7867_v46  ;;  %v7792_v49 = vpop.f32.mrf.mxu1 }
 0x3e8   : > { %v7874_v9 = vadd.f32 %v7792_v49, %v16661_v27  ;;  %v8352_v13 = vpop.f32.mrf.mxu0 }
 0x3e9   : > { %v16759_v54 = vadd.f32 %v8352_v13, %v7868_v62  ;;  %v7794_v15 = vpop.f32.mrf.mxu1 }
 0x3ea   : > { %v7875_v17 = vadd.f32 %v7794_v15, %v16665_v21  ;;  %v8356_v56 = vpop.f32.mrf.mxu0 }
 0x3eb   : > { %v16762_v11 = vadd.f32 %v8356_v56, %v7869_v5  ;;  %v7796_v31 = vpop.f32.mrf.mxu1 }
 0x3ec   : > { %v7876_v53 = vadd.f32 %v7796_v31, %v16668_v50  ;;  %v8358_v10 = vpop.f32.mrf.mxu0 }
 0x3ed   : > { %v16765_v6 = vadd.f32 %v8358_v10, %v7870_v1  ;;  %v7800_v30 = vpop.f32.mrf.mxu1 }
 0x3ee   : > { %v7877_v29 = vadd.f32 %v7800_v30, %v16671_v55  ;;  %v8360_v46 = vpop.f32.mrf.mxu0 }
 0x3ef   : > { %v16768_v27 = vadd.f32 %v8360_v46, %v7871_v63  ;;  %v7802_v37 = vpop.f32.mrf.mxu1 }
 0x3f0   : > { %v7878_v0 = vadd.f32 %v7802_v37, %v16674_v42  ;;  %v8362_v62 = vpop.f32.mrf.mxu0 }
 0x3f1   : > { %v16771_v21 = vadd.f32 %v8362_v62, %v7872_v61  ;;  %v7804_v51 = vpop.f32.mrf.mxu1 }
 0x3f2   : > { %v7879_v36 = vadd.f32 %v7804_v51, %v16681_v52  ;;  %v8366_v5 = vpop.f32.mrf.mxu0 }
 0x3f3   : > { %v16774_v50 = vadd.f32 %v8366_v5, %v7873_v45  ;;  %v7806_v34 = vpop.f32.mrf.mxu1 }
 0x3f4   : > { %v7880_v24 = vadd.f32 %v7806_v34, %v16684_v33  ;;  %v8368_v1 = vpop.f32.mrf.mxu0 }
 0x3f5   : > { %v16777_v55 = vadd.f32 %v8368_v1, %v7874_v9  ;;  %v8872_v8 = vpop.f32.mrf.mxu1 }
 0x3f6   : > { %v16780_v7 = vadd.f32 %v8872_v8, %v16687_v35  ;;  %v8370_v42 = vpop.f32.mrf.mxu0 }
 0x3f7   : > { %v16782_v63 = vadd.f32 %v8370_v42, %v7875_v17  ;;  %v8874_v3 = vpop.f32.mrf.mxu1 }
 0x3f8   : > { %v16785_v58 = vadd.f32 %v8874_v3, %v16693_v26  ;;  %v8372_v52 = vpop.f32.mrf.mxu0 }
 0x3f9   : > { %v16787_v61 = vadd.f32 %v8372_v52, %v7876_v53  ;;  %v8876_v57 = vpop.f32.mrf.mxu1 }
 0x3fa   : > { %v16790_v33 = vadd.f32 %v8876_v57, %v16696_v22  ;;  %v8376_v19 = vpop.f32.mrf.mxu0 }
 0x3fb   : > { %v16792_v45 = vadd.f32 %v8376_v19, %v7877_v29  ;;  %v8878_v4 = vpop.f32.mrf.mxu1 }
 0x3fc   : > { %v16795_v35 = vadd.f32 %v8878_v4, %v16699_v20  ;;  %v8378_v49 = vpop.f32.mrf.mxu0 }
 0x3fd   : > { %v16797_v9 = vadd.f32 %v8378_v49, %v7878_v0  ;;  %v8882_v13 = vpop.f32.mrf.mxu1 }
 0x3fe   : > { %v16800_v26 = vadd.f32 %v8882_v13, %v16702_v40  ;;  %v8380_v15 = vpop.f32.mrf.mxu0 }
 0x3ff   : > { %v16802_v17 = vadd.f32 %v8380_v15, %v7879_v36  ;;  %v8884_v56 = vpop.f32.mrf.mxu1 }
 0x400   : > { %v16805_v22 = vadd.f32 %v8884_v56, %v16705_v48  ;;  %v8382_v31 = vpop.f32.mrf.mxu0 }
 0x401   : > { %v16807_v53 = vadd.f32 %v8382_v31, %v7880_v24  ;;  %v8886_v10 = vpop.f32.mrf.mxu1 }
 0x402   : > { %v16810_v20 = vadd.f32 %v8886_v10, %v16708_v39  ;;  %v16812_v30 = vpop.f32.mrf.mxu0 }
 0x403   : > { %v8888_v29 = vpop.f32.mrf.mxu1 }
 0x404   : > { %v16815_v40 = vadd.f32 %v8888_v29, %v16711_v28  ;;  %v16817_v46 = vpop.f32.mrf.mxu0 }
 0x405   : > { %v8892_v37 = vpop.f32.mrf.mxu1 }
 0x406   : > { %v16820_v0 = vadd.f32 %v8892_v37, %v16714_v14  ;;  %v16822_v48 = vpop.f32.mrf.mxu0 }
 0x407   : > { %v8894_v62 = vpop.f32.mrf.mxu1 }
 0x408   : > { %v16825_v51 = vadd.f32 %v8894_v62, %v16717_v60  ;;  %v16827_v39 = vpop.f32.mrf.mxu0 }
 0x409   : > { %v8896_v36 = vpop.f32.mrf.mxu1 }
 0x40a   : > { %v16830_v5 = vadd.f32 %v8896_v36, %v16720_v2  ;;  %v16832_v28 = vpop.f32.mrf.mxu0 }
 0x40b   : > { %v8898_v34 = vpop.f32.mrf.mxu1 }
 0x40c   : > { %v16835_v24 = vadd.f32 %v8898_v34, %v16723_v41  ;;  %v16837_v14 = vpop.f32.mrf.mxu0 }
 0x40d   : > { %v8902_v1 = vpop.f32.mrf.mxu1 }
 0x40e   : > { %v16840_v8 = vadd.f32 %v8902_v1, %v16726_v44  ;;  %v16842_v60 = vpop.f32.mrf.mxu0 }
 0x40f   : > { %v8904_v42 = vpop.f32.mrf.mxu1 }
 0x410   : > { %v16845_v3 = vadd.f32 %v8904_v42, %v16729_v43  ;;  %v16847_v2 = vpop.f32.mrf.mxu0 }
 0x411   : > { %v8906_v52 = vpop.f32.mrf.mxu1 }
 0x412   : > { %v16850_v57 = vadd.f32 %v8906_v52, %v16732_v59  ;;  %v16852_v41 = vpop.f32.mrf.mxu0 }
 0x413   : > { %v8908_v19 = vpop.f32.mrf.mxu1 }
 0x414   : > { %v16855_v4 = vadd.f32 %v8908_v19, %v16735_v16  ;;  %v16857_v49 = vpop.f32.mrf.mxu0 }
 0x415   : > { %v8912_v44 = vpop.f32.mrf.mxu1 }
 0x416   : > { %v16860_v13 = vadd.f32 %v8912_v44, %v16738_v47  ;;  %v16865_v31 = vpop.f32.mrf.mxu0 }
 0x417   : > { %v8914_v43 = vpop.f32.mrf.mxu1 }
 0x418   : > { %v16863_v15 = vadd.f32 %v8914_v43, %v16741_v23  ;;  %v16873_v37 = vpop.f32.mrf.mxu0 }
 0x419   : > { %v8916_v56 = vpop.f32.mrf.mxu1 }
 0x41a   : > { %v16868_v59 = vadd.f32 %v8916_v56, %v16744_v12  ;;  %v16881_v34 = vpop.f32.mrf.mxu0 }
 0x41b   : > { %v8918_v10 = vpop.f32.mrf.mxu1 }
 0x41c   : > { %v16871_v16 = vadd.f32 %v8918_v10, %v16747_v18  ;;  %v16889_v52 = vpop.f32.mrf.mxu0 }
 0x41d   : > { %v8922_v29 = vpop.f32.mrf.mxu1 }
 0x41e   : > { %v16876_v47 = vadd.f32 %v8922_v29, %v16750_v38  ;;  %v16897_v43 = vpop.f32.mrf.mxu0 }
 0x41f   : > { %v8924_v62 = vpop.f32.mrf.mxu1 }
 0x420   : > { %v16879_v23 = vadd.f32 %v8924_v62, %v16753_v25  ;;  %v16905_v29 = vpop.f32.mrf.mxu0 }
 0x421   : > { %v8926_v36 = vpop.f32.mrf.mxu1 }
 0x422   : > { %v16884_v12 = vadd.f32 %v8926_v36, %v16756_v32 }
 0x423   : > { %v8928_v1 = vpop.f32.mrf.mxu1 }
 0x424   : > { %v16887_v18 = vadd.f32 %v8928_v1, %v16759_v54  ;;  %v16913_v1 = vpop.f32.mrf.mxu0 }
 0x425   : > { %v8932_v42 = vpop.f32.mrf.mxu1 }
 0x426   : > { %v16892_v38 = vadd.f32 %v8932_v42, %v16762_v11 }
 0x427   : > { %v8934_v19 = vpop.f32.mrf.mxu1 }
 0x428   : > { %v16895_v25 = vadd.f32 %v8934_v19, %v16765_v6 }
 0x429   : > { %v8936_v44 = vpop.f32.mrf.mxu1 }
 0x42a   : > { %v16900_v32 = vadd.f32 %v8936_v44, %v16768_v27  ;;  %v16921_v44 = vpop.f32.mrf.mxu0 }
 0x42b   : > { %v8938_v56 = vpop.f32.mrf.mxu1 }
 0x42c   : > { %v16903_v54 = vadd.f32 %v8938_v56, %v16771_v21 }
 0x42d   : > { %v8942_v10 = vpop.f32.mrf.mxu1 }
 0x42e   : > { %v16908_v11 = vadd.f32 %v8942_v10, %v16774_v50 }
 0x42f   : > { %v8944_v62 = vpop.f32.mrf.mxu1 }
 0x430   : > { %v16911_v6 = vadd.f32 %v8944_v62, %v16777_v55  ;;  %v16932_v62 = vpop.f32.mrf.mxu0 }
 0x431   : > { %v8946_v36 = vpop.f32.mrf.mxu1 }
 0x432   : > { %17599 = vst [vmem:[#allocation18_spill] sm:$0xff] %v16911_v6  ;;  %v16916_v27 = vadd.f32 %v8946_v36, %v16782_v63  ;;  %v10365_v63 = vld [vmem:[%s17261_s4] sm:$0x3] }
 0x433   : > { %v8948_v42 = vpop.f32.mrf.mxu1 }
 0x434   : > { %17600 = vst [vmem:[#allocation19_spill] sm:$0xff] %v16916_v27  ;;  %v16919_v21 = vadd.f32 %v8948_v42, %v16787_v61  ;;  %v17607_v27 = vld [vmem:[#allocation22_spill] sm:$0xff] }
 0x435   : > { %v8952_v19 = vpop.f32.mrf.mxu1  ;;  %v10374_v6 = vrot.slane %v10365_v63, %v17607_v27 }
 0x436   : > { %17601 = vst [vmem:[#allocation27_spill] sm:$0xff] %v16919_v21  ;;  %v16924_v50 = vadd.f32 %v8952_v19, %v16792_v45  ;;  %v9713_v45 = vadd.f32 %v16812_v30, %v16780_v7 }
 0x437   : > { %v8954_v56 = vpop.f32.mrf.mxu1 }
 0x438   : > { %17602 = vst [vmem:[#allocation28_spill] sm:$0xff] %v16924_v50  ;;  %v16927_v55 = vadd.f32 %v8954_v56, %v16797_v9  ;;  %v17606_v9 = vld [vmem:[#allocation20_spill] sm:$0xff]  ;;  %v16945_v50 = vpop.f32.mrf.mxu0 }
 0x439   : > { %v8956_v10 = vpop.f32.mrf.mxu1  ;;  %v10370_v19 = vrot.slane %v10365_v63, %v17606_v9  ;;  %v9718_v63 = vadd.f32 %v16837_v14, %v16805_v22 }
 0x43a   : > { %17603 = vst [vmem:[#allocation12_spill] sm:$0xff] %v16927_v55  ;;  %v16935_v61 = vadd.f32 %v8956_v10, %v16802_v17  ;;  %v9714_v55 = vadd.f32 %v16817_v46, %v16785_v58  ;;  %v9715_v10 = vadd.f32 %v16822_v48, %v16790_v33 }
 0x43b   : > { %v8958_v36 = vpop.f32.mrf.mxu1 }
 0x43c   : > { %17604 = vst [vmem:[#allocation11_spill] sm:$0xff] %v16935_v61  ;;  %v16940_v42 = vadd.f32 %v8958_v36, %v16807_v53  ;;  %v9716_v36 = vadd.f32 %v16827_v39, %v16795_v35  ;;  %v10399_v39 = vld [vmem:[%s17261_s4] sm:$0x3] }
 0x43d   : > { %v10164_v56 = vpop.f32.mrf.mxu1 }
 0x43e   : > { %17605 = vst [vmem:[#allocation21_spill] sm:$0xff] %v16940_v42  ;;  %v10289_v21 = vadd.f32 %v10164_v56, %v9713_v45  ;;  %v16953_v42 = vpop.f32.mrf.mxu0  ;;  %v9717_v45 = vadd.f32 %v16832_v28, %v16800_v26 }
 0x43f   : > { %v10166_v17 = vpop.f32.mrf.mxu1 }
 0x440   : > { %v10377_v7 = vadd.f32 %v10370_v19, %v10289_v21  ;;  %v10290_v30 = vadd.f32 %v10166_v17, %v9714_v55  ;;  %v16967_v28 = vpop.f32.mrf.mxu0 }
 0x441   : > { %v10168_v53 = vpop.f32.mrf.mxu1 }
 0x442   : > { %v10381_v61 = vmul.f32 0.01, %v10377_v7  ;;  %v10378_v58 = vadd.f32 %v10374_v6, %v10290_v30  ;;  %v10291_v46 = vadd.f32 %v10168_v53, %v9715_v10  ;;  %v9719_v30 = vadd.f32 %v16842_v60, %v16810_v20  ;;  %v10461_v20 = vld [vmem:[%s17261_s4] sm:$0x3] }
 0x443   : > { %v10170_v33 = vpop.f32.mrf.mxu1 }
 0x444   : > { %v10385_v48 = vmax.f32 %v10377_v7, %v10381_v61  ;;  %v10382_v21 = vmul.f32 0.01, %v10378_v58  ;;  %v10379_v55 = vadd.f32 %v10370_v19, %v10291_v46  ;;  %v10292_v35 = vadd.f32 %v10170_v33, %v9716_v36  ;;  %v16978_v46 = vpop.f32.mrf.mxu0 }
 0x445   : > { %v10174_v26 = vpop.f32.mrf.mxu1  ;;  %v16971_v7 = vrot.slane %v10399_v39, %v17606_v9 }
 0x446   : > { %10389 = vst [vmem:[%s16960_s25] sm:$0xff] %v10385_v48  ;;  %v10386_v56 = vmax.f32 %v10378_v58, %v10382_v21  ;;  %v10383_v17 = vmul.f32 0.01, %v10379_v55  ;;  %v10380_v10 = vadd.f32 %v10374_v6, %v10292_v35  ;;  %v10293_v61 = vadd.f32 %v10174_v26, %v9717_v45  ;;  %v10523_v21 = vld [vmem:[%s17261_s4] sm:$0x3] }
 0x447   : > { %v10176_v19 = vpop.f32.mrf.mxu1  ;;  %v9720_v58 = vadd.f32 %v16847_v2, %v16815_v40  ;;  %v16982_v45 = vrot.slane %v10399_v39, %v17607_v27  ;;  %v9721_v48 = vadd.f32 %v16852_v41, %v16820_v0  ;;  %v16998_v39 = vrot.slane %v10461_v20, %v17606_v9  ;;  %v17002_v0 = vpop.f32.mrf.mxu0 }
 0x448   : > { %10390 = vst [vmem:[%s16960_s25 + $0x8] sm:$0xff] %v10386_v56  ;;  %v10387_v53 = vmax.f32 %v10379_v55, %v10383_v17  ;;  %v10384_v22 = vmul.f32 0.01, %v10380_v10  ;;  %10329 = vst [vmem:[#allocation4 + $0xd0] sm:$0xff] %v10293_v61  ;;  %v10294_v14 = vadd.f32 %v10176_v19, %v9718_v63  ;;  %v10583_v55 = vld [vmem:[%s17261_s4] sm:$0x3]  ;;  %v9722_v63 = vadd.f32 %v16857_v49, %v16825_v51 }
 0x449   : > { %v10178_v36 = vpop.f32.mrf.mxu1  ;;  %v17008_v17 = vld [vmem:[%s17261_s4] sm:$0x3]  ;;  %v17011_v19 = vrot.slane %v10461_v20, %v17607_v27  ;;  %v17017_v51 = vrot.slane %v10523_v21, %v17607_v27  ;;  %v17020_v49 = vrot.slane %v10583_v55, %v17606_v9 }
 0x44a   : > { %10391 = vst [vmem:[%s16960_s25 + $0x10] sm:$0xff] %v10387_v53  ;;  %v10388_v6 = vmax.f32 %v10380_v10, %v10384_v22  ;;  %10330 = vst [vmem:[#allocation4 + $0x20] sm:$0xff] %v10294_v14  ;;  %v10295_v33 = vadd.f32 %v10178_v36, %v9719_v30  ;;  %v17014_v30 = vrot.slane %v10523_v21, %v17606_v9  ;;  %v17036_v21 = vpop.f32.mrf.mxu0 }
 0x44b   : > { %v10180_v60 = vpop.f32.mrf.mxu1  ;;  %v17024_v36 = vrot.slane %v10583_v55, %v17607_v27 }
 0x44c   : > { %10392 = vst [vmem:[%s16960_s25 + $0x18] sm:$0xff] %v10388_v6  ;;  %v10413_v40 = vadd.f32 %v16971_v7, %v10295_v33  ;;  %v10296_v2 = vadd.f32 %v10180_v60, %v9720_v58  ;;  %v9723_v58 = vadd.f32 %v16865_v31, %v16830_v5  ;;  %v9724_v6 = vadd.f32 %v16873_v37, %v16835_v24 }
 0x44d   : > { %v10184_v35 = vpop.f32.mrf.mxu1  ;;  %v9726_v5 = vadd.f32 %v16889_v52, %v16845_v3  ;;  %v9727_v24 = vadd.f32 %v16897_v43, %v16850_v57  ;;  %v9728_v31 = vadd.f32 %v16905_v29, %v16855_v4  ;;  %v17058_v43 = vpop.f32.mrf.mxu0 }
 0x44e   : > { %v10419_v41 = vmul.f32 0.01, %v10413_v40  ;;  %v10414_v26 = vadd.f32 %v16982_v45, %v10296_v2  ;;  %v10297_v56 = vadd.f32 %v10184_v35, %v9721_v48  ;;  %v17032_v48 = vrot.slane %v17008_v17, %v17606_v9 }
 0x44f   : > { %v10393_v10 = vld [vmem:[#allocation4 + $0xd0] sm:$0xfc]  ;;  %v10186_v61 = vpop.f32.mrf.mxu1  ;;  %v9725_v2 = vadd.f32 %v16881_v34, %v16840_v8  ;;  %v17047_v8 = vadd.f32 %v16913_v1, %v16860_v13 }
 0x450   : > { %v10411_v53 = vadd.f32 %v16971_v7, %v10393_v10  ;;  %v10420_v22 = vmul.f32 0.01, %v10414_v26  ;;  %10333 = vst [vmem:[#allocation4 + $0xe0] sm:$0xff] %v10297_v56  ;;  %v10298_v14 = vadd.f32 %v10186_v61, %v9722_v63  ;;  %v10425_v20 = vmax.f32 %v10413_v40, %v10419_v41 }
 0x451   : > { %v10394_v33 = vld [vmem:[#allocation4 + $0x20] sm:$0xfc]  ;;  %v10188_v60 = vpop.f32.mrf.mxu1  ;;  %v17063_v61 = vadd.f32 %v16932_v62, %v16868_v59 }
 0x452   : > { %v10417_v55 = vmul.f32 0.01, %v10411_v53  ;;  %v10412_v35 = vadd.f32 %v16982_v45, %v10394_v33  ;;  %v10426_v63 = vmax.f32 %v10414_v26, %v10420_v22  ;;  %10334 = vst [vmem:[#allocation4 + $0x110] sm:$0xff] %v10298_v14  ;;  %v10299_v37 = vadd.f32 %v10188_v60, %v9723_v58 }
 0x453   : > { %v10190_v40 = vpop.f32.mrf.mxu1  ;;  %v17051_v26 = vadd.f32 %v16921_v44, %v16863_v15  ;;  %v17053_v3 = vrot.slane %v10425_v20, 2  ;;  %v17067_v15 = vadd.f32 %v16945_v50, %v16871_v16  ;;  %v17071_v44 = vadd.f32 %v16953_v42, %v16876_v47 }
 0x454   : > { %v10423_v34 = vmax.f32 %v10411_v53, %v10417_v55  ;;  %v10418_v41 = vmul.f32 0.01, %v10412_v35  ;;  %v10300_v56 = vadd.f32 %v10190_v40, %v9724_v6  ;;  %v17055_v52 = vrot.slane %v10426_v63, 2  ;;  %v17082_v55 = vpop.f32.mrf.mxu0 }
 0x455   : > { %v10475_v57 = vadd.f32 %v16998_v39, %v10299_v37  ;;  %v10194_v4 = vpop.f32.mrf.mxu1  ;;  %v17079_v16 = vadd.f32 %v16967_v28, %v16879_v23  ;;  %v17089_v23 = vadd.f32 %v16978_v46, %v16884_v12 }
 0x456   : > { %v10436_v29 = vrot.slane %v10423_v34, 2  ;;  %v10424_v10 = vmax.f32 %v10412_v35, %v10418_v41  ;;  %v10476_v13 = vadd.f32 %v17011_v19, %v10300_v56  ;;  %v10301_v1 = vadd.f32 %v10194_v4, %v9725_v2  ;;  %v17098_v46 = vpop.f32.mrf.mxu0 }
 0x457   : > { %v10397_v53 = vld [vmem:[#allocation4 + $0xe0] sm:$0x3]  ;;  %v10455_v22 = vld [vmem:[#allocation4 + $0xe0] sm:$0xf0]  ;;  %v10481_v14 = vmul.f32 0.01, %v10475_v57  ;;  %v10196_v58 = vpop.f32.mrf.mxu1 }
 0x458   : > { %v10439_v6 = vrot.slane %v10424_v10, 2  ;;  %v10438_v33 = vsel %vm17562_vm5, %v10436_v29, %v17053_v3  ;;  %v10415_v20 = vadd.f32 %v16971_v7, %v10397_v53  ;;  %v10473_v59 = vadd.f32 %v16998_v39, %v10455_v22  ;;  %10337 = vst [vmem:[#allocation4 + $0x18] sm:$0xff] %v10301_v1  ;;  %vm17630_vm5 = vmmov %vm17626_vm2 }
 0x459   : > { %11963 = vst [vmem:[%s16960_s25 + $0x20] sm:$0xff] %v10438_v33  ;;  %v10398_v47 = vld [vmem:[#allocation4 + $0x110] sm:$0x3]  ;;  %v10456_v50 = vld [vmem:[#allocation4 + $0x110] sm:$0xf0]  ;;  %v10487_v62 = vmax.f32 %v10475_v57, %v10481_v14  ;;  %v10302_v60 = vadd.f32 %v10196_v58, %v9726_v5  ;;  %v10198_v2 = vpop.f32.mrf.mxu1 }
 0x45a   : > { %v10482_v42 = vmul.f32 0.01, %v10476_v13  ;;  %v10441_v7 = vsel %vm17608_vm15, %v10439_v6, %v17055_v52  ;;  %v10421_v35 = vmul.f32 0.01, %v10415_v20  ;;  %v10479_v63 = vmul.f32 0.01, %v10473_v59  ;;  %vm17631_vm15 = vmmov %vm17613_vm1 }
 0x45b   : > { %v10416_v37 = vadd.f32 %v16982_v45, %v10398_v47  ;;  %11964 = vst [vmem:[%s16960_s25 + $0x28] sm:$0xff] %v10441_v7  ;;  %v10474_v28 = vadd.f32 %v17011_v19, %v10456_v50  ;;  %10338 = vst [vmem:[#allocation4 + $0x60] sm:$0xff] %v10302_v60  ;;  %v10303_v5 = vadd.f32 %v10198_v2, %v9727_v24  ;;  %v10200_v34 = vpop.f32.mrf.mxu1  ;;  %v17093_v10 = vrot.slane %v10487_v62, 4  ;;  %v17114_v7 = vpop.f32.mrf.mxu0 }
 0x45c   : > { %v10488_v40 = vmax.f32 %v10476_v13, %v10482_v42  ;;  %v10427_v41 = vmax.f32 %v10415_v20, %v10421_v35  ;;  %v10485_v56 = vmax.f32 %v10473_v59, %v10479_v63  ;;  %v10304_v4 = vadd.f32 %v10200_v34, %v9728_v31 }
 0x45d   : > { %v10422_v57 = vmul.f32 0.01, %v10416_v37  ;;  %v10480_v29 = vmul.f32 0.01, %v10474_v28  ;;  %v10537_v45 = vadd.f32 %v17014_v30, %v10303_v5  ;;  %v10204_v12 = vpop.f32.mrf.mxu1  ;;  %v17103_v31 = vadd.f32 %v17002_v0, %v16887_v18 }
 0x45e   : > { %v17095_v1 = vrot.slane %v10488_v40, 4  ;;  %v10442_v53 = vrot.slane %v10427_v41, 2  ;;  %v10498_v13 = vrot.slane %v10485_v56, 4  ;;  %v10538_v22 = vadd.f32 %v17017_v51, %v10304_v4 }
 0x45f   : > { %v10428_v24 = vmax.f32 %v10416_v37, %v10422_v57  ;;  %v10486_v14 = vmax.f32 %v10474_v28, %v10480_v29  ;;  %v10459_v58 = vld [vmem:[#allocation4 + $0x18] sm:$0xf]  ;;  %v10517_v6 = vld [vmem:[#allocation4 + $0x18] sm:$0xc0]  ;;  %v10543_v33 = vmul.f32 0.01, %v10537_v45  ;;  %v10305_v20 = vadd.f32 %v10204_v12, %v17047_v8  ;;  %v10206_v59 = vpop.f32.mrf.mxu1 }
 0x460   : > { %v10443_v47 = vsel %vm17609_vm13, %v17053_v3, %v10442_v53  ;;  %v10500_v62 = vsel %vm17610_vm6, %v10498_v13, %v17093_v10  ;;  %v10477_v42 = vadd.f32 %v16998_v39, %v10459_v58  ;;  %v10535_v0 = vadd.f32 %v17014_v30, %v10517_v6  ;;  %v17130_v13 = vpop.f32.mrf.mxu0  ;;  %vm17632_vm13 = vmmov %vm17613_vm1 }
 0x461   : > { %v10444_v50 = vrot.slane %v10428_v24, 2  ;;  %11965 = vst [vmem:[%s16960_s25 + $0x30] sm:$0xff] %v10443_v47  ;;  %v10501_v18 = vrot.slane %v10486_v14, 4  ;;  %11967 = vst [vmem:[%s16960_s25 + $0x40] sm:$0xff] %v10500_v62  ;;  %v10549_v60 = vmax.f32 %v10537_v45, %v10543_v33  ;;  %v10544_v2 = vmul.f32 0.01, %v10538_v22  ;;  %v10208_v8 = vpop.f32.mrf.mxu1 }
 0x462   : > { %10341 = vst [vmem:[#allocation4 + $0x118] sm:$0xff] %v10305_v20  ;;  %v10483_v35 = vmul.f32 0.01, %v10477_v42  ;;  %v10460_v63 = vld [vmem:[#allocation4 + $0x60] sm:$0xf]  ;;  %v10306_v39 = vadd.f32 %v10206_v59, %v17051_v26  ;;  %v10307_v28 = vadd.f32 %v10208_v8, %v17063_v61  ;;  %v17144_v8 = vpop.f32.mrf.mxu0  ;;  %vm17633_vm6 = vmmov %vm17618_vm0 }
 0x463   : > { %v10445_v3 = vsel %vm17611_vm11, %v17055_v52, %v10444_v50  ;;  %v10518_v37 = vld [vmem:[#allocation4 + $0x60] sm:$0xc0]  ;;  %v10503_v40 = vsel %vm17612_vm8, %v10501_v18, %v17095_v1  ;;  %v10541_v5 = vmul.f32 0.01, %v10535_v0  ;;  %v10478_v34 = vadd.f32 %v17011_v19, %v10460_v63  ;;  %v10210_v56 = vpop.f32.mrf.mxu1  ;;  %vm17634_vm11 = vmmov %vm17613_vm1 }
 0x464   : > { %11966 = vst [vmem:[%s16960_s25 + $0x38] sm:$0xff] %v10445_v3  ;;  %v10536_v41 = vadd.f32 %v17017_v51, %v10518_v37  ;;  %11968 = vst [vmem:[%s16960_s25 + $0x48] sm:$0xff] %v10503_v40  ;;  %v10489_v57 = vmax.f32 %v10477_v42, %v10483_v35  ;;  %v17126_v52 = vrot.slane %v10549_v60, 6  ;;  %v10550_v4 = vmax.f32 %v10538_v22, %v10544_v2 }
 0x465   : > { %10342 = vst [vmem:[#allocation4 + $0xf8] sm:$0xff] %v10306_v39  ;;  %v10595_v26 = vadd.f32 %v17020_v49, %v10307_v28  ;;  %v10547_v29 = vmax.f32 %v10535_v0, %v10541_v5  ;;  %v10484_v61 = vmul.f32 0.01, %v10478_v34  ;;  %v10308_v12 = vadd.f32 %v10210_v56, %v17067_v15  ;;  %v10214_v53 = vpop.f32.mrf.mxu1  ;;  %v9664_v56 = vpop.f32.mrf.mxu0  ;;  %vm17635_vm8 = vmmov %vm17618_vm0 }
 0x466   : > { %v10542_v45 = vmul.f32 0.01, %v10536_v41  ;;  %v10504_v19 = vrot.slane %v10489_v57, 4  ;;  %v17132_v24 = vrot.slane %v10550_v4, 6  ;;  %v10309_v58 = vadd.f32 %v10214_v53, %v17071_v44 }
 0x467   : > { %v10599_v14 = vmul.f32 0.01, %v10595_v26  ;;  %v10560_v6 = vrot.slane %v10547_v29, 6  ;;  %v10490_v22 = vmax.f32 %v10478_v34, %v10484_v61  ;;  %v10596_v20 = vadd.f32 %v17024_v36, %v10308_v12  ;;  %v10216_v59 = vpop.f32.mrf.mxu1  ;;  %v9668_v53 = vpop.f32.mrf.mxu0 }
 0x468   : > { %v10548_v33 = vmax.f32 %v10536_v41, %v10542_v45  ;;  %v10505_v15 = vsel %vm17613_vm1, %v17093_v10, %v10504_v19  ;;  %v10597_v62 = vadd.f32 %v17020_v49, %v10309_v58  ;;  %v10310_v42 = vadd.f32 %v10216_v59, %v17079_v16  ;;  %vm17636_vm1 = vmmov %vm17618_vm0 }
 0x469   : > { %v10521_v47 = vld [vmem:[#allocation4 + $0x118] sm:$0x3f]  ;;  %v10603_v50 = vmax.f32 %v10595_v26, %v10599_v14  ;;  %11969 = vst [vmem:[%s16960_s25 + $0x50] sm:$0xff] %v10505_v15  ;;  %v10506_v18 = vrot.slane %v10490_v22, 4  ;;  %v10562_v0 = vsel %vm17614_vm12, %v10560_v6, %v17126_v52  ;;  %v10218_v2 = vpop.f32.mrf.mxu1  ;;  %v10600_v10 = vmul.f32 0.01, %v10596_v20  ;;  %vm17637_vm12 = vmmov %vm17618_vm0 }
 0x46a   : > { %v10563_v44 = vrot.slane %v10548_v33, 6  ;;  %v10539_v60 = vadd.f32 %v17014_v30, %v10521_v47  ;;  %11971 = vst [vmem:[%s16960_s25 + $0x60] sm:$0xff] %v10562_v0  ;;  %v10601_v3 = vmul.f32 0.01, %v10597_v62  ;;  %v10598_v49 = vadd.f32 %v17024_v36, %v10310_v42  ;;  %v9670_v42 = vpop.f32.mrf.mxu0 }
 0x46b   : > { %11975 = vst [vmem:[%s16960_s25 + $0x80] sm:$0xff] %v10603_v50  ;;  %v10311_v16 = vadd.f32 %v10218_v2, %v17089_v23  ;;  %v9737_v35 = vadd.f32 %v17036_v21, %v16892_v38  ;;  %v10507_v63 = vsel %vm17615_vm7, %v17095_v1, %v10506_v18  ;;  %v10220_v28 = vpop.f32.mrf.mxu1  ;;  %v10604_v40 = vmax.f32 %v10596_v20, %v10600_v10 }
 0x46c   : > { %v10565_v30 = vsel %vm17616_vm4, %v10563_v44, %v17132_v24  ;;  %v10545_v37 = vmul.f32 0.01, %v10539_v60  ;;  %v10522_v39 = vld [vmem:[#allocation4 + $0xf8] sm:$0x3f]  ;;  %11970 = vst [vmem:[%s16960_s25 + $0x58] sm:$0xff] %v10507_v63  ;;  %v10605_v23 = vmax.f32 %v10597_v62, %v10601_v3  ;;  %v10312_v21 = vadd.f32 %v10220_v28, %v17103_v31 }
 0x46d   : > { %11972 = vst [vmem:[%s16960_s25 + $0x68] sm:$0xff] %v10565_v30  ;;  %v10540_v36 = vadd.f32 %v17017_v51, %v10522_v39  ;;  %v10602_v5 = vmul.f32 0.01, %v10598_v49  ;;  %10347 = vst [vmem:[#allocation4 + $0x50] sm:$0xff] %v10311_v16  ;;  %v17162_v1 = vrot.slane %v17008_v17, %v17607_v27  ;;  %v10224_v34 = vpop.f32.mrf.mxu1  ;;  %v9738_v41 = vadd.f32 %v17058_v43, %v16895_v25  ;;  %v10679_v25 = vld [vmem:[%s17261_s4] sm:$0x3] }
 0x46e   : > { %v10551_v38 = vmax.f32 %v10539_v60, %v10545_v37  ;;  %11976 = vst [vmem:[%s16960_s25 + $0x88] sm:$0xff] %v10604_v40  ;;  %11977 = vst [vmem:[%s16960_s25 + $0x90] sm:$0xff] %v10605_v23  ;;  %v10313_v4 = vadd.f32 %v10224_v34, %v9737_v35  ;;  %v9739_v31 = vadd.f32 %v17082_v55, %v16900_v32  ;;  %v9672_v37 = vpop.f32.mrf.mxu0  ;;  %v17621_v40 = vld [vmem:[#allocation27_spill] sm:$0xff] }
 0x46f   : > { %v10546_v57 = vmul.f32 0.01, %v10540_v36  ;;  %v10606_v51 = vmax.f32 %v10598_v49, %v10602_v5  ;;  %10348 = vst [vmem:[#allocation4 + $0x108] sm:$0xff] %v10312_v21  ;;  %v10226_v29 = vpop.f32.mrf.mxu1  ;;  %v9740_v58 = vadd.f32 %v17098_v46, %v16903_v54  ;;  %v17182_v22 = vrot.slane %v10679_v25, %v17606_v9  ;;  %v17619_v54 = vld [vmem:[#allocation18_spill] sm:$0xff]  ;;  %v17622_v5 = vld [vmem:[#allocation28_spill] sm:$0xff] }
 0x470   : > { %v10566_v26 = vrot.slane %v10551_v38, 6  ;;  %v10632_v17 = vadd.f32 %v17032_v48, %v10313_v4  ;;  %v10314_v45 = vadd.f32 %v10226_v29, %v9738_v41  ;;  %v9742_v46 = vadd.f32 %v17130_v13, %v17619_v54  ;;  %v10740_v13 = vld [vmem:[%s17261_s4] sm:$0x3] }
 0x471   : > { %v10552_v61 = vmax.f32 %v10540_v36, %v10546_v57  ;;  %11978 = vst [vmem:[%s16960_s25 + $0x98] sm:$0xff] %v10606_v51  ;;  %v10228_v12 = vpop.f32.mrf.mxu1  ;;  %v17193_v0 = vrot.slane %v10679_v25, %v17607_v27  ;;  %v9744_v23 = vadd.f32 %v9664_v56, %v17621_v40  ;;  %v9745_v38 = vadd.f32 %v9668_v53, %v17622_v5 }
 0x472   : > { %v10567_v43 = vsel %vm17617_vm9, %v17126_v52, %v10566_v26  ;;  %v10638_v14 = vmul.f32 0.01, %v10632_v17  ;;  %v10633_v32 = vadd.f32 %v17162_v1, %v10314_v45  ;;  %v10315_v55 = vadd.f32 %v10228_v12, %v9739_v31 }
 0x473   : > { %11973 = vst [vmem:[%s16960_s25 + $0x70] sm:$0xff] %v10567_v43  ;;  %v10568_v19 = vrot.slane %v10552_v61, 6  ;;  %v10230_v33 = vpop.f32.mrf.mxu1  ;;  %v9741_v52 = vadd.f32 %v17114_v7, %v16908_v11  ;;  %v17620_v7 = vld [vmem:[#allocation19_spill] sm:$0xff]  ;;  %v17208_v57 = vrot.slane %v10740_v13, %v17606_v9  ;;  %v9674_v43 = vpop.f32.mrf.mxu0 }
 0x474   : > { %v10612_v6 = vld [vmem:[#allocation4 + $0x50] sm:$0xfc]  ;;  %v10639_v15 = vmul.f32 0.01, %v10633_v32  ;;  %10351 = vst [vmem:[#allocation4 + $0x88] sm:$0xff] %v10315_v55  ;;  %v10644_v47 = vmax.f32 %v10632_v17, %v10638_v14  ;;  %v10316_v50 = vadd.f32 %v10230_v33, %v9740_v58 }
 0x475   : > { %v10569_v20 = vsel %vm17618_vm0, %v17132_v24, %v10568_v19  ;;  %v10630_v59 = vadd.f32 %v17032_v48, %v10612_v6  ;;  %v10234_v62 = vpop.f32.mrf.mxu1  ;;  %v9743_v24 = vadd.f32 %v17144_v8, %v17620_v7  ;;  %v17216_v19 = vrot.slane %v10740_v13, %v17607_v27  ;;  %v17625_v55 = vld [vmem:[#allocation11_spill] sm:$0xff] }
 0x476   : > { %11974 = vst [vmem:[%s16960_s25 + $0x78] sm:$0xff] %v10569_v20  ;;  %v10613_v44 = vld [vmem:[#allocation4 + $0x108] sm:$0xfc]  ;;  %v10317_v11 = vadd.f32 %v10234_v62, %v9741_v52  ;;  %10352 = vst [vmem:[#allocation4 + $0x78] sm:$0xff] %v10316_v50  ;;  %v10645_v3 = vmax.f32 %v10633_v32, %v10639_v15  ;;  %v10655_v63 = vrot.slane %v10644_v47, 2  ;;  %v9747_v58 = vadd.f32 %v9672_v37, %v17625_v55  ;;  %v17627_v50 = vld [vmem:[#allocation21_spill] sm:$0xff] }
 0x477   : > { %v10636_v18 = vmul.f32 0.01, %v10630_v59  ;;  %v10631_v60 = vadd.f32 %v17162_v1, %v10613_v44  ;;  %v10236_v2 = vpop.f32.mrf.mxu1  ;;  %v9748_v62 = vadd.f32 %v9674_v43, %v17627_v50 }
 0x478   : > { %v10693_v49 = vadd.f32 %v17182_v22, %v10317_v11  ;;  %v10318_v16 = vadd.f32 %v10236_v2, %v9742_v46  ;;  %v10658_v26 = vrot.slane %v10645_v3, 2 }
 0x479   : > { %v10642_v10 = vmax.f32 %v10630_v59, %v10636_v18  ;;  %v10637_v35 = vmul.f32 0.01, %v10631_v60  ;;  %v10238_v30 = vpop.f32.mrf.mxu1 }
 0x47a   : > { %v10699_v28 = vmul.f32 0.01, %v10693_v49  ;;  %v17203_v8 = vadd.f32 %v17193_v0, %v10318_v16  ;;  %v10319_v36 = vadd.f32 %v10238_v30, %v9743_v24 }
 0x47b   : > { %v10654_v39 = vrot.slane %v10642_v10, 2  ;;  %v10643_v21 = vmax.f32 %v10631_v60, %v10637_v35  ;;  %v10616_v34 = vld [vmem:[#allocation4 + $0x88] sm:$0x3]  ;;  %v10673_v41 = vld [vmem:[#allocation4 + $0x88] sm:$0xf0]  ;;  %v10240_v51 = vpop.f32.mrf.mxu1 }
 0x47c   : > { %v10634_v29 = vadd.f32 %v17032_v48, %v10616_v34  ;;  %v10691_v31 = vadd.f32 %v17182_v22, %v10673_v41  ;;  %10355 = vst [vmem:[#allocation4 + $0x28] sm:$0xff] %v10319_v36  ;;  %v10705_v56 = vmax.f32 %v10693_v49, %v10699_v28  ;;  %v10700_v17 = vmul.f32 0.01, %v17203_v8  ;;  %v17624_v48 = vld [vmem:[#allocation12_spill] sm:$0xff] }
 0x47d   : > { %v10656_v4 = vsel %vm17623_vm10, %v10654_v39, %v10655_v63  ;;  %v10657_v61 = vrot.slane %v10643_v21, 2  ;;  %v10320_v45 = vadd.f32 %v10240_v51, %v9744_v23  ;;  %v10244_v25 = vpop.f32.mrf.mxu1  ;;  %v10617_v53 = vld [vmem:[#allocation4 + $0x78] sm:$0x3]  ;;  %v9746_v32 = vadd.f32 %v9670_v42, %v17624_v48  ;;  %v10674_v52 = vld [vmem:[#allocation4 + $0x78] sm:$0xf0] }
 0x47e   : > { %11979 = vst [vmem:[%s16960_s25 + $0xa0] sm:$0xff] %v10656_v4  ;;  %v10640_v9 = vmul.f32 0.01, %v10634_v29  ;;  %v10697_v12 = vmul.f32 0.01, %v10691_v31  ;;  %v10321_v14 = vadd.f32 %v10244_v25, %v9745_v38  ;;  %v10635_v33 = vadd.f32 %v17162_v1, %v10617_v53 }
 0x47f   : > { %v10659_v6 = vsel %vm17626_vm2, %v10657_v61, %v10658_v26  ;;  %10356 = vst [vmem:[#allocation4 + $0xa8] sm:$0xff] %v10320_v45  ;;  %v10246_v20 = vpop.f32.mrf.mxu1  ;;  %v10692_v47 = vadd.f32 %v17193_v0, %v10674_v52  ;;  %v10716_v46 = vrot.slane %v10705_v56, 4  ;;  %v10706_v7 = vmax.f32 %v17203_v8, %v10700_v17 }
 0x480   : > { %11980 = vst [vmem:[%s16960_s25 + $0xa8] sm:$0xff] %v10659_v6  ;;  %v10646_v59 = vmax.f32 %v10634_v29, %v10640_v9  ;;  %v10703_v15 = vmax.f32 %v10691_v31, %v10697_v12  ;;  %v10754_v27 = vadd.f32 %v17208_v57, %v10321_v14  ;;  %v10641_v54 = vmul.f32 0.01, %v10635_v33 }
 0x481   : > { %v10322_v42 = vadd.f32 %v10246_v20, %v9746_v32  ;;  %v10248_v18 = vpop.f32.mrf.mxu1  ;;  %v10698_v1 = vmul.f32 0.01, %v10692_v47  ;;  %v10719_v40 = vrot.slane %v10706_v7, 4 }
 0x482   : > { %v10660_v44 = vrot.slane %v10646_v59, 2  ;;  %v10715_v11 = vrot.slane %v10703_v15, 4  ;;  %v10647_v24 = vmax.f32 %v10635_v33, %v10641_v54  ;;  %v10760_v10 = vmul.f32 0.01, %v10754_v27 }
 0x483   : > { %v10677_v60 = vld [vmem:[#allocation4 + $0x28] sm:$0xf]  ;;  %v10734_v2 = vld [vmem:[#allocation4 + $0x28] sm:$0xc0]  ;;  %v10755_v3 = vadd.f32 %v17216_v19, %v10322_v42  ;;  %v10323_v49 = vadd.f32 %v10248_v18, %v9747_v58  ;;  %v10250_v16 = vpop.f32.mrf.mxu1  ;;  %v10704_v35 = vmax.f32 %v10692_v47, %v10698_v1 }
 0x484   : > { %v10661_v13 = vsel %vm17628_vm14, %v10655_v63, %v10660_v44  ;;  %v10717_v30 = vsel %vm17629_vm3, %v10715_v11, %v10716_v46  ;;  %v10695_v37 = vadd.f32 %v17182_v22, %v10677_v60  ;;  %v10662_v39 = vrot.slane %v10647_v24, 2 }
 0x485   : > { %11981 = vst [vmem:[%s16960_s25 + $0xb0] sm:$0xff] %v10661_v13  ;;  %11983 = vst [vmem:[%s16960_s25 + $0xc0] sm:$0xff] %v10717_v30  ;;  %v10752_v28 = vadd.f32 %v17208_v57, %v10734_v2  ;;  %v10761_v8 = vmul.f32 0.01, %v10755_v3  ;;  %v10718_v36 = vrot.slane %v10704_v35, 4  ;;  %v10324_v38 = vadd.f32 %v10250_v16, %v9748_v62 }
 0x486   : > { %10359 = vst [vmem:[#allocation4 + $0x98] sm:$0xff] %v10323_v49  ;;  %v10701_v23 = vmul.f32 0.01, %v10695_v37  ;;  %v10678_v5 = vld [vmem:[#allocation4 + $0xa8] sm:$0xf]  ;;  %v10663_v63 = vsel %vm17630_vm5, %v10658_v26, %v10662_v39  ;;  %v10766_v41 = vmax.f32 %v10754_v27, %v10760_v10 }
 0x487   : > { %v10758_v21 = vmul.f32 0.01, %v10752_v28  ;;  %v10696_v34 = vadd.f32 %v17193_v0, %v10678_v5  ;;  %v10735_v22 = vld [vmem:[#allocation4 + $0xa8] sm:$0xc0]  ;;  %11982 = vst [vmem:[%s16960_s25 + $0xb8] sm:$0xff] %v10663_v63  ;;  %v10720_v51 = vsel %vm17631_vm15, %v10718_v36, %v10719_v40  ;;  %10360 = vst [vmem:[#allocation4 + $0xd8] sm:$0xff] %v10324_v38  ;;  %v10767_v26 = vmax.f32 %v10755_v3, %v10761_v8 }
 0x488   : > { %v10707_v4 = vmax.f32 %v10695_v37, %v10701_v23  ;;  %v10753_v29 = vadd.f32 %v17216_v19, %v10735_v22  ;;  %11984 = vst [vmem:[%s16960_s25 + $0xc8] sm:$0xff] %v10720_v51  ;;  %v10777_v25 = vrot.slane %v10766_v41, 6 }
 0x489   : > { %v10764_v31 = vmax.f32 %v10752_v28, %v10758_v21  ;;  %v10702_v61 = vmul.f32 0.01, %v10696_v34  ;;  %v10780_v55 = vrot.slane %v10767_v26, 6 }
 0x48a   : > { %v10721_v56 = vrot.slane %v10707_v4, 4  ;;  %v10759_v17 = vmul.f32 0.01, %v10753_v29 }
 0x48b   : > { %v10776_v45 = vrot.slane %v10764_v31, 6  ;;  %v10708_v0 = vmax.f32 %v10696_v34, %v10702_v61 }
 0x48c   : > { %v10722_v43 = vsel %vm17632_vm13, %v10716_v46, %v10721_v56  ;;  %v10765_v9 = vmax.f32 %v10753_v29, %v10759_v17 }
 0x48d   : > { %v10738_v12 = vld [vmem:[#allocation4 + $0x98] sm:$0x3f]  ;;  %11985 = vst [vmem:[%s16960_s25 + $0xd0] sm:$0xff] %v10722_v43  ;;  %v10723_v53 = vrot.slane %v10708_v0, 4  ;;  %v10778_v14 = vsel %vm17633_vm6, %v10776_v45, %v10777_v25 }
 0x48e   : > { %v10756_v48 = vadd.f32 %v17208_v57, %v10738_v12  ;;  %v10779_v32 = vrot.slane %v10765_v9, 6  ;;  %11987 = vst [vmem:[%s16960_s25 + $0xe0] sm:$0xff] %v10778_v14  ;;  %v10739_v33 = vld [vmem:[#allocation4 + $0xd8] sm:$0x3f] }
 0x48f   : > { %v10724_v58 = vsel %vm17634_vm11, %v10719_v40, %v10723_v53  ;;  %v10757_v20 = vadd.f32 %v17216_v19, %v10739_v33 }
 0x490   : > { %v10762_v6 = vmul.f32 0.01, %v10756_v48  ;;  %11986 = vst [vmem:[%s16960_s25 + $0xd8] sm:$0xff] %v10724_v58  ;;  %v10781_v52 = vsel %vm17635_vm8, %v10779_v32, %v10780_v55 }
 0x491   : > { %11988 = vst [vmem:[%s16960_s25 + $0xe8] sm:$0xff] %v10781_v52  ;;  %v10763_v15 = vmul.f32 0.01, %v10757_v20 }
 0x492   : > { %v10768_v59 = vmax.f32 %v10756_v48, %v10762_v6 }
 0x493   : > { %v10769_v27 = vmax.f32 %v10757_v20, %v10763_v15 }
 0x494   : > { %v10782_v47 = vrot.slane %v10768_v59, 6 }
 0x495   : > { %v10784_v50 = vrot.slane %v10769_v27, 6 }
 0x496   : > { %v10783_v57 = vsel %vm17636_vm1, %v10777_v25, %v10782_v47 }
 0x497   : > { %11989 = vst [vmem:[%s16960_s25 + $0xf0] sm:$0xff] %v10783_v57  ;;  %v10785_v62 = vsel %vm17637_vm12, %v10780_v55, %v10784_v50 }
 0x498   : > { %11990 = vst [vmem:[%s16960_s25 + $0xf8] sm:$0xff] %v10785_v62 }
 0x499 PF: > { %s15_s18 = sadd.s32 1, %s12858_s18  }
 0x49a   : > { %p12_p4 = scmp.ge.s32.totalorder %s15_s18, 4  }
 0x49c   :  { %14 = sbr.rel (!%p12_p4) target bundleno = 1 (0x1), region = 93 }

</bundles_post_ra>
